<compile_context>
chip_gen: v7x
topology: tpu7x:2x2x1
jax: 0.10.0
libtpu: 0.0.40
codegen_flags: <defaults>
</compile_context>

<pallas_src>
import functools
import math

import numpy as np

import jax
import jax.numpy as jnp
from jax import lax
from jax.experimental import pallas as pl
from jax.experimental.pallas import tpu as pltpu


# ---------------------------------------------------------------- utilities

@functools.lru_cache(maxsize=None)
def _vmem_limit():
    """Generation-aware scoped-VMEM budget (v5e/v6e: 128 MiB phys, v7x: 64 MiB)."""
    cap = 64 * 1024 * 1024
    try:
        info_fn = getattr(pltpu, "get_tpu_info", None)
        if info_fn is not None:
            cap = int(getattr(info_fn(), "vmem_capacity_bytes", cap) or cap)
    except Exception:
        pass
    return max(32 * 1024 * 1024, min(int(cap * 0.7), 96 * 1024 * 1024))


def _row_plan(rows, target=512):
    """Pick (row_tile, padded_rows) so the grid has >=2 pipelined steps when possible."""
    if rows < 16:
        return rows, rows
    upper = min(target, rows // 2)
    upper -= upper % 8
    for t in range(upper, 7, -8):
        if rows % t == 0:
            return t, rows
    t = max(upper, 8)
    rows_p = -(-rows // t) * t
    return t, rows_p


def _gelu(x):
    # exact (erf) GELU, matching torch.nn.GELU default
    return 0.5 * x * (1.0 + lax.erf(x * 0.7071067811865476))


@functools.lru_cache(maxsize=None)
def _dft_mats_np(S):
    """Real rfft2 / irfft2 over an (S, S) grid as four real matrices (numpy constants).

    spec_re = F_re @ x_flat ; spec_im = F_im @ x_flat   (x_flat: (S*S, C), row-major h*S+w)
    y_flat  = G_re @ spec_re + G_im @ spec_im           (exactly reproduces np.fft.irfft2)
    """
    Sr = S // 2 + 1
    eye_sp = np.eye(S * S, dtype=np.float64).reshape(S * S, S, S)
    fwd = np.fft.rfft2(eye_sp, axes=(1, 2)).reshape(S * S, S * Sr)
    f_re = np.ascontiguousarray(fwd.real.T).astype(np.float32)      # (S*Sr, S*S)
    f_im = np.ascontiguousarray(fwd.imag.T).astype(np.float32)
    eye_fr = np.eye(S * Sr, dtype=np.float64).reshape(S * Sr, S, Sr)
    g_re = np.fft.irfft2(eye_fr, s=(S, S), axes=(1, 2)).reshape(S * Sr, S * S)
    g_im = np.fft.irfft2(1j * eye_fr, s=(S, S), axes=(1, 2)).reshape(S * Sr, S * S)
    g_re = np.ascontiguousarray(g_re.T).astype(np.float32)          # (S*S, S*Sr)
    g_im = np.ascontiguousarray(g_im.T).astype(np.float32)
    return f_re, f_im, g_re, g_im


@functools.lru_cache(maxsize=None)
def _shift_mats_np(H, W, k):
    """(k*k, H*W, H*W) 0/1 matrices: T[t] @ x_flat == x shifted by tap t with zero padding."""
    pad = k // 2
    n = H * W
    t_all = np.zeros((k * k, n, n), dtype=np.float32)
    for kh in range(k):
        for kw in range(k):
            t = kh * k + kw
            dh, dw = kh - pad, kw - pad
            for h in range(H):
                hh = h + dh
                if hh < 0 or hh >= H:
                    continue
                for w in range(W):
                    ww = w + dw
                    if ww < 0 or ww >= W:
                        continue
                    t_all[t, h * W + w, hh * W + ww] = 1.0
    return t_all


# ------------------------------ fused LayerNorm1 + SFMA adapter (one region) ------------------

def _sfma_region_kernel(x_ref, lng_ref, lnb_ref, wdn_ref, bdn_ref,
                        t5_ref, w5_ref, b5_ref,
                        fre_ref, fim_ref, t3_ref, w3_ref, b3_ref,
                        wint_ref, bint_ref, gre_ref, gim_ref,
                        wup_ref, bup_ref,
                        out_ref, dn_ref, gy_ref, *, M, factor, eps):
    # ---- LayerNorm1 ----
    x = x_ref[0]                                                     # (L, D)
    mu = jnp.mean(x, axis=-1, keepdims=True)
    xc = x - mu
    var = jnp.mean(xc * xc, axis=-1, keepdims=True)
    xn = xc * lax.rsqrt(var + eps) * lng_ref[...] + lnb_ref[...]

    # ---- s_down1 | s_down2 | f_down as one lane-dense (D, 3M) matmul into VMEM scratch ----
    dn_ref[...] = (jnp.dot(xn.astype(jnp.bfloat16), wdn_ref[...],
                           preferred_element_type=jnp.float32) + bdn_ref[...])
    sd1 = dn_ref[:, :M]                                              # (L, M)
    sd2 = dn_ref[:, M:2 * M]
    fdn = dn_ref[:, 2 * M:]

    # ---- spatial branch: depthwise 5x5 (shift-matrix matmuls) -> * s_down2 -> ReLU ----
    w5 = w5_ref[...]                                                 # (25, M)
    sacc = jnp.zeros_like(sd1)
    for t in range(25):
        sacc = sacc + jnp.dot(t5_ref[t], sd1,
                              preferred_element_type=jnp.float32) * w5[t:t + 1, :]
    gy_ref[:, :M] = jnp.maximum((sacc + b5_ref[...]) * sd2, 0.0)     # s_relu

    # ---- frequency branch: rDFT -> |.| -> dw3x3 -> ReLU -> 1x1 -> sigmoid gate -> irDFT ----
    re = jnp.dot(fre_ref[...], fdn, preferred_element_type=jnp.float32)   # (Q, M)
    im = jnp.dot(fim_ref[...], fdn, preferred_element_type=jnp.float32)
    amp = jnp.sqrt(re * re + im * im)
    w3 = w3_ref[...]                                                 # (9, M)
    facc = jnp.zeros_like(amp)
    for t in range(9):
        facc = facc + jnp.dot(t3_ref[t], amp,
                              preferred_element_type=jnp.float32) * w3[t:t + 1, :]
    facc = jnp.maximum(facc + b3_ref[...], 0.0)                      # f_relu1
    mod = (jnp.dot(facc.astype(jnp.bfloat16), wint_ref[...],
                   preferred_element_type=jnp.float32) + bint_ref[...])
    gate = jax.nn.sigmoid(mod)
    # amp*sg(mod)*cos(phs) == re*sg(mod) ; amp*sg(mod)*sin(phs) == im*sg(mod)
    y = (jnp.dot(gre_ref[...], re * gate, preferred_element_type=jnp.float32)
         + jnp.dot(gim_ref[...], im * gate, preferred_element_type=jnp.float32))  # (L, M)
    gy_ref[:, M:] = jnp.maximum(y, 0.0)                              # f_relu2

    # ---- [s_up | f_up] as one K=2M matmul + SFMA residual onto the LN1 output ----
    modout = (jnp.dot(gy_ref[...].astype(jnp.bfloat16), wup_ref[...],
                      preferred_element_type=jnp.float32) + bup_ref[...])
    out_ref[0] = xn + modout * factor


def sfma_region(x_r, p, S, factor, eps=1e-5):
    """LayerNorm1 + SFMA adapter on one square token region (B, S*S, D) -> (B, S*S, D)."""
    B, Lr, D = x_r.shape
    sp = p["sfma"]
    M = sp["w_sd1"].shape[1]
    Sr = S // 2 + 1
    Q = S * Sr
    assert Lr == S * S

    f_re_np, f_im_np, g_re_np, g_im_np = _dft_mats_np(S)
    f_re, f_im = jnp.asarray(f_re_np), jnp.asarray(f_im_np)
    g_re, g_im = jnp.asarray(g_re_np), jnp.asarray(g_im_np)
    t5 = jnp.asarray(_shift_mats_np(S, S, 5))                        # (25, Lr, Lr)
    t3 = jnp.asarray(_shift_mats_np(S, Sr, 3))                       # (9, Q, Q)

    w_down = jnp.concatenate([sp["w_sd1"], sp["w_sd2"], sp["w_fdown"]],
                             axis=1).astype(jnp.bfloat16)            # (D, 3M)
    b_down = jnp.concatenate([sp["b_sd1"], sp["b_sd2"], sp["b_fdown"]]).reshape(1, 3 * M)
    w_up = jnp.concatenate([sp["w_sup"], sp["w_fup"]], axis=0).astype(jnp.bfloat16)  # (2M, D)
    b_up = (sp["b_sup"] + sp["b_fup"]).reshape(1, D)

    c2 = lambda b: (0, 0)
    c3 = lambda b: (0, 0, 0)
    kern = functools.partial(_sfma_region_kernel, M=M, factor=float(factor), eps=eps)
    # TODO(synk): grid is only (B,); add a batch x row axis for better pipelining at larger B/S.
    return pl.pallas_call(
        kern,
        out_shape=jax.ShapeDtypeStruct((B, Lr, D), jnp.float32),
        grid=(B,),
        in_specs=[pl.BlockSpec((1, Lr, D), lambda b: (b, 0, 0)),
                  pl.BlockSpec((1, D), c2),
                  pl.BlockSpec((1, D), c2),
                  pl.BlockSpec((D, 3 * M), c2),
                  pl.BlockSpec((1, 3 * M), c2),
                  pl.BlockSpec((25, Lr, Lr), c3),
                  pl.BlockSpec((25, M), c2),
                  pl.BlockSpec((1, M), c2),
                  pl.BlockSpec((Q, Lr), c2),
                  pl.BlockSpec((Q, Lr), c2),
                  pl.BlockSpec((9, Q, Q), c3),
                  pl.BlockSpec((9, M), c2),
                  pl.BlockSpec((1, M), c2),
                  pl.BlockSpec((M, M), c2),
                  pl.BlockSpec((1, M), c2),
                  pl.BlockSpec((Lr, Q), c2),
                  pl.BlockSpec((Lr, Q), c2),
                  pl.BlockSpec((2 * M, D), c2),
                  pl.BlockSpec((1, D), c2)],
        out_specs=pl.BlockSpec((1, Lr, D), lambda b: (b, 0, 0)),
        scratch_shapes=[pltpu.VMEM((Lr, 3 * M), jnp.float32),
                        pltpu.VMEM((Lr, 2 * M), jnp.float32)],
        compiler_params=pltpu.CompilerParams(dimension_semantics=("parallel",),
                                             vmem_limit_bytes=_vmem_limit()),
    )(x_r, p["ln1_g"].reshape(1, D), p["ln1_b"].reshape(1, D), w_down, b_down,
      t5, sp["w_sdw"].reshape(25, M), sp["b_sdw"].reshape(1, M),
      f_re, f_im, t3, sp["w_fdw"].reshape(9, M), sp["b_fdw"].reshape(1, M),
      sp["w_finter"].astype(jnp.bfloat16), sp["b_finter"].reshape(1, M),
      g_re, g_im, w_up, b_up)


# ------------------------------ fused attention (qkv + softmax + proj + residual) -------------

def _attn_kernel(xn_ref, xo_ref, wqkv_ref, bqkv_ref, wproj_ref, bproj_ref,
                 o_ref, p_ref, qkv_s, ov_s, *, num_heads, scale):
    xn = xn_ref[0]                                                   # (N, D)
    D = xn.shape[-1]
    hd = D // num_heads
    # qkv staged in VMEM scratch (never a live (N, 3D) f32 value -> no vreg spill)
    qkv_s[...] = (jnp.dot(xn.astype(jnp.bfloat16), wqkv_ref[...],
                          preferred_element_type=jnp.float32) + bqkv_ref[...])
    for h in range(num_heads):
        q = qkv_s[:, h * hd:(h + 1) * hd]
        k = qkv_s[:, D + h * hd:D + (h + 1) * hd]
        v = qkv_s[:, 2 * D + h * hd:2 * D + (h + 1) * hd]
        s = lax.dot_general(q.astype(jnp.bfloat16), k.astype(jnp.bfloat16),
                            (((1,), (1,)), ((), ())),
                            preferred_element_type=jnp.float32) * scale
        m = jnp.max(s, axis=-1, keepdims=True)
        e = jnp.exp(s - m)
        pr = e / jnp.sum(e, axis=-1, keepdims=True)                  # exact softmax (map is output)
        p_ref[0, h] = pr
        ov_s[:, h * hd:(h + 1) * hd] = jnp.dot(pr.astype(jnp.bfloat16), v.astype(jnp.bfloat16),
                                               preferred_element_type=jnp.float32)
    # single merged (N, D) @ (D, D) output projection + residual
    o_ref[0] = (xo_ref[0]
                + jnp.dot(ov_s[...].astype(jnp.bfloat16), wproj_ref[...],
                          preferred_element_type=jnp.float32)
                + bproj_ref[...])


def attention_block(xn, x_ori, p, num_heads):
    B, N, D = xn.shape
    hd = D // num_heads
    scale = hd ** -0.5
    out, attn = pl.pallas_call(
        functools.partial(_attn_kernel, num_heads=num_heads, scale=scale),
        out_shape=(jax.ShapeDtypeStruct((B, N, D), jnp.float32),
                   jax.ShapeDtypeStruct((B, num_heads, N, N), jnp.float32)),
        grid=(B,),
        in_specs=[pl.BlockSpec((1, N, D), lambda b: (b, 0, 0)),
                  pl.BlockSpec((1, N, D), lambda b: (b, 0, 0)),
                  pl.BlockSpec((D, 3 * D), lambda b: (0, 0)),
                  pl.BlockSpec((1, 3 * D), lambda b: (0, 0)),
                  pl.BlockSpec((D, D), lambda b: (0, 0)),
                  pl.BlockSpec((1, D), lambda b: (0, 0))],
        out_specs=(pl.BlockSpec((1, N, D), lambda b: (b, 0, 0)),
                   pl.BlockSpec((1, num_heads, N, N), lambda b: (b, 0, 0, 0))),
        scratch_shapes=[pltpu.VMEM((N, 3 * D), jnp.float32),
                        pltpu.VMEM((N, D), jnp.float32)],
        compiler_params=pltpu.CompilerParams(dimension_semantics=("parallel",),
                                             vmem_limit_bytes=_vmem_limit()),
    )(xn, x_ori,
      p["w_qkv"].astype(jnp.bfloat16), p["b_qkv"].reshape(1, 3 * D),
      p["w_proj"].astype(jnp.bfloat16), p["b_proj"].reshape(1, D))
    return out, attn


# ------------------------------ fused MLP: LN2 + fc1 + GELU + fc2 + residual ------------------

def _mlp_kernel(x_ref, g_ref, b_ref, w1_ref, b1_ref, w2_ref, b2_ref, o_ref, *, eps):
    x = x_ref[...]
    mu = jnp.mean(x, axis=-1, keepdims=True)
    xc = x - mu
    var = jnp.mean(xc * xc, axis=-1, keepdims=True)
    xn = xc * lax.rsqrt(var + eps) * g_ref[...] + b_ref[...]
    h = jnp.dot(xn.astype(jnp.bfloat16), w1_ref[...],
                preferred_element_type=jnp.float32) + b1_ref[...]
    h = _gelu(h)
    y = jnp.dot(h.astype(jnp.bfloat16), w2_ref[...],
                preferred_element_type=jnp.float32) + b2_ref[...]
    o_ref[...] = x + y


def mlp_block(x, p, eps=1e-5):
    B, L, D = x.shape
    H = p["w_fc1"].shape[1]
    rows = B * L
    tm, rows_p = _row_plan(rows, target=256)
    xf = x.reshape(rows, D)
    if rows_p != rows:
        xf = jnp.pad(xf, ((0, rows_p - rows), (0, 0)))
    out = pl.pallas_call(
        functools.partial(_mlp_kernel, eps=eps),
        out_shape=jax.ShapeDtypeStruct((rows_p, D), jnp.float32),
        grid=(rows_p // tm,),
        in_specs=[pl.BlockSpec((tm, D), lambda i: (i, 0)),
                  pl.BlockSpec((1, D), lambda i: (0, 0)),
                  pl.BlockSpec((1, D), lambda i: (0, 0)),
                  pl.BlockSpec((D, H), lambda i: (0, 0)),
                  pl.BlockSpec((1, H), lambda i: (0, 0)),
                  pl.BlockSpec((H, D), lambda i: (0, 0)),
                  pl.BlockSpec((1, D), lambda i: (0, 0))],
        out_specs=pl.BlockSpec((tm, D), lambda i: (i, 0)),
        compiler_params=pltpu.CompilerParams(dimension_semantics=("parallel",),
                                             vmem_limit_bytes=_vmem_limit()),
    )(xf, p["ln2_g"].reshape(1, D), p["ln2_b"].reshape(1, D),
      p["w_fc1"].astype(jnp.bfloat16), p["b_fc1"].reshape(1, H),
      p["w_fc2"].astype(jnp.bfloat16), p["b_fc2"].reshape(1, D))
    if rows_p != rows:
        out = out[:rows]
    return out.reshape(B, L, D)


# ------------------------------ token gather (candidate_elimination_prompt) -------------------

def ce_prompt(tokens, lens_t, gi_s):
    t = tokens[:, :lens_t]
    s = tokens[:, lens_t:]
    idx = gi_s.astype(jnp.int32)[..., None]
    idx = jnp.broadcast_to(idx, (s.shape[0], idx.shape[1], s.shape[2]))
    g = jnp.take_along_axis(s, idx, axis=1)
    return jnp.concatenate([t, g], axis=1)


# ------------------------------ CEBlock forward ------------------------------------------------

def ce_block_forward(x, gi_t, gi_s, p, *, num_heads, keep_ratio_search=1.0, adapt_factor=1.0):
    B, L, D = x.shape
    lens_t = gi_t.shape[1]
    lens_s = L - lens_t
    St = int(round(math.sqrt(lens_t)))
    Ss = int(round(math.sqrt(lens_s)))
    assert St * St == lens_t and Ss * Ss == lens_s, "SFMA requires square token grids"

    # LayerNorm1 + full SFMA adapter, fully fused per region (template / search)
    xt_t = sfma_region(x[:, :lens_t], p, St, adapt_factor)
    xt_s = sfma_region(x[:, lens_t:], p, Ss, adapt_factor)
    x_tilde = jnp.concatenate([xt_t, xt_s], axis=1)

    xn_prompt = ce_prompt(x_tilde, lens_t, gi_s)
    x_ori = ce_prompt(x, lens_t, gi_s)

    # qkv + per-head softmax(QK^T)V + merged output projection + residual, fused
    x_new, attn = attention_block(xn_prompt, x_ori, p, num_heads)

    removed_index_search = None
    # keep_ratio_search == 1.0 -> candidate_elimination branch not taken (matches reference).

    x_out = mlp_block(x_new, p)   # LN2 + fc1 + GELU + fc2 + residual fused
    return x_out, gi_t, gi_s, removed_index_search, attn


# ------------------------------ deterministic parameter init -----------------------------------

def init_params(key, dim, mlp_ratio, middle_dim):
    keys = jax.random.split(key, 32)

    def nrm(k, shape, scale=0.02):
        return (scale * jax.random.normal(k, shape)).astype(jnp.float32)

    hidden = int(dim * mlp_ratio)
    return {
        "ln1_g": jnp.ones((dim,), jnp.float32), "ln1_b": jnp.zeros((dim,), jnp.float32),
        "ln2_g": jnp.ones((dim,), jnp.float32), "ln2_b": jnp.zeros((dim,), jnp.float32),
        "w_qkv": nrm(keys[0], (dim, 3 * dim)),
        "b_qkv": jnp.zeros((3 * dim,), jnp.float32),      # qkv_bias=False
        "w_proj": nrm(keys[1], (dim, dim)), "b_proj": nrm(keys[2], (dim,)),
        "w_fc1": nrm(keys[3], (dim, hidden)), "b_fc1": nrm(keys[4], (hidden,)),
        "w_fc2": nrm(keys[5], (hidden, dim)), "b_fc2": nrm(keys[6], (dim,)),
        "sfma": {
            "w_sd1": nrm(keys[7], (dim, middle_dim)), "b_sd1": nrm(keys[8], (middle_dim,)),
            "w_sd2": nrm(keys[9], (dim, middle_dim)), "b_sd2": nrm(keys[10], (middle_dim,)),
            "w_sdw": nrm(keys[11], (5, 5, middle_dim)), "b_sdw": nrm(keys[12], (middle_dim,)),
            "w_sup": nrm(keys[13], (middle_dim, dim)), "b_sup": nrm(keys[14], (dim,)),
            "w_fdown": nrm(keys[15], (dim, middle_dim)), "b_fdown": nrm(keys[16], (middle_dim,)),
            "w_fup": nrm(keys[17], (middle_dim, dim)), "b_fup": nrm(keys[18], (dim,)),
            "w_fdw": nrm(keys[19], (3, 3, middle_dim)), "b_fdw": nrm(keys[20], (middle_dim,)),
            "w_finter": nrm(keys[21], (middle_dim, middle_dim)),
            "b_finter": nrm(keys[22], (middle_dim,)),
        },
    }


if __name__ == "__main__":
    B = 2
    dim = 128          # lane-dense channel dim; head_dim = 64
    num_heads = 2
    mlp_ratio = 4.0
    middle_dim = 64    # SFMA(in_dim=dim, middle_dim=dim//2)
    lens_t = 16        # 4x4 template tokens (perfect square, required by SFMA)
    lens_s = 64        # 8x8 search tokens
    L = lens_t + lens_s

    key = jax.random.PRNGKey(0)
    kx, kp = jax.random.split(key)
    x = (0.1 * jax.random.normal(kx, (B, L, dim))).astype(jnp.float32)
    gi_t = jnp.tile(jnp.arange(lens_t, dtype=jnp.int32)[None], (B, 1))
    gi_s = jnp.tile(jnp.arange(lens_s, dtype=jnp.int32)[None], (B, 1))

    params = init_params(kp, dim, mlp_ratio, middle_dim)

    fwd = jax.jit(functools.partial(ce_block_forward, num_heads=num_heads,
                                    keep_ratio_search=1.0, adapt_factor=1.0))
    x_out, gi_t_out, gi_s_out, removed, attn = fwd(x, gi_t, gi_s, params)
    jax.block_until_ready((x_out, attn))

    assert x_out.shape == (B, L, dim)
    assert attn.shape == (B, num_heads, L, L)
    assert removed is None
    print("KERNEL_OK")
</pallas_src>

<mosaic_0001>
module attributes {stable_mosaic.version = 11 : i64} {
  func.func private @main(%arg0: i32) attributes {dimension_semantics = [#tpu.dimension_semantics<core_parallel>], iteration_bounds = array<i64: 2>, tpu.core_type = #tpu.core_type<sc_scalar_subcore>, window_params = []} {
    return
  }
}

module attributes {stable_mosaic.version = 11 : i64} {
  func.func private @main(%arg0: i32) attributes {dimension_semantics = [#tpu.dimension_semantics<core_parallel>], iteration_bounds = array<i64: 2>, tpu.core_type = #tpu.core_type<sc_scalar_subcore>, window_params = []} {
    return
  }
}

module attributes {stable_mosaic.version = 11 : i64} {
  func.func @_sfma_region_kernel(%arg0: i32, %arg1: memref<1x64x128xf32, #tpu.memory_space<vmem>>, %arg2: memref<1x128xf32, #tpu.memory_space<vmem>>, %arg3: memref<1x128xf32, #tpu.memory_space<vmem>>, %arg4: memref<128x192xbf16, #tpu.memory_space<vmem>>, %arg5: memref<1x192xf32, #tpu.memory_space<vmem>>, %arg6: memref<25x64x64xf32, #tpu.memory_space<vmem>>, %arg7: memref<25x64xf32, #tpu.memory_space<vmem>>, %arg8: memref<1x64xf32, #tpu.memory_space<vmem>>, %arg9: memref<40x64xf32, #tpu.memory_space<vmem>>, %arg10: memref<40x64xf32, #tpu.memory_space<vmem>>, %arg11: memref<9x40x40xf32, #tpu.memory_space<vmem>>, %arg12: memref<9x64xf32, #tpu.memory_space<vmem>>, %arg13: memref<1x64xf32, #tpu.memory_space<vmem>>, %arg14: memref<64x64xbf16, #tpu.memory_space<vmem>>, %arg15: memref<1x64xf32, #tpu.memory_space<vmem>>, %arg16: memref<64x40xf32, #tpu.memory_space<vmem>>, %arg17: memref<64x40xf32, #tpu.memory_space<vmem>>, %arg18: memref<128x128xbf16, #tpu.memory_space<vmem>>, %arg19: memref<1x128xf32, #tpu.memory_space<vmem>>, %arg20: memref<1x64x128xf32, #tpu.memory_space<vmem>>, %arg21: memref<64x192xf32, #tpu.memory_space<vmem>>, %arg22: memref<64x128xf32, #tpu.memory_space<vmem>>) attributes {dimension_semantics = [#tpu.dimension_semantics<parallel>], iteration_bounds = array<i64: 2>, scalar_prefetch = 0 : i64, scratch_operands = 2 : i64, tpu.core_type = #tpu.core_type<tc>, window_params = [{transform_indices = @transform_0, window_bounds = array<i64: 1, 64, 128>}, {pipeline_mode = #tpu.pipeline_mode<synchronous>, transform_indices = @transform_1, window_bounds = array<i64: 1, 128>}, {pipeline_mode = #tpu.pipeline_mode<synchronous>, transform_indices = @transform_2, window_bounds = array<i64: 1, 128>}, {pipeline_mode = #tpu.pipeline_mode<synchronous>, transform_indices = @transform_3, window_bounds = array<i64: 128, 192>}, {pipeline_mode = #tpu.pipeline_mode<synchronous>, transform_indices = @transform_4, window_bounds = array<i64: 1, 192>}, {pipeline_mode = #tpu.pipeline_mode<synchronous>, transform_indices = @transform_5, window_bounds = array<i64: 25, 64, 64>}, {pipeline_mode = #tpu.pipeline_mode<synchronous>, transform_indices = @transform_6, window_bounds = array<i64: 25, 64>}, {pipeline_mode = #tpu.pipeline_mode<synchronous>, transform_indices = @transform_7, window_bounds = array<i64: 1, 64>}, {pipeline_mode = #tpu.pipeline_mode<synchronous>, transform_indices = @transform_8, window_bounds = array<i64: 40, 64>}, {pipeline_mode = #tpu.pipeline_mode<synchronous>, transform_indices = @transform_9, window_bounds = array<i64: 40, 64>}, {pipeline_mode = #tpu.pipeline_mode<synchronous>, transform_indices = @transform_10, window_bounds = array<i64: 9, 40, 40>}, {pipeline_mode = #tpu.pipeline_mode<synchronous>, transform_indices = @transform_11, window_bounds = array<i64: 9, 64>}, {pipeline_mode = #tpu.pipeline_mode<synchronous>, transform_indices = @transform_12, window_bounds = array<i64: 1, 64>}, {pipeline_mode = #tpu.pipeline_mode<synchronous>, transform_indices = @transform_13, window_bounds = array<i64: 64, 64>}, {pipeline_mode = #tpu.pipeline_mode<synchronous>, transform_indices = @transform_14, window_bounds = array<i64: 1, 64>}, {pipeline_mode = #tpu.pipeline_mode<synchronous>, transform_indices = @transform_15, window_bounds = array<i64: 64, 40>}, {pipeline_mode = #tpu.pipeline_mode<synchronous>, transform_indices = @transform_16, window_bounds = array<i64: 64, 40>}, {pipeline_mode = #tpu.pipeline_mode<synchronous>, transform_indices = @transform_17, window_bounds = array<i64: 128, 128>}, {pipeline_mode = #tpu.pipeline_mode<synchronous>, transform_indices = @transform_18, window_bounds = array<i64: 1, 128>}, {transform_indices = @transform_19, window_bounds = array<i64: 1, 64, 128>}]} {
    %c0 = arith.constant 0 : index
    %c0_0 = arith.constant 0 : index
    %c0_1 = arith.constant 0 : index
    %0 = vector.load %arg1[%c0, %c0_0, %c0_1] : memref<1x64x128xf32, #tpu.memory_space<vmem>>, vector<1x64x128xf32>
    %1 = vector.shape_cast %0 : vector<1x64x128xf32> to vector<64x128xf32>
    %cst = arith.constant dense<0.000000e+00> : vector<64xf32>
    %2 = vector.multi_reduction <add>, %1, %cst [1] : vector<64x128xf32> to vector<64xf32>
    %3 = vector.shape_cast %2 : vector<64xf32> to vector<64x1xf32>
    %cst_2 = arith.constant 1.280000e+02 : f32
    %4 = vector.broadcast %cst_2 : f32 to vector<64x1xf32>
    %5 = arith.divf %3, %4 : vector<64x1xf32>
    %6 = vector.broadcast %5 : vector<64x1xf32> to vector<64x128xf32>
    %7 = arith.subf %1, %6 : vector<64x128xf32>
    %8 = arith.mulf %7, %7 : vector<64x128xf32>
    %cst_3 = arith.constant dense<0.000000e+00> : vector<64xf32>
    %9 = vector.multi_reduction <add>, %8, %cst_3 [1] : vector<64x128xf32> to vector<64xf32>
    %10 = vector.shape_cast %9 : vector<64xf32> to vector<64x1xf32>
    %cst_4 = arith.constant 1.280000e+02 : f32
    %11 = vector.broadcast %cst_4 : f32 to vector<64x1xf32>
    %12 = arith.divf %10, %11 : vector<64x1xf32>
    %cst_5 = arith.constant 9.99999974E-6 : f32
    %13 = vector.broadcast %cst_5 : f32 to vector<64x1xf32>
    %14 = arith.addf %12, %13 : vector<64x1xf32>
    %15 = math.rsqrt %14 : vector<64x1xf32>
    %16 = vector.broadcast %15 : vector<64x1xf32> to vector<64x128xf32>
    %17 = arith.mulf %7, %16 : vector<64x128xf32>
    %c0_6 = arith.constant 0 : index
    %c0_7 = arith.constant 0 : index
    %18 = vector.load %arg2[%c0_6, %c0_7] : memref<1x128xf32, #tpu.memory_space<vmem>>, vector<1x128xf32>
    %19 = vector.broadcast %18 : vector<1x128xf32> to vector<64x128xf32>
    %20 = arith.mulf %17, %19 : vector<64x128xf32>
    %c0_8 = arith.constant 0 : index
    %c0_9 = arith.constant 0 : index
    %21 = vector.load %arg3[%c0_8, %c0_9] : memref<1x128xf32, #tpu.memory_space<vmem>>, vector<1x128xf32>
    %22 = vector.broadcast %21 : vector<1x128xf32> to vector<64x128xf32>
    %23 = arith.addf %20, %22 : vector<64x128xf32>
    %24 = arith.truncf %23 : vector<64x128xf32> to vector<64x128xbf16>
    %c0_10 = arith.constant 0 : index
    %c0_11 = arith.constant 0 : index
    %25 = vector.load %arg4[%c0_10, %c0_11] : memref<128x192xbf16, #tpu.memory_space<vmem>>, vector<128x192xbf16>
    %cst_12 = arith.constant dense<0.000000e+00> : vector<64x192xf32>
    %26 = tpu.matmul %24, %25, %cst_12 {dimension_numbers = #tpu.dot_dimension_numbers<[1], [0], [0], [1], [0, 0, 1, 1], [], []>} : vector<64x128xbf16>, vector<128x192xbf16>, vector<64x192xf32> -> vector<64x192xf32>
    %c0_13 = arith.constant 0 : index
    %c0_14 = arith.constant 0 : index
    %27 = vector.load %arg5[%c0_13, %c0_14] : memref<1x192xf32, #tpu.memory_space<vmem>>, vector<1x192xf32>
    %28 = vector.broadcast %27 : vector<1x192xf32> to vector<64x192xf32>
    %29 = arith.addf %26, %28 : vector<64x192xf32>
    %c0_15 = arith.constant 0 : index
    %c0_16 = arith.constant 0 : index
    %30 = vector.load %arg21[%c0_15, %c0_16] : memref<64x192xf32, #tpu.memory_space<vmem>>, vector<64x192xf32>
    tpu.vector_store %arg21[%c0_15, %c0_16], %29 {strides = array<i32>} : memref<64x192xf32, #tpu.memory_space<vmem>>, vector<64x192xf32>,
    %c0_17 = arith.constant 0 : index
    %c0_18 = arith.constant 0 : index
    %31 = vector.load %arg21[%c0_17, %c0_18] : memref<64x192xf32, #tpu.memory_space<vmem>>, vector<64x64xf32>
    %c0_19 = arith.constant 0 : index
    %c64 = arith.constant 64 : index
    %32 = vector.load %arg21[%c0_19, %c64] : memref<64x192xf32, #tpu.memory_space<vmem>>, vector<64x64xf32>
    %c0_20 = arith.constant 0 : index
    %c128 = arith.constant 128 : index
    %33 = vector.load %arg21[%c0_20, %c128] : memref<64x192xf32, #tpu.memory_space<vmem>>, vector<64x64xf32>
    %c0_21 = arith.constant 0 : index
    %c0_22 = arith.constant 0 : index
    %34 = vector.load %arg7[%c0_21, %c0_22] : memref<25x64xf32, #tpu.memory_space<vmem>>, vector<25x64xf32>
    %cst_23 = arith.constant 0.000000e+00 : f32
    %35 = vector.broadcast %cst_23 : f32 to vector<64x64xf32>
    %c0_24 = arith.constant 0 : index
    %c0_25 = arith.constant 0 : index
    %c0_26 = arith.constant 0 : index
    %36 = vector.load %arg6[%c0_24, %c0_25, %c0_26] : memref<25x64x64xf32, #tpu.memory_space<vmem>>, vector<1x64x64xf32>
    %37 = vector.shape_cast %36 : vector<1x64x64xf32> to vector<64x64xf32>
    %cst_27 = arith.constant dense<0.000000e+00> : vector<64x64xf32>
    %38 = tpu.matmul %37, %31, %cst_27 {dimension_numbers = #tpu.dot_dimension_numbers<[1], [0], [0], [1], [0, 0, 1, 1], [], []>} : vector<64x64xf32>, vector<64x64xf32>, vector<64x64xf32> -> vector<64x64xf32>
    %39 = vector.extract_strided_slice %34 {offsets = [0, 0], sizes = [1, 64], strides = [1, 1]} : vector<25x64xf32> to vector<1x64xf32>
    %40 = vector.broadcast %39 : vector<1x64xf32> to vector<64x64xf32>
    %41 = arith.mulf %38, %40 : vector<64x64xf32>
    %42 = arith.addf %35, %41 : vector<64x64xf32>
    %c1 = arith.constant 1 : index
    %c0_28 = arith.constant 0 : index
    %c0_29 = arith.constant 0 : index
    %43 = vector.load %arg6[%c1, %c0_28, %c0_29] : memref<25x64x64xf32, #tpu.memory_space<vmem>>, vector<1x64x64xf32>
    %44 = vector.shape_cast %43 : vector<1x64x64xf32> to vector<64x64xf32>
    %cst_30 = arith.constant dense<0.000000e+00> : vector<64x64xf32>
    %45 = tpu.matmul %44, %31, %cst_30 {dimension_numbers = #tpu.dot_dimension_numbers<[1], [0], [0], [1], [0, 0, 1, 1], [], []>} : vector<64x64xf32>, vector<64x64xf32>, vector<64x64xf32> -> vector<64x64xf32>
    %46 = vector.extract_strided_slice %34 {offsets = [1, 0], sizes = [1, 64], strides = [1, 1]} : vector<25x64xf32> to vector<1x64xf32>
    %47 = vector.broadcast %46 : vector<1x64xf32> to vector<64x64xf32>
    %48 = arith.mulf %45, %47 : vector<64x64xf32>
    %49 = arith.addf %42, %48 : vector<64x64xf32>
    %c2 = arith.constant 2 : index
    %c0_31 = arith.constant 0 : index
    %c0_32 = arith.constant 0 : index
    %50 = vector.load %arg6[%c2, %c0_31, %c0_32] : memref<25x64x64xf32, #tpu.memory_space<vmem>>, vector<1x64x64xf32>
    %51 = vector.shape_cast %50 : vector<1x64x64xf32> to vector<64x64xf32>
    %cst_33 = arith.constant dense<0.000000e+00> : vector<64x64xf32>
    %52 = tpu.matmul %51, %31, %cst_33 {dimension_numbers = #tpu.dot_dimension_numbers<[1], [0], [0], [1], [0, 0, 1, 1], [], []>} : vector<64x64xf32>, vector<64x64xf32>, vector<64x64xf32> -> vector<64x64xf32>
    %53 = vector.extract_strided_slice %34 {offsets = [2, 0], sizes = [1, 64], strides = [1, 1]} : vector<25x64xf32> to vector<1x64xf32>
    %54 = vector.broadcast %53 : vector<1x64xf32> to vector<64x64xf32>
    %55 = arith.mulf %52, %54 : vector<64x64xf32>
    %56 = arith.addf %49, %55 : vector<64x64xf32>
    %c3 = arith.constant 3 : index
    %c0_34 = arith.constant 0 : index
    %c0_35 = arith.constant 0 : index
    %57 = vector.load %arg6[%c3, %c0_34, %c0_35] : memref<25x64x64xf32, #tpu.memory_space<vmem>>, vector<1x64x64xf32>
    %58 = vector.shape_cast %57 : vector<1x64x64xf32> to vector<64x64xf32>
    %cst_36 = arith.constant dense<0.000000e+00> : vector<64x64xf32>
    %59 = tpu.matmul %58, %31, %cst_36 {dimension_numbers = #tpu.dot_dimension_numbers<[1], [0], [0], [1], [0, 0, 1, 1], [], []>} : vector<64x64xf32>, vector<64x64xf32>, vector<64x64xf32> -> vector<64x64xf32>
    %60 = vector.extract_strided_slice %34 {offsets = [3, 0], sizes = [1, 64], strides = [1, 1]} : vector<25x64xf32> to vector<1x64xf32>
    %61 = vector.broadcast %60 : vector<1x64xf32> to vector<64x64xf32>
    %62 = arith.mulf %59, %61 : vector<64x64xf32>
    %63 = arith.addf %56, %62 : vector<64x64xf32>
    %c4 = arith.constant 4 : index
    %c0_37 = arith.constant 0 : index
    %c0_38 = arith.constant 0 : index
    %64 = vector.load %arg6[%c4, %c0_37, %c0_38] : memref<25x64x64xf32, #tpu.memory_space<vmem>>, vector<1x64x64xf32>
    %65 = vector.shape_cast %64 : vector<1x64x64xf32> to vector<64x64xf32>
    %cst_39 = arith.constant dense<0.000000e+00> : vector<64x64xf32>
    %66 = tpu.matmul %65, %31, %cst_39 {dimension_numbers = #tpu.dot_dimension_numbers<[1], [0], [0], [1], [0, 0, 1, 1], [], []>} : vector<64x64xf32>, vector<64x64xf32>, vector<64x64xf32> -> vector<64x64xf32>
    %67 = vector.extract_strided_slice %34 {offsets = [4, 0], sizes = [1, 64], strides = [1, 1]} : vector<25x64xf32> to vector<1x64xf32>
    %68 = vector.broadcast %67 : vector<1x64xf32> to vector<64x64xf32>
    %69 = arith.mulf %66, %68 : vector<64x64xf32>
    %70 = arith.addf %63, %69 : vector<64x64xf32>
    %c5 = arith.constant 5 : index
    %c0_40 = arith.constant 0 : index
    %c0_41 = arith.constant 0 : index
    %71 = vector.load %arg6[%c5, %c0_40, %c0_41] : memref<25x64x64xf32, #tpu.memory_space<vmem>>, vector<1x64x64xf32>
    %72 = vector.shape_cast %71 : vector<1x64x64xf32> to vector<64x64xf32>
    %cst_42 = arith.constant dense<0.000000e+00> : vector<64x64xf32>
    %73 = tpu.matmul %72, %31, %cst_42 {dimension_numbers = #tpu.dot_dimension_numbers<[1], [0], [0], [1], [0, 0, 1, 1], [], []>} : vector<64x64xf32>, vector<64x64xf32>, vector<64x64xf32> -> vector<64x64xf32>
    %74 = vector.extract_strided_slice %34 {offsets = [5, 0], sizes = [1, 64], strides = [1, 1]} : vector<25x64xf32> to vector<1x64xf32>
    %75 = vector.broadcast %74 : vector<1x64xf32> to vector<64x64xf32>
    %76 = arith.mulf %73, %75 : vector<64x64xf32>
    %77 = arith.addf %70, %76 : vector<64x64xf32>
    %c6 = arith.constant 6 : index
    %c0_43 = arith.constant 0 : index
    %c0_44 = arith.constant 0 : index
    %78 = vector.load %arg6[%c6, %c0_43, %c0_44] : memref<25x64x64xf32, #tpu.memory_space<vmem>>, vector<1x64x64xf32>
    %79 = vector.shape_cast %78 : vector<1x64x64xf32> to vector<64x64xf32>
    %cst_45 = arith.constant dense<0.000000e+00> : vector<64x64xf32>
    %80 = tpu.matmul %79, %31, %cst_45 {dimension_numbers = #tpu.dot_dimension_numbers<[1], [0], [0], [1], [0, 0, 1, 1], [], []>} : vector<64x64xf32>, vector<64x64xf32>, vector<64x64xf32> -> vector<64x64xf32>
    %81 = vector.extract_strided_slice %34 {offsets = [6, 0], sizes = [1, 64], strides = [1, 1]} : vector<25x64xf32> to vector<1x64xf32>
    %82 = vector.broadcast %81 : vector<1x64xf32> to vector<64x64xf32>
    %83 = arith.mulf %80, %82 : vector<64x64xf32>
    %84 = arith.addf %77, %83 : vector<64x64xf32>
    %c7 = arith.constant 7 : index
    %c0_46 = arith.constant 0 : index
    %c0_47 = arith.constant 0 : index
    %85 = vector.load %arg6[%c7, %c0_46, %c0_47] : memref<25x64x64xf32, #tpu.memory_space<vmem>>, vector<1x64x64xf32>
    %86 = vector.shape_cast %85 : vector<1x64x64xf32> to vector<64x64xf32>
    %cst_48 = arith.constant dense<0.000000e+00> : vector<64x64xf32>
    %87 = tpu.matmul %86, %31, %cst_48 {dimension_numbers = #tpu.dot_dimension_numbers<[1], [0], [0], [1], [0, 0, 1, 1], [], []>} : vector<64x64xf32>, vector<64x64xf32>, vector<64x64xf32> -> vector<64x64xf32>
    %88 = vector.extract_strided_slice %34 {offsets = [7, 0], sizes = [1, 64], strides = [1, 1]} : vector<25x64xf32> to vector<1x64xf32>
    %89 = vector.broadcast %88 : vector<1x64xf32> to vector<64x64xf32>
    %90 = arith.mulf %87, %89 : vector<64x64xf32>
    %91 = arith.addf %84, %90 : vector<64x64xf32>
    %c8 = arith.constant 8 : index
    %c0_49 = arith.constant 0 : index
    %c0_50 = arith.constant 0 : index
    %92 = vector.load %arg6[%c8, %c0_49, %c0_50] : memref<25x64x64xf32, #tpu.memory_space<vmem>>, vector<1x64x64xf32>
    %93 = vector.shape_cast %92 : vector<1x64x64xf32> to vector<64x64xf32>
    %cst_51 = arith.constant dense<0.000000e+00> : vector<64x64xf32>
    %94 = tpu.matmul %93, %31, %cst_51 {dimension_numbers = #tpu.dot_dimension_numbers<[1], [0], [0], [1], [0, 0, 1, 1], [], []>} : vector<64x64xf32>, vector<64x64xf32>, vector<64x64xf32> -> vector<64x64xf32>
    %95 = vector.extract_strided_slice %34 {offsets = [8, 0], sizes = [1, 64], strides = [1, 1]} : vector<25x64xf32> to vector<1x64xf32>
    %96 = vector.broadcast %95 : vector<1x64xf32> to vector<64x64xf32>
    %97 = arith.mulf %94, %96 : vector<64x64xf32>
    %98 = arith.addf %91, %97 : vector<64x64xf32>
    %c9 = arith.constant 9 : index
    %c0_52 = arith.constant 0 : index
    %c0_53 = arith.constant 0 : index
    %99 = vector.load %arg6[%c9, %c0_52, %c0_53] : memref<25x64x64xf32, #tpu.memory_space<vmem>>, vector<1x64x64xf32>
    %100 = vector.shape_cast %99 : vector<1x64x64xf32> to vector<64x64xf32>
    %cst_54 = arith.constant dense<0.000000e+00> : vector<64x64xf32>
    %101 = tpu.matmul %100, %31, %cst_54 {dimension_numbers = #tpu.dot_dimension_numbers<[1], [0], [0], [1], [0, 0, 1, 1], [], []>} : vector<64x64xf32>, vector<64x64xf32>, vector<64x64xf32> -> vector<64x64xf32>
    %102 = vector.extract_strided_slice %34 {offsets = [9, 0], sizes = [1, 64], strides = [1, 1]} : vector<25x64xf32> to vector<1x64xf32>
    %103 = vector.broadcast %102 : vector<1x64xf32> to vector<64x64xf32>
    %104 = arith.mulf %101, %103 : vector<64x64xf32>
    %105 = arith.addf %98, %104 : vector<64x64xf32>
    %c10 = arith.constant 10 : index
    %c0_55 = arith.constant 0 : index
    %c0_56 = arith.constant 0 : index
    %106 = vector.load %arg6[%c10, %c0_55, %c0_56] : memref<25x64x64xf32, #tpu.memory_space<vmem>>, vector<1x64x64xf32>
    %107 = vector.shape_cast %106 : vector<1x64x64xf32> to vector<64x64xf32>
    %cst_57 = arith.constant dense<0.000000e+00> : vector<64x64xf32>
    %108 = tpu.matmul %107, %31, %cst_57 {dimension_numbers = #tpu.dot_dimension_numbers<[1], [0], [0], [1], [0, 0, 1, 1], [], []>} : vector<64x64xf32>, vector<64x64xf32>, vector<64x64xf32> -> vector<64x64xf32>
    %109 = vector.extract_strided_slice %34 {offsets = [10, 0], sizes = [1, 64], strides = [1, 1]} : vector<25x64xf32> to vector<1x64xf32>
    %110 = vector.broadcast %109 : vector<1x64xf32> to vector<64x64xf32>
    %111 = arith.mulf %108, %110 : vector<64x64xf32>
    %112 = arith.addf %105, %111 : vector<64x64xf32>
    %c11 = arith.constant 11 : index
    %c0_58 = arith.constant 0 : index
    %c0_59 = arith.constant 0 : index
    %113 = vector.load %arg6[%c11, %c0_58, %c0_59] : memref<25x64x64xf32, #tpu.memory_space<vmem>>, vector<1x64x64xf32>
    %114 = vector.shape_cast %113 : vector<1x64x64xf32> to vector<64x64xf32>
    %cst_60 = arith.constant dense<0.000000e+00> : vector<64x64xf32>
    %115 = tpu.matmul %114, %31, %cst_60 {dimension_numbers = #tpu.dot_dimension_numbers<[1], [0], [0], [1], [0, 0, 1, 1], [], []>} : vector<64x64xf32>, vector<64x64xf32>, vector<64x64xf32> -> vector<64x64xf32>
    %116 = vector.extract_strided_slice %34 {offsets = [11, 0], sizes = [1, 64], strides = [1, 1]} : vector<25x64xf32> to vector<1x64xf32>
    %117 = vector.broadcast %116 : vector<1x64xf32> to vector<64x64xf32>
    %118 = arith.mulf %115, %117 : vector<64x64xf32>
    %119 = arith.addf %112, %118 : vector<64x64xf32>
    %c12 = arith.constant 12 : index
    %c0_61 = arith.constant 0 : index
    %c0_62 = arith.constant 0 : index
    %120 = vector.load %arg6[%c12, %c0_61, %c0_62] : memref<25x64x64xf32, #tpu.memory_space<vmem>>, vector<1x64x64xf32>
    %121 = vector.shape_cast %120 : vector<1x64x64xf32> to vector<64x64xf32>
    %cst_63 = arith.constant dense<0.000000e+00> : vector<64x64xf32>
    %122 = tpu.matmul %121, %31, %cst_63 {dimension_numbers = #tpu.dot_dimension_numbers<[1], [0], [0], [1], [0, 0, 1, 1], [], []>} : vector<64x64xf32>, vector<64x64xf32>, vector<64x64xf32> -> vector<64x64xf32>
    %123 = vector.extract_strided_slice %34 {offsets = [12, 0], sizes = [1, 64], strides = [1, 1]} : vector<25x64xf32> to vector<1x64xf32>
    %124 = vector.broadcast %123 : vector<1x64xf32> to vector<64x64xf32>
    %125 = arith.mulf %122, %124 : vector<64x64xf32>
    %126 = arith.addf %119, %125 : vector<64x64xf32>
    %c13 = arith.constant 13 : index
    %c0_64 = arith.constant 0 : index
    %c0_65 = arith.constant 0 : index
    %127 = vector.load %arg6[%c13, %c0_64, %c0_65] : memref<25x64x64xf32, #tpu.memory_space<vmem>>, vector<1x64x64xf32>
    %128 = vector.shape_cast %127 : vector<1x64x64xf32> to vector<64x64xf32>
    %cst_66 = arith.constant dense<0.000000e+00> : vector<64x64xf32>
    %129 = tpu.matmul %128, %31, %cst_66 {dimension_numbers = #tpu.dot_dimension_numbers<[1], [0], [0], [1], [0, 0, 1, 1], [], []>} : vector<64x64xf32>, vector<64x64xf32>, vector<64x64xf32> -> vector<64x64xf32>
    %130 = vector.extract_strided_slice %34 {offsets = [13, 0], sizes = [1, 64], strides = [1, 1]} : vector<25x64xf32> to vector<1x64xf32>
    %131 = vector.broadcast %130 : vector<1x64xf32> to vector<64x64xf32>
    %132 = arith.mulf %129, %131 : vector<64x64xf32>
    %133 = arith.addf %126, %132 : vector<64x64xf32>
    %c14 = arith.constant 14 : index
    %c0_67 = arith.constant 0 : index
    %c0_68 = arith.constant 0 : index
    %134 = vector.load %arg6[%c14, %c0_67, %c0_68] : memref<25x64x64xf32, #tpu.memory_space<vmem>>, vector<1x64x64xf32>
    %135 = vector.shape_cast %134 : vector<1x64x64xf32> to vector<64x64xf32>
    %cst_69 = arith.constant dense<0.000000e+00> : vector<64x64xf32>
    %136 = tpu.matmul %135, %31, %cst_69 {dimension_numbers = #tpu.dot_dimension_numbers<[1], [0], [0], [1], [0, 0, 1, 1], [], []>} : vector<64x64xf32>, vector<64x64xf32>, vector<64x64xf32> -> vector<64x64xf32>
    %137 = vector.extract_strided_slice %34 {offsets = [14, 0], sizes = [1, 64], strides = [1, 1]} : vector<25x64xf32> to vector<1x64xf32>
    %138 = vector.broadcast %137 : vector<1x64xf32> to vector<64x64xf32>
    %139 = arith.mulf %136, %138 : vector<64x64xf32>
    %140 = arith.addf %133, %139 : vector<64x64xf32>
    %c15 = arith.constant 15 : index
    %c0_70 = arith.constant 0 : index
    %c0_71 = arith.constant 0 : index
    %141 = vector.load %arg6[%c15, %c0_70, %c0_71] : memref<25x64x64xf32, #tpu.memory_space<vmem>>, vector<1x64x64xf32>
    %142 = vector.shape_cast %141 : vector<1x64x64xf32> to vector<64x64xf32>
    %cst_72 = arith.constant dense<0.000000e+00> : vector<64x64xf32>
    %143 = tpu.matmul %142, %31, %cst_72 {dimension_numbers = #tpu.dot_dimension_numbers<[1], [0], [0], [1], [0, 0, 1, 1], [], []>} : vector<64x64xf32>, vector<64x64xf32>, vector<64x64xf32> -> vector<64x64xf32>
    %144 = vector.extract_strided_slice %34 {offsets = [15, 0], sizes = [1, 64], strides = [1, 1]} : vector<25x64xf32> to vector<1x64xf32>
    %145 = vector.broadcast %144 : vector<1x64xf32> to vector<64x64xf32>
    %146 = arith.mulf %143, %145 : vector<64x64xf32>
    %147 = arith.addf %140, %146 : vector<64x64xf32>
    %c16 = arith.constant 16 : index
    %c0_73 = arith.constant 0 : index
    %c0_74 = arith.constant 0 : index
    %148 = vector.load %arg6[%c16, %c0_73, %c0_74] : memref<25x64x64xf32, #tpu.memory_space<vmem>>, vector<1x64x64xf32>
    %149 = vector.shape_cast %148 : vector<1x64x64xf32> to vector<64x64xf32>
    %cst_75 = arith.constant dense<0.000000e+00> : vector<64x64xf32>
    %150 = tpu.matmul %149, %31, %cst_75 {dimension_numbers = #tpu.dot_dimension_numbers<[1], [0], [0], [1], [0, 0, 1, 1], [], []>} : vector<64x64xf32>, vector<64x64xf32>, vector<64x64xf32> -> vector<64x64xf32>
    %151 = vector.extract_strided_slice %34 {offsets = [16, 0], sizes = [1, 64], strides = [1, 1]} : vector<25x64xf32> to vector<1x64xf32>
    %152 = vector.broadcast %151 : vector<1x64xf32> to vector<64x64xf32>
    %153 = arith.mulf %150, %152 : vector<64x64xf32>
    %154 = arith.addf %147, %153 : vector<64x64xf32>
    %c17 = arith.constant 17 : index
    %c0_76 = arith.constant 0 : index
    %c0_77 = arith.constant 0 : index
    %155 = vector.load %arg6[%c17, %c0_76, %c0_77] : memref<25x64x64xf32, #tpu.memory_space<vmem>>, vector<1x64x64xf32>
    %156 = vector.shape_cast %155 : vector<1x64x64xf32> to vector<64x64xf32>
    %cst_78 = arith.constant dense<0.000000e+00> : vector<64x64xf32>
    %157 = tpu.matmul %156, %31, %cst_78 {dimension_numbers = #tpu.dot_dimension_numbers<[1], [0], [0], [1], [0, 0, 1, 1], [], []>} : vector<64x64xf32>, vector<64x64xf32>, vector<64x64xf32> -> vector<64x64xf32>
    %158 = vector.extract_strided_slice %34 {offsets = [17, 0], sizes = [1, 64], strides = [1, 1]} : vector<25x64xf32> to vector<1x64xf32>
    %159 = vector.broadcast %158 : vector<1x64xf32> to vector<64x64xf32>
    %160 = arith.mulf %157, %159 : vector<64x64xf32>
    %161 = arith.addf %154, %160 : vector<64x64xf32>
    %c18 = arith.constant 18 : index
    %c0_79 = arith.constant 0 : index
    %c0_80 = arith.constant 0 : index
    %162 = vector.load %arg6[%c18, %c0_79, %c0_80] : memref<25x64x64xf32, #tpu.memory_space<vmem>>, vector<1x64x64xf32>
    %163 = vector.shape_cast %162 : vector<1x64x64xf32> to vector<64x64xf32>
    %cst_81 = arith.constant dense<0.000000e+00> : vector<64x64xf32>
    %164 = tpu.matmul %163, %31, %cst_81 {dimension_numbers = #tpu.dot_dimension_numbers<[1], [0], [0], [1], [0, 0, 1, 1], [], []>} : vector<64x64xf32>, vector<64x64xf32>, vector<64x64xf32> -> vector<64x64xf32>
    %165 = vector.extract_strided_slice %34 {offsets = [18, 0], sizes = [1, 64], strides = [1, 1]} : vector<25x64xf32> to vector<1x64xf32>
    %166 = vector.broadcast %165 : vector<1x64xf32> to vector<64x64xf32>
    %167 = arith.mulf %164, %166 : vector<64x64xf32>
    %168 = arith.addf %161, %167 : vector<64x64xf32>
    %c19 = arith.constant 19 : index
    %c0_82 = arith.constant 0 : index
    %c0_83 = arith.constant 0 : index
    %169 = vector.load %arg6[%c19, %c0_82, %c0_83] : memref<25x64x64xf32, #tpu.memory_space<vmem>>, vector<1x64x64xf32>
    %170 = vector.shape_cast %169 : vector<1x64x64xf32> to vector<64x64xf32>
    %cst_84 = arith.constant dense<0.000000e+00> : vector<64x64xf32>
    %171 = tpu.matmul %170, %31, %cst_84 {dimension_numbers = #tpu.dot_dimension_numbers<[1], [0], [0], [1], [0, 0, 1, 1], [], []>} : vector<64x64xf32>, vector<64x64xf32>, vector<64x64xf32> -> vector<64x64xf32>
    %172 = vector.extract_strided_slice %34 {offsets = [19, 0], sizes = [1, 64], strides = [1, 1]} : vector<25x64xf32> to vector<1x64xf32>
    %173 = vector.broadcast %172 : vector<1x64xf32> to vector<64x64xf32>
    %174 = arith.mulf %171, %173 : vector<64x64xf32>
    %175 = arith.addf %168, %174 : vector<64x64xf32>
    %c20 = arith.constant 20 : index
    %c0_85 = arith.constant 0 : index
    %c0_86 = arith.constant 0 : index
    %176 = vector.load %arg6[%c20, %c0_85, %c0_86] : memref<25x64x64xf32, #tpu.memory_space<vmem>>, vector<1x64x64xf32>
    %177 = vector.shape_cast %176 : vector<1x64x64xf32> to vector<64x64xf32>
    %cst_87 = arith.constant dense<0.000000e+00> : vector<64x64xf32>
    %178 = tpu.matmul %177, %31, %cst_87 {dimension_numbers = #tpu.dot_dimension_numbers<[1], [0], [0], [1], [0, 0, 1, 1], [], []>} : vector<64x64xf32>, vector<64x64xf32>, vector<64x64xf32> -> vector<64x64xf32>
    %179 = vector.extract_strided_slice %34 {offsets = [20, 0], sizes = [1, 64], strides = [1, 1]} : vector<25x64xf32> to vector<1x64xf32>
    %180 = vector.broadcast %179 : vector<1x64xf32> to vector<64x64xf32>
    %181 = arith.mulf %178, %180 : vector<64x64xf32>
    %182 = arith.addf %175, %181 : vector<64x64xf32>
    %c21 = arith.constant 21 : index
    %c0_88 = arith.constant 0 : index
    %c0_89 = arith.constant 0 : index
    %183 = vector.load %arg6[%c21, %c0_88, %c0_89] : memref<25x64x64xf32, #tpu.memory_space<vmem>>, vector<1x64x64xf32>
    %184 = vector.shape_cast %183 : vector<1x64x64xf32> to vector<64x64xf32>
    %cst_90 = arith.constant dense<0.000000e+00> : vector<64x64xf32>
    %185 = tpu.matmul %184, %31, %cst_90 {dimension_numbers = #tpu.dot_dimension_numbers<[1], [0], [0], [1], [0, 0, 1, 1], [], []>} : vector<64x64xf32>, vector<64x64xf32>, vector<64x64xf32> -> vector<64x64xf32>
    %186 = vector.extract_strided_slice %34 {offsets = [21, 0], sizes = [1, 64], strides = [1, 1]} : vector<25x64xf32> to vector<1x64xf32>
    %187 = vector.broadcast %186 : vector<1x64xf32> to vector<64x64xf32>
    %188 = arith.mulf %185, %187 : vector<64x64xf32>
    %189 = arith.addf %182, %188 : vector<64x64xf32>
    %c22 = arith.constant 22 : index
    %c0_91 = arith.constant 0 : index
    %c0_92 = arith.constant 0 : index
    %190 = vector.load %arg6[%c22, %c0_91, %c0_92] : memref<25x64x64xf32, #tpu.memory_space<vmem>>, vector<1x64x64xf32>
    %191 = vector.shape_cast %190 : vector<1x64x64xf32> to vector<64x64xf32>
    %cst_93 = arith.constant dense<0.000000e+00> : vector<64x64xf32>
    %192 = tpu.matmul %191, %31, %cst_93 {dimension_numbers = #tpu.dot_dimension_numbers<[1], [0], [0], [1], [0, 0, 1, 1], [], []>} : vector<64x64xf32>, vector<64x64xf32>, vector<64x64xf32> -> vector<64x64xf32>
    %193 = vector.extract_strided_slice %34 {offsets = [22, 0], sizes = [1, 64], strides = [1, 1]} : vector<25x64xf32> to vector<1x64xf32>
    %194 = vector.broadcast %193 : vector<1x64xf32> to vector<64x64xf32>
    %195 = arith.mulf %192, %194 : vector<64x64xf32>
    %196 = arith.addf %189, %195 : vector<64x64xf32>
    %c23 = arith.constant 23 : index
    %c0_94 = arith.constant 0 : index
    %c0_95 = arith.constant 0 : index
    %197 = vector.load %arg6[%c23, %c0_94, %c0_95] : memref<25x64x64xf32, #tpu.memory_space<vmem>>, vector<1x64x64xf32>
    %198 = vector.shape_cast %197 : vector<1x64x64xf32> to vector<64x64xf32>
    %cst_96 = arith.constant dense<0.000000e+00> : vector<64x64xf32>
    %199 = tpu.matmul %198, %31, %cst_96 {dimension_numbers = #tpu.dot_dimension_numbers<[1], [0], [0], [1], [0, 0, 1, 1], [], []>} : vector<64x64xf32>, vector<64x64xf32>, vector<64x64xf32> -> vector<64x64xf32>
    %200 = vector.extract_strided_slice %34 {offsets = [23, 0], sizes = [1, 64], strides = [1, 1]} : vector<25x64xf32> to vector<1x64xf32>
    %201 = vector.broadcast %200 : vector<1x64xf32> to vector<64x64xf32>
    %202 = arith.mulf %199, %201 : vector<64x64xf32>
    %203 = arith.addf %196, %202 : vector<64x64xf32>
    %c24 = arith.constant 24 : index
    %c0_97 = arith.constant 0 : index
    %c0_98 = arith.constant 0 : index
    %204 = vector.load %arg6[%c24, %c0_97, %c0_98] : memref<25x64x64xf32, #tpu.memory_space<vmem>>, vector<1x64x64xf32>
    %205 = vector.shape_cast %204 : vector<1x64x64xf32> to vector<64x64xf32>
    %cst_99 = arith.constant dense<0.000000e+00> : vector<64x64xf32>
    %206 = tpu.matmul %205, %31, %cst_99 {dimension_numbers = #tpu.dot_dimension_numbers<[1], [0], [0], [1], [0, 0, 1, 1], [], []>} : vector<64x64xf32>, vector<64x64xf32>, vector<64x64xf32> -> vector<64x64xf32>
    %207 = vector.extract_strided_slice %34 {offsets = [24, 0], sizes = [1, 64], strides = [1, 1]} : vector<25x64xf32> to vector<1x64xf32>
    %208 = vector.broadcast %207 : vector<1x64xf32> to vector<64x64xf32>
    %209 = arith.mulf %206, %208 : vector<64x64xf32>
    %210 = arith.addf %203, %209 : vector<64x64xf32>
    %c0_100 = arith.constant 0 : index
    %c0_101 = arith.constant 0 : index
    %211 = vector.load %arg8[%c0_100, %c0_101] : memref<1x64xf32, #tpu.memory_space<vmem>>, vector<1x64xf32>
    %212 = vector.broadcast %211 : vector<1x64xf32> to vector<64x64xf32>
    %213 = arith.addf %210, %212 : vector<64x64xf32>
    %214 = arith.mulf %213, %32 : vector<64x64xf32>
    %cst_102 = arith.constant 0.000000e+00 : f32
    %215 = vector.broadcast %cst_102 : f32 to vector<64x64xf32>
    %216 = arith.maximumf %214, %215 : vector<64x64xf32>
    %c0_103 = arith.constant 0 : index
    %c0_104 = arith.constant 0 : index
    %217 = vector.load %arg22[%c0_103, %c0_104] : memref<64x128xf32, #tpu.memory_space<vmem>>, vector<64x64xf32>
    tpu.vector_store %arg22[%c0_103, %c0_104], %216 {strides = array<i32>} : memref<64x128xf32, #tpu.memory_space<vmem>>, vector<64x64xf32>,
    %c0_105 = arith.constant 0 : index
    %c0_106 = arith.constant 0 : index
    %218 = vector.load %arg9[%c0_105, %c0_106] : memref<40x64xf32, #tpu.memory_space<vmem>>, vector<40x64xf32>
    %cst_107 = arith.constant dense<0.000000e+00> : vector<40x64xf32>
    %219 = tpu.matmul %218, %33, %cst_107 {dimension_numbers = #tpu.dot_dimension_numbers<[1], [0], [0], [1], [0, 0, 1, 1], [], []>} : vector<40x64xf32>, vector<64x64xf32>, vector<40x64xf32> -> vector<40x64xf32>
    %c0_108 = arith.constant 0 : index
    %c0_109 = arith.constant 0 : index
    %220 = vector.load %arg10[%c0_108, %c0_109] : memref<40x64xf32, #tpu.memory_space<vmem>>, vector<40x64xf32>
    %cst_110 = arith.constant dense<0.000000e+00> : vector<40x64xf32>
    %221 = tpu.matmul %220, %33, %cst_110 {dimension_numbers = #tpu.dot_dimension_numbers<[1], [0], [0], [1], [0, 0, 1, 1], [], []>} : vector<40x64xf32>, vector<64x64xf32>, vector<40x64xf32> -> vector<40x64xf32>
    %222 = arith.mulf %219, %219 : vector<40x64xf32>
    %223 = arith.mulf %221, %221 : vector<40x64xf32>
    %224 = arith.addf %222, %223 : vector<40x64xf32>
    %225 = math.sqrt %224 : vector<40x64xf32>
    %c0_111 = arith.constant 0 : index
    %c0_112 = arith.constant 0 : index
    %226 = vector.load %arg12[%c0_111, %c0_112] : memref<9x64xf32, #tpu.memory_space<vmem>>, vector<9x64xf32>
    %cst_113 = arith.constant 0.000000e+00 : f32
    %227 = vector.broadcast %cst_113 : f32 to vector<40x64xf32>
    %c0_114 = arith.constant 0 : index
    %c0_115 = arith.constant 0 : index
    %c0_116 = arith.constant 0 : index
    %228 = vector.load %arg11[%c0_114, %c0_115, %c0_116] : memref<9x40x40xf32, #tpu.memory_space<vmem>>, vector<1x40x40xf32>
    %229 = vector.shape_cast %228 : vector<1x40x40xf32> to vector<40x40xf32>
    %cst_117 = arith.constant dense<0.000000e+00> : vector<40x64xf32>
    %230 = tpu.matmul %229, %225, %cst_117 {dimension_numbers = #tpu.dot_dimension_numbers<[1], [0], [0], [1], [0, 0, 1, 1], [], []>} : vector<40x40xf32>, vector<40x64xf32>, vector<40x64xf32> -> vector<40x64xf32>
    %231 = vector.extract_strided_slice %226 {offsets = [0, 0], sizes = [1, 64], strides = [1, 1]} : vector<9x64xf32> to vector<1x64xf32>
    %232 = vector.broadcast %231 : vector<1x64xf32> to vector<40x64xf32>
    %233 = arith.mulf %230, %232 : vector<40x64xf32>
    %234 = arith.addf %227, %233 : vector<40x64xf32>
    %c1_118 = arith.constant 1 : index
    %c0_119 = arith.constant 0 : index
    %c0_120 = arith.constant 0 : index
    %235 = vector.load %arg11[%c1_118, %c0_119, %c0_120] : memref<9x40x40xf32, #tpu.memory_space<vmem>>, vector<1x40x40xf32>
    %236 = vector.shape_cast %235 : vector<1x40x40xf32> to vector<40x40xf32>
    %cst_121 = arith.constant dense<0.000000e+00> : vector<40x64xf32>
    %237 = tpu.matmul %236, %225, %cst_121 {dimension_numbers = #tpu.dot_dimension_numbers<[1], [0], [0], [1], [0, 0, 1, 1], [], []>} : vector<40x40xf32>, vector<40x64xf32>, vector<40x64xf32> -> vector<40x64xf32>
    %238 = vector.extract_strided_slice %226 {offsets = [1, 0], sizes = [1, 64], strides = [1, 1]} : vector<9x64xf32> to vector<1x64xf32>
    %239 = vector.broadcast %238 : vector<1x64xf32> to vector<40x64xf32>
    %240 = arith.mulf %237, %239 : vector<40x64xf32>
    %241 = arith.addf %234, %240 : vector<40x64xf32>
    %c2_122 = arith.constant 2 : index
    %c0_123 = arith.constant 0 : index
    %c0_124 = arith.constant 0 : index
    %242 = vector.load %arg11[%c2_122, %c0_123, %c0_124] : memref<9x40x40xf32, #tpu.memory_space<vmem>>, vector<1x40x40xf32>
    %243 = vector.shape_cast %242 : vector<1x40x40xf32> to vector<40x40xf32>
    %cst_125 = arith.constant dense<0.000000e+00> : vector<40x64xf32>
    %244 = tpu.matmul %243, %225, %cst_125 {dimension_numbers = #tpu.dot_dimension_numbers<[1], [0], [0], [1], [0, 0, 1, 1], [], []>} : vector<40x40xf32>, vector<40x64xf32>, vector<40x64xf32> -> vector<40x64xf32>
    %245 = vector.extract_strided_slice %226 {offsets = [2, 0], sizes = [1, 64], strides = [1, 1]} : vector<9x64xf32> to vector<1x64xf32>
    %246 = vector.broadcast %245 : vector<1x64xf32> to vector<40x64xf32>
    %247 = arith.mulf %244, %246 : vector<40x64xf32>
    %248 = arith.addf %241, %247 : vector<40x64xf32>
    %c3_126 = arith.constant 3 : index
    %c0_127 = arith.constant 0 : index
    %c0_128 = arith.constant 0 : index
    %249 = vector.load %arg11[%c3_126, %c0_127, %c0_128] : memref<9x40x40xf32, #tpu.memory_space<vmem>>, vector<1x40x40xf32>
    %250 = vector.shape_cast %249 : vector<1x40x40xf32> to vector<40x40xf32>
    %cst_129 = arith.constant dense<0.000000e+00> : vector<40x64xf32>
    %251 = tpu.matmul %250, %225, %cst_129 {dimension_numbers = #tpu.dot_dimension_numbers<[1], [0], [0], [1], [0, 0, 1, 1], [], []>} : vector<40x40xf32>, vector<40x64xf32>, vector<40x64xf32> -> vector<40x64xf32>
    %252 = vector.extract_strided_slice %226 {offsets = [3, 0], sizes = [1, 64], strides = [1, 1]} : vector<9x64xf32> to vector<1x64xf32>
    %253 = vector.broadcast %252 : vector<1x64xf32> to vector<40x64xf32>
    %254 = arith.mulf %251, %253 : vector<40x64xf32>
    %255 = arith.addf %248, %254 : vector<40x64xf32>
    %c4_130 = arith.constant 4 : index
    %c0_131 = arith.constant 0 : index
    %c0_132 = arith.constant 0 : index
    %256 = vector.load %arg11[%c4_130, %c0_131, %c0_132] : memref<9x40x40xf32, #tpu.memory_space<vmem>>, vector<1x40x40xf32>
    %257 = vector.shape_cast %256 : vector<1x40x40xf32> to vector<40x40xf32>
    %cst_133 = arith.constant dense<0.000000e+00> : vector<40x64xf32>
    %258 = tpu.matmul %257, %225, %cst_133 {dimension_numbers = #tpu.dot_dimension_numbers<[1], [0], [0], [1], [0, 0, 1, 1], [], []>} : vector<40x40xf32>, vector<40x64xf32>, vector<40x64xf32> -> vector<40x64xf32>
    %259 = vector.extract_strided_slice %226 {offsets = [4, 0], sizes = [1, 64], strides = [1, 1]} : vector<9x64xf32> to vector<1x64xf32>
    %260 = vector.broadcast %259 : vector<1x64xf32> to vector<40x64xf32>
    %261 = arith.mulf %258, %260 : vector<40x64xf32>
    %262 = arith.addf %255, %261 : vector<40x64xf32>
    %c5_134 = arith.constant 5 : index
    %c0_135 = arith.constant 0 : index
    %c0_136 = arith.constant 0 : index
    %263 = vector.load %arg11[%c5_134, %c0_135, %c0_136] : memref<9x40x40xf32, #tpu.memory_space<vmem>>, vector<1x40x40xf32>
    %264 = vector.shape_cast %263 : vector<1x40x40xf32> to vector<40x40xf32>
    %cst_137 = arith.constant dense<0.000000e+00> : vector<40x64xf32>
    %265 = tpu.matmul %264, %225, %cst_137 {dimension_numbers = #tpu.dot_dimension_numbers<[1], [0], [0], [1], [0, 0, 1, 1], [], []>} : vector<40x40xf32>, vector<40x64xf32>, vector<40x64xf32> -> vector<40x64xf32>
    %266 = vector.extract_strided_slice %226 {offsets = [5, 0], sizes = [1, 64], strides = [1, 1]} : vector<9x64xf32> to vector<1x64xf32>
    %267 = vector.broadcast %266 : vector<1x64xf32> to vector<40x64xf32>
    %268 = arith.mulf %265, %267 : vector<40x64xf32>
    %269 = arith.addf %262, %268 : vector<40x64xf32>
    %c6_138 = arith.constant 6 : index
    %c0_139 = arith.constant 0 : index
    %c0_140 = arith.constant 0 : index
    %270 = vector.load %arg11[%c6_138, %c0_139, %c0_140] : memref<9x40x40xf32, #tpu.memory_space<vmem>>, vector<1x40x40xf32>
    %271 = vector.shape_cast %270 : vector<1x40x40xf32> to vector<40x40xf32>
    %cst_141 = arith.constant dense<0.000000e+00> : vector<40x64xf32>
    %272 = tpu.matmul %271, %225, %cst_141 {dimension_numbers = #tpu.dot_dimension_numbers<[1], [0], [0], [1], [0, 0, 1, 1], [], []>} : vector<40x40xf32>, vector<40x64xf32>, vector<40x64xf32> -> vector<40x64xf32>
    %273 = vector.extract_strided_slice %226 {offsets = [6, 0], sizes = [1, 64], strides = [1, 1]} : vector<9x64xf32> to vector<1x64xf32>
    %274 = vector.broadcast %273 : vector<1x64xf32> to vector<40x64xf32>
    %275 = arith.mulf %272, %274 : vector<40x64xf32>
    %276 = arith.addf %269, %275 : vector<40x64xf32>
    %c7_142 = arith.constant 7 : index
    %c0_143 = arith.constant 0 : index
    %c0_144 = arith.constant 0 : index
    %277 = vector.load %arg11[%c7_142, %c0_143, %c0_144] : memref<9x40x40xf32, #tpu.memory_space<vmem>>, vector<1x40x40xf32>
    %278 = vector.shape_cast %277 : vector<1x40x40xf32> to vector<40x40xf32>
    %cst_145 = arith.constant dense<0.000000e+00> : vector<40x64xf32>
    %279 = tpu.matmul %278, %225, %cst_145 {dimension_numbers = #tpu.dot_dimension_numbers<[1], [0], [0], [1], [0, 0, 1, 1], [], []>} : vector<40x40xf32>, vector<40x64xf32>, vector<40x64xf32> -> vector<40x64xf32>
    %280 = vector.extract_strided_slice %226 {offsets = [7, 0], sizes = [1, 64], strides = [1, 1]} : vector<9x64xf32> to vector<1x64xf32>
    %281 = vector.broadcast %280 : vector<1x64xf32> to vector<40x64xf32>
    %282 = arith.mulf %279, %281 : vector<40x64xf32>
    %283 = arith.addf %276, %282 : vector<40x64xf32>
    %c8_146 = arith.constant 8 : index
    %c0_147 = arith.constant 0 : index
    %c0_148 = arith.constant 0 : index
    %284 = vector.load %arg11[%c8_146, %c0_147, %c0_148] : memref<9x40x40xf32, #tpu.memory_space<vmem>>, vector<1x40x40xf32>
    %285 = vector.shape_cast %284 : vector<1x40x40xf32> to vector<40x40xf32>
    %cst_149 = arith.constant dense<0.000000e+00> : vector<40x64xf32>
    %286 = tpu.matmul %285, %225, %cst_149 {dimension_numbers = #tpu.dot_dimension_numbers<[1], [0], [0], [1], [0, 0, 1, 1], [], []>} : vector<40x40xf32>, vector<40x64xf32>, vector<40x64xf32> -> vector<40x64xf32>
    %287 = vector.extract_strided_slice %226 {offsets = [8, 0], sizes = [1, 64], strides = [1, 1]} : vector<9x64xf32> to vector<1x64xf32>
    %288 = vector.broadcast %287 : vector<1x64xf32> to vector<40x64xf32>
    %289 = arith.mulf %286, %288 : vector<40x64xf32>
    %290 = arith.addf %283, %289 : vector<40x64xf32>
    %c0_150 = arith.constant 0 : index
    %c0_151 = arith.constant 0 : index
    %291 = vector.load %arg13[%c0_150, %c0_151] : memref<1x64xf32, #tpu.memory_space<vmem>>, vector<1x64xf32>
    %292 = vector.broadcast %291 : vector<1x64xf32> to vector<40x64xf32>
    %293 = arith.addf %290, %292 : vector<40x64xf32>
    %cst_152 = arith.constant 0.000000e+00 : f32
    %294 = vector.broadcast %cst_152 : f32 to vector<40x64xf32>
    %295 = arith.maximumf %293, %294 : vector<40x64xf32>
    %296 = arith.truncf %295 : vector<40x64xf32> to vector<40x64xbf16>
    %c0_153 = arith.constant 0 : index
    %c0_154 = arith.constant 0 : index
    %297 = vector.load %arg14[%c0_153, %c0_154] : memref<64x64xbf16, #tpu.memory_space<vmem>>, vector<64x64xbf16>
    %cst_155 = arith.constant dense<0.000000e+00> : vector<40x64xf32>
    %298 = tpu.matmul %296, %297, %cst_155 {dimension_numbers = #tpu.dot_dimension_numbers<[1], [0], [0], [1], [0, 0, 1, 1], [], []>} : vector<40x64xbf16>, vector<64x64xbf16>, vector<40x64xf32> -> vector<40x64xf32>
    %c0_156 = arith.constant 0 : index
    %c0_157 = arith.constant 0 : index
    %299 = vector.load %arg15[%c0_156, %c0_157] : memref<1x64xf32, #tpu.memory_space<vmem>>, vector<1x64xf32>
    %300 = vector.broadcast %299 : vector<1x64xf32> to vector<40x64xf32>
    %301 = arith.addf %298, %300 : vector<40x64xf32>
    %302 = arith.negf %301 : vector<40x64xf32>
    %303 = math.exp %302 : vector<40x64xf32>
    %cst_158 = arith.constant 1.000000e+00 : f32
    %304 = vector.broadcast %cst_158 : f32 to vector<40x64xf32>
    %305 = arith.addf %304, %303 : vector<40x64xf32>
    %306 = arith.divf %304, %305 : vector<40x64xf32>
    %c0_159 = arith.constant 0 : index
    %c0_160 = arith.constant 0 : index
    %307 = vector.load %arg16[%c0_159, %c0_160] : memref<64x40xf32, #tpu.memory_space<vmem>>, vector<64x40xf32>
    %308 = arith.mulf %219, %306 : vector<40x64xf32>
    %cst_161 = arith.constant dense<0.000000e+00> : vector<64x64xf32>
    %309 = tpu.matmul %307, %308, %cst_161 {dimension_numbers = #tpu.dot_dimension_numbers<[1], [0], [0], [1], [0, 0, 1, 1], [], []>} : vector<64x40xf32>, vector<40x64xf32>, vector<64x64xf32> -> vector<64x64xf32>
    %c0_162 = arith.constant 0 : index
    %c0_163 = arith.constant 0 : index
    %310 = vector.load %arg17[%c0_162, %c0_163] : memref<64x40xf32, #tpu.memory_space<vmem>>, vector<64x40xf32>
    %311 = arith.mulf %221, %306 : vector<40x64xf32>
    %cst_164 = arith.constant dense<0.000000e+00> : vector<64x64xf32>
    %312 = tpu.matmul %310, %311, %cst_164 {dimension_numbers = #tpu.dot_dimension_numbers<[1], [0], [0], [1], [0, 0, 1, 1], [], []>} : vector<64x40xf32>, vector<40x64xf32>, vector<64x64xf32> -> vector<64x64xf32>
    %313 = arith.addf %309, %312 : vector<64x64xf32>
    %cst_165 = arith.constant 0.000000e+00 : f32
    %314 = vector.broadcast %cst_165 : f32 to vector<64x64xf32>
    %315 = arith.maximumf %313, %314 : vector<64x64xf32>
    %c0_166 = arith.constant 0 : index
    %c64_167 = arith.constant 64 : index
    %316 = vector.load %arg22[%c0_166, %c64_167] : memref<64x128xf32, #tpu.memory_space<vmem>>, vector<64x64xf32>
    tpu.vector_store %arg22[%c0_166, %c64_167], %315 {strides = array<i32>} : memref<64x128xf32, #tpu.memory_space<vmem>>, vector<64x64xf32>,
    %c0_168 = arith.constant 0 : index
    %c0_169 = arith.constant 0 : index
    %317 = vector.load %arg22[%c0_168, %c0_169] : memref<64x128xf32, #tpu.memory_space<vmem>>, vector<64x128xf32>
    %318 = arith.truncf %317 : vector<64x128xf32> to vector<64x128xbf16>
    %c0_170 = arith.constant 0 : index
    %c0_171 = arith.constant 0 : index
    %319 = vector.load %arg18[%c0_170, %c0_171] : memref<128x128xbf16, #tpu.memory_space<vmem>>, vector<128x128xbf16>
    %cst_172 = arith.constant dense<0.000000e+00> : vector<64x128xf32>
    %320 = tpu.matmul %318, %319, %cst_172 {dimension_numbers = #tpu.dot_dimension_numbers<[1], [0], [0], [1], [0, 0, 1, 1], [], []>} : vector<64x128xbf16>, vector<128x128xbf16>, vector<64x128xf32> -> vector<64x128xf32>
    %c0_173 = arith.constant 0 : index
    %c0_174 = arith.constant 0 : index
    %321 = vector.load %arg19[%c0_173, %c0_174] : memref<1x128xf32, #tpu.memory_space<vmem>>, vector<1x128xf32>
    %322 = vector.broadcast %321 : vector<1x128xf32> to vector<64x128xf32>
    %323 = arith.addf %320, %322 : vector<64x128xf32>
    %cst_175 = arith.constant 1.000000e+00 : f32
    %324 = vector.broadcast %cst_175 : f32 to vector<64x128xf32>
    %325 = arith.mulf %323, %324 : vector<64x128xf32>
    %326 = arith.addf %23, %325 : vector<64x128xf32>
    %c0_176 = arith.constant 0 : index
    %c0_177 = arith.constant 0 : index
    %c0_178 = arith.constant 0 : index
    %327 = vector.load %arg20[%c0_176, %c0_177, %c0_178] : memref<1x64x128xf32, #tpu.memory_space<vmem>>, vector<1x64x128xf32>
    %328 = vector.shape_cast %327 : vector<1x64x128xf32> to vector<64x128xf32>
    %329 = vector.shape_cast %326 : vector<64x128xf32> to vector<1x64x128xf32>
    tpu.vector_store %arg20[%c0_176, %c0_177, %c0_178], %329 {strides = array<i32>} : memref<1x64x128xf32, #tpu.memory_space<vmem>>, vector<1x64x128xf32>,
    return
  }
  func.func @transform_0(%arg0: i32) -> (i32, i32, i32) {
    %c0_i32 = arith.constant 0 : i32
    %c0_i32_0 = arith.constant 0 : i32
    %c0_i32_1 = arith.constant 0 : i32
    return %arg0, %c0_i32, %c0_i32_0 : i32, i32, i32
  }
  func.func @transform_1(%arg0: i32) -> (i32, i32) {
    %c0_i32 = arith.constant 0 : i32
    %c0_i32_0 = arith.constant 0 : i32
    %c0_i32_1 = arith.constant 0 : i32
    return %c0_i32, %c0_i32_0 : i32, i32
  }
  func.func @transform_2(%arg0: i32) -> (i32, i32) {
    %c0_i32 = arith.constant 0 : i32
    %c0_i32_0 = arith.constant 0 : i32
    %c0_i32_1 = arith.constant 0 : i32
    return %c0_i32, %c0_i32_0 : i32, i32
  }
  func.func @transform_3(%arg0: i32) -> (i32, i32) {
    %c0_i32 = arith.constant 0 : i32
    %c0_i32_0 = arith.constant 0 : i32
    %c0_i32_1 = arith.constant 0 : i32
    return %c0_i32, %c0_i32_0 : i32, i32
  }
  func.func @transform_4(%arg0: i32) -> (i32, i32) {
    %c0_i32 = arith.constant 0 : i32
    %c0_i32_0 = arith.constant 0 : i32
    %c0_i32_1 = arith.constant 0 : i32
    return %c0_i32, %c0_i32_0 : i32, i32
  }
  func.func @transform_5(%arg0: i32) -> (i32, i32, i32) {
    %c0_i32 = arith.constant 0 : i32
    %c0_i32_0 = arith.constant 0 : i32
    %c0_i32_1 = arith.constant 0 : i32
    %c0_i32_2 = arith.constant 0 : i32
    return %c0_i32, %c0_i32_0, %c0_i32_1 : i32, i32, i32
  }
  func.func @transform_6(%arg0: i32) -> (i32, i32) {
    %c0_i32 = arith.constant 0 : i32
    %c0_i32_0 = arith.constant 0 : i32
    %c0_i32_1 = arith.constant 0 : i32
    return %c0_i32, %c0_i32_0 : i32, i32
  }
  func.func @transform_7(%arg0: i32) -> (i32, i32) {
    %c0_i32 = arith.constant 0 : i32
    %c0_i32_0 = arith.constant 0 : i32
    %c0_i32_1 = arith.constant 0 : i32
    return %c0_i32, %c0_i32_0 : i32, i32
  }
  func.func @transform_8(%arg0: i32) -> (i32, i32) {
    %c0_i32 = arith.constant 0 : i32
    %c0_i32_0 = arith.constant 0 : i32
    %c0_i32_1 = arith.constant 0 : i32
    return %c0_i32, %c0_i32_0 : i32, i32
  }
  func.func @transform_9(%arg0: i32) -> (i32, i32) {
    %c0_i32 = arith.constant 0 : i32
    %c0_i32_0 = arith.constant 0 : i32
    %c0_i32_1 = arith.constant 0 : i32
    return %c0_i32, %c0_i32_0 : i32, i32
  }
  func.func @transform_10(%arg0: i32) -> (i32, i32, i32) {
    %c0_i32 = arith.constant 0 : i32
    %c0_i32_0 = arith.constant 0 : i32
    %c0_i32_1 = arith.constant 0 : i32
    %c0_i32_2 = arith.constant 0 : i32
    return %c0_i32, %c0_i32_0, %c0_i32_1 : i32, i32, i32
  }
  func.func @transform_11(%arg0: i32) -> (i32, i32) {
    %c0_i32 = arith.constant 0 : i32
    %c0_i32_0 = arith.constant 0 : i32
    %c0_i32_1 = arith.constant 0 : i32
    return %c0_i32, %c0_i32_0 : i32, i32
  }
  func.func @transform_12(%arg0: i32) -> (i32, i32) {
    %c0_i32 = arith.constant 0 : i32
    %c0_i32_0 = arith.constant 0 : i32
    %c0_i32_1 = arith.constant 0 : i32
    return %c0_i32, %c0_i32_0 : i32, i32
  }
  func.func @transform_13(%arg0: i32) -> (i32, i32) {
    %c0_i32 = arith.constant 0 : i32
    %c0_i32_0 = arith.constant 0 : i32
    %c0_i32_1 = arith.constant 0 : i32
    return %c0_i32, %c0_i32_0 : i32, i32
  }
  func.func @transform_14(%arg0: i32) -> (i32, i32) {
    %c0_i32 = arith.constant 0 : i32
    %c0_i32_0 = arith.constant 0 : i32
    %c0_i32_1 = arith.constant 0 : i32
    return %c0_i32, %c0_i32_0 : i32, i32
  }
  func.func @transform_15(%arg0: i32) -> (i32, i32) {
    %c0_i32 = arith.constant 0 : i32
    %c0_i32_0 = arith.constant 0 : i32
    %c0_i32_1 = arith.constant 0 : i32
    return %c0_i32, %c0_i32_0 : i32, i32
  }
  func.func @transform_16(%arg0: i32) -> (i32, i32) {
    %c0_i32 = arith.constant 0 : i32
    %c0_i32_0 = arith.constant 0 : i32
    %c0_i32_1 = arith.constant 0 : i32
    return %c0_i32, %c0_i32_0 : i32, i32
  }
  func.func @transform_17(%arg0: i32) -> (i32, i32) {
    %c0_i32 = arith.constant 0 : i32
    %c0_i32_0 = arith.constant 0 : i32
    %c0_i32_1 = arith.constant 0 : i32
    return %c0_i32, %c0_i32_0 : i32, i32
  }
  func.func @transform_18(%arg0: i32) -> (i32, i32) {
    %c0_i32 = arith.constant 0 : i32
    %c0_i32_0 = arith.constant 0 : i32
    %c0_i32_1 = arith.constant 0 : i32
    return %c0_i32, %c0_i32_0 : i32, i32
  }
  func.func @transform_19(%arg0: i32) -> (i32, i32, i32) {
    %c0_i32 = arith.constant 0 : i32
    %c0_i32_0 = arith.constant 0 : i32
    %c0_i32_1 = arith.constant 0 : i32
    return %arg0, %c0_i32, %c0_i32_0 : i32, i32, i32
  }
}

module attributes {stable_mosaic.version = 11 : i64} {
  func.func @_sfma_region_kernel(%arg0: i32, %arg1: memref<1x16x128xf32, #tpu.memory_space<vmem>>, %arg2: memref<1x128xf32, #tpu.memory_space<vmem>>, %arg3: memref<1x128xf32, #tpu.memory_space<vmem>>, %arg4: memref<128x192xbf16, #tpu.memory_space<vmem>>, %arg5: memref<1x192xf32, #tpu.memory_space<vmem>>, %arg6: memref<25x16x16xf32, #tpu.memory_space<vmem>>, %arg7: memref<25x64xf32, #tpu.memory_space<vmem>>, %arg8: memref<1x64xf32, #tpu.memory_space<vmem>>, %arg9: memref<12x16xf32, #tpu.memory_space<vmem>>, %arg10: memref<12x16xf32, #tpu.memory_space<vmem>>, %arg11: memref<9x12x12xf32, #tpu.memory_space<vmem>>, %arg12: memref<9x64xf32, #tpu.memory_space<vmem>>, %arg13: memref<1x64xf32, #tpu.memory_space<vmem>>, %arg14: memref<64x64xbf16, #tpu.memory_space<vmem>>, %arg15: memref<1x64xf32, #tpu.memory_space<vmem>>, %arg16: memref<16x12xf32, #tpu.memory_space<vmem>>, %arg17: memref<16x12xf32, #tpu.memory_space<vmem>>, %arg18: memref<128x128xbf16, #tpu.memory_space<vmem>>, %arg19: memref<1x128xf32, #tpu.memory_space<vmem>>, %arg20: memref<1x16x128xf32, #tpu.memory_space<vmem>>, %arg21: memref<16x192xf32, #tpu.memory_space<vmem>>, %arg22: memref<16x128xf32, #tpu.memory_space<vmem>>) attributes {dimension_semantics = [#tpu.dimension_semantics<parallel>], iteration_bounds = array<i64: 2>, scalar_prefetch = 0 : i64, scratch_operands = 2 : i64, tpu.core_type = #tpu.core_type<tc>, window_params = [{transform_indices = @transform_0, window_bounds = array<i64: 1, 16, 128>}, {pipeline_mode = #tpu.pipeline_mode<synchronous>, transform_indices = @transform_1, window_bounds = array<i64: 1, 128>}, {pipeline_mode = #tpu.pipeline_mode<synchronous>, transform_indices = @transform_2, window_bounds = array<i64: 1, 128>}, {pipeline_mode = #tpu.pipeline_mode<synchronous>, transform_indices = @transform_3, window_bounds = array<i64: 128, 192>}, {pipeline_mode = #tpu.pipeline_mode<synchronous>, transform_indices = @transform_4, window_bounds = array<i64: 1, 192>}, {pipeline_mode = #tpu.pipeline_mode<synchronous>, transform_indices = @transform_5, window_bounds = array<i64: 25, 16, 16>}, {pipeline_mode = #tpu.pipeline_mode<synchronous>, transform_indices = @transform_6, window_bounds = array<i64: 25, 64>}, {pipeline_mode = #tpu.pipeline_mode<synchronous>, transform_indices = @transform_7, window_bounds = array<i64: 1, 64>}, {pipeline_mode = #tpu.pipeline_mode<synchronous>, transform_indices = @transform_8, window_bounds = array<i64: 12, 16>}, {pipeline_mode = #tpu.pipeline_mode<synchronous>, transform_indices = @transform_9, window_bounds = array<i64: 12, 16>}, {pipeline_mode = #tpu.pipeline_mode<synchronous>, transform_indices = @transform_10, window_bounds = array<i64: 9, 12, 12>}, {pipeline_mode = #tpu.pipeline_mode<synchronous>, transform_indices = @transform_11, window_bounds = array<i64: 9, 64>}, {pipeline_mode = #tpu.pipeline_mode<synchronous>, transform_indices = @transform_12, window_bounds = array<i64: 1, 64>}, {pipeline_mode = #tpu.pipeline_mode<synchronous>, transform_indices = @transform_13, window_bounds = array<i64: 64, 64>}, {pipeline_mode = #tpu.pipeline_mode<synchronous>, transform_indices = @transform_14, window_bounds = array<i64: 1, 64>}, {pipeline_mode = #tpu.pipeline_mode<synchronous>, transform_indices = @transform_15, window_bounds = array<i64: 16, 12>}, {pipeline_mode = #tpu.pipeline_mode<synchronous>, transform_indices = @transform_16, window_bounds = array<i64: 16, 12>}, {pipeline_mode = #tpu.pipeline_mode<synchronous>, transform_indices = @transform_17, window_bounds = array<i64: 128, 128>}, {pipeline_mode = #tpu.pipeline_mode<synchronous>, transform_indices = @transform_18, window_bounds = array<i64: 1, 128>}, {transform_indices = @transform_19, window_bounds = array<i64: 1, 16, 128>}]} {
    %c0 = arith.constant 0 : index
    %c0_0 = arith.constant 0 : index
    %c0_1 = arith.constant 0 : index
    %0 = vector.load %arg1[%c0, %c0_0, %c0_1] : memref<1x16x128xf32, #tpu.memory_space<vmem>>, vector<1x16x128xf32>
    %1 = vector.shape_cast %0 : vector<1x16x128xf32> to vector<16x128xf32>
    %cst = arith.constant dense<0.000000e+00> : vector<16xf32>
    %2 = vector.multi_reduction <add>, %1, %cst [1] : vector<16x128xf32> to vector<16xf32>
    %3 = vector.shape_cast %2 : vector<16xf32> to vector<16x1xf32>
    %cst_2 = arith.constant 1.280000e+02 : f32
    %4 = vector.broadcast %cst_2 : f32 to vector<16x1xf32>
    %5 = arith.divf %3, %4 : vector<16x1xf32>
    %6 = vector.broadcast %5 : vector<16x1xf32> to vector<16x128xf32>
    %7 = arith.subf %1, %6 : vector<16x128xf32>
    %8 = arith.mulf %7, %7 : vector<16x128xf32>
    %cst_3 = arith.constant dense<0.000000e+00> : vector<16xf32>
    %9 = vector.multi_reduction <add>, %8, %cst_3 [1] : vector<16x128xf32> to vector<16xf32>
    %10 = vector.shape_cast %9 : vector<16xf32> to vector<16x1xf32>
    %cst_4 = arith.constant 1.280000e+02 : f32
    %11 = vector.broadcast %cst_4 : f32 to vector<16x1xf32>
    %12 = arith.divf %10, %11 : vector<16x1xf32>
    %cst_5 = arith.constant 9.99999974E-6 : f32
    %13 = vector.broadcast %cst_5 : f32 to vector<16x1xf32>
    %14 = arith.addf %12, %13 : vector<16x1xf32>
    %15 = math.rsqrt %14 : vector<16x1xf32>
    %16 = vector.broadcast %15 : vector<16x1xf32> to vector<16x128xf32>
    %17 = arith.mulf %7, %16 : vector<16x128xf32>
    %c0_6 = arith.constant 0 : index
    %c0_7 = arith.constant 0 : index
    %18 = vector.load %arg2[%c0_6, %c0_7] : memref<1x128xf32, #tpu.memory_space<vmem>>, vector<1x128xf32>
    %19 = vector.broadcast %18 : vector<1x128xf32> to vector<16x128xf32>
    %20 = arith.mulf %17, %19 : vector<16x128xf32>
    %c0_8 = arith.constant 0 : index
    %c0_9 = arith.constant 0 : index
    %21 = vector.load %arg3[%c0_8, %c0_9] : memref<1x128xf32, #tpu.memory_space<vmem>>, vector<1x128xf32>
    %22 = vector.broadcast %21 : vector<1x128xf32> to vector<16x128xf32>
    %23 = arith.addf %20, %22 : vector<16x128xf32>
    %24 = arith.truncf %23 : vector<16x128xf32> to vector<16x128xbf16>
    %c0_10 = arith.constant 0 : index
    %c0_11 = arith.constant 0 : index
    %25 = vector.load %arg4[%c0_10, %c0_11] : memref<128x192xbf16, #tpu.memory_space<vmem>>, vector<128x192xbf16>
    %cst_12 = arith.constant dense<0.000000e+00> : vector<16x192xf32>
    %26 = tpu.matmul %24, %25, %cst_12 {dimension_numbers = #tpu.dot_dimension_numbers<[1], [0], [0], [1], [0, 0, 1, 1], [], []>} : vector<16x128xbf16>, vector<128x192xbf16>, vector<16x192xf32> -> vector<16x192xf32>
    %c0_13 = arith.constant 0 : index
    %c0_14 = arith.constant 0 : index
    %27 = vector.load %arg5[%c0_13, %c0_14] : memref<1x192xf32, #tpu.memory_space<vmem>>, vector<1x192xf32>
    %28 = vector.broadcast %27 : vector<1x192xf32> to vector<16x192xf32>
    %29 = arith.addf %26, %28 : vector<16x192xf32>
    %c0_15 = arith.constant 0 : index
    %c0_16 = arith.constant 0 : index
    %30 = vector.load %arg21[%c0_15, %c0_16] : memref<16x192xf32, #tpu.memory_space<vmem>>, vector<16x192xf32>
    tpu.vector_store %arg21[%c0_15, %c0_16], %29 {strides = array<i32>} : memref<16x192xf32, #tpu.memory_space<vmem>>, vector<16x192xf32>,
    %c0_17 = arith.constant 0 : index
    %c0_18 = arith.constant 0 : index
    %31 = vector.load %arg21[%c0_17, %c0_18] : memref<16x192xf32, #tpu.memory_space<vmem>>, vector<16x64xf32>
    %c0_19 = arith.constant 0 : index
    %c64 = arith.constant 64 : index
    %32 = vector.load %arg21[%c0_19, %c64] : memref<16x192xf32, #tpu.memory_space<vmem>>, vector<16x64xf32>
    %c0_20 = arith.constant 0 : index
    %c128 = arith.constant 128 : index
    %33 = vector.load %arg21[%c0_20, %c128] : memref<16x192xf32, #tpu.memory_space<vmem>>, vector<16x64xf32>
    %c0_21 = arith.constant 0 : index
    %c0_22 = arith.constant 0 : index
    %34 = vector.load %arg7[%c0_21, %c0_22] : memref<25x64xf32, #tpu.memory_space<vmem>>, vector<25x64xf32>
    %cst_23 = arith.constant 0.000000e+00 : f32
    %35 = vector.broadcast %cst_23 : f32 to vector<16x64xf32>
    %c0_24 = arith.constant 0 : index
    %c0_25 = arith.constant 0 : index
    %c0_26 = arith.constant 0 : index
    %36 = vector.load %arg6[%c0_24, %c0_25, %c0_26] : memref<25x16x16xf32, #tpu.memory_space<vmem>>, vector<1x16x16xf32>
    %37 = vector.shape_cast %36 : vector<1x16x16xf32> to vector<16x16xf32>
    %cst_27 = arith.constant dense<0.000000e+00> : vector<16x64xf32>
    %38 = tpu.matmul %37, %31, %cst_27 {dimension_numbers = #tpu.dot_dimension_numbers<[1], [0], [0], [1], [0, 0, 1, 1], [], []>} : vector<16x16xf32>, vector<16x64xf32>, vector<16x64xf32> -> vector<16x64xf32>
    %39 = vector.extract_strided_slice %34 {offsets = [0, 0], sizes = [1, 64], strides = [1, 1]} : vector<25x64xf32> to vector<1x64xf32>
    %40 = vector.broadcast %39 : vector<1x64xf32> to vector<16x64xf32>
    %41 = arith.mulf %38, %40 : vector<16x64xf32>
    %42 = arith.addf %35, %41 : vector<16x64xf32>
    %c1 = arith.constant 1 : index
    %c0_28 = arith.constant 0 : index
    %c0_29 = arith.constant 0 : index
    %43 = vector.load %arg6[%c1, %c0_28, %c0_29] : memref<25x16x16xf32, #tpu.memory_space<vmem>>, vector<1x16x16xf32>
    %44 = vector.shape_cast %43 : vector<1x16x16xf32> to vector<16x16xf32>
    %cst_30 = arith.constant dense<0.000000e+00> : vector<16x64xf32>
    %45 = tpu.matmul %44, %31, %cst_30 {dimension_numbers = #tpu.dot_dimension_numbers<[1], [0], [0], [1], [0, 0, 1, 1], [], []>} : vector<16x16xf32>, vector<16x64xf32>, vector<16x64xf32> -> vector<16x64xf32>
    %46 = vector.extract_strided_slice %34 {offsets = [1, 0], sizes = [1, 64], strides = [1, 1]} : vector<25x64xf32> to vector<1x64xf32>
    %47 = vector.broadcast %46 : vector<1x64xf32> to vector<16x64xf32>
    %48 = arith.mulf %45, %47 : vector<16x64xf32>
    %49 = arith.addf %42, %48 : vector<16x64xf32>
    %c2 = arith.constant 2 : index
    %c0_31 = arith.constant 0 : index
    %c0_32 = arith.constant 0 : index
    %50 = vector.load %arg6[%c2, %c0_31, %c0_32] : memref<25x16x16xf32, #tpu.memory_space<vmem>>, vector<1x16x16xf32>
    %51 = vector.shape_cast %50 : vector<1x16x16xf32> to vector<16x16xf32>
    %cst_33 = arith.constant dense<0.000000e+00> : vector<16x64xf32>
    %52 = tpu.matmul %51, %31, %cst_33 {dimension_numbers = #tpu.dot_dimension_numbers<[1], [0], [0], [1], [0, 0, 1, 1], [], []>} : vector<16x16xf32>, vector<16x64xf32>, vector<16x64xf32> -> vector<16x64xf32>
    %53 = vector.extract_strided_slice %34 {offsets = [2, 0], sizes = [1, 64], strides = [1, 1]} : vector<25x64xf32> to vector<1x64xf32>
    %54 = vector.broadcast %53 : vector<1x64xf32> to vector<16x64xf32>
    %55 = arith.mulf %52, %54 : vector<16x64xf32>
    %56 = arith.addf %49, %55 : vector<16x64xf32>
    %c3 = arith.constant 3 : index
    %c0_34 = arith.constant 0 : index
    %c0_35 = arith.constant 0 : index
    %57 = vector.load %arg6[%c3, %c0_34, %c0_35] : memref<25x16x16xf32, #tpu.memory_space<vmem>>, vector<1x16x16xf32>
    %58 = vector.shape_cast %57 : vector<1x16x16xf32> to vector<16x16xf32>
    %cst_36 = arith.constant dense<0.000000e+00> : vector<16x64xf32>
    %59 = tpu.matmul %58, %31, %cst_36 {dimension_numbers = #tpu.dot_dimension_numbers<[1], [0], [0], [1], [0, 0, 1, 1], [], []>} : vector<16x16xf32>, vector<16x64xf32>, vector<16x64xf32> -> vector<16x64xf32>
    %60 = vector.extract_strided_slice %34 {offsets = [3, 0], sizes = [1, 64], strides = [1, 1]} : vector<25x64xf32> to vector<1x64xf32>
    %61 = vector.broadcast %60 : vector<1x64xf32> to vector<16x64xf32>
    %62 = arith.mulf %59, %61 : vector<16x64xf32>
    %63 = arith.addf %56, %62 : vector<16x64xf32>
    %c4 = arith.constant 4 : index
    %c0_37 = arith.constant 0 : index
    %c0_38 = arith.constant 0 : index
    %64 = vector.load %arg6[%c4, %c0_37, %c0_38] : memref<25x16x16xf32, #tpu.memory_space<vmem>>, vector<1x16x16xf32>
    %65 = vector.shape_cast %64 : vector<1x16x16xf32> to vector<16x16xf32>
    %cst_39 = arith.constant dense<0.000000e+00> : vector<16x64xf32>
    %66 = tpu.matmul %65, %31, %cst_39 {dimension_numbers = #tpu.dot_dimension_numbers<[1], [0], [0], [1], [0, 0, 1, 1], [], []>} : vector<16x16xf32>, vector<16x64xf32>, vector<16x64xf32> -> vector<16x64xf32>
    %67 = vector.extract_strided_slice %34 {offsets = [4, 0], sizes = [1, 64], strides = [1, 1]} : vector<25x64xf32> to vector<1x64xf32>
    %68 = vector.broadcast %67 : vector<1x64xf32> to vector<16x64xf32>
    %69 = arith.mulf %66, %68 : vector<16x64xf32>
    %70 = arith.addf %63, %69 : vector<16x64xf32>
    %c5 = arith.constant 5 : index
    %c0_40 = arith.constant 0 : index
    %c0_41 = arith.constant 0 : index
    %71 = vector.load %arg6[%c5, %c0_40, %c0_41] : memref<25x16x16xf32, #tpu.memory_space<vmem>>, vector<1x16x16xf32>
    %72 = vector.shape_cast %71 : vector<1x16x16xf32> to vector<16x16xf32>
    %cst_42 = arith.constant dense<0.000000e+00> : vector<16x64xf32>
    %73 = tpu.matmul %72, %31, %cst_42 {dimension_numbers = #tpu.dot_dimension_numbers<[1], [0], [0], [1], [0, 0, 1, 1], [], []>} : vector<16x16xf32>, vector<16x64xf32>, vector<16x64xf32> -> vector<16x64xf32>
    %74 = vector.extract_strided_slice %34 {offsets = [5, 0], sizes = [1, 64], strides = [1, 1]} : vector<25x64xf32> to vector<1x64xf32>
    %75 = vector.broadcast %74 : vector<1x64xf32> to vector<16x64xf32>
    %76 = arith.mulf %73, %75 : vector<16x64xf32>
    %77 = arith.addf %70, %76 : vector<16x64xf32>
    %c6 = arith.constant 6 : index
    %c0_43 = arith.constant 0 : index
    %c0_44 = arith.constant 0 : index
    %78 = vector.load %arg6[%c6, %c0_43, %c0_44] : memref<25x16x16xf32, #tpu.memory_space<vmem>>, vector<1x16x16xf32>
    %79 = vector.shape_cast %78 : vector<1x16x16xf32> to vector<16x16xf32>
    %cst_45 = arith.constant dense<0.000000e+00> : vector<16x64xf32>
    %80 = tpu.matmul %79, %31, %cst_45 {dimension_numbers = #tpu.dot_dimension_numbers<[1], [0], [0], [1], [0, 0, 1, 1], [], []>} : vector<16x16xf32>, vector<16x64xf32>, vector<16x64xf32> -> vector<16x64xf32>
    %81 = vector.extract_strided_slice %34 {offsets = [6, 0], sizes = [1, 64], strides = [1, 1]} : vector<25x64xf32> to vector<1x64xf32>
    %82 = vector.broadcast %81 : vector<1x64xf32> to vector<16x64xf32>
    %83 = arith.mulf %80, %82 : vector<16x64xf32>
    %84 = arith.addf %77, %83 : vector<16x64xf32>
    %c7 = arith.constant 7 : index
    %c0_46 = arith.constant 0 : index
    %c0_47 = arith.constant 0 : index
    %85 = vector.load %arg6[%c7, %c0_46, %c0_47] : memref<25x16x16xf32, #tpu.memory_space<vmem>>, vector<1x16x16xf32>
    %86 = vector.shape_cast %85 : vector<1x16x16xf32> to vector<16x16xf32>
    %cst_48 = arith.constant dense<0.000000e+00> : vector<16x64xf32>
    %87 = tpu.matmul %86, %31, %cst_48 {dimension_numbers = #tpu.dot_dimension_numbers<[1], [0], [0], [1], [0, 0, 1, 1], [], []>} : vector<16x16xf32>, vector<16x64xf32>, vector<16x64xf32> -> vector<16x64xf32>
    %88 = vector.extract_strided_slice %34 {offsets = [7, 0], sizes = [1, 64], strides = [1, 1]} : vector<25x64xf32> to vector<1x64xf32>
    %89 = vector.broadcast %88 : vector<1x64xf32> to vector<16x64xf32>
    %90 = arith.mulf %87, %89 : vector<16x64xf32>
    %91 = arith.addf %84, %90 : vector<16x64xf32>
    %c8 = arith.constant 8 : index
    %c0_49 = arith.constant 0 : index
    %c0_50 = arith.constant 0 : index
    %92 = vector.load %arg6[%c8, %c0_49, %c0_50] : memref<25x16x16xf32, #tpu.memory_space<vmem>>, vector<1x16x16xf32>
    %93 = vector.shape_cast %92 : vector<1x16x16xf32> to vector<16x16xf32>
    %cst_51 = arith.constant dense<0.000000e+00> : vector<16x64xf32>
    %94 = tpu.matmul %93, %31, %cst_51 {dimension_numbers = #tpu.dot_dimension_numbers<[1], [0], [0], [1], [0, 0, 1, 1], [], []>} : vector<16x16xf32>, vector<16x64xf32>, vector<16x64xf32> -> vector<16x64xf32>
    %95 = vector.extract_strided_slice %34 {offsets = [8, 0], sizes = [1, 64], strides = [1, 1]} : vector<25x64xf32> to vector<1x64xf32>
    %96 = vector.broadcast %95 : vector<1x64xf32> to vector<16x64xf32>
    %97 = arith.mulf %94, %96 : vector<16x64xf32>
    %98 = arith.addf %91, %97 : vector<16x64xf32>
    %c9 = arith.constant 9 : index
    %c0_52 = arith.constant 0 : index
    %c0_53 = arith.constant 0 : index
    %99 = vector.load %arg6[%c9, %c0_52, %c0_53] : memref<25x16x16xf32, #tpu.memory_space<vmem>>, vector<1x16x16xf32>
    %100 = vector.shape_cast %99 : vector<1x16x16xf32> to vector<16x16xf32>
    %cst_54 = arith.constant dense<0.000000e+00> : vector<16x64xf32>
    %101 = tpu.matmul %100, %31, %cst_54 {dimension_numbers = #tpu.dot_dimension_numbers<[1], [0], [0], [1], [0, 0, 1, 1], [], []>} : vector<16x16xf32>, vector<16x64xf32>, vector<16x64xf32> -> vector<16x64xf32>
    %102 = vector.extract_strided_slice %34 {offsets = [9, 0], sizes = [1, 64], strides = [1, 1]} : vector<25x64xf32> to vector<1x64xf32>
    %103 = vector.broadcast %102 : vector<1x64xf32> to vector<16x64xf32>
    %104 = arith.mulf %101, %103 : vector<16x64xf32>
    %105 = arith.addf %98, %104 : vector<16x64xf32>
    %c10 = arith.constant 10 : index
    %c0_55 = arith.constant 0 : index
    %c0_56 = arith.constant 0 : index
    %106 = vector.load %arg6[%c10, %c0_55, %c0_56] : memref<25x16x16xf32, #tpu.memory_space<vmem>>, vector<1x16x16xf32>
    %107 = vector.shape_cast %106 : vector<1x16x16xf32> to vector<16x16xf32>
    %cst_57 = arith.constant dense<0.000000e+00> : vector<16x64xf32>
    %108 = tpu.matmul %107, %31, %cst_57 {dimension_numbers = #tpu.dot_dimension_numbers<[1], [0], [0], [1], [0, 0, 1, 1], [], []>} : vector<16x16xf32>, vector<16x64xf32>, vector<16x64xf32> -> vector<16x64xf32>
    %109 = vector.extract_strided_slice %34 {offsets = [10, 0], sizes = [1, 64], strides = [1, 1]} : vector<25x64xf32> to vector<1x64xf32>
    %110 = vector.broadcast %109 : vector<1x64xf32> to vector<16x64xf32>
    %111 = arith.mulf %108, %110 : vector<16x64xf32>
    %112 = arith.addf %105, %111 : vector<16x64xf32>
    %c11 = arith.constant 11 : index
    %c0_58 = arith.constant 0 : index
    %c0_59 = arith.constant 0 : index
    %113 = vector.load %arg6[%c11, %c0_58, %c0_59] : memref<25x16x16xf32, #tpu.memory_space<vmem>>, vector<1x16x16xf32>
    %114 = vector.shape_cast %113 : vector<1x16x16xf32> to vector<16x16xf32>
    %cst_60 = arith.constant dense<0.000000e+00> : vector<16x64xf32>
    %115 = tpu.matmul %114, %31, %cst_60 {dimension_numbers = #tpu.dot_dimension_numbers<[1], [0], [0], [1], [0, 0, 1, 1], [], []>} : vector<16x16xf32>, vector<16x64xf32>, vector<16x64xf32> -> vector<16x64xf32>
    %116 = vector.extract_strided_slice %34 {offsets = [11, 0], sizes = [1, 64], strides = [1, 1]} : vector<25x64xf32> to vector<1x64xf32>
    %117 = vector.broadcast %116 : vector<1x64xf32> to vector<16x64xf32>
    %118 = arith.mulf %115, %117 : vector<16x64xf32>
    %119 = arith.addf %112, %118 : vector<16x64xf32>
    %c12 = arith.constant 12 : index
    %c0_61 = arith.constant 0 : index
    %c0_62 = arith.constant 0 : index
    %120 = vector.load %arg6[%c12, %c0_61, %c0_62] : memref<25x16x16xf32, #tpu.memory_space<vmem>>, vector<1x16x16xf32>
    %121 = vector.shape_cast %120 : vector<1x16x16xf32> to vector<16x16xf32>
    %cst_63 = arith.constant dense<0.000000e+00> : vector<16x64xf32>
    %122 = tpu.matmul %121, %31, %cst_63 {dimension_numbers = #tpu.dot_dimension_numbers<[1], [0], [0], [1], [0, 0, 1, 1], [], []>} : vector<16x16xf32>, vector<16x64xf32>, vector<16x64xf32> -> vector<16x64xf32>
    %123 = vector.extract_strided_slice %34 {offsets = [12, 0], sizes = [1, 64], strides = [1, 1]} : vector<25x64xf32> to vector<1x64xf32>
    %124 = vector.broadcast %123 : vector<1x64xf32> to vector<16x64xf32>
    %125 = arith.mulf %122, %124 : vector<16x64xf32>
    %126 = arith.addf %119, %125 : vector<16x64xf32>
    %c13 = arith.constant 13 : index
    %c0_64 = arith.constant 0 : index
    %c0_65 = arith.constant 0 : index
    %127 = vector.load %arg6[%c13, %c0_64, %c0_65] : memref<25x16x16xf32, #tpu.memory_space<vmem>>, vector<1x16x16xf32>
    %128 = vector.shape_cast %127 : vector<1x16x16xf32> to vector<16x16xf32>
    %cst_66 = arith.constant dense<0.000000e+00> : vector<16x64xf32>
    %129 = tpu.matmul %128, %31, %cst_66 {dimension_numbers = #tpu.dot_dimension_numbers<[1], [0], [0], [1], [0, 0, 1, 1], [], []>} : vector<16x16xf32>, vector<16x64xf32>, vector<16x64xf32> -> vector<16x64xf32>
    %130 = vector.extract_strided_slice %34 {offsets = [13, 0], sizes = [1, 64], strides = [1, 1]} : vector<25x64xf32> to vector<1x64xf32>
    %131 = vector.broadcast %130 : vector<1x64xf32> to vector<16x64xf32>
    %132 = arith.mulf %129, %131 : vector<16x64xf32>
    %133 = arith.addf %126, %132 : vector<16x64xf32>
    %c14 = arith.constant 14 : index
    %c0_67 = arith.constant 0 : index
    %c0_68 = arith.constant 0 : index
    %134 = vector.load %arg6[%c14, %c0_67, %c0_68] : memref<25x16x16xf32, #tpu.memory_space<vmem>>, vector<1x16x16xf32>
    %135 = vector.shape_cast %134 : vector<1x16x16xf32> to vector<16x16xf32>
    %cst_69 = arith.constant dense<0.000000e+00> : vector<16x64xf32>
    %136 = tpu.matmul %135, %31, %cst_69 {dimension_numbers = #tpu.dot_dimension_numbers<[1], [0], [0], [1], [0, 0, 1, 1], [], []>} : vector<16x16xf32>, vector<16x64xf32>, vector<16x64xf32> -> vector<16x64xf32>
    %137 = vector.extract_strided_slice %34 {offsets = [14, 0], sizes = [1, 64], strides = [1, 1]} : vector<25x64xf32> to vector<1x64xf32>
    %138 = vector.broadcast %137 : vector<1x64xf32> to vector<16x64xf32>
    %139 = arith.mulf %136, %138 : vector<16x64xf32>
    %140 = arith.addf %133, %139 : vector<16x64xf32>
    %c15 = arith.constant 15 : index
    %c0_70 = arith.constant 0 : index
    %c0_71 = arith.constant 0 : index
    %141 = vector.load %arg6[%c15, %c0_70, %c0_71] : memref<25x16x16xf32, #tpu.memory_space<vmem>>, vector<1x16x16xf32>
    %142 = vector.shape_cast %141 : vector<1x16x16xf32> to vector<16x16xf32>
    %cst_72 = arith.constant dense<0.000000e+00> : vector<16x64xf32>
    %143 = tpu.matmul %142, %31, %cst_72 {dimension_numbers = #tpu.dot_dimension_numbers<[1], [0], [0], [1], [0, 0, 1, 1], [], []>} : vector<16x16xf32>, vector<16x64xf32>, vector<16x64xf32> -> vector<16x64xf32>
    %144 = vector.extract_strided_slice %34 {offsets = [15, 0], sizes = [1, 64], strides = [1, 1]} : vector<25x64xf32> to vector<1x64xf32>
    %145 = vector.broadcast %144 : vector<1x64xf32> to vector<16x64xf32>
    %146 = arith.mulf %143, %145 : vector<16x64xf32>
    %147 = arith.addf %140, %146 : vector<16x64xf32>
    %c16 = arith.constant 16 : index
    %c0_73 = arith.constant 0 : index
    %c0_74 = arith.constant 0 : index
    %148 = vector.load %arg6[%c16, %c0_73, %c0_74] : memref<25x16x16xf32, #tpu.memory_space<vmem>>, vector<1x16x16xf32>
    %149 = vector.shape_cast %148 : vector<1x16x16xf32> to vector<16x16xf32>
    %cst_75 = arith.constant dense<0.000000e+00> : vector<16x64xf32>
    %150 = tpu.matmul %149, %31, %cst_75 {dimension_numbers = #tpu.dot_dimension_numbers<[1], [0], [0], [1], [0, 0, 1, 1], [], []>} : vector<16x16xf32>, vector<16x64xf32>, vector<16x64xf32> -> vector<16x64xf32>
    %151 = vector.extract_strided_slice %34 {offsets = [16, 0], sizes = [1, 64], strides = [1, 1]} : vector<25x64xf32> to vector<1x64xf32>
    %152 = vector.broadcast %151 : vector<1x64xf32> to vector<16x64xf32>
    %153 = arith.mulf %150, %152 : vector<16x64xf32>
    %154 = arith.addf %147, %153 : vector<16x64xf32>
    %c17 = arith.constant 17 : index
    %c0_76 = arith.constant 0 : index
    %c0_77 = arith.constant 0 : index
    %155 = vector.load %arg6[%c17, %c0_76, %c0_77] : memref<25x16x16xf32, #tpu.memory_space<vmem>>, vector<1x16x16xf32>
    %156 = vector.shape_cast %155 : vector<1x16x16xf32> to vector<16x16xf32>
    %cst_78 = arith.constant dense<0.000000e+00> : vector<16x64xf32>
    %157 = tpu.matmul %156, %31, %cst_78 {dimension_numbers = #tpu.dot_dimension_numbers<[1], [0], [0], [1], [0, 0, 1, 1], [], []>} : vector<16x16xf32>, vector<16x64xf32>, vector<16x64xf32> -> vector<16x64xf32>
    %158 = vector.extract_strided_slice %34 {offsets = [17, 0], sizes = [1, 64], strides = [1, 1]} : vector<25x64xf32> to vector<1x64xf32>
    %159 = vector.broadcast %158 : vector<1x64xf32> to vector<16x64xf32>
    %160 = arith.mulf %157, %159 : vector<16x64xf32>
    %161 = arith.addf %154, %160 : vector<16x64xf32>
    %c18 = arith.constant 18 : index
    %c0_79 = arith.constant 0 : index
    %c0_80 = arith.constant 0 : index
    %162 = vector.load %arg6[%c18, %c0_79, %c0_80] : memref<25x16x16xf32, #tpu.memory_space<vmem>>, vector<1x16x16xf32>
    %163 = vector.shape_cast %162 : vector<1x16x16xf32> to vector<16x16xf32>
    %cst_81 = arith.constant dense<0.000000e+00> : vector<16x64xf32>
    %164 = tpu.matmul %163, %31, %cst_81 {dimension_numbers = #tpu.dot_dimension_numbers<[1], [0], [0], [1], [0, 0, 1, 1], [], []>} : vector<16x16xf32>, vector<16x64xf32>, vector<16x64xf32> -> vector<16x64xf32>
    %165 = vector.extract_strided_slice %34 {offsets = [18, 0], sizes = [1, 64], strides = [1, 1]} : vector<25x64xf32> to vector<1x64xf32>
    %166 = vector.broadcast %165 : vector<1x64xf32> to vector<16x64xf32>
    %167 = arith.mulf %164, %166 : vector<16x64xf32>
    %168 = arith.addf %161, %167 : vector<16x64xf32>
    %c19 = arith.constant 19 : index
    %c0_82 = arith.constant 0 : index
    %c0_83 = arith.constant 0 : index
    %169 = vector.load %arg6[%c19, %c0_82, %c0_83] : memref<25x16x16xf32, #tpu.memory_space<vmem>>, vector<1x16x16xf32>
    %170 = vector.shape_cast %169 : vector<1x16x16xf32> to vector<16x16xf32>
    %cst_84 = arith.constant dense<0.000000e+00> : vector<16x64xf32>
    %171 = tpu.matmul %170, %31, %cst_84 {dimension_numbers = #tpu.dot_dimension_numbers<[1], [0], [0], [1], [0, 0, 1, 1], [], []>} : vector<16x16xf32>, vector<16x64xf32>, vector<16x64xf32> -> vector<16x64xf32>
    %172 = vector.extract_strided_slice %34 {offsets = [19, 0], sizes = [1, 64], strides = [1, 1]} : vector<25x64xf32> to vector<1x64xf32>
    %173 = vector.broadcast %172 : vector<1x64xf32> to vector<16x64xf32>
    %174 = arith.mulf %171, %173 : vector<16x64xf32>
    %175 = arith.addf %168, %174 : vector<16x64xf32>
    %c20 = arith.constant 20 : index
    %c0_85 = arith.constant 0 : index
    %c0_86 = arith.constant 0 : index
    %176 = vector.load %arg6[%c20, %c0_85, %c0_86] : memref<25x16x16xf32, #tpu.memory_space<vmem>>, vector<1x16x16xf32>
    %177 = vector.shape_cast %176 : vector<1x16x16xf32> to vector<16x16xf32>
    %cst_87 = arith.constant dense<0.000000e+00> : vector<16x64xf32>
    %178 = tpu.matmul %177, %31, %cst_87 {dimension_numbers = #tpu.dot_dimension_numbers<[1], [0], [0], [1], [0, 0, 1, 1], [], []>} : vector<16x16xf32>, vector<16x64xf32>, vector<16x64xf32> -> vector<16x64xf32>
    %179 = vector.extract_strided_slice %34 {offsets = [20, 0], sizes = [1, 64], strides = [1, 1]} : vector<25x64xf32> to vector<1x64xf32>
    %180 = vector.broadcast %179 : vector<1x64xf32> to vector<16x64xf32>
    %181 = arith.mulf %178, %180 : vector<16x64xf32>
    %182 = arith.addf %175, %181 : vector<16x64xf32>
    %c21 = arith.constant 21 : index
    %c0_88 = arith.constant 0 : index
    %c0_89 = arith.constant 0 : index
    %183 = vector.load %arg6[%c21, %c0_88, %c0_89] : memref<25x16x16xf32, #tpu.memory_space<vmem>>, vector<1x16x16xf32>
    %184 = vector.shape_cast %183 : vector<1x16x16xf32> to vector<16x16xf32>
    %cst_90 = arith.constant dense<0.000000e+00> : vector<16x64xf32>
    %185 = tpu.matmul %184, %31, %cst_90 {dimension_numbers = #tpu.dot_dimension_numbers<[1], [0], [0], [1], [0, 0, 1, 1], [], []>} : vector<16x16xf32>, vector<16x64xf32>, vector<16x64xf32> -> vector<16x64xf32>
    %186 = vector.extract_strided_slice %34 {offsets = [21, 0], sizes = [1, 64], strides = [1, 1]} : vector<25x64xf32> to vector<1x64xf32>
    %187 = vector.broadcast %186 : vector<1x64xf32> to vector<16x64xf32>
    %188 = arith.mulf %185, %187 : vector<16x64xf32>
    %189 = arith.addf %182, %188 : vector<16x64xf32>
    %c22 = arith.constant 22 : index
    %c0_91 = arith.constant 0 : index
    %c0_92 = arith.constant 0 : index
    %190 = vector.load %arg6[%c22, %c0_91, %c0_92] : memref<25x16x16xf32, #tpu.memory_space<vmem>>, vector<1x16x16xf32>
    %191 = vector.shape_cast %190 : vector<1x16x16xf32> to vector<16x16xf32>
    %cst_93 = arith.constant dense<0.000000e+00> : vector<16x64xf32>
    %192 = tpu.matmul %191, %31, %cst_93 {dimension_numbers = #tpu.dot_dimension_numbers<[1], [0], [0], [1], [0, 0, 1, 1], [], []>} : vector<16x16xf32>, vector<16x64xf32>, vector<16x64xf32> -> vector<16x64xf32>
    %193 = vector.extract_strided_slice %34 {offsets = [22, 0], sizes = [1, 64], strides = [1, 1]} : vector<25x64xf32> to vector<1x64xf32>
    %194 = vector.broadcast %193 : vector<1x64xf32> to vector<16x64xf32>
    %195 = arith.mulf %192, %194 : vector<16x64xf32>
    %196 = arith.addf %189, %195 : vector<16x64xf32>
    %c23 = arith.constant 23 : index
    %c0_94 = arith.constant 0 : index
    %c0_95 = arith.constant 0 : index
    %197 = vector.load %arg6[%c23, %c0_94, %c0_95] : memref<25x16x16xf32, #tpu.memory_space<vmem>>, vector<1x16x16xf32>
    %198 = vector.shape_cast %197 : vector<1x16x16xf32> to vector<16x16xf32>
    %cst_96 = arith.constant dense<0.000000e+00> : vector<16x64xf32>
    %199 = tpu.matmul %198, %31, %cst_96 {dimension_numbers = #tpu.dot_dimension_numbers<[1], [0], [0], [1], [0, 0, 1, 1], [], []>} : vector<16x16xf32>, vector<16x64xf32>, vector<16x64xf32> -> vector<16x64xf32>
    %200 = vector.extract_strided_slice %34 {offsets = [23, 0], sizes = [1, 64], strides = [1, 1]} : vector<25x64xf32> to vector<1x64xf32>
    %201 = vector.broadcast %200 : vector<1x64xf32> to vector<16x64xf32>
    %202 = arith.mulf %199, %201 : vector<16x64xf32>
    %203 = arith.addf %196, %202 : vector<16x64xf32>
    %c24 = arith.constant 24 : index
    %c0_97 = arith.constant 0 : index
    %c0_98 = arith.constant 0 : index
    %204 = vector.load %arg6[%c24, %c0_97, %c0_98] : memref<25x16x16xf32, #tpu.memory_space<vmem>>, vector<1x16x16xf32>
    %205 = vector.shape_cast %204 : vector<1x16x16xf32> to vector<16x16xf32>
    %cst_99 = arith.constant dense<0.000000e+00> : vector<16x64xf32>
    %206 = tpu.matmul %205, %31, %cst_99 {dimension_numbers = #tpu.dot_dimension_numbers<[1], [0], [0], [1], [0, 0, 1, 1], [], []>} : vector<16x16xf32>, vector<16x64xf32>, vector<16x64xf32> -> vector<16x64xf32>
    %207 = vector.extract_strided_slice %34 {offsets = [24, 0], sizes = [1, 64], strides = [1, 1]} : vector<25x64xf32> to vector<1x64xf32>
    %208 = vector.broadcast %207 : vector<1x64xf32> to vector<16x64xf32>
    %209 = arith.mulf %206, %208 : vector<16x64xf32>
    %210 = arith.addf %203, %209 : vector<16x64xf32>
    %c0_100 = arith.constant 0 : index
    %c0_101 = arith.constant 0 : index
    %211 = vector.load %arg8[%c0_100, %c0_101] : memref<1x64xf32, #tpu.memory_space<vmem>>, vector<1x64xf32>
    %212 = vector.broadcast %211 : vector<1x64xf32> to vector<16x64xf32>
    %213 = arith.addf %210, %212 : vector<16x64xf32>
    %214 = arith.mulf %213, %32 : vector<16x64xf32>
    %cst_102 = arith.constant 0.000000e+00 : f32
    %215 = vector.broadcast %cst_102 : f32 to vector<16x64xf32>
    %216 = arith.maximumf %214, %215 : vector<16x64xf32>
    %c0_103 = arith.constant 0 : index
    %c0_104 = arith.constant 0 : index
    %217 = vector.load %arg22[%c0_103, %c0_104] : memref<16x128xf32, #tpu.memory_space<vmem>>, vector<16x64xf32>
    tpu.vector_store %arg22[%c0_103, %c0_104], %216 {strides = array<i32>} : memref<16x128xf32, #tpu.memory_space<vmem>>, vector<16x64xf32>,
    %c0_105 = arith.constant 0 : index
    %c0_106 = arith.constant 0 : index
    %218 = vector.load %arg9[%c0_105, %c0_106] : memref<12x16xf32, #tpu.memory_space<vmem>>, vector<12x16xf32>
    %cst_107 = arith.constant dense<0.000000e+00> : vector<12x64xf32>
    %219 = tpu.matmul %218, %33, %cst_107 {dimension_numbers = #tpu.dot_dimension_numbers<[1], [0], [0], [1], [0, 0, 1, 1], [], []>} : vector<12x16xf32>, vector<16x64xf32>, vector<12x64xf32> -> vector<12x64xf32>
    %c0_108 = arith.constant 0 : index
    %c0_109 = arith.constant 0 : index
    %220 = vector.load %arg10[%c0_108, %c0_109] : memref<12x16xf32, #tpu.memory_space<vmem>>, vector<12x16xf32>
    %cst_110 = arith.constant dense<0.000000e+00> : vector<12x64xf32>
    %221 = tpu.matmul %220, %33, %cst_110 {dimension_numbers = #tpu.dot_dimension_numbers<[1], [0], [0], [1], [0, 0, 1, 1], [], []>} : vector<12x16xf32>, vector<16x64xf32>, vector<12x64xf32> -> vector<12x64xf32>
    %222 = arith.mulf %219, %219 : vector<12x64xf32>
    %223 = arith.mulf %221, %221 : vector<12x64xf32>
    %224 = arith.addf %222, %223 : vector<12x64xf32>
    %225 = math.sqrt %224 : vector<12x64xf32>
    %c0_111 = arith.constant 0 : index
    %c0_112 = arith.constant 0 : index
    %226 = vector.load %arg12[%c0_111, %c0_112] : memref<9x64xf32, #tpu.memory_space<vmem>>, vector<9x64xf32>
    %cst_113 = arith.constant 0.000000e+00 : f32
    %227 = vector.broadcast %cst_113 : f32 to vector<12x64xf32>
    %c0_114 = arith.constant 0 : index
    %c0_115 = arith.constant 0 : index
    %c0_116 = arith.constant 0 : index
    %228 = vector.load %arg11[%c0_114, %c0_115, %c0_116] : memref<9x12x12xf32, #tpu.memory_space<vmem>>, vector<1x12x12xf32>
    %229 = vector.shape_cast %228 : vector<1x12x12xf32> to vector<12x12xf32>
    %cst_117 = arith.constant dense<0.000000e+00> : vector<12x64xf32>
    %230 = tpu.matmul %229, %225, %cst_117 {dimension_numbers = #tpu.dot_dimension_numbers<[1], [0], [0], [1], [0, 0, 1, 1], [], []>} : vector<12x12xf32>, vector<12x64xf32>, vector<12x64xf32> -> vector<12x64xf32>
    %231 = vector.extract_strided_slice %226 {offsets = [0, 0], sizes = [1, 64], strides = [1, 1]} : vector<9x64xf32> to vector<1x64xf32>
    %232 = vector.broadcast %231 : vector<1x64xf32> to vector<12x64xf32>
    %233 = arith.mulf %230, %232 : vector<12x64xf32>
    %234 = arith.addf %227, %233 : vector<12x64xf32>
    %c1_118 = arith.constant 1 : index
    %c0_119 = arith.constant 0 : index
    %c0_120 = arith.constant 0 : index
    %235 = vector.load %arg11[%c1_118, %c0_119, %c0_120] : memref<9x12x12xf32, #tpu.memory_space<vmem>>, vector<1x12x12xf32>
    %236 = vector.shape_cast %235 : vector<1x12x12xf32> to vector<12x12xf32>
    %cst_121 = arith.constant dense<0.000000e+00> : vector<12x64xf32>
    %237 = tpu.matmul %236, %225, %cst_121 {dimension_numbers = #tpu.dot_dimension_numbers<[1], [0], [0], [1], [0, 0, 1, 1], [], []>} : vector<12x12xf32>, vector<12x64xf32>, vector<12x64xf32> -> vector<12x64xf32>
    %238 = vector.extract_strided_slice %226 {offsets = [1, 0], sizes = [1, 64], strides = [1, 1]} : vector<9x64xf32> to vector<1x64xf32>
    %239 = vector.broadcast %238 : vector<1x64xf32> to vector<12x64xf32>
    %240 = arith.mulf %237, %239 : vector<12x64xf32>
    %241 = arith.addf %234, %240 : vector<12x64xf32>
    %c2_122 = arith.constant 2 : index
    %c0_123 = arith.constant 0 : index
    %c0_124 = arith.constant 0 : index
    %242 = vector.load %arg11[%c2_122, %c0_123, %c0_124] : memref<9x12x12xf32, #tpu.memory_space<vmem>>, vector<1x12x12xf32>
    %243 = vector.shape_cast %242 : vector<1x12x12xf32> to vector<12x12xf32>
    %cst_125 = arith.constant dense<0.000000e+00> : vector<12x64xf32>
    %244 = tpu.matmul %243, %225, %cst_125 {dimension_numbers = #tpu.dot_dimension_numbers<[1], [0], [0], [1], [0, 0, 1, 1], [], []>} : vector<12x12xf32>, vector<12x64xf32>, vector<12x64xf32> -> vector<12x64xf32>
    %245 = vector.extract_strided_slice %226 {offsets = [2, 0], sizes = [1, 64], strides = [1, 1]} : vector<9x64xf32> to vector<1x64xf32>
    %246 = vector.broadcast %245 : vector<1x64xf32> to vector<12x64xf32>
    %247 = arith.mulf %244, %246 : vector<12x64xf32>
    %248 = arith.addf %241, %247 : vector<12x64xf32>
    %c3_126 = arith.constant 3 : index
    %c0_127 = arith.constant 0 : index
    %c0_128 = arith.constant 0 : index
    %249 = vector.load %arg11[%c3_126, %c0_127, %c0_128] : memref<9x12x12xf32, #tpu.memory_space<vmem>>, vector<1x12x12xf32>
    %250 = vector.shape_cast %249 : vector<1x12x12xf32> to vector<12x12xf32>
    %cst_129 = arith.constant dense<0.000000e+00> : vector<12x64xf32>
    %251 = tpu.matmul %250, %225, %cst_129 {dimension_numbers = #tpu.dot_dimension_numbers<[1], [0], [0], [1], [0, 0, 1, 1], [], []>} : vector<12x12xf32>, vector<12x64xf32>, vector<12x64xf32> -> vector<12x64xf32>
    %252 = vector.extract_strided_slice %226 {offsets = [3, 0], sizes = [1, 64], strides = [1, 1]} : vector<9x64xf32> to vector<1x64xf32>
    %253 = vector.broadcast %252 : vector<1x64xf32> to vector<12x64xf32>
    %254 = arith.mulf %251, %253 : vector<12x64xf32>
    %255 = arith.addf %248, %254 : vector<12x64xf32>
    %c4_130 = arith.constant 4 : index
    %c0_131 = arith.constant 0 : index
    %c0_132 = arith.constant 0 : index
    %256 = vector.load %arg11[%c4_130, %c0_131, %c0_132] : memref<9x12x12xf32, #tpu.memory_space<vmem>>, vector<1x12x12xf32>
    %257 = vector.shape_cast %256 : vector<1x12x12xf32> to vector<12x12xf32>
    %cst_133 = arith.constant dense<0.000000e+00> : vector<12x64xf32>
    %258 = tpu.matmul %257, %225, %cst_133 {dimension_numbers = #tpu.dot_dimension_numbers<[1], [0], [0], [1], [0, 0, 1, 1], [], []>} : vector<12x12xf32>, vector<12x64xf32>, vector<12x64xf32> -> vector<12x64xf32>
    %259 = vector.extract_strided_slice %226 {offsets = [4, 0], sizes = [1, 64], strides = [1, 1]} : vector<9x64xf32> to vector<1x64xf32>
    %260 = vector.broadcast %259 : vector<1x64xf32> to vector<12x64xf32>
    %261 = arith.mulf %258, %260 : vector<12x64xf32>
    %262 = arith.addf %255, %261 : vector<12x64xf32>
    %c5_134 = arith.constant 5 : index
    %c0_135 = arith.constant 0 : index
    %c0_136 = arith.constant 0 : index
    %263 = vector.load %arg11[%c5_134, %c0_135, %c0_136] : memref<9x12x12xf32, #tpu.memory_space<vmem>>, vector<1x12x12xf32>
    %264 = vector.shape_cast %263 : vector<1x12x12xf32> to vector<12x12xf32>
    %cst_137 = arith.constant dense<0.000000e+00> : vector<12x64xf32>
    %265 = tpu.matmul %264, %225, %cst_137 {dimension_numbers = #tpu.dot_dimension_numbers<[1], [0], [0], [1], [0, 0, 1, 1], [], []>} : vector<12x12xf32>, vector<12x64xf32>, vector<12x64xf32> -> vector<12x64xf32>
    %266 = vector.extract_strided_slice %226 {offsets = [5, 0], sizes = [1, 64], strides = [1, 1]} : vector<9x64xf32> to vector<1x64xf32>
    %267 = vector.broadcast %266 : vector<1x64xf32> to vector<12x64xf32>
    %268 = arith.mulf %265, %267 : vector<12x64xf32>
    %269 = arith.addf %262, %268 : vector<12x64xf32>
    %c6_138 = arith.constant 6 : index
    %c0_139 = arith.constant 0 : index
    %c0_140 = arith.constant 0 : index
    %270 = vector.load %arg11[%c6_138, %c0_139, %c0_140] : memref<9x12x12xf32, #tpu.memory_space<vmem>>, vector<1x12x12xf32>
    %271 = vector.shape_cast %270 : vector<1x12x12xf32> to vector<12x12xf32>
    %cst_141 = arith.constant dense<0.000000e+00> : vector<12x64xf32>
    %272 = tpu.matmul %271, %225, %cst_141 {dimension_numbers = #tpu.dot_dimension_numbers<[1], [0], [0], [1], [0, 0, 1, 1], [], []>} : vector<12x12xf32>, vector<12x64xf32>, vector<12x64xf32> -> vector<12x64xf32>
    %273 = vector.extract_strided_slice %226 {offsets = [6, 0], sizes = [1, 64], strides = [1, 1]} : vector<9x64xf32> to vector<1x64xf32>
    %274 = vector.broadcast %273 : vector<1x64xf32> to vector<12x64xf32>
    %275 = arith.mulf %272, %274 : vector<12x64xf32>
    %276 = arith.addf %269, %275 : vector<12x64xf32>
    %c7_142 = arith.constant 7 : index
    %c0_143 = arith.constant 0 : index
    %c0_144 = arith.constant 0 : index
    %277 = vector.load %arg11[%c7_142, %c0_143, %c0_144] : memref<9x12x12xf32, #tpu.memory_space<vmem>>, vector<1x12x12xf32>
    %278 = vector.shape_cast %277 : vector<1x12x12xf32> to vector<12x12xf32>
    %cst_145 = arith.constant dense<0.000000e+00> : vector<12x64xf32>
    %279 = tpu.matmul %278, %225, %cst_145 {dimension_numbers = #tpu.dot_dimension_numbers<[1], [0], [0], [1], [0, 0, 1, 1], [], []>} : vector<12x12xf32>, vector<12x64xf32>, vector<12x64xf32> -> vector<12x64xf32>
    %280 = vector.extract_strided_slice %226 {offsets = [7, 0], sizes = [1, 64], strides = [1, 1]} : vector<9x64xf32> to vector<1x64xf32>
    %281 = vector.broadcast %280 : vector<1x64xf32> to vector<12x64xf32>
    %282 = arith.mulf %279, %281 : vector<12x64xf32>
    %283 = arith.addf %276, %282 : vector<12x64xf32>
    %c8_146 = arith.constant 8 : index
    %c0_147 = arith.constant 0 : index
    %c0_148 = arith.constant 0 : index
    %284 = vector.load %arg11[%c8_146, %c0_147, %c0_148] : memref<9x12x12xf32, #tpu.memory_space<vmem>>, vector<1x12x12xf32>
    %285 = vector.shape_cast %284 : vector<1x12x12xf32> to vector<12x12xf32>
    %cst_149 = arith.constant dense<0.000000e+00> : vector<12x64xf32>
    %286 = tpu.matmul %285, %225, %cst_149 {dimension_numbers = #tpu.dot_dimension_numbers<[1], [0], [0], [1], [0, 0, 1, 1], [], []>} : vector<12x12xf32>, vector<12x64xf32>, vector<12x64xf32> -> vector<12x64xf32>
    %287 = vector.extract_strided_slice %226 {offsets = [8, 0], sizes = [1, 64], strides = [1, 1]} : vector<9x64xf32> to vector<1x64xf32>
    %288 = vector.broadcast %287 : vector<1x64xf32> to vector<12x64xf32>
    %289 = arith.mulf %286, %288 : vector<12x64xf32>
    %290 = arith.addf %283, %289 : vector<12x64xf32>
    %c0_150 = arith.constant 0 : index
    %c0_151 = arith.constant 0 : index
    %291 = vector.load %arg13[%c0_150, %c0_151] : memref<1x64xf32, #tpu.memory_space<vmem>>, vector<1x64xf32>
    %292 = vector.broadcast %291 : vector<1x64xf32> to vector<12x64xf32>
    %293 = arith.addf %290, %292 : vector<12x64xf32>
    %cst_152 = arith.constant 0.000000e+00 : f32
    %294 = vector.broadcast %cst_152 : f32 to vector<12x64xf32>
    %295 = arith.maximumf %293, %294 : vector<12x64xf32>
    %296 = arith.truncf %295 : vector<12x64xf32> to vector<12x64xbf16>
    %c0_153 = arith.constant 0 : index
    %c0_154 = arith.constant 0 : index
    %297 = vector.load %arg14[%c0_153, %c0_154] : memref<64x64xbf16, #tpu.memory_space<vmem>>, vector<64x64xbf16>
    %cst_155 = arith.constant dense<0.000000e+00> : vector<12x64xf32>
    %298 = tpu.matmul %296, %297, %cst_155 {dimension_numbers = #tpu.dot_dimension_numbers<[1], [0], [0], [1], [0, 0, 1, 1], [], []>} : vector<12x64xbf16>, vector<64x64xbf16>, vector<12x64xf32> -> vector<12x64xf32>
    %c0_156 = arith.constant 0 : index
    %c0_157 = arith.constant 0 : index
    %299 = vector.load %arg15[%c0_156, %c0_157] : memref<1x64xf32, #tpu.memory_space<vmem>>, vector<1x64xf32>
    %300 = vector.broadcast %299 : vector<1x64xf32> to vector<12x64xf32>
    %301 = arith.addf %298, %300 : vector<12x64xf32>
    %302 = arith.negf %301 : vector<12x64xf32>
    %303 = math.exp %302 : vector<12x64xf32>
    %cst_158 = arith.constant 1.000000e+00 : f32
    %304 = vector.broadcast %cst_158 : f32 to vector<12x64xf32>
    %305 = arith.addf %304, %303 : vector<12x64xf32>
    %306 = arith.divf %304, %305 : vector<12x64xf32>
    %c0_159 = arith.constant 0 : index
    %c0_160 = arith.constant 0 : index
    %307 = vector.load %arg16[%c0_159, %c0_160] : memref<16x12xf32, #tpu.memory_space<vmem>>, vector<16x12xf32>
    %308 = arith.mulf %219, %306 : vector<12x64xf32>
    %cst_161 = arith.constant dense<0.000000e+00> : vector<16x64xf32>
    %309 = tpu.matmul %307, %308, %cst_161 {dimension_numbers = #tpu.dot_dimension_numbers<[1], [0], [0], [1], [0, 0, 1, 1], [], []>} : vector<16x12xf32>, vector<12x64xf32>, vector<16x64xf32> -> vector<16x64xf32>
    %c0_162 = arith.constant 0 : index
    %c0_163 = arith.constant 0 : index
    %310 = vector.load %arg17[%c0_162, %c0_163] : memref<16x12xf32, #tpu.memory_space<vmem>>, vector<16x12xf32>
    %311 = arith.mulf %221, %306 : vector<12x64xf32>
    %cst_164 = arith.constant dense<0.000000e+00> : vector<16x64xf32>
    %312 = tpu.matmul %310, %311, %cst_164 {dimension_numbers = #tpu.dot_dimension_numbers<[1], [0], [0], [1], [0, 0, 1, 1], [], []>} : vector<16x12xf32>, vector<12x64xf32>, vector<16x64xf32> -> vector<16x64xf32>
    %313 = arith.addf %309, %312 : vector<16x64xf32>
    %cst_165 = arith.constant 0.000000e+00 : f32
    %314 = vector.broadcast %cst_165 : f32 to vector<16x64xf32>
    %315 = arith.maximumf %313, %314 : vector<16x64xf32>
    %c0_166 = arith.constant 0 : index
    %c64_167 = arith.constant 64 : index
    %316 = vector.load %arg22[%c0_166, %c64_167] : memref<16x128xf32, #tpu.memory_space<vmem>>, vector<16x64xf32>
    tpu.vector_store %arg22[%c0_166, %c64_167], %315 {strides = array<i32>} : memref<16x128xf32, #tpu.memory_space<vmem>>, vector<16x64xf32>,
    %c0_168 = arith.constant 0 : index
    %c0_169 = arith.constant 0 : index
    %317 = vector.load %arg22[%c0_168, %c0_169] : memref<16x128xf32, #tpu.memory_space<vmem>>, vector<16x128xf32>
    %318 = arith.truncf %317 : vector<16x128xf32> to vector<16x128xbf16>
    %c0_170 = arith.constant 0 : index
    %c0_171 = arith.constant 0 : index
    %319 = vector.load %arg18[%c0_170, %c0_171] : memref<128x128xbf16, #tpu.memory_space<vmem>>, vector<128x128xbf16>
    %cst_172 = arith.constant dense<0.000000e+00> : vector<16x128xf32>
    %320 = tpu.matmul %318, %319, %cst_172 {dimension_numbers = #tpu.dot_dimension_numbers<[1], [0], [0], [1], [0, 0, 1, 1], [], []>} : vector<16x128xbf16>, vector<128x128xbf16>, vector<16x128xf32> -> vector<16x128xf32>
    %c0_173 = arith.constant 0 : index
    %c0_174 = arith.constant 0 : index
    %321 = vector.load %arg19[%c0_173, %c0_174] : memref<1x128xf32, #tpu.memory_space<vmem>>, vector<1x128xf32>
    %322 = vector.broadcast %321 : vector<1x128xf32> to vector<16x128xf32>
    %323 = arith.addf %320, %322 : vector<16x128xf32>
    %cst_175 = arith.constant 1.000000e+00 : f32
    %324 = vector.broadcast %cst_175 : f32 to vector<16x128xf32>
    %325 = arith.mulf %323, %324 : vector<16x128xf32>
    %326 = arith.addf %23, %325 : vector<16x128xf32>
    %c0_176 = arith.constant 0 : index
    %c0_177 = arith.constant 0 : index
    %c0_178 = arith.constant 0 : index
    %327 = vector.load %arg20[%c0_176, %c0_177, %c0_178] : memref<1x16x128xf32, #tpu.memory_space<vmem>>, vector<1x16x128xf32>
    %328 = vector.shape_cast %327 : vector<1x16x128xf32> to vector<16x128xf32>
    %329 = vector.shape_cast %326 : vector<16x128xf32> to vector<1x16x128xf32>
    tpu.vector_store %arg20[%c0_176, %c0_177, %c0_178], %329 {strides = array<i32>} : memref<1x16x128xf32, #tpu.memory_space<vmem>>, vector<1x16x128xf32>,
    return
  }
  func.func @transform_0(%arg0: i32) -> (i32, i32, i32) {
    %c0_i32 = arith.constant 0 : i32
    %c0_i32_0 = arith.constant 0 : i32
    %c0_i32_1 = arith.constant 0 : i32
    return %arg0, %c0_i32, %c0_i32_0 : i32, i32, i32
  }
  func.func @transform_1(%arg0: i32) -> (i32, i32) {
    %c0_i32 = arith.constant 0 : i32
    %c0_i32_0 = arith.constant 0 : i32
    %c0_i32_1 = arith.constant 0 : i32
    return %c0_i32, %c0_i32_0 : i32, i32
  }
  func.func @transform_2(%arg0: i32) -> (i32, i32) {
    %c0_i32 = arith.constant 0 : i32
    %c0_i32_0 = arith.constant 0 : i32
    %c0_i32_1 = arith.constant 0 : i32
    return %c0_i32, %c0_i32_0 : i32, i32
  }
  func.func @transform_3(%arg0: i32) -> (i32, i32) {
    %c0_i32 = arith.constant 0 : i32
    %c0_i32_0 = arith.constant 0 : i32
    %c0_i32_1 = arith.constant 0 : i32
    return %c0_i32, %c0_i32_0 : i32, i32
  }
  func.func @transform_4(%arg0: i32) -> (i32, i32) {
    %c0_i32 = arith.constant 0 : i32
    %c0_i32_0 = arith.constant 0 : i32
    %c0_i32_1 = arith.constant 0 : i32
    return %c0_i32, %c0_i32_0 : i32, i32
  }
  func.func @transform_5(%arg0: i32) -> (i32, i32, i32) {
    %c0_i32 = arith.constant 0 : i32
    %c0_i32_0 = arith.constant 0 : i32
    %c0_i32_1 = arith.constant 0 : i32
    %c0_i32_2 = arith.constant 0 : i32
    return %c0_i32, %c0_i32_0, %c0_i32_1 : i32, i32, i32
  }
  func.func @transform_6(%arg0: i32) -> (i32, i32) {
    %c0_i32 = arith.constant 0 : i32
    %c0_i32_0 = arith.constant 0 : i32
    %c0_i32_1 = arith.constant 0 : i32
    return %c0_i32, %c0_i32_0 : i32, i32
  }
  func.func @transform_7(%arg0: i32) -> (i32, i32) {
    %c0_i32 = arith.constant 0 : i32
    %c0_i32_0 = arith.constant 0 : i32
    %c0_i32_1 = arith.constant 0 : i32
    return %c0_i32, %c0_i32_0 : i32, i32
  }
  func.func @transform_8(%arg0: i32) -> (i32, i32) {
    %c0_i32 = arith.constant 0 : i32
    %c0_i32_0 = arith.constant 0 : i32
    %c0_i32_1 = arith.constant 0 : i32
    return %c0_i32, %c0_i32_0 : i32, i32
  }
  func.func @transform_9(%arg0: i32) -> (i32, i32) {
    %c0_i32 = arith.constant 0 : i32
    %c0_i32_0 = arith.constant 0 : i32
    %c0_i32_1 = arith.constant 0 : i32
    return %c0_i32, %c0_i32_0 : i32, i32
  }
  func.func @transform_10(%arg0: i32) -> (i32, i32, i32) {
    %c0_i32 = arith.constant 0 : i32
    %c0_i32_0 = arith.constant 0 : i32
    %c0_i32_1 = arith.constant 0 : i32
    %c0_i32_2 = arith.constant 0 : i32
    return %c0_i32, %c0_i32_0, %c0_i32_1 : i32, i32, i32
  }
  func.func @transform_11(%arg0: i32) -> (i32, i32) {
    %c0_i32 = arith.constant 0 : i32
    %c0_i32_0 = arith.constant 0 : i32
    %c0_i32_1 = arith.constant 0 : i32
    return %c0_i32, %c0_i32_0 : i32, i32
  }
  func.func @transform_12(%arg0: i32) -> (i32, i32) {
    %c0_i32 = arith.constant 0 : i32
    %c0_i32_0 = arith.constant 0 : i32
    %c0_i32_1 = arith.constant 0 : i32
    return %c0_i32, %c0_i32_0 : i32, i32
  }
  func.func @transform_13(%arg0: i32) -> (i32, i32) {
    %c0_i32 = arith.constant 0 : i32
    %c0_i32_0 = arith.constant 0 : i32
    %c0_i32_1 = arith.constant 0 : i32
    return %c0_i32, %c0_i32_0 : i32, i32
  }
  func.func @transform_14(%arg0: i32) -> (i32, i32) {
    %c0_i32 = arith.constant 0 : i32
    %c0_i32_0 = arith.constant 0 : i32
    %c0_i32_1 = arith.constant 0 : i32
    return %c0_i32, %c0_i32_0 : i32, i32
  }
  func.func @transform_15(%arg0: i32) -> (i32, i32) {
    %c0_i32 = arith.constant 0 : i32
    %c0_i32_0 = arith.constant 0 : i32
    %c0_i32_1 = arith.constant 0 : i32
    return %c0_i32, %c0_i32_0 : i32, i32
  }
  func.func @transform_16(%arg0: i32) -> (i32, i32) {
    %c0_i32 = arith.constant 0 : i32
    %c0_i32_0 = arith.constant 0 : i32
    %c0_i32_1 = arith.constant 0 : i32
    return %c0_i32, %c0_i32_0 : i32, i32
  }
  func.func @transform_17(%arg0: i32) -> (i32, i32) {
    %c0_i32 = arith.constant 0 : i32
    %c0_i32_0 = arith.constant 0 : i32
    %c0_i32_1 = arith.constant 0 : i32
    return %c0_i32, %c0_i32_0 : i32, i32
  }
  func.func @transform_18(%arg0: i32) -> (i32, i32) {
    %c0_i32 = arith.constant 0 : i32
    %c0_i32_0 = arith.constant 0 : i32
    %c0_i32_1 = arith.constant 0 : i32
    return %c0_i32, %c0_i32_0 : i32, i32
  }
  func.func @transform_19(%arg0: i32) -> (i32, i32, i32) {
    %c0_i32 = arith.constant 0 : i32
    %c0_i32_0 = arith.constant 0 : i32
    %c0_i32_1 = arith.constant 0 : i32
    return %arg0, %c0_i32, %c0_i32_0 : i32, i32, i32
  }
}

module attributes {stable_mosaic.version = 11 : i64} {
  func.func @_mlp_kernel(%arg0: i32, %arg1: memref<80x128xf32, #tpu.memory_space<vmem>>, %arg2: memref<1x128xf32, #tpu.memory_space<vmem>>, %arg3: memref<1x128xf32, #tpu.memory_space<vmem>>, %arg4: memref<128x512xbf16, #tpu.memory_space<vmem>>, %arg5: memref<1x512xf32, #tpu.memory_space<vmem>>, %arg6: memref<512x128xbf16, #tpu.memory_space<vmem>>, %arg7: memref<1x128xf32, #tpu.memory_space<vmem>>, %arg8: memref<80x128xf32, #tpu.memory_space<vmem>>) attributes {dimension_semantics = [#tpu.dimension_semantics<parallel>], iteration_bounds = array<i64: 2>, scalar_prefetch = 0 : i64, scratch_operands = 0 : i64, tpu.core_type = #tpu.core_type<tc>, window_params = [{transform_indices = @transform_0, window_bounds = array<i64: 80, 128>}, {pipeline_mode = #tpu.pipeline_mode<synchronous>, transform_indices = @transform_1, window_bounds = array<i64: 1, 128>}, {pipeline_mode = #tpu.pipeline_mode<synchronous>, transform_indices = @transform_2, window_bounds = array<i64: 1, 128>}, {pipeline_mode = #tpu.pipeline_mode<synchronous>, transform_indices = @transform_3, window_bounds = array<i64: 128, 512>}, {pipeline_mode = #tpu.pipeline_mode<synchronous>, transform_indices = @transform_4, window_bounds = array<i64: 1, 512>}, {pipeline_mode = #tpu.pipeline_mode<synchronous>, transform_indices = @transform_5, window_bounds = array<i64: 512, 128>}, {pipeline_mode = #tpu.pipeline_mode<synchronous>, transform_indices = @transform_6, window_bounds = array<i64: 1, 128>}, {transform_indices = @transform_7, window_bounds = array<i64: 80, 128>}]} {
    %c0 = arith.constant 0 : index
    %c0_0 = arith.constant 0 : index
    %0 = vector.load %arg1[%c0, %c0_0] : memref<80x128xf32, #tpu.memory_space<vmem>>, vector<80x128xf32>
    %cst = arith.constant dense<0.000000e+00> : vector<80xf32>
    %1 = vector.multi_reduction <add>, %0, %cst [1] : vector<80x128xf32> to vector<80xf32>
    %2 = vector.shape_cast %1 : vector<80xf32> to vector<80x1xf32>
    %cst_1 = arith.constant 1.280000e+02 : f32
    %3 = vector.broadcast %cst_1 : f32 to vector<80x1xf32>
    %4 = arith.divf %2, %3 : vector<80x1xf32>
    %5 = vector.broadcast %4 : vector<80x1xf32> to vector<80x128xf32>
    %6 = arith.subf %0, %5 : vector<80x128xf32>
    %7 = arith.mulf %6, %6 : vector<80x128xf32>
    %cst_2 = arith.constant dense<0.000000e+00> : vector<80xf32>
    %8 = vector.multi_reduction <add>, %7, %cst_2 [1] : vector<80x128xf32> to vector<80xf32>
    %9 = vector.shape_cast %8 : vector<80xf32> to vector<80x1xf32>
    %cst_3 = arith.constant 1.280000e+02 : f32
    %10 = vector.broadcast %cst_3 : f32 to vector<80x1xf32>
    %11 = arith.divf %9, %10 : vector<80x1xf32>
    %cst_4 = arith.constant 9.99999974E-6 : f32
    %12 = vector.broadcast %cst_4 : f32 to vector<80x1xf32>
    %13 = arith.addf %11, %12 : vector<80x1xf32>
    %14 = math.rsqrt %13 : vector<80x1xf32>
    %15 = vector.broadcast %14 : vector<80x1xf32> to vector<80x128xf32>
    %16 = arith.mulf %6, %15 : vector<80x128xf32>
    %c0_5 = arith.constant 0 : index
    %c0_6 = arith.constant 0 : index
    %17 = vector.load %arg2[%c0_5, %c0_6] : memref<1x128xf32, #tpu.memory_space<vmem>>, vector<1x128xf32>
    %18 = vector.broadcast %17 : vector<1x128xf32> to vector<80x128xf32>
    %19 = arith.mulf %16, %18 : vector<80x128xf32>
    %c0_7 = arith.constant 0 : index
    %c0_8 = arith.constant 0 : index
    %20 = vector.load %arg3[%c0_7, %c0_8] : memref<1x128xf32, #tpu.memory_space<vmem>>, vector<1x128xf32>
    %21 = vector.broadcast %20 : vector<1x128xf32> to vector<80x128xf32>
    %22 = arith.addf %19, %21 : vector<80x128xf32>
    %23 = arith.truncf %22 : vector<80x128xf32> to vector<80x128xbf16>
    %c0_9 = arith.constant 0 : index
    %c0_10 = arith.constant 0 : index
    %24 = vector.load %arg4[%c0_9, %c0_10] : memref<128x512xbf16, #tpu.memory_space<vmem>>, vector<128x512xbf16>
    %cst_11 = arith.constant dense<0.000000e+00> : vector<80x512xf32>
    %25 = tpu.matmul %23, %24, %cst_11 {dimension_numbers = #tpu.dot_dimension_numbers<[1], [0], [0], [1], [0, 0, 1, 1], [], []>} : vector<80x128xbf16>, vector<128x512xbf16>, vector<80x512xf32> -> vector<80x512xf32>
    %c0_12 = arith.constant 0 : index
    %c0_13 = arith.constant 0 : index
    %26 = vector.load %arg5[%c0_12, %c0_13] : memref<1x512xf32, #tpu.memory_space<vmem>>, vector<1x512xf32>
    %27 = vector.broadcast %26 : vector<1x512xf32> to vector<80x512xf32>
    %28 = arith.addf %25, %27 : vector<80x512xf32>
    %cst_14 = arith.constant 5.000000e-01 : f32
    %29 = vector.broadcast %cst_14 : f32 to vector<80x512xf32>
    %30 = arith.mulf %29, %28 : vector<80x512xf32>
    %cst_15 = arith.constant 0.707106769 : f32
    %31 = vector.broadcast %cst_15 : f32 to vector<80x512xf32>
    %32 = arith.mulf %28, %31 : vector<80x512xf32>
    %33 = math.erf %32 : vector<80x512xf32>
    %cst_16 = arith.constant 1.000000e+00 : f32
    %34 = vector.broadcast %cst_16 : f32 to vector<80x512xf32>
    %35 = arith.addf %34, %33 : vector<80x512xf32>
    %36 = arith.mulf %30, %35 : vector<80x512xf32>
    %37 = arith.truncf %36 : vector<80x512xf32> to vector<80x512xbf16>
    %c0_17 = arith.constant 0 : index
    %c0_18 = arith.constant 0 : index
    %38 = vector.load %arg6[%c0_17, %c0_18] : memref<512x128xbf16, #tpu.memory_space<vmem>>, vector<512x128xbf16>
    %cst_19 = arith.constant dense<0.000000e+00> : vector<80x128xf32>
    %39 = tpu.matmul %37, %38, %cst_19 {dimension_numbers = #tpu.dot_dimension_numbers<[1], [0], [0], [1], [0, 0, 1, 1], [], []>} : vector<80x512xbf16>, vector<512x128xbf16>, vector<80x128xf32> -> vector<80x128xf32>
    %c0_20 = arith.constant 0 : index
    %c0_21 = arith.constant 0 : index
    %40 = vector.load %arg7[%c0_20, %c0_21] : memref<1x128xf32, #tpu.memory_space<vmem>>, vector<1x128xf32>
    %41 = vector.broadcast %40 : vector<1x128xf32> to vector<80x128xf32>
    %42 = arith.addf %39, %41 : vector<80x128xf32>
    %43 = arith.addf %0, %42 : vector<80x128xf32>
    %c0_22 = arith.constant 0 : index
    %c0_23 = arith.constant 0 : index
    %44 = vector.load %arg8[%c0_22, %c0_23] : memref<80x128xf32, #tpu.memory_space<vmem>>, vector<80x128xf32>
    tpu.vector_store %arg8[%c0_22, %c0_23], %43 {strides = array<i32>} : memref<80x128xf32, #tpu.memory_space<vmem>>, vector<80x128xf32>,
    return
  }
  func.func @transform_0(%arg0: i32) -> (i32, i32) {
    %c0_i32 = arith.constant 0 : i32
    %c0_i32_0 = arith.constant 0 : i32
    return %arg0, %c0_i32 : i32, i32
  }
  func.func @transform_1(%arg0: i32) -> (i32, i32) {
    %c0_i32 = arith.constant 0 : i32
    %c0_i32_0 = arith.constant 0 : i32
    %c0_i32_1 = arith.constant 0 : i32
    return %c0_i32, %c0_i32_0 : i32, i32
  }
  func.func @transform_2(%arg0: i32) -> (i32, i32) {
    %c0_i32 = arith.constant 0 : i32
    %c0_i32_0 = arith.constant 0 : i32
    %c0_i32_1 = arith.constant 0 : i32
    return %c0_i32, %c0_i32_0 : i32, i32
  }
  func.func @transform_3(%arg0: i32) -> (i32, i32) {
    %c0_i32 = arith.constant 0 : i32
    %c0_i32_0 = arith.constant 0 : i32
    %c0_i32_1 = arith.constant 0 : i32
    return %c0_i32, %c0_i32_0 : i32, i32
  }
  func.func @transform_4(%arg0: i32) -> (i32, i32) {
    %c0_i32 = arith.constant 0 : i32
    %c0_i32_0 = arith.constant 0 : i32
    %c0_i32_1 = arith.constant 0 : i32
    return %c0_i32, %c0_i32_0 : i32, i32
  }
  func.func @transform_5(%arg0: i32) -> (i32, i32) {
    %c0_i32 = arith.constant 0 : i32
    %c0_i32_0 = arith.constant 0 : i32
    %c0_i32_1 = arith.constant 0 : i32
    return %c0_i32, %c0_i32_0 : i32, i32
  }
  func.func @transform_6(%arg0: i32) -> (i32, i32) {
    %c0_i32 = arith.constant 0 : i32
    %c0_i32_0 = arith.constant 0 : i32
    %c0_i32_1 = arith.constant 0 : i32
    return %c0_i32, %c0_i32_0 : i32, i32
  }
  func.func @transform_7(%arg0: i32) -> (i32, i32) {
    %c0_i32 = arith.constant 0 : i32
    %c0_i32_0 = arith.constant 0 : i32
    return %arg0, %c0_i32 : i32, i32
  }
}

module attributes {stable_mosaic.version = 11 : i64} {
  func.func @_attn_kernel(%arg0: i32, %arg1: memref<1x80x128xf32, #tpu.memory_space<vmem>>, %arg2: memref<1x80x128xf32, #tpu.memory_space<vmem>>, %arg3: memref<128x384xbf16, #tpu.memory_space<vmem>>, %arg4: memref<1x384xf32, #tpu.memory_space<vmem>>, %arg5: memref<128x128xbf16, #tpu.memory_space<vmem>>, %arg6: memref<1x128xf32, #tpu.memory_space<vmem>>, %arg7: memref<1x80x128xf32, #tpu.memory_space<vmem>>, %arg8: memref<1x2x80x80xf32, #tpu.memory_space<vmem>>, %arg9: memref<80x384xf32, #tpu.memory_space<vmem>>, %arg10: memref<80x128xf32, #tpu.memory_space<vmem>>) attributes {dimension_semantics = [#tpu.dimension_semantics<parallel>], iteration_bounds = array<i64: 2>, scalar_prefetch = 0 : i64, scratch_operands = 2 : i64, tpu.core_type = #tpu.core_type<tc>, window_params = [{transform_indices = @transform_0, window_bounds = array<i64: 1, 80, 128>}, {transform_indices = @transform_1, window_bounds = array<i64: 1, 80, 128>}, {pipeline_mode = #tpu.pipeline_mode<synchronous>, transform_indices = @transform_2, window_bounds = array<i64: 128, 384>}, {pipeline_mode = #tpu.pipeline_mode<synchronous>, transform_indices = @transform_3, window_bounds = array<i64: 1, 384>}, {pipeline_mode = #tpu.pipeline_mode<synchronous>, transform_indices = @transform_4, window_bounds = array<i64: 128, 128>}, {pipeline_mode = #tpu.pipeline_mode<synchronous>, transform_indices = @transform_5, window_bounds = array<i64: 1, 128>}, {transform_indices = @transform_6, window_bounds = array<i64: 1, 80, 128>}, {transform_indices = @transform_7, window_bounds = array<i64: 1, 2, 80, 80>}]} {
    %c0 = arith.constant 0 : index
    %c0_0 = arith.constant 0 : index
    %c0_1 = arith.constant 0 : index
    %0 = vector.load %arg1[%c0, %c0_0, %c0_1] : memref<1x80x128xf32, #tpu.memory_space<vmem>>, vector<1x80x128xf32>
    %1 = vector.shape_cast %0 : vector<1x80x128xf32> to vector<80x128xf32>
    %2 = arith.truncf %1 : vector<80x128xf32> to vector<80x128xbf16>
    %c0_2 = arith.constant 0 : index
    %c0_3 = arith.constant 0 : index
    %3 = vector.load %arg3[%c0_2, %c0_3] : memref<128x384xbf16, #tpu.memory_space<vmem>>, vector<128x384xbf16>
    %cst = arith.constant dense<0.000000e+00> : vector<80x384xf32>
    %4 = tpu.matmul %2, %3, %cst {dimension_numbers = #tpu.dot_dimension_numbers<[1], [0], [0], [1], [0, 0, 1, 1], [], []>} : vector<80x128xbf16>, vector<128x384xbf16>, vector<80x384xf32> -> vector<80x384xf32>
    %c0_4 = arith.constant 0 : index
    %c0_5 = arith.constant 0 : index
    %5 = vector.load %arg4[%c0_4, %c0_5] : memref<1x384xf32, #tpu.memory_space<vmem>>, vector<1x384xf32>
    %6 = vector.broadcast %5 : vector<1x384xf32> to vector<80x384xf32>
    %7 = arith.addf %4, %6 : vector<80x384xf32>
    %c0_6 = arith.constant 0 : index
    %c0_7 = arith.constant 0 : index
    %8 = vector.load %arg9[%c0_6, %c0_7] : memref<80x384xf32, #tpu.memory_space<vmem>>, vector<80x384xf32>
    tpu.vector_store %arg9[%c0_6, %c0_7], %7 {strides = array<i32>} : memref<80x384xf32, #tpu.memory_space<vmem>>, vector<80x384xf32>,
    %c0_8 = arith.constant 0 : index
    %c0_9 = arith.constant 0 : index
    %9 = vector.load %arg9[%c0_8, %c0_9] : memref<80x384xf32, #tpu.memory_space<vmem>>, vector<80x64xf32>
    %c0_10 = arith.constant 0 : index
    %c128 = arith.constant 128 : index
    %10 = vector.load %arg9[%c0_10, %c128] : memref<80x384xf32, #tpu.memory_space<vmem>>, vector<80x64xf32>
    %c0_11 = arith.constant 0 : index
    %c256 = arith.constant 256 : index
    %11 = vector.load %arg9[%c0_11, %c256] : memref<80x384xf32, #tpu.memory_space<vmem>>, vector<80x64xf32>
    %12 = arith.truncf %9 : vector<80x64xf32> to vector<80x64xbf16>
    %13 = arith.truncf %10 : vector<80x64xf32> to vector<80x64xbf16>
    %cst_12 = arith.constant dense<0.000000e+00> : vector<80x80xf32>
    %14 = tpu.matmul %12, %13, %cst_12 {dimension_numbers = #tpu.dot_dimension_numbers<[1], [1], [0], [0], [0, 0, 1, 0], [], []>} : vector<80x64xbf16>, vector<80x64xbf16>, vector<80x80xf32> -> vector<80x80xf32>
    %cst_13 = arith.constant 1.250000e-01 : f32
    %15 = vector.broadcast %cst_13 : f32 to vector<80x80xf32>
    %16 = arith.mulf %14, %15 : vector<80x80xf32>
    %cst_14 = arith.constant dense<0xFF800000> : vector<80xf32>
    %17 = vector.multi_reduction <maximumf>, %16, %cst_14 [1] : vector<80x80xf32> to vector<80xf32>
    %18 = vector.shape_cast %17 : vector<80xf32> to vector<80x1xf32>
    %19 = vector.broadcast %18 : vector<80x1xf32> to vector<80x80xf32>
    %20 = arith.subf %16, %19 : vector<80x80xf32>
    %21 = math.exp %20 : vector<80x80xf32>
    %cst_15 = arith.constant dense<0.000000e+00> : vector<80xf32>
    %22 = vector.multi_reduction <add>, %21, %cst_15 [1] : vector<80x80xf32> to vector<80xf32>
    %23 = vector.shape_cast %22 : vector<80xf32> to vector<80x1xf32>
    %24 = vector.broadcast %23 : vector<80x1xf32> to vector<80x80xf32>
    %25 = arith.divf %21, %24 : vector<80x80xf32>
    %c0_16 = arith.constant 0 : index
    %c0_17 = arith.constant 0 : index
    %c0_18 = arith.constant 0 : index
    %c0_19 = arith.constant 0 : index
    %26 = vector.load %arg8[%c0_16, %c0_17, %c0_18, %c0_19] : memref<1x2x80x80xf32, #tpu.memory_space<vmem>>, vector<1x1x80x80xf32>
    %27 = vector.shape_cast %26 : vector<1x1x80x80xf32> to vector<80x80xf32>
    %28 = vector.shape_cast %25 : vector<80x80xf32> to vector<1x1x80x80xf32>
    tpu.vector_store %arg8[%c0_16, %c0_17, %c0_18, %c0_19], %28 {strides = array<i32>} : memref<1x2x80x80xf32, #tpu.memory_space<vmem>>, vector<1x1x80x80xf32>,
    %29 = arith.truncf %25 : vector<80x80xf32> to vector<80x80xbf16>
    %30 = arith.truncf %11 : vector<80x64xf32> to vector<80x64xbf16>
    %cst_20 = arith.constant dense<0.000000e+00> : vector<80x64xf32>
    %31 = tpu.matmul %29, %30, %cst_20 {dimension_numbers = #tpu.dot_dimension_numbers<[1], [0], [0], [1], [0, 0, 1, 1], [], []>} : vector<80x80xbf16>, vector<80x64xbf16>, vector<80x64xf32> -> vector<80x64xf32>
    %c0_21 = arith.constant 0 : index
    %c0_22 = arith.constant 0 : index
    %32 = vector.load %arg10[%c0_21, %c0_22] : memref<80x128xf32, #tpu.memory_space<vmem>>, vector<80x64xf32>
    tpu.vector_store %arg10[%c0_21, %c0_22], %31 {strides = array<i32>} : memref<80x128xf32, #tpu.memory_space<vmem>>, vector<80x64xf32>,
    %c0_23 = arith.constant 0 : index
    %c64 = arith.constant 64 : index
    %33 = vector.load %arg9[%c0_23, %c64] : memref<80x384xf32, #tpu.memory_space<vmem>>, vector<80x64xf32>
    %c0_24 = arith.constant 0 : index
    %c192 = arith.constant 192 : index
    %34 = vector.load %arg9[%c0_24, %c192] : memref<80x384xf32, #tpu.memory_space<vmem>>, vector<80x64xf32>
    %c0_25 = arith.constant 0 : index
    %c320 = arith.constant 320 : index
    %35 = vector.load %arg9[%c0_25, %c320] : memref<80x384xf32, #tpu.memory_space<vmem>>, vector<80x64xf32>
    %36 = arith.truncf %33 : vector<80x64xf32> to vector<80x64xbf16>
    %37 = arith.truncf %34 : vector<80x64xf32> to vector<80x64xbf16>
    %cst_26 = arith.constant dense<0.000000e+00> : vector<80x80xf32>
    %38 = tpu.matmul %36, %37, %cst_26 {dimension_numbers = #tpu.dot_dimension_numbers<[1], [1], [0], [0], [0, 0, 1, 0], [], []>} : vector<80x64xbf16>, vector<80x64xbf16>, vector<80x80xf32> -> vector<80x80xf32>
    %cst_27 = arith.constant 1.250000e-01 : f32
    %39 = vector.broadcast %cst_27 : f32 to vector<80x80xf32>
    %40 = arith.mulf %38, %39 : vector<80x80xf32>
    %cst_28 = arith.constant dense<0xFF800000> : vector<80xf32>
    %41 = vector.multi_reduction <maximumf>, %40, %cst_28 [1] : vector<80x80xf32> to vector<80xf32>
    %42 = vector.shape_cast %41 : vector<80xf32> to vector<80x1xf32>
    %43 = vector.broadcast %42 : vector<80x1xf32> to vector<80x80xf32>
    %44 = arith.subf %40, %43 : vector<80x80xf32>
    %45 = math.exp %44 : vector<80x80xf32>
    %cst_29 = arith.constant dense<0.000000e+00> : vector<80xf32>
    %46 = vector.multi_reduction <add>, %45, %cst_29 [1] : vector<80x80xf32> to vector<80xf32>
    %47 = vector.shape_cast %46 : vector<80xf32> to vector<80x1xf32>
    %48 = vector.broadcast %47 : vector<80x1xf32> to vector<80x80xf32>
    %49 = arith.divf %45, %48 : vector<80x80xf32>
    %c0_30 = arith.constant 0 : index
    %c1 = arith.constant 1 : index
    %c0_31 = arith.constant 0 : index
    %c0_32 = arith.constant 0 : index
    %50 = vector.load %arg8[%c0_30, %c1, %c0_31, %c0_32] : memref<1x2x80x80xf32, #tpu.memory_space<vmem>>, vector<1x1x80x80xf32>
    %51 = vector.shape_cast %50 : vector<1x1x80x80xf32> to vector<80x80xf32>
    %52 = vector.shape_cast %49 : vector<80x80xf32> to vector<1x1x80x80xf32>
    tpu.vector_store %arg8[%c0_30, %c1, %c0_31, %c0_32], %52 {strides = array<i32>} : memref<1x2x80x80xf32, #tpu.memory_space<vmem>>, vector<1x1x80x80xf32>,
    %53 = arith.truncf %49 : vector<80x80xf32> to vector<80x80xbf16>
    %54 = arith.truncf %35 : vector<80x64xf32> to vector<80x64xbf16>
    %cst_33 = arith.constant dense<0.000000e+00> : vector<80x64xf32>
    %55 = tpu.matmul %53, %54, %cst_33 {dimension_numbers = #tpu.dot_dimension_numbers<[1], [0], [0], [1], [0, 0, 1, 1], [], []>} : vector<80x80xbf16>, vector<80x64xbf16>, vector<80x64xf32> -> vector<80x64xf32>
    %c0_34 = arith.constant 0 : index
    %c64_35 = arith.constant 64 : index
    %56 = vector.load %arg10[%c0_34, %c64_35] : memref<80x128xf32, #tpu.memory_space<vmem>>, vector<80x64xf32>
    tpu.vector_store %arg10[%c0_34, %c64_35], %55 {strides = array<i32>} : memref<80x128xf32, #tpu.memory_space<vmem>>, vector<80x64xf32>,
    %c0_36 = arith.constant 0 : index
    %c0_37 = arith.constant 0 : index
    %c0_38 = arith.constant 0 : index
    %57 = vector.load %arg2[%c0_36, %c0_37, %c0_38] : memref<1x80x128xf32, #tpu.memory_space<vmem>>, vector<1x80x128xf32>
    %58 = vector.shape_cast %57 : vector<1x80x128xf32> to vector<80x128xf32>
    %c0_39 = arith.constant 0 : index
    %c0_40 = arith.constant 0 : index
    %59 = vector.load %arg10[%c0_39, %c0_40] : memref<80x128xf32, #tpu.memory_space<vmem>>, vector<80x128xf32>
    %60 = arith.truncf %59 : vector<80x128xf32> to vector<80x128xbf16>
    %c0_41 = arith.constant 0 : index
    %c0_42 = arith.constant 0 : index
    %61 = vector.load %arg5[%c0_41, %c0_42] : memref<128x128xbf16, #tpu.memory_space<vmem>>, vector<128x128xbf16>
    %cst_43 = arith.constant dense<0.000000e+00> : vector<80x128xf32>
    %62 = tpu.matmul %60, %61, %cst_43 {dimension_numbers = #tpu.dot_dimension_numbers<[1], [0], [0], [1], [0, 0, 1, 1], [], []>} : vector<80x128xbf16>, vector<128x128xbf16>, vector<80x128xf32> -> vector<80x128xf32>
    %63 = arith.addf %58, %62 : vector<80x128xf32>
    %c0_44 = arith.constant 0 : index
    %c0_45 = arith.constant 0 : index
    %64 = vector.load %arg6[%c0_44, %c0_45] : memref<1x128xf32, #tpu.memory_space<vmem>>, vector<1x128xf32>
    %65 = vector.broadcast %64 : vector<1x128xf32> to vector<80x128xf32>
    %66 = arith.addf %63, %65 : vector<80x128xf32>
    %c0_46 = arith.constant 0 : index
    %c0_47 = arith.constant 0 : index
    %c0_48 = arith.constant 0 : index
    %67 = vector.load %arg7[%c0_46, %c0_47, %c0_48] : memref<1x80x128xf32, #tpu.memory_space<vmem>>, vector<1x80x128xf32>
    %68 = vector.shape_cast %67 : vector<1x80x128xf32> to vector<80x128xf32>
    %69 = vector.shape_cast %66 : vector<80x128xf32> to vector<1x80x128xf32>
    tpu.vector_store %arg7[%c0_46, %c0_47, %c0_48], %69 {strides = array<i32>} : memref<1x80x128xf32, #tpu.memory_space<vmem>>, vector<1x80x128xf32>,
    return
  }
  func.func @transform_0(%arg0: i32) -> (i32, i32, i32) {
    %c0_i32 = arith.constant 0 : i32
    %c0_i32_0 = arith.constant 0 : i32
    %c0_i32_1 = arith.constant 0 : i32
    return %arg0, %c0_i32, %c0_i32_0 : i32, i32, i32
  }
  func.func @transform_1(%arg0: i32) -> (i32, i32, i32) {
    %c0_i32 = arith.constant 0 : i32
    %c0_i32_0 = arith.constant 0 : i32
    %c0_i32_1 = arith.constant 0 : i32
    return %arg0, %c0_i32, %c0_i32_0 : i32, i32, i32
  }
  func.func @transform_2(%arg0: i32) -> (i32, i32) {
    %c0_i32 = arith.constant 0 : i32
    %c0_i32_0 = arith.constant 0 : i32
    %c0_i32_1 = arith.constant 0 : i32
    return %c0_i32, %c0_i32_0 : i32, i32
  }
  func.func @transform_3(%arg0: i32) -> (i32, i32) {
    %c0_i32 = arith.constant 0 : i32
    %c0_i32_0 = arith.constant 0 : i32
    %c0_i32_1 = arith.constant 0 : i32
    return %c0_i32, %c0_i32_0 : i32, i32
  }
  func.func @transform_4(%arg0: i32) -> (i32, i32) {
    %c0_i32 = arith.constant 0 : i32
    %c0_i32_0 = arith.constant 0 : i32
    %c0_i32_1 = arith.constant 0 : i32
    return %c0_i32, %c0_i32_0 : i32, i32
  }
  func.func @transform_5(%arg0: i32) -> (i32, i32) {
    %c0_i32 = arith.constant 0 : i32
    %c0_i32_0 = arith.constant 0 : i32
    %c0_i32_1 = arith.constant 0 : i32
    return %c0_i32, %c0_i32_0 : i32, i32
  }
  func.func @transform_6(%arg0: i32) -> (i32, i32, i32) {
    %c0_i32 = arith.constant 0 : i32
    %c0_i32_0 = arith.constant 0 : i32
    %c0_i32_1 = arith.constant 0 : i32
    return %arg0, %c0_i32, %c0_i32_0 : i32, i32, i32
  }
  func.func @transform_7(%arg0: i32) -> (i32, i32, i32, i32) {
    %c0_i32 = arith.constant 0 : i32
    %c0_i32_0 = arith.constant 0 : i32
    %c0_i32_1 = arith.constant 0 : i32
    %c0_i32_2 = arith.constant 0 : i32
    return %arg0, %c0_i32, %c0_i32_0, %c0_i32_1 : i32, i32, i32, i32
  }
}

</mosaic_0001>

<bundles_post_ra>
// kernel: ce_block_forward.7
= control target key start
LH: loop header
LB: loop body
LE: loop exit
PB: predicated region body
PF: predicated region fallthrough
CT: control target
= control target key end

     0   :  { %12 = vsyncpa [#allocation3], 0  ;;  %s2743_s0 = inlined_call_operand.vmem [shape: f32[160,128], index: 0, kind: input, shape index: {}]   ;;  %s2744_s1 = inlined_call_operand.vmem [shape: f32[1,128], index: 1, kind: input, shape index: {}]   ;;  %s2745_s2 = inlined_call_operand.vmem [shape: f32[1,128], index: 2, kind: input, shape index: {}]   ;;  %s2746_s3 = inlined_call_operand.vmem [shape: bf16[128,512], index: 3, kind: input, shape index: {}]   ;;  %s2747_s4 = inlined_call_operand.vmem [shape: f32[1,512], index: 4, kind: input, shape index: {}]   ;;  %s2748_s5 = inlined_call_operand.vmem [shape: bf16[512,128], index: 5, kind: input, shape index: {}]   ;;  %s2749_s6 = inlined_call_operand.vmem [shape: f32[1,128], index: 6, kind: input, shape index: {}]   ;;  %s2750_s7 = inlined_call_operand.hbm [shape: f32[160,128], index: 7, kind: output, shape index: {}]  }
   0x1   :  { %14 = vsyncpa [#allocation3 + $0x1], 0  ;;  %s2055_s24 = smov 0   ;;  %s2057_s25 = smov 0  }
   0x2   :  { %s2059_s26 = smov 0   ;;  %s2061_s27 = smov 0  }
   0x3 LB: > { %s2076_s28 = sadd.s32 4294967295, %s2009_s27   ;;  %s1546_s29 = sadd.s32 4294967294, %s2009_s27   ;;  %s2009_s27 = sphi %s2061_s27, %s2756_s27   ;;  %s2005_s26 = sphi %s2059_s26, %s2755_s26   ;;  %s2001_s25 = sphi %s2057_s25, %s2754_s25   ;;  %s1997_s24 = sphi %s2055_s24, %s2753_s24  }
   0x4   : > { %s2080_s30 = sadd.s32 1, %s2009_s27   ;;  %s179_s8 = sadd.s32 1, %s2005_s26 }
   0x5   : > { %s176_s9 = ssub.s32 %s2009_s27, %s2080_s30  ;;  %p189_p0 = scmp.ne.s32.totalorder %s2005_s26, %s2001_s25 }
   0x6   : > { %p177_p1 = scmp.eq.s32.totalorder %s176_s9, 0  ;;  %p190_p2 = scmp.eq.s32.totalorder %s2076_s28, 1 }
   0x7   : > { %p195_p3 = scmp.ne.s32.totalorder %s2001_s25, %s1997_s24  ;;  %p196_p4 = scmp.eq.s32.totalorder %s1546_s29, 1 }
   0x8   : > { %s2091_s10 = scalar_select %p177_p1, %s2005_s26, %s179_s8  }
   0x9   : > { %p2093_p5 = por %p190_p2, %p189_p0  ;;  %p2097_p6 = por %p196_p4, %p195_p3 }
   0xa   : > { %p1549_p7 = scmp.ge.s32.totalorder %s2009_s27, 1  ;;  %p241_p8 = scmp.lt.s32.totalorder %s2009_s27, 3 }
   0xc   : > { %p242_p9 = pnand %p1549_p7, %p241_p8 }
   0xd   : > { %s273_s13 = smul.u32 (!%p242_p9), 10, %s2076_s28  ;;  %v1757_v10 = vld [vmem:[%s2746_s3 + $0x4] ss:$16 sps:$4 sm:$0xff] (!%p242_p9)   ;;  %v1759_v11 = vld [vmem:[%s2746_s3 + $0xc] ss:$16 sps:$4 sm:$0xff] (!%p242_p9)   ;;  %s270_s22 = sand.u32 (!%p242_p9), 1, %s2001_s25  }
   0xe   : > { %245 = sbr.rel (%p242_p9) target bundleno = 869 (0x365), region = 48  ;;  %v1761_v12 = vld [vmem:[%s2746_s3] ss:$16 sps:$4 sm:$0xff] (!%p242_p9)   ;;  %v1762_v13 = vld [vmem:[%s2746_s3 + $0x8] ss:$16 sps:$4 sm:$0xff] (!%p242_p9)   ;;  %655 = vmatprep.subr.bf16.mxu0 (!%p242_p9), %v1757_v10  ;;  %738 = vmatprep.subr.bf16.mxu1 (!%p242_p9), %v1759_v11  ;;  %s2012_s20 = smov (!%p242_p9), [#allocation2]  }
   0xf   : > { %p274_p10 = scmp.lt.s32.totalorder (!%p242_p9), %s273_s13, 19  ;;  %v1763_v14 = vld [vmem:[%s2746_s3 + $0x24] ss:$16 sps:$4 sm:$0xff] (!%p242_p9)   ;;  %v1765_v15 = vld [vmem:[%s2746_s3 + $0x2c] ss:$16 sps:$4 sm:$0xff] (!%p242_p9)   ;;  %656 = vmatpush1.bf16.msra.mxu0 (!%p242_p9), %v1761_v12  ;;  %739 = vmatpush1.bf16.msra.mxu1 (!%p242_p9), %v1762_v13  ;;  %s1714_s8 = smul.u32 (!%p242_p9), 80, %s270_s22 }
  0x10   : > { %657 = vmatprep.subr.bf16.mxu0 (!%p242_p9), %v1763_v14  ;;  %740 = vmatprep.subr.bf16.mxu1 (!%p242_p9), %v1765_v15  ;;  %v1767_v54 = vld [vmem:[%s2746_s3 + $0x20] ss:$16 sps:$4 sm:$0xff] (!%p242_p9)   ;;  %v1768_v55 = vld [vmem:[%s2746_s3 + $0x28] ss:$16 sps:$4 sm:$0xff] (!%p242_p9)   ;;  %v1769_v57 = vld [vmem:[%s2746_s3 + $0x44] ss:$16 sps:$4 sm:$0xff] (!%p242_p9)  }
  0x11   : > { %v1771_v58 = vld [vmem:[%s2746_s3 + $0x4c] ss:$16 sps:$4 sm:$0xff] (!%p242_p9)   ;;  %v1773_v60 = vld [vmem:[%s2746_s3 + $0x40] ss:$16 sps:$4 sm:$0xff] (!%p242_p9)   ;;  %v1774_v61 = vld [vmem:[%s2746_s3 + $0x48] ss:$16 sps:$4 sm:$0xff] (!%p242_p9)  }
  0x12   : > { %v1775_v62 = vld [vmem:[%s2746_s3 + $0x64] ss:$16 sps:$4 sm:$0xff] (!%p242_p9)   ;;  %v1777_v63 = vld [vmem:[%s2746_s3 + $0x6c] ss:$16 sps:$4 sm:$0xff] (!%p242_p9)   ;;  %v1797_v12 = vld [vmem:[%s2746_s3 + $0xc0] ss:$16 sps:$4 sm:$0xff] (!%p242_p9)  }
  0x13   : > { %658 = vmatpush1.bf16.msra.mxu0 (!%p242_p9), %v1767_v54  ;;  %741 = vmatpush1.bf16.msra.mxu1 (!%p242_p9), %v1768_v55  ;;  %v1793_v10 = vld [vmem:[%s2746_s3 + $0xc4] ss:$16 sps:$4 sm:$0xff] (!%p242_p9)   ;;  %v1795_v11 = vld [vmem:[%s2746_s3 + $0xcc] ss:$16 sps:$4 sm:$0xff] (!%p242_p9)   ;;  %v1798_v13 = vld [vmem:[%s2746_s3 + $0xc8] ss:$16 sps:$4 sm:$0xff] (!%p242_p9)  }
  0x14   : > { %659 = vmatprep.subr.bf16.mxu0 (!%p242_p9), %v1769_v57  ;;  %742 = vmatprep.subr.bf16.mxu1 (!%p242_p9), %v1771_v58  ;;  %v1799_v14 = vld [vmem:[%s2746_s3 + $0xe4] ss:$16 sps:$4 sm:$0xff] (!%p242_p9)   ;;  %v1801_v15 = vld [vmem:[%s2746_s3 + $0xec] ss:$16 sps:$4 sm:$0xff] (!%p242_p9)   ;;  %v2267_v54 = vld [vmem:[%s2744_s1] ss:$0 sm:$0xff] (!%p242_p9) }
  0x15   : > { %s2758_s13 = smov (!%p274_p10, %s273_s13), 19  ;;  %s2662_s9 = scalar_lea.vmem [#allocation2], %s1714_s8 }
  0x16   : > { %s1550_s14 = sshll.u32 %s2758_s13, 3  ;;  %s1621_s13 = smul.u32 1280, %s2076_s28 }
  0x17   : > { %s2107_s17 = scalar_lea.vmem %s2743_s0, %s1550_s14  ;;  %660 = vmatpush1.bf16.msra.mxu0 %v1773_v60  ;;  %743 = vmatpush1.bf16.msra.mxu1 %v1774_v61  ;;  %s1484_s14 = sshll.u32 %s2662_s9, 4  ;;  %s2690_s14 = int_to_ptr.vmem [resolvable:$true] %s1484_s14 }
  0x18   : > { %v281_v0 = vld [vmem:[%s2107_s17] sm:$0xff]  ;;  %v283_v1 = vld [vmem:[%s2107_s17 + $0x10] sm:$0xff]  ;;  %v282_v2 = vld [vmem:[%s2107_s17 + $0x8] sm:$0xff]  ;;  %661 = vmatprep.subr.bf16.mxu0 %v1775_v62  ;;  %744 = vmatprep.subr.bf16.mxu1 %v1777_v63  ;;  %s2697_s18 = scalar_lea.hbm %s2750_s7, %s1621_s13  ;;  %s2702_s28 = scalar_lea.sflag [#allocation3], %s270_s22 }
  0x19   : > { %291 = vadd.xlane.f32.xlu0 %v281_v0  ;;  %295 = vadd.xlane.f32.xlu1 %v283_v1  ;;  %v284_v3 = vld [vmem:[%s2107_s17 + $0x18] sm:$0xff]  ;;  %v285_v4 = vld [vmem:[%s2107_s17 + $0x20] sm:$0xff]  ;;  %v286_v5 = vld [vmem:[%s2107_s17 + $0x28] sm:$0xff]  ;;  %s1947_s19 = scalar_lea.vmem %s2690_s14, 1280  ;;  %s1951_s21 = sshll.u32 %s2012_s20, 4  ;;  %s1952_s21 = int_to_ptr.vmem [resolvable:$false] %s1951_s21 }
  0x1a   : > { %v287_v6 = vld [vmem:[%s2107_s17 + $0x30] sm:$0xff]  ;;  %v288_v7 = vld [vmem:[%s2107_s17 + $0x38] sm:$0xff]  ;;  %v289_v8 = vld [vmem:[%s2107_s17 + $0x40] sm:$0xff]  ;;  %p1948_p11 = scmp.ne.s32.totalorder %s2690_s14, %s1947_s19  ;;  %s1953_s23 = scalar_lea.vmem %s1952_s21, 2560 }
  0x1b   : > { %v290_v9 = vld [vmem:[%s2107_s17 + $0x48] sm:$0xff]  ;;  %p1954_p0 = scmp.lt.s32.totalorder %s2690_s14, %s1952_s21  ;;  %p1955_p1 = scmp.lt.s32.totalorder %s1953_s23, %s1947_s19 }
  0x1c   : > { %p1949_p12 = pnand %p1948_p11, %p2093_p5 }
  0x1d   : > { %293 = vadd.xlane.f32.xlu0 %v282_v2  ;;  %297 = vadd.xlane.f32.xlu1 %v284_v3  ;;  %p1956_p2 = por %p1955_p1, %p1954_p0 }
  0x1e   : > { %p1950_p13 = pneg %p1949_p12 }
  0x20   : > { %p1957_p3 = pnand %p1956_p2, %p1950_p13 }
  0x21   : > { %299 = vadd.xlane.f32.xlu0 %v285_v4  ;;  %301 = vadd.xlane.f32.xlu1 %v286_v5 }
  0x25   : > { %303 = vadd.xlane.f32.xlu0 %v287_v6  ;;  %305 = vadd.xlane.f32.xlu1 %v288_v7 }
  0x29   : > { %307 = vadd.xlane.f32.xlu0 %v289_v8  ;;  %309 = vadd.xlane.f32.xlu1 %v290_v9 }
  0xa6   : > { %v292_v16 = vpop.xlane.xlu0 %291  ;;  %v296_v17 = vpop.xlane.xlu1 %295 }
  0xa7   : > { %v312_v18 = vmul.f32 0.0078125, %v292_v16  ;;  %v314_v19 = vmul.f32 0.0078125, %v296_v17  ;;  %v1803_v16 = vld [vmem:[%s2746_s3 + $0xe0] ss:$16 sps:$4 sm:$0xff]   ;;  %v1804_v17 = vld [vmem:[%s2746_s3 + $0xe8] ss:$16 sps:$4 sm:$0xff]  }
  0xa9   : > { %v2137_v20 = vsub.f32 %v281_v0, %v312_v18  ;;  %v2139_v21 = vsub.f32 %v283_v1, %v314_v19  ;;  %v1779_v0 = vld [vmem:[%s2746_s3 + $0x60] ss:$16 sps:$4 sm:$0xff]   ;;  %v1780_v1 = vld [vmem:[%s2746_s3 + $0x68] ss:$16 sps:$4 sm:$0xff]   ;;  %v2011_v18 = vmov 0  }
  0xaa   : > { %v294_v22 = vpop.xlane.xlu0 %293  ;;  %v298_v23 = vpop.xlane.xlu1 %297  ;;  %662 = vmatpush1.bf16.msra.mxu0 %v1779_v0  ;;  %745 = vmatpush1.bf16.msra.mxu1 %v1780_v1  ;;  %v1805_v19 = vld [vmem:[%s2748_s5 + $0x40] sm:$0xff]  }
  0xab   : > { %v313_v24 = vmul.f32 0.0078125, %v294_v22  ;;  %v332_v25 = vmul.f32 %v2137_v20, %v2137_v20  ;;  %v315_v26 = vmul.f32 0.0078125, %v298_v23  ;;  %v334_v29 = vmul.f32 %v2139_v21, %v2139_v21  ;;  %687 = vmatprep.mubr.bf16.mxu0 %v2011_v18  ;;  %770 = vmatprep.mubr.bf16.mxu1 %v2011_v18  ;;  %v1807_v22 = vld [vmem:[%s2748_s5 + $0xc0] sm:$0xff]  }
  0xad   : > { %v2143_v27 = vsub.f32 %v282_v2, %v313_v24  ;;  %342 = vadd.xlane.f32.xlu0 %v332_v25  ;;  %v2145_v28 = vsub.f32 %v284_v3, %v315_v26  ;;  %v1781_v2 = vld [vmem:[%s2746_s3 + $0x84] ss:$16 sps:$4 sm:$0xff]   ;;  %v1783_v3 = vld [vmem:[%s2746_s3 + $0x8c] ss:$16 sps:$4 sm:$0xff]  }
  0xae   : > { %v300_v30 = vpop.xlane.xlu0 %299  ;;  %v302_v31 = vpop.xlane.xlu1 %301  ;;  %663 = vmatprep.subr.bf16.mxu0 %v1781_v2  ;;  %746 = vmatprep.subr.bf16.mxu1 %v1783_v3 }
  0xaf   : > { %v316_v32 = vmul.f32 0.0078125, %v300_v30  ;;  %v333_v33 = vmul.f32 %v2143_v27, %v2143_v27  ;;  %v317_v34 = vmul.f32 0.0078125, %v302_v31  ;;  %v335_v37 = vmul.f32 %v2145_v28, %v2145_v28 }
  0xb1   : > { %v2151_v35 = vsub.f32 %v285_v4, %v316_v32  ;;  %346 = vadd.xlane.f32.xlu0 %v334_v29  ;;  %344 = vadd.xlane.f32.xlu1 %v333_v33  ;;  %v2153_v36 = vsub.f32 %v286_v5, %v317_v34  ;;  %v1785_v4 = vld [vmem:[%s2746_s3 + $0x80] ss:$16 sps:$4 sm:$0xff]   ;;  %v1786_v5 = vld [vmem:[%s2746_s3 + $0x88] ss:$16 sps:$4 sm:$0xff]  }
  0xb2   : > { %v304_v38 = vpop.xlane.xlu0 %303  ;;  %v306_v39 = vpop.xlane.xlu1 %305  ;;  %664 = vmatpush1.bf16.msra.mxu0 %v1785_v4  ;;  %747 = vmatpush1.bf16.msra.mxu1 %v1786_v5 }
  0xb3   : > { %v318_v40 = vmul.f32 0.0078125, %v304_v38  ;;  %v336_v41 = vmul.f32 %v2151_v35, %v2151_v35  ;;  %v319_v42 = vmul.f32 0.0078125, %v306_v39  ;;  %v337_v45 = vmul.f32 %v2153_v36, %v2153_v36 }
  0xb5   : > { %v2159_v43 = vsub.f32 %v287_v6, %v318_v40  ;;  %348 = vadd.xlane.f32.xlu1 %v335_v37  ;;  %350 = vadd.xlane.f32.xlu0 %v336_v41  ;;  %v2161_v44 = vsub.f32 %v288_v7, %v319_v42  ;;  %v1787_v6 = vld [vmem:[%s2746_s3 + $0xa4] ss:$16 sps:$4 sm:$0xff]   ;;  %v1789_v7 = vld [vmem:[%s2746_s3 + $0xac] ss:$16 sps:$4 sm:$0xff]  }
  0xb6   : > { %v308_v46 = vpop.xlane.xlu0 %307  ;;  %v310_v47 = vpop.xlane.xlu1 %309  ;;  %665 = vmatprep.subr.bf16.mxu0 %v1787_v6  ;;  %748 = vmatprep.subr.bf16.mxu1 %v1789_v7 }
  0xb7   : > { %v320_v48 = vmul.f32 0.0078125, %v308_v46  ;;  %v338_v49 = vmul.f32 %v2159_v43, %v2159_v43  ;;  %v321_v50 = vmul.f32 0.0078125, %v310_v47  ;;  %v339_v53 = vmul.f32 %v2161_v44, %v2161_v44 }
  0xb9   : > { %v2167_v51 = vsub.f32 %v289_v8, %v320_v48  ;;  %352 = vadd.xlane.f32.xlu1 %v337_v45  ;;  %354 = vadd.xlane.f32.xlu0 %v338_v49  ;;  %v2169_v52 = vsub.f32 %v290_v9, %v321_v50  ;;  %v1791_v8 = vld [vmem:[%s2746_s3 + $0xa0] ss:$16 sps:$4 sm:$0xff]   ;;  %v1792_v9 = vld [vmem:[%s2746_s3 + $0xa8] ss:$16 sps:$4 sm:$0xff]  }
  0xba   : > { %666 = vmatpush1.bf16.msra.mxu0 %v1791_v8  ;;  %749 = vmatpush1.bf16.msra.mxu1 %v1792_v9  ;;  %v1806_v8 = vld [vmem:[%s2748_s5] sm:$0xff]  }
  0xbb   : > { %v340_v56 = vmul.f32 %v2167_v51, %v2167_v51  ;;  %v341_v59 = vmul.f32 %v2169_v52, %v2169_v52  ;;  %667 = vmatprep.subr.bf16.mxu0 %v1793_v10  ;;  %750 = vmatprep.subr.bf16.mxu1 %v1795_v11  ;;  %v1808_v9 = vld [vmem:[%s2748_s5 + $0x80] sm:$0xff]  }
  0xbd   : > { %356 = vadd.xlane.f32.xlu1 %v339_v53  ;;  %358 = vadd.xlane.f32.xlu0 %v340_v56 }
  0xbe   : > { %668 = vmatpush1.bf16.msra.mxu0 %v1797_v12  ;;  %751 = vmatpush1.bf16.msra.mxu1 %v1798_v13 }
  0xbf   : > { %669 = vmatprep.subr.bf16.mxu0 %v1799_v14  ;;  %752 = vmatprep.subr.bf16.mxu1 %v1801_v15 }
  0xc1   : > { %360 = vadd.xlane.f32.xlu1 %v341_v59 }
  0xc2   : > { %670 = vmatpush1.bf16.msra.mxu0 %v1803_v16  ;;  %753 = vmatpush1.bf16.msra.mxu1 %v1804_v17  ;;  %v1810_v17 = vld [vmem:[%s2748_s5 + $0x8] sm:$0xff]  }
  0xc3   : > { %1622 = vmatprep.subr.bf16.mxu0 %v1805_v19  ;;  %1668 = vmatprep.subr.bf16.mxu1 %v1807_v22  ;;  %v1812_v19 = vld [vmem:[%s2748_s5 + $0x88] sm:$0xff]  }
 0x13a   : > { %v343_v23 = vpop.xlane.xlu0 %342 }
 0x13b   : > { %v362_v24 = vmul.f32 0.0078125, %v343_v23  ;;  %v1813_v23 = vld [vmem:[%s2748_s5 + $0x50] sm:$0xff]  }
 0x13d   : > { %v372_v25 = vadd.f32 1e-05, %v362_v24 }
 0x13e   : > { %v345_v26 = vpop.xlane.xlu1 %344  ;;  %v347_v29 = vpop.xlane.xlu0 %346 }
 0x13f   : > { %1837 = vrsqrt.f32 %v372_v25  ;;  %v363_v30 = vmul.f32 0.0078125, %v345_v26  ;;  %v364_v31 = vmul.f32 0.0078125, %v347_v29 }
 0x141   : > { %v373_v32 = vadd.f32 1e-05, %v363_v30  ;;  %v374_v33 = vadd.f32 1e-05, %v364_v31  ;;  %v1814_v30 = vld [vmem:[%s2748_s5 + $0x10] sm:$0xff]  }
 0x142   : > { %v349_v34 = vpop.xlane.xlu1 %348  ;;  %v351_v37 = vpop.xlane.xlu0 %350  ;;  %v1816_v31 = vld [vmem:[%s2748_s5 + $0x90] sm:$0xff]  }
 0x143   : > { %1839 = vrsqrt.f32 %v373_v32  ;;  %v365_v38 = vmul.f32 0.0078125, %v349_v34  ;;  %v366_v40 = vmul.f32 0.0078125, %v351_v37 }
 0x144   : > { %1841 = vrsqrt.f32 %v374_v33 }
 0x145   : > { %v375_v39 = vadd.f32 1e-05, %v365_v38  ;;  %v376_v46 = vadd.f32 1e-05, %v366_v40 }
 0x146   : > { %v353_v41 = vpop.xlane.xlu1 %352  ;;  %v355_v48 = vpop.xlane.xlu0 %354 }
 0x147   : > { %1843 = vrsqrt.f32 %v375_v39  ;;  %v367_v42 = vmul.f32 0.0078125, %v353_v41  ;;  %v368_v56 = vmul.f32 0.0078125, %v355_v48 }
 0x149   : > { %v1838_v45 = vpop.eup %1837  ;;  %v377_v47 = vadd.f32 1e-05, %v367_v42  ;;  %v378_v0 = vadd.f32 1e-05, %v368_v56 }
 0x14a   : > { %v357_v49 = vpop.xlane.xlu1 %356  ;;  %v392_v50 = vmul.f32 %v1838_v45, %v2137_v20  ;;  %v2274_v20 = vld [vmem:[%s2745_s2] ss:$0 sm:$0xff]  ;;  %v359_v1 = vpop.xlane.xlu0 %358 }
 0x14b   : > { %1845 = vrsqrt.f32 %v377_v47  ;;  %v369_v53 = vmul.f32 0.0078125, %v357_v49  ;;  %v370_v11 = vmul.f32 0.0078125, %v359_v1  ;;  %v1829_v1 = vld [vmem:[%s2748_s5 + $0x70] sm:$0xff]  }
 0x14c   : > { %1847 = vrsqrt.f32 %v376_v46  ;;  %v409_v58 = vmul.f32 %v2267_v54, %v392_v50 }
 0x14d   : > { %v1840_v55 = vpop.eup %1839  ;;  %v379_v60 = vadd.f32 1e-05, %v369_v53  ;;  %v380_v22 = vadd.f32 1e-05, %v370_v11 }
 0x14e   : > { %v393_v57 = vmul.f32 %v1840_v55, %v2143_v27  ;;  %v1842_v59 = vpop.eup %1841  ;;  %v361_v61 = vpop.xlane.xlu1 %360  ;;  %v426_v2 = vadd.f32 %v2274_v20, %v409_v58  ;;  %v1821_v58 = vld [vmem:[%s2748_s5 + $0x60] sm:$0xff]  }
 0x14f   : > { %v394_v27 = vmul.f32 %v1842_v59, %v2139_v21  ;;  %1849 = vrsqrt.f32 %v379_v60  ;;  %v371_v5 = vmul.f32 0.0078125, %v361_v61  ;;  %v1809_v21 = vld [vmem:[%s2748_s5 + $0x48] sm:$0xff]   ;;  %v1823_v59 = vld [vmem:[%s2748_s5 + $0xe0] sm:$0xff]  }
 0x150   : > { %v410_v62 = vmul.f32 %v2267_v54, %v393_v57  ;;  %1851 = vrsqrt.f32 %v378_v0  ;;  %v1820_v57 = vld [vmem:[%s2748_s5 + $0x98] sm:$0xff]   ;;  %v1822_v60 = vld [vmem:[%s2748_s5 + $0x20] sm:$0xff]   ;;  %v1825_v61 = vld [vmem:[%s2748_s5 + $0x68] sm:$0xff]  }
 0x151   : > { %v1844_v63 = vpop.eup %1843  ;;  %v411_v12 = vmul.f32 %v2267_v54, %v394_v27  ;;  %v381_v14 = vadd.f32 1e-05, %v371_v5  ;;  %v1828_v0 = vld [vmem:[%s2748_s5 + $0xa8] sm:$0xff]   ;;  %v1832_v27 = vld [vmem:[%s2748_s5 + $0xb0] sm:$0xff]   ;;  %v1835_v5 = vld [vmem:[%s2748_s5 + $0xf8] sm:$0xff]  }
 0x152   : > { %v427_v3 = vadd.f32 %v2274_v20, %v410_v62  ;;  %v395_v4 = vmul.f32 %v1844_v63, %v2145_v28  ;;  %v1811_v28 = vld [vmem:[%s2748_s5 + $0xc8] sm:$0xff]  }
 0x153   : > { %v428_v24 = vadd.f32 %v2274_v20, %v411_v12  ;;  %1853 = vrsqrt.f32 %v381_v14  ;;  %v1827_v62 = vld [vmem:[%s2748_s5 + $0xe8] sm:$0xff]  }
 0x154   : > { %v436_v6 = vpack.c.bf16 %v427_v3, %v426_v2  ;;  %v412_v7 = vmul.f32 %v2267_v54, %v395_v4  ;;  %1855 = vrsqrt.f32 %v380_v22  ;;  %v1826_v63 = vld [vmem:[%s2748_s5 + $0x28] sm:$0xff]   ;;  %v1830_v2 = vld [vmem:[%s2748_s5 + $0x30] sm:$0xff]   ;;  %v1833_v4 = vld [vmem:[%s2748_s5 + $0x78] sm:$0xff]  }
 0x155   : > { %v1846_v10 = vpop.eup %1845  ;;  %v1831_v3 = vld [vmem:[%s2748_s5 + $0xf0] sm:$0xff]  }
 0x156   : > { %688 = vmatmul.mubr.bf16.vlgmr.msra.gmra.mrb[0].mxu0 %v436_v6  ;;  %771 = vmatmul.mubr.bf16.vlgmr.msra.gmra.mrb[0].mxu1 %v436_v6  ;;  %v1848_v13 = vpop.eup %1847  ;;  %v429_v15 = vadd.f32 %v2274_v20, %v412_v7  ;;  %v397_v16 = vmul.f32 %v1846_v10, %v2153_v36  ;;  %v1815_v36 = vld [vmem:[%s2748_s5 + $0xd0] sm:$0xff]   ;;  %v1834_v6 = vld [vmem:[%s2748_s5 + $0x38] sm:$0xff]  }
 0x157   : > { %697 = vmatprep.mubr.bf16.mxu0 %v2011_v18  ;;  %780 = vmatprep.mubr.bf16.mxu1 %v2011_v18  ;;  %v396_v25 = vmul.f32 %v1848_v13, %v2151_v35  ;;  %v1836_v7 = vld [vmem:[%s2748_s5 + $0xb8] sm:$0xff]  }
 0x158   : > { %1623 = vmatpush3.bf16.msra.mxu0 %v1806_v8  ;;  %1669 = vmatpush3.bf16.msra.mxu1 %v1808_v9  ;;  %v437_v26 = vpack.c.bf16 %v429_v15, %v428_v24  ;;  %v414_v29 = vmul.f32 %v2267_v54, %v397_v16  ;;  %v475_v8 = vlaneseq }
 0x159   : > { %1624 = vmatprep.subr.bf16.mxu0 %v1809_v21  ;;  %1670 = vmatprep.subr.bf16.mxu1 %v1811_v28  ;;  %v1850_v32 = vpop.eup %1849  ;;  %v413_v35 = vmul.f32 %v2267_v54, %v396_v25  ;;  %v473_v21 = vld [vmem:[%s2747_s4] sm:$0xf] }
 0x15a   : > { %v1852_v33 = vpop.eup %1851  ;;  %v431_v34 = vadd.f32 %v2274_v20, %v414_v29  ;;  %v399_v37 = vmul.f32 %v1850_v32, %v2161_v44  ;;  %v476_v9 = vshrl.u32 %v475_v8, 7 }
 0x15b   : > { %v430_v38 = vadd.f32 %v2274_v20, %v413_v35  ;;  %v398_v39 = vmul.f32 %v1852_v33, %v2159_v43 }
 0x15c   : > { %1625 = vmatpush3.bf16.msra.mxu0 %v1810_v17  ;;  %1671 = vmatpush3.bf16.msra.mxu1 %v1812_v19  ;;  %v416_v41 = vmul.f32 %v2267_v54, %v399_v37  ;;  %v477_v10 = vsub.s32 0, %v476_v9  ;;  %v485_v11 = vsub.s32 2, %v476_v9  ;;  %v481_v28 = vsub.s32 1, %v476_v9 }
 0x15d   : > { %1626 = vmatprep.subr.bf16.mxu0 %v1813_v23  ;;  %1672 = vmatprep.subr.bf16.mxu1 %v1815_v36  ;;  %v438_v40 = vpack.c.bf16 %v431_v34, %v430_v38  ;;  %v1854_v42 = vpop.eup %1853  ;;  %v415_v45 = vmul.f32 %v2267_v54, %v398_v39  ;;  %v489_v12 = vsub.s32 3, %v476_v9 }
 0x15e   : > { %698 = vmatmul.mubr.bf16.gmra.mrb[4].mxu0 %v437_v26  ;;  %781 = vmatmul.mubr.bf16.gmra.mrb[4].mxu1 %v437_v26  ;;  %v1856_v46 = vpop.eup %1855  ;;  %v433_v44 = vadd.f32 %v2274_v20, %v416_v41  ;;  %v401_v47 = vmul.f32 %v1854_v42, %v2169_v52  ;;  %v2404_v13 = vrot.slane %v473_v21, %v477_v10 }
 0x15f   : > { %707 = vmatprep.mubr.bf16.mxu0 %v2011_v18  ;;  %790 = vmatprep.mubr.bf16.mxu1 %v2011_v18  ;;  %v432_v48 = vadd.f32 %v2274_v20, %v415_v45  ;;  %v400_v43 = vmul.f32 %v1856_v46, %v2167_v51  ;;  %v1817_v51 = vld [vmem:[%s2748_s5 + $0x58] sm:$0xff]   ;;  %v2406_v14 = vrot.slane %v473_v21, %v485_v11 }
 0x160   : > { %1627 = vmatpush3.bf16.msra.mxu0 %v1814_v30  ;;  %1673 = vmatpush3.bf16.msra.mxu1 %v1816_v31  ;;  %v418_v50 = vmul.f32 %v2267_v54, %v401_v47  ;;  %v2408_v15 = vrot.slane %v473_v21, %v481_v28  ;;  %v2410_v16 = vrot.slane %v473_v21, %v489_v12 }
 0x161   : > { %v439_v49 = vpack.c.bf16 %v433_v44, %v432_v48  ;;  %v417_v53 = vmul.f32 %v2267_v54, %v400_v43  ;;  %1628 = vmatprep.subr.bf16.mxu0 %v1817_v51  ;;  %v1818_v54 = vld [vmem:[%s2748_s5 + $0x18] sm:$0xff]  }
 0x162   : > { %v435_v55 = vadd.f32 %v2274_v20, %v418_v50 }
 0x163   : > { %v434_v56 = vadd.f32 %v2274_v20, %v417_v53  ;;  %v1824_v20 = vld [vmem:[%s2748_s5 + $0xa0] sm:$0xff]  }
 0x164   : > { %1629 = vmatpush3.bf16.msra.mxu0 %v1818_v54 }
 0x165   : > { %v440_v52 = vpack.c.bf16 %v435_v55, %v434_v56  ;;  %1630 = vmatprep.subr.bf16.mxu0 %v1821_v58 }
 0x166   : > { %708 = vmatmul.mubr.bf16.gmra.mrb[8].mxu0 %v438_v40  ;;  %791 = vmatmul.mubr.bf16.gmra.mrb[8].mxu1 %v438_v40 }
 0x167   : > { %717 = vmatprep.mubr.bf16.mxu0 %v2011_v18  ;;  %800 = vmatprep.mubr.bf16.mxu1 %v2011_v18 }
 0x168   : > { %1631 = vmatpush3.bf16.msra.mxu0 %v1822_v60 }
 0x169   : > { %1632 = vmatprep.subr.bf16.mxu0 %v1825_v61 }
 0x16c   : > { %1633 = vmatpush3.bf16.msra.mxu0 %v1826_v63 }
 0x16d   : > { %1634 = vmatprep.subr.bf16.mxu0 %v1829_v1 }
 0x16e   : > { %718 = vmatmul.mubr.bf16.gmra.mrb[12].mxu0 %v439_v49  ;;  %801 = vmatmul.mubr.bf16.gmra.mrb[12].mxu1 %v439_v49 }
 0x16f   : > { %727 = vmatprep.mubr.bf16.mxu0 %v2011_v18  ;;  %810 = vmatprep.mubr.bf16.mxu1 %v2011_v18  ;;  %v1819_v18 = vld [vmem:[%s2748_s5 + $0xd8] sm:$0xff]  }
 0x170   : > { %1674 = vmatprep.subr.bf16.mxu1 %v1819_v18  ;;  %1635 = vmatpush3.bf16.msra.mxu0 %v1830_v2 }
 0x171   : > { %1675 = vmatpush3.bf16.msra.mxu1 %v1820_v57  ;;  %1636 = vmatprep.subr.bf16.mxu0 %v1833_v4 }
 0x172   : > { %1676 = vmatprep.subr.bf16.mxu1 %v1823_v59 }
 0x174   : > { %1637 = vmatpush3.bf16.msra.mxu0 %v1834_v6 }
 0x175   : > { %1677 = vmatpush3.bf16.msra.mxu1 %v1824_v20 }
 0x176   : > { %728 = vmatmul.mubr.bf16.gmra.mrb[16].mxu0 %v440_v52  ;;  %811 = vmatmul.mubr.bf16.gmra.mrb[16].mxu1 %v440_v52 }
 0x177   : > { %1678 = vmatprep.subr.bf16.mxu1 %v1827_v62 }
 0x179   : > { %1679 = vmatpush3.bf16.msra.mxu1 %v1828_v0 }
 0x17a   : > { %1680 = vmatprep.subr.bf16.mxu1 %v1831_v3 }
 0x17d   : > { %1681 = vmatpush3.bf16.msra.mxu1 %v1832_v27 }
 0x17e   : > { %1682 = vmatprep.subr.bf16.mxu1 %v1835_v5 }
 0x181   : > { %1683 = vmatpush3.bf16.msra.mxu1 %v1836_v7 }
 0x229   : > { %v689_v17 = vpop.f32.mrb[0].mxu0  ;;  %v772_v19 = vpop.f32.mrb[0].mxu1 }
 0x22a   : > { %v690_v22 = vadd.f32 %v689_v17, %v2404_v13  ;;  %v773_v23 = vadd.f32 %v772_v19, %v2406_v14  ;;  %v691_v36 = vpop.f32.mrb[1].mxu0  ;;  %v774_v24 = vpop.f32.mrb[1].mxu1 }
 0x22b   : > { %v692_v25 = vadd.f32 %v691_v36, %v2408_v15  ;;  %v775_v26 = vadd.f32 %v774_v24, %v2410_v16  ;;  %v693_v29 = vpop.f32.mrb[2].mxu0  ;;  %v776_v30 = vpop.f32.mrb[2].mxu1 }
 0x22c   : > { %v861_v31 = vmul.f32 0.70710677, %v690_v22  ;;  %v863_v32 = vmul.f32 0.70710677, %v773_v23  ;;  %v694_v34 = vadd.f32 %v693_v29, %v2404_v13  ;;  %v777_v37 = vadd.f32 %v776_v30, %v2406_v14  ;;  %v695_v38 = vpop.f32.mrb[3].mxu0  ;;  %v778_v39 = vpop.f32.mrb[3].mxu1 }
 0x22d   : > { %v862_v35 = vmul.f32 0.70710677, %v692_v25  ;;  %v864_v33 = vmul.f32 0.70710677, %v775_v26  ;;  %v696_v40 = vadd.f32 %v695_v38, %v2408_v15  ;;  %v779_v41 = vadd.f32 %v778_v39, %v2410_v16 }
 0x22e   : > { %1857 = verf.f32 %v861_v31  ;;  %v865_v42 = vmul.f32 0.70710677, %v694_v34  ;;  %v867_v45 = vmul.f32 0.70710677, %v777_v37  ;;  %v821_v59 = vmul.f32 0.5, %v690_v22 }
 0x22f   : > { %1859 = verf.f32 %v863_v32  ;;  %v866_v46 = vmul.f32 0.70710677, %v696_v40  ;;  %v868_v47 = vmul.f32 0.70710677, %v779_v41  ;;  %v823_v1 = vmul.f32 0.5, %v773_v23 }
 0x230   : > { %1861 = verf.f32 %v862_v35  ;;  %v2427_v2 = vmul.f32 0.5, %v692_v25  ;;  %v2429_v3 = vmul.f32 0.5, %v775_v26  ;;  %v825_v27 = vmul.f32 0.5, %v694_v34 }
 0x231   : > { %1863 = verf.f32 %v864_v33  ;;  %v699_v44 = vpop.f32.mrb[4].mxu0  ;;  %v782_v43 = vpop.f32.mrb[4].mxu1  ;;  %v827_v6 = vmul.f32 0.5, %v777_v37  ;;  %v2431_v11 = vmul.f32 0.5, %v696_v40  ;;  %v2433_v21 = vmul.f32 0.5, %v779_v41 }
 0x232   : > { %1865 = verf.f32 %v865_v42  ;;  %v700_v48 = vadd.f32 %v699_v44, %v2404_v13  ;;  %v701_v49 = vpop.f32.mrb[5].mxu0  ;;  %v783_v50 = vadd.f32 %v782_v43, %v2406_v14  ;;  %v784_v55 = vpop.f32.mrb[5].mxu1 }
 0x233   : > { %1867 = verf.f32 %v867_v45  ;;  %v702_v53 = vadd.f32 %v701_v49, %v2408_v15  ;;  %v703_v56 = vpop.f32.mrb[6].mxu0  ;;  %v785_v51 = vadd.f32 %v784_v55, %v2410_v16  ;;  %v786_v54 = vpop.f32.mrb[6].mxu1 }
 0x234   : > { %1869 = verf.f32 %v866_v46  ;;  %v869_v52 = vmul.f32 0.70710677, %v700_v48  ;;  %v705_v18 = vpop.f32.mrb[7].mxu0  ;;  %v871_v57 = vmul.f32 0.70710677, %v783_v50  ;;  %v788_v58 = vpop.f32.mrb[7].mxu1  ;;  %v704_v61 = vadd.f32 %v703_v56, %v2404_v13 }
 0x235   : > { %1871 = verf.f32 %v868_v47  ;;  %v870_v60 = vmul.f32 0.70710677, %v702_v53  ;;  %v872_v20 = vmul.f32 0.70710677, %v785_v51  ;;  %v787_v62 = vadd.f32 %v786_v54, %v2406_v14 }
 0x236   : > { %1873 = verf.f32 %v869_v52  ;;  %v706_v63 = vadd.f32 %v705_v18, %v2408_v15  ;;  %v873_v7 = vmul.f32 0.70710677, %v704_v61  ;;  %v789_v12 = vadd.f32 %v788_v58, %v2410_v16 }
 0x237   : > { %1875 = verf.f32 %v871_v57  ;;  %v875_v28 = vmul.f32 0.70710677, %v787_v62  ;;  %v2436_v23 = vmul.f32 0.5, %v700_v48  ;;  %v2438_v29 = vmul.f32 0.5, %v783_v50 }
 0x238   : > { %v1858_v0 = vpop.eup %1857  ;;  %1877 = verf.f32 %v870_v60  ;;  %v874_v36 = vmul.f32 0.70710677, %v706_v63  ;;  %v2440_v30 = vmul.f32 0.5, %v702_v53  ;;  %v2442_v31 = vmul.f32 0.5, %v785_v51 }
 0x239   : > { %v1860_v4 = vpop.eup %1859  ;;  %v941_v5 = vadd.f32 1.0, %v1858_v0  ;;  %v709_v8 = vpop.f32.mrb[8].mxu0  ;;  %1879 = verf.f32 %v872_v20  ;;  %v2448_v39 = vmul.f32 0.5, %v704_v61  ;;  %v876_v45 = vmul.f32 0.70710677, %v789_v12 }
 0x23a   : > { %v792_v9 = vpop.f32.mrb[8].mxu1  ;;  %v1862_v10 = vpop.eup %1861  ;;  %v943_v22 = vadd.f32 1.0, %v1860_v4  ;;  %1881 = verf.f32 %v873_v7  ;;  %v710_v46 = vadd.f32 %v709_v8, %v2404_v13  ;;  %v2463_v18 = vmul.f32 0.5, %v787_v62 }
 0x23b   : > { %v711_v17 = vpop.f32.mrb[9].mxu0  ;;  %v1864_v19 = vpop.eup %1863  ;;  %v2446_v34 = vmul.f32 %v941_v5, %v821_v59  ;;  %v942_v37 = vadd.f32 1.0, %v1862_v10  ;;  %1883 = verf.f32 %v875_v28  ;;  %v793_v43 = vadd.f32 %v792_v9, %v2406_v14 }
 0x23c   : > { %v794_v24 = vpop.f32.mrb[9].mxu1  ;;  %v713_v25 = vpop.f32.mrb[10].mxu0  ;;  %v2453_v47 = vmul.f32 %v943_v22, %v823_v1  ;;  %1885 = verf.f32 %v874_v36  ;;  %v944_v50 = vadd.f32 1.0, %v1864_v19  ;;  %v877_v55 = vmul.f32 0.70710677, %v710_v46 }
 0x23d   : > { %v1866_v26 = vpop.eup %1865  ;;  %v796_v32 = vpop.f32.mrb[10].mxu1  ;;  %v712_v56 = vadd.f32 %v711_v17, %v2408_v15  ;;  %v2465_v57 = vmul.f32 0.5, %v706_v63  ;;  %v2471_v61 = vmul.f32 0.5, %v789_v12  ;;  %1887 = verf.f32 %v876_v45 }
 0x23e   : > { %v2444_v35 = vpop.f32.mrb[11].mxu0  ;;  %v1868_v33 = vpop.eup %1867  ;;  %v945_v38 = vadd.f32 1.0, %v1866_v26  ;;  %v2478_v62 = vmul.f32 %v942_v37, %v2427_v2  ;;  %1889 = verf.f32 %v877_v55  ;;  %v879_v4 = vmul.f32 0.70710677, %v793_v43 }
 0x23f   : > { %v2450_v40 = vpop.f32.mrb[11].mxu1  ;;  %v1870_v41 = vpop.eup %1869  ;;  %v947_v42 = vadd.f32 1.0, %v1868_v33  ;;  %v2485_v7 = vmul.f32 %v944_v50, %v2429_v3  ;;  %v878_v9 = vmul.f32 0.70710677, %v712_v56  ;;  %v795_v10 = vadd.f32 %v794_v24, %v2410_v16 }
 0x240   : > { %v1872_v44 = vpop.eup %1871  ;;  %v2455_v48 = vmul.f32 %v945_v38, %v825_v27  ;;  %v946_v54 = vadd.f32 1.0, %v1870_v41  ;;  %v2493_v19 = vmul.f32 0.5, %v710_v46  ;;  %v714_v22 = vadd.f32 %v713_v25, %v2404_v13 }
 0x241   : > { %v1874_v49 = vpop.eup %1873  ;;  %v2458_v53 = vmul.f32 %v947_v42, %v827_v6  ;;  %v719_v58 = vpop.f32.mrb[12].mxu0  ;;  %v948_v20 = vadd.f32 1.0, %v1872_v44  ;;  %v797_v36 = vadd.f32 %v796_v32, %v2406_v14  ;;  %v2498_v37 = vmul.f32 0.5, %v793_v43 }
 0x242   : > { %v1876_v52 = vpop.eup %1875  ;;  %v1021_v51 = vpack.c.bf16 %v2455_v48, %v2446_v34  ;;  %v2467_v59 = vpop.f32.mrb[12].mxu1  ;;  %v949_v63 = vadd.f32 1.0, %v1874_v49  ;;  %v986_v17 = vmul.f32 %v946_v54, %v2431_v11  ;;  %1891 = verf.f32 %v879_v4 }
 0x243   : > { %v1023_v60 = vpack.c.bf16 %v2458_v53, %v2453_v47  ;;  %v2473_v0 = vpop.f32.mrb[13].mxu0  ;;  %v2475_v1 = vpop.f32.mrb[13].mxu1  ;;  %v951_v8 = vadd.f32 1.0, %v1876_v52  ;;  %v988_v3 = vmul.f32 %v948_v20, %v2433_v21  ;;  %1893 = verf.f32 %v878_v9 }
 0x244   : > { %v1878_v27 = vpop.eup %1877  ;;  %v2480_v5 = vpop.f32.mrb[14].mxu0  ;;  %v2501_v24 = vmul.f32 %v949_v63, %v2436_v23  ;;  %v880_v38 = vmul.f32 0.70710677, %v795_v10  ;;  %v881_v41 = vmul.f32 0.70710677, %v714_v22  ;;  %v2506_v45 = vmul.f32 0.5, %v712_v56 }
 0x245   : > { %v2482_v6 = vpop.f32.mrb[14].mxu1  ;;  %v2488_v28 = vpop.f32.mrb[15].mxu0  ;;  %v950_v33 = vadd.f32 1.0, %v1878_v27  ;;  %v2504_v42 = vmul.f32 %v951_v8, %v2438_v29  ;;  %v883_v32 = vmul.f32 0.70710677, %v797_v36  ;;  %v716_v44 = vadd.f32 %v2444_v35, %v2408_v15 }
 0x246   : > { %v2490_v12 = vpop.f32.mrb[15].mxu1  ;;  %v1880_v2 = vpop.eup %1879  ;;  %1895 = verf.f32 %v880_v38  ;;  %v799_v23 = vadd.f32 %v2450_v40, %v2410_v16  ;;  %v2519_v50 = vmul.f32 0.5, %v795_v10  ;;  %v720_v55 = vadd.f32 %v719_v58, %v2404_v13 }
 0x247   : > { %v1882_v26 = vpop.eup %1881  ;;  %v952_v25 = vadd.f32 1.0, %v1880_v2  ;;  %v2517_v29 = vmul.f32 %v950_v33, %v2440_v30  ;;  %1897 = verf.f32 %v881_v41  ;;  %v2526_v54 = vmul.f32 0.5, %v714_v22 }
 0x248   : > { %v1884_v11 = vpop.eup %1883  ;;  %v953_v21 = vadd.f32 1.0, %v1882_v26  ;;  %1899 = verf.f32 %v883_v32  ;;  %v882_v40 = vmul.f32 0.70710677, %v716_v44  ;;  %v884_v8 = vmul.f32 0.70710677, %v799_v23 }
 0x249   : > { %v1886_v46 = vpop.eup %1885  ;;  %v2512_v43 = vpop.f32.mrb[16].mxu0  ;;  %v955_v35 = vadd.f32 1.0, %v1884_v11  ;;  %v2533_v63 = vmul.f32 %v952_v25, %v2442_v31  ;;  %v885_v58 = vmul.f32 0.70710677, %v720_v55  ;;  %v803_v22 = vadd.f32 %v2467_v59, %v2406_v14 }
 0x24a   : > { %v2514_v49 = vpop.f32.mrb[16].mxu1  ;;  %v2522_v56 = vpop.f32.mrb[17].mxu0  ;;  %v954_v4 = vadd.f32 1.0, %v1886_v46  ;;  %v2538_v2 = vmul.f32 %v953_v21, %v2448_v39  ;;  %1901 = verf.f32 %v882_v40  ;;  %v722_v26 = vadd.f32 %v2473_v0, %v2408_v15 }
 0x24b   : > { %v2524_v52 = vpop.f32.mrb[17].mxu1  ;;  %v2528_v20 = vpop.f32.mrb[18].mxu0  ;;  %1903 = verf.f32 %v884_v8  ;;  %v805_v31 = vadd.f32 %v2475_v1, %v2410_v16  ;;  %v1022_v38 = vpack.c.bf16 %v986_v17, %v2478_v62  ;;  %v1024_v41 = vpack.c.bf16 %v988_v3, %v2485_v7 }
 0x24c   : > { %v2530_v27 = vpop.f32.mrb[18].mxu1  ;;  %v1888_v30 = vpop.eup %1887  ;;  %v2550_v39 = vmul.f32 0.5, %v797_v36  ;;  %1905 = verf.f32 %v885_v58  ;;  %v887_v25 = vmul.f32 0.70710677, %v803_v22  ;;  %v2553_v59 = vmul.f32 %v955_v35, %v2463_v18 }
 0x24d   : > { %v2535_v9 = vpop.f32.mrb[19].mxu0  ;;  %v1890_v10 = vpop.eup %1889  ;;  %v956_v11 = vadd.f32 1.0, %v1888_v30  ;;  %v2556_v0 = vmul.f32 %v954_v4, %v2465_v57  ;;  %v886_v21 = vmul.f32 0.70710677, %v722_v26  ;;  %1336 = vmatprep.mubr.bf16.mxu0 %v1022_v38  ;;  %1409 = vmatprep.mubr.bf16.mxu1 %v1024_v41  ;;  %v842_v62 = vmul.f32 0.5, %v716_v44 }
 0x24e   : > { %v2544_v33 = vpop.f32.mrb[19].mxu1  ;;  %v1892_v32 = vpop.eup %1891  ;;  %v957_v46 = vadd.f32 1.0, %v1890_v10  ;;  %1907 = verf.f32 %v887_v25  ;;  %v888_v7 = vmul.f32 0.70710677, %v805_v31  ;;  %v724_v17 = vadd.f32 %v2480_v5, %v2404_v13  ;;  %1337 = vmatmul.mubr.bf16.vlgmr.msra.gmra.mrb[20].mxu0 %v1021_v51  ;;  %1410 = vmatmul.mubr.bf16.vlgmr.msra.gmra.mrb[20].mxu1 %v1023_v60 }
 0x24f   : > { %v1894_v1 = vpop.eup %1893  ;;  %v844_v18 = vmul.f32 0.5, %v799_v23  ;;  %1909 = verf.f32 %v886_v21  ;;  %v807_v57 = vadd.f32 %v2482_v6, %v2406_v14  ;;  %v726_v36 = vadd.f32 %v2488_v28, %v2408_v15 }
 0x250   : > { %v1896_v3 = vpop.eup %1895  ;;  %v2571_v44 = vmul.f32 %v956_v11, %v2471_v61  ;;  %v959_v5 = vadd.f32 1.0, %v1892_v32  ;;  %v845_v35 = vmul.f32 0.5, %v720_v55  ;;  %v889_v34 = vmul.f32 0.70710677, %v724_v17 }
 0x251   : > { %v1898_v48 = vpop.eup %1897  ;;  %v2574_v51 = vmul.f32 %v957_v46, %v2493_v19  ;;  %v958_v47 = vadd.f32 1.0, %v1894_v1  ;;  %1911 = verf.f32 %v888_v7  ;;  %v891_v53 = vmul.f32 0.70710677, %v807_v57 }
 0x252   : > { %v1900_v60 = vpop.eup %1899  ;;  %v847_v23 = vmul.f32 0.5, %v803_v22  ;;  %1913 = verf.f32 %v889_v34  ;;  %v890_v6 = vmul.f32 0.70710677, %v726_v36  ;;  %v809_v28 = vadd.f32 %v2490_v12, %v2410_v16 }
 0x253   : > { %v2578_v40 = vmul.f32 0.5, %v722_v26  ;;  %v2580_v61 = vmul.f32 0.5, %v805_v31  ;;  %1915 = verf.f32 %v891_v53  ;;  %v2584_v55 = vadd.f32 %v2512_v43, %v2404_v13 }
 0x254   : > { %v1902_v19 = vpop.eup %1901  ;;  %v2587_v30 = vmul.f32 %v959_v5, %v2498_v37  ;;  %v960_v4 = vadd.f32 1.0, %v1896_v3  ;;  %1917 = verf.f32 %v890_v6  ;;  %v892_v8 = vmul.f32 0.70710677, %v809_v28 }
 0x255   : > { %v1904_v58 = vpop.eup %1903  ;;  %v2590_v10 = vmul.f32 %v958_v47, %v2506_v45  ;;  %v961_v12 = vadd.f32 1.0, %v1898_v48  ;;  %v963_v22 = vadd.f32 1.0, %v1900_v60  ;;  %v962_v26 = vadd.f32 1.0, %v1902_v19 }
 0x256   : > { %v1906_v31 = vpop.eup %1905  ;;  %1919 = verf.f32 %v892_v8  ;;  %v893_v38 = vmul.f32 0.70710677, %v2584_v55  ;;  %v2595_v43 = vadd.f32 %v2514_v49, %v2406_v14  ;;  %v2599_v37 = vadd.f32 %v2522_v56, %v2408_v15 }
 0x257   : > { %v964_v41 = vadd.f32 1.0, %v1904_v58  ;;  %v965_v11 = vadd.f32 1.0, %v1906_v31  ;;  %v849_v25 = vmul.f32 0.5, %v724_v17  ;;  %v2603_v45 = vadd.f32 %v2524_v52, %v2410_v16 }
 0x258   : > { %v1908_v32 = vpop.eup %1907  ;;  %v2606_v46 = vmul.f32 %v960_v4, %v2519_v50  ;;  %v851_v21 = vmul.f32 0.5, %v807_v57  ;;  %v850_v1 = vmul.f32 0.5, %v726_v36  ;;  %v895_v49 = vmul.f32 0.70710677, %v2595_v43 }
 0x259   : > { %v1910_v7 = vpop.eup %1909  ;;  %v2610_v3 = vmul.f32 %v961_v12, %v2526_v54  ;;  %v2613_v56 = vmul.f32 %v963_v22, %v2550_v39  ;;  %v967_v17 = vadd.f32 1.0, %v1908_v32  ;;  %v852_v5 = vmul.f32 0.5, %v809_v28 }
 0x25a   : > { %v1002_v34 = vmul.f32 %v962_v26, %v842_v62  ;;  %1921 = verf.f32 %v893_v38  ;;  %v894_v52 = vmul.f32 0.70710677, %v2599_v37  ;;  %v1026_v50 = vpack.c.bf16 %v2556_v0, %v2517_v29 }
 0x25b   : > { %v1912_v57 = vpop.eup %1911  ;;  %v1004_v36 = vmul.f32 %v964_v41, %v844_v18  ;;  %v2618_v48 = vmul.f32 %v965_v11, %v845_v35  ;;  %v896_v47 = vmul.f32 0.70710677, %v2603_v45  ;;  %v1028_v54 = vpack.c.bf16 %v2571_v44, %v2533_v63 }
 0x25c   : > { %v1914_v39 = vpop.eup %1913  ;;  %v966_v53 = vadd.f32 1.0, %v1910_v7  ;;  %1923 = verf.f32 %v895_v49  ;;  %1344 = vmatprep.mubr.bf16.mxu0 %v1026_v50  ;;  %v734_v62 = vadd.f32 %v2528_v20, %v2404_v13  ;;  %v817_v60 = vadd.f32 %v2530_v27, %v2406_v14 }
 0x25d   : > { %v1916_v29 = vpop.eup %1915  ;;  %v2627_v0 = vmul.f32 %v967_v17, %v847_v23  ;;  %v969_v18 = vadd.f32 1.0, %v1914_v39  ;;  %1417 = vmatprep.mubr.bf16.mxu1 %v1028_v54  ;;  %v1025_v35 = vpack.c.bf16 %v2538_v2, %v2501_v24  ;;  %v1027_v63 = vpack.c.bf16 %v2553_v59, %v2504_v42 }
 0x25e   : > { %v1918_v44 = vpop.eup %1917  ;;  %v968_v6 = vadd.f32 1.0, %v1912_v57  ;;  %v971_v28 = vadd.f32 1.0, %v1916_v29  ;;  %1925 = verf.f32 %v894_v52  ;;  %v897_v19 = vmul.f32 0.70710677, %v734_v62 }
 0x25f   : > { %v970_v13 = vadd.f32 1.0, %v1918_v44  ;;  %1927 = verf.f32 %v896_v47  ;;  %v899_v20 = vmul.f32 0.70710677, %v817_v60  ;;  %1345 = vmatmul.mubr.bf16.gmra.mrb[24].mxu0 %v1025_v35  ;;  %1418 = vmatmul.mubr.bf16.gmra.mrb[24].mxu1 %v1027_v63  ;;  %v736_v14 = vadd.f32 %v2535_v9, %v2408_v15 }
 0x260   : > { %v1920_v27 = vpop.eup %1919  ;;  %v1009_v23 = vmul.f32 %v969_v18, %v849_v25  ;;  %1929 = verf.f32 %v897_v19  ;;  %v819_v24 = vadd.f32 %v2544_v33, %v2410_v16  ;;  %v1030_v42 = vpack.c.bf16 %v1002_v34, %v2590_v10 }
 0x261   : > { %v1011_v2 = vmul.f32 %v971_v28, %v851_v21  ;;  %v1010_v59 = vmul.f32 %v970_v13, %v850_v1  ;;  %v972_v4 = vadd.f32 1.0, %v1920_v27  ;;  %1931 = verf.f32 %v899_v20 }
 0x262   : > { %v1006_v8 = vmul.f32 %v966_v53, %v2578_v40  ;;  %v1008_v58 = vmul.f32 %v968_v6, %v2580_v61  ;;  %v898_v12 = vmul.f32 0.70710677, %v736_v14  ;;  %v900_v22 = vmul.f32 0.70710677, %v819_v24  ;;  %1352 = vmatprep.mubr.bf16.mxu0 %v1030_v42 }
 0x263   : > { %v1012_v15 = vmul.f32 %v972_v4, %v852_v5  ;;  %v1032_v9 = vpack.c.bf16 %v1004_v36, %v2606_v46  ;;  %v1029_v26 = vpack.c.bf16 %v2610_v3, %v2574_v51  ;;  %v1031_v16 = vpack.c.bf16 %v2613_v56, %v2587_v30 }
 0x264   : > { %v1922_v33 = vpop.eup %1921  ;;  %1933 = verf.f32 %v898_v12  ;;  %v1034_v10 = vpack.c.bf16 %v1010_v59, %v1006_v8  ;;  %v1033_v31 = vpack.c.bf16 %v1009_v23, %v2618_v48  ;;  %v1035_v61 = vpack.c.bf16 %v1011_v2, %v2627_v0  ;;  %v1937_v8 = vld [vmem:[%s2107_s17] sm:$0xff] }
 0x265   : > { %1935 = verf.f32 %v900_v22  ;;  %1425 = vmatprep.mubr.bf16.mxu1 %v1032_v9  ;;  %v1036_v40 = vpack.c.bf16 %v1012_v15, %v1008_v58  ;;  %v973_v11 = vadd.f32 1.0, %v1922_v33  ;;  %v853_v46 = vmul.f32 0.5, %v2584_v55  ;;  %v1938_v22 = vld [vmem:[%s2107_s17 + $0x8] sm:$0xff] }
 0x266   : > { %v1924_v38 = vpop.eup %1923  ;;  %v857_v21 = vmul.f32 0.5, %v734_v62  ;;  %v855_v49 = vmul.f32 0.5, %v2595_v43  ;;  %v859_v7 = vmul.f32 0.5, %v817_v60  ;;  %v854_v48 = vmul.f32 0.5, %v2599_v37 }
 0x267   : > { %1353 = vmatmul.mubr.bf16.gmra.mrb[28].mxu0 %v1029_v26  ;;  %1426 = vmatmul.mubr.bf16.gmra.mrb[28].mxu1 %v1031_v16  ;;  %v975_v30 = vadd.f32 1.0, %v1924_v38  ;;  %v1013_v56 = vmul.f32 %v973_v11, %v853_v46  ;;  %v858_v47 = vmul.f32 0.5, %v736_v14  ;;  %v856_v39 = vmul.f32 0.5, %v2603_v45  ;;  %v2655_v45 = vld [vmem:[%s2749_s6] ss:$0 sm:$0xff]  ;;  %v1939_v46 = vld [vmem:[%s2107_s17 + $0x10] sm:$0xff] }
 0x268   : > { %v1926_v41 = vpop.eup %1925  ;;  %1360 = vmatprep.mubr.bf16.mxu0 %v1034_v10  ;;  %1433 = vmatprep.mubr.bf16.mxu1 %v1036_v40  ;;  %v860_v43 = vmul.f32 0.5, %v819_v24 }
 0x269   : > { %v1928_v51 = vpop.eup %1927  ;;  %v974_v17 = vadd.f32 1.0, %v1926_v41  ;;  %v1015_v52 = vmul.f32 %v975_v30, %v855_v49 }
 0x26a   : > { %v1930_v25 = vpop.eup %1929  ;;  %v976_v50 = vadd.f32 1.0, %v1928_v51 }
 0x26b   : > { %v1932_v32 = vpop.eup %1931  ;;  %v977_v1 = vadd.f32 1.0, %v1930_v25  ;;  %v1014_v60 = vmul.f32 %v974_v17, %v854_v48  ;;  %v1940_v17 = vld [vmem:[%s2107_s17 + $0x18] sm:$0xff] }
 0x26c   : > { %v979_v3 = vadd.f32 1.0, %v1932_v32  ;;  %v1016_v0 = vmul.f32 %v976_v50, %v856_v39 }
 0x26d   : > { %v1017_v5 = vmul.f32 %v977_v1, %v857_v21 }
 0x26e   : > { %v1934_v34 = vpop.eup %1933  ;;  %v1019_v57 = vmul.f32 %v979_v3, %v859_v7 }
 0x26f   : > { %v1936_v36 = vpop.eup %1935  ;;  %v978_v54 = vadd.f32 1.0, %v1934_v34  ;;  %1361 = vmatmul.mubr.bf16.gmra.mrb[32].mxu0 %v1033_v31  ;;  %1434 = vmatmul.mubr.bf16.gmra.mrb[32].mxu1 %v1035_v61  ;;  %v1037_v55 = vpack.c.bf16 %v1017_v5, %v1013_v56 }
 0x270   : > { %v980_v53 = vadd.f32 1.0, %v1936_v36  ;;  %v1039_v62 = vpack.c.bf16 %v1019_v57, %v1015_v52 }
 0x271   : > { %v1018_v29 = vmul.f32 %v978_v54, %v858_v47 }
 0x272   : > { %v1020_v18 = vmul.f32 %v980_v53, %v860_v43  ;;  %v1941_v53 = vld [vmem:[%s2107_s17 + $0x20] sm:$0xff] }
 0x273   : > { %v1038_v35 = vpack.c.bf16 %v1018_v29, %v1014_v60 }
 0x274   : > { %v1040_v63 = vpack.c.bf16 %v1020_v18, %v1016_v0 }
 0x275   : > { %1368 = vmatprep.mubr.bf16.mxu0 %v1038_v35 }
 0x276   : > { %1441 = vmatprep.mubr.bf16.mxu1 %v1040_v63  ;;  %v1942_v63 = vld [vmem:[%s2107_s17 + $0x28] sm:$0xff] }
 0x277   : > { %1369 = vmatmul.mubr.bf16.gmra.mrb[36].mxu0 %v1037_v55  ;;  %1442 = vmatmul.mubr.bf16.gmra.mrb[36].mxu1 %v1039_v62 }
 0x321   : > { %v1638_v37 = vpop.f32.mrb[20].mxu0  ;;  %v1684_v44 = vpop.f32.mrb[20].mxu1 }
 0x322   : > { %v1639_v6 = vpop.f32.mrb[21].mxu0  ;;  %v1685_v28 = vpop.f32.mrb[21].mxu1 }
 0x323   : > { %v1640_v19 = vadd.f32 %v1639_v6, %v1638_v37  ;;  %v1686_v13 = vadd.f32 %v1685_v28, %v1684_v44  ;;  %v1641_v20 = vpop.f32.mrb[22].mxu0  ;;  %v1687_v14 = vpop.f32.mrb[22].mxu1 }
 0x324   : > { %v1642_v27 = vpop.f32.mrb[23].mxu0  ;;  %v1688_v23 = vpop.f32.mrb[23].mxu1 }
 0x325   : > { %v1339_v24 = vadd.f32 %v1640_v19, %v2655_v45  ;;  %v1643_v42 = vadd.f32 %v1642_v27, %v1641_v20  ;;  %v1689_v2 = vadd.f32 %v1688_v23, %v1687_v14 }
 0x327   : > { %v1412_v59 = vadd.f32 %v1686_v13, %v1339_v24  ;;  %v1342_v4 = vadd.f32 %v1643_v42, %v2655_v45 }
 0x329   : > { %v1450_v58 = vadd.f32 %v1937_v8, %v1412_v59  ;;  %v1415_v12 = vadd.f32 %v1689_v2, %v1342_v4  ;;  %v1943_v2 = vld [vmem:[%s2107_s17 + $0x30] sm:$0xff] }
 0x32b   : > { %1460 = vst [vmem:[%s2662_s9] sm:$0xff] %v1450_v58  ;;  %v1451_v15 = vadd.f32 %v1938_v22, %v1415_v12 }
 0x32d   : > { %1461 = vst [vmem:[%s2662_s9 + $0x8] sm:$0xff] %v1451_v15  ;;  %v1944_v15 = vld [vmem:[%s2107_s17 + $0x38] sm:$0xff] }
 0x332   : > { %v1644_v9 = vpop.f32.mrb[24].mxu0  ;;  %v1690_v26 = vpop.f32.mrb[24].mxu1 }
 0x333   : > { %v1645_v16 = vpop.f32.mrb[25].mxu0  ;;  %v1691_v33 = vpop.f32.mrb[25].mxu1 }
 0x334   : > { %v1646_v10 = vadd.f32 %v1645_v16, %v1644_v9  ;;  %v1692_v31 = vadd.f32 %v1691_v33, %v1690_v26  ;;  %v1647_v40 = vpop.f32.mrb[26].mxu0  ;;  %v1693_v61 = vpop.f32.mrb[26].mxu1 }
 0x335   : > { %v1648_v38 = vpop.f32.mrb[27].mxu0  ;;  %v1694_v41 = vpop.f32.mrb[27].mxu1 }
 0x336   : > { %v1347_v51 = vadd.f32 %v1646_v10, %v2655_v45  ;;  %v1649_v11 = vadd.f32 %v1648_v38, %v1647_v40  ;;  %v1695_v25 = vadd.f32 %v1694_v41, %v1693_v61 }
 0x338   : > { %v1420_v30 = vadd.f32 %v1692_v31, %v1347_v51  ;;  %v1350_v32 = vadd.f32 %v1649_v11, %v2655_v45 }
 0x33a   : > { %v1452_v21 = vadd.f32 %v1939_v46, %v1420_v30  ;;  %v1423_v1 = vadd.f32 %v1695_v25, %v1350_v32  ;;  %v1650_v49 = vpop.f32.mrb[28].mxu0  ;;  %v1696_v7 = vpop.f32.mrb[28].mxu1  ;;  %v1945_v25 = vld [vmem:[%s2107_s17 + $0x40] sm:$0xff]  ;;  %v1946_v46 = vld [vmem:[%s2107_s17 + $0x48] sm:$0xff] }
 0x33b   : > { %v1651_v3 = vpop.f32.mrb[29].mxu0  ;;  %v1697_v56 = vpop.f32.mrb[29].mxu1 }
 0x33c   : > { %1462 = vst [vmem:[%s2662_s9 + $0x10] sm:$0xff] %v1452_v21  ;;  %v1453_v5 = vadd.f32 %v1940_v17, %v1423_v1  ;;  %v1652_v34 = vadd.f32 %v1651_v3, %v1650_v49  ;;  %v1698_v52 = vadd.f32 %v1697_v56, %v1696_v7  ;;  %v1653_v50 = vpop.f32.mrb[30].mxu0  ;;  %v1699_v57 = vpop.f32.mrb[30].mxu1 }
 0x33d   : > { %v1654_v36 = vpop.f32.mrb[31].mxu0  ;;  %v1700_v48 = vpop.f32.mrb[31].mxu1 }
 0x33e   : > { %1463 = vst [vmem:[%s2662_s9 + $0x18] sm:$0xff] %v1453_v5  ;;  %v1355_v47 = vadd.f32 %v1652_v34, %v2655_v45  ;;  %v1655_v54 = vadd.f32 %v1654_v36, %v1653_v50  ;;  %v1701_v55 = vadd.f32 %v1700_v48, %v1699_v57 }
 0x340   : > { %v1428_v39 = vadd.f32 %v1698_v52, %v1355_v47  ;;  %v1358_v43 = vadd.f32 %v1655_v54, %v2655_v45 }
 0x342   : > { %v1454_v62 = vadd.f32 %v1941_v53, %v1428_v39  ;;  %v1431_v60 = vadd.f32 %v1701_v55, %v1358_v43  ;;  %v1656_v29 = vpop.f32.mrb[32].mxu0  ;;  %v1702_v0 = vpop.f32.mrb[32].mxu1 }
 0x343   : > { %v1657_v18 = vpop.f32.mrb[33].mxu0  ;;  %v1703_v35 = vpop.f32.mrb[33].mxu1 }
 0x344   : > { %1464 = vst [vmem:[%s2662_s9 + $0x20] sm:$0xff] %v1454_v62  ;;  %v1455_v37 = vadd.f32 %v1942_v63, %v1431_v60  ;;  %v1658_v44 = vadd.f32 %v1657_v18, %v1656_v29  ;;  %v1704_v6 = vadd.f32 %v1703_v35, %v1702_v0  ;;  %v1659_v28 = vpop.f32.mrb[34].mxu0  ;;  %v1705_v19 = vpop.f32.mrb[34].mxu1 }
 0x345   : > { %v1660_v13 = vpop.f32.mrb[35].mxu0  ;;  %v1706_v20 = vpop.f32.mrb[35].mxu1 }
 0x346   : > { %1465 = vst [vmem:[%s2662_s9 + $0x28] sm:$0xff] %v1455_v37  ;;  %v1363_v14 = vadd.f32 %v1658_v44, %v2655_v45  ;;  %v1661_v27 = vadd.f32 %v1660_v13, %v1659_v28  ;;  %v1707_v23 = vadd.f32 %v1706_v20, %v1705_v19 }
 0x348   : > { %v1436_v24 = vadd.f32 %v1704_v6, %v1363_v14  ;;  %v1366_v42 = vadd.f32 %v1661_v27, %v2655_v45 }
 0x34a   : > { %v1456_v59 = vadd.f32 %v1943_v2, %v1436_v24  ;;  %v1439_v4 = vadd.f32 %v1707_v23, %v1366_v42  ;;  %v1662_v8 = vpop.f32.mrb[36].mxu0  ;;  %v1708_v58 = vpop.f32.mrb[36].mxu1 }
 0x34b   : > { %v1663_v12 = vpop.f32.mrb[37].mxu0  ;;  %v1709_v22 = vpop.f32.mrb[37].mxu1 }
 0x34c   : > { %1466 = vst [vmem:[%s2662_s9 + $0x30] sm:$0xff] %v1456_v59  ;;  %v1457_v9 = vadd.f32 %v1944_v15, %v1439_v4  ;;  %v1664_v26 = vadd.f32 %v1663_v12, %v1662_v8  ;;  %v1710_v16 = vadd.f32 %v1709_v22, %v1708_v58  ;;  %v1665_v33 = vpop.f32.mrb[38].mxu0  ;;  %v1711_v10 = vpop.f32.mrb[38].mxu1 }
 0x34d   : > { %v1666_v31 = vpop.f32.mrb[39].mxu0  ;;  %v1712_v40 = vpop.f32.mrb[39].mxu1 }
 0x34e   : > { %1467 = vst [vmem:[%s2662_s9 + $0x38] sm:$0xff] %v1457_v9  ;;  %v1371_v61 = vadd.f32 %v1664_v26, %v2655_v45  ;;  %v1667_v38 = vadd.f32 %v1666_v31, %v1665_v33  ;;  %v1713_v41 = vadd.f32 %v1712_v40, %v1711_v10 }
 0x350   : > { %v1444_v51 = vadd.f32 %v1710_v16, %v1371_v61  ;;  %v1374_v11 = vadd.f32 %v1667_v38, %v2655_v45 }
 0x352   : > { %v1458_v30 = vadd.f32 %v1945_v25, %v1444_v51  ;;  %v1447_v32 = vadd.f32 %v1713_v41, %v1374_v11 }
 0x354   : > { %1468 = vst [vmem:[%s2662_s9 + $0x40] sm:$0xff] %v1458_v30  ;;  %v1459_v21 = vadd.f32 %v1946_v46, %v1447_v32 }
 0x356   : > { %1469 = vst [vmem:[%s2662_s9 + $0x48] sm:$0xff] %v1459_v21 }
 0x357   : > { %1960 = shalt.err (!%p1957_p3)
}
 0x358   : > { %s1961_s17 = scalar_lea.hbm %s2697_s18, 1280  ;;  %s1965_s8 = scalar_lea.hbm %s2750_s7, 2560 }
 0x359   : > { %p1962_p4 = scmp.ne.s32.totalorder %s2697_s18, %s1961_s17  ;;  %p1966_p9 = scmp.lt.u32.totalorder %s2697_s18, %s2750_s7 }
 0x35a   : > { %p1967_p10 = scmp.lt.u32.totalorder %s1965_s8, %s1961_s17  ;;  %p1969_p12 = scmp.lt.u32.totalorder %s1961_s17, %s2697_s18 }
 0x35b   : > { %p1963_p7 = pnand %p1962_p4, %p2093_p5 }
 0x35c   : > { %p1968_p11 = por %p1967_p10, %p1966_p9 }
 0x35d   : > { %p1964_p8 = pneg %p1963_p7 }
 0x35e   : > { %p1970_p13 = por %p1969_p12, %p1968_p11 }
 0x360   : > { %p1971_p0 = pnand %p1970_p13, %p1964_p8 }
 0x362   : > { %1974 = shalt.err (!%p1971_p0)
}
 0x363   : > { %s2013_s15 = smov 128   ;;  %s2014_s16 = smov 8  }
 0x364   : > { %1715 = dma.vmem_to_hbm [thread:$0]  (%p2093_p5), %s2690_s14, 1280, %s2697_s18, %s2702_s28, %s2013_s15, %s2013_s15, %s2014_s16  }
 0x365 PF: > { %p1721_p1 = scmp.ge.s32.totalorder %s2009_s27, 2  ;;  %s1499_s19 = sand.u32 1, %s1997_s24  }
 0x366   : > { %s1500_s20 = scalar_lea.sflag [#allocation3], %s1499_s19 }
 0x367   : > { %p1718_p2 = pnand %p1721_p1, %p2097_p6 }
 0x369   : > { %1992 = dma.done.wait (!%p1718_p2), %s1500_s20, 1280  }
 0x36a   : > { %1994 = vsyncadd (!%p1718_p2), %s1500_s20, 4294966016  ;;  %p17_p3 = scmp.ge.s32.totalorder %s2080_s30, 4   ;;  %s2753_s24 = smov %s2001_s25 }
 0x36b   : > { %s2754_s25 = smov %s2005_s26  ;;  %s2755_s26 = smov %s2091_s10 }
 0x36c   : > { %s2756_s27 = smov %s2080_s30  ;;  %19 = sbr.rel (!%p17_p3) target bundleno = 3 (0x3), region = 83 }
 0x373   :  { %1505 = vsyncpa [#allocation3], 1 }
 0x374   :  { %1507 = vsyncpa [#allocation3 + $0x1], 1 }

// kernel: ce_block_forward.6
= control target key start
LH: loop header
LB: loop body
LE: loop exit
PB: predicated region body
PF: predicated region fallthrough
CT: control target
= control target key end

     0   :  { %13 = vsyncpa [#allocation5], 0  ;;  %s3228_s0 = inlined_call_operand.vmem [shape: f32[2,80,128], index: 0, kind: input, shape index: {}]   ;;  %s3229_s1 = inlined_call_operand.vmem [shape: f32[2,80,128], index: 1, kind: input, shape index: {}]   ;;  %s3230_s2 = inlined_call_operand.vmem [shape: bf16[128,384], index: 2, kind: input, shape index: {}]   ;;  %s3231_s3 = inlined_call_operand.vmem [shape: f32[1,384], index: 3, kind: input, shape index: {}]   ;;  %s3232_s4 = inlined_call_operand.vmem [shape: bf16[128,128], index: 4, kind: input, shape index: {}]   ;;  %s3233_s5 = inlined_call_operand.vmem [shape: f32[1,128], index: 5, kind: input, shape index: {}]   ;;  %s3234_s6 = inlined_call_operand.vmem [shape: f32[2,80,128], index: 6, kind: output, shape index: {0}]   ;;  %s3235_s7 = inlined_call_operand.hbm [shape: f32[2,2,80,80], index: 7, kind: output, shape index: {1}]  }
   0x1   :  { %15 = vsyncpa [#allocation5 + $0x1], 0  ;;  %s2491_s24 = smov 0   ;;  %s2493_s25 = smov 0  }
   0x2   :  { %s2495_s26 = smov 0   ;;  %s2497_s27 = smov 0  }
   0x3 LB: > { %s2512_s28 = sadd.s32 4294967295, %s2442_s27   ;;  %s1865_s29 = sadd.s32 4294967294, %s2442_s27   ;;  %s2442_s27 = sphi %s2497_s27, %s3241_s27   ;;  %s2438_s26 = sphi %s2495_s26, %s3240_s26   ;;  %s2434_s25 = sphi %s2493_s25, %s3239_s25   ;;  %s2430_s24 = sphi %s2491_s24, %s3238_s24  }
   0x4   : > { %s2516_s30 = sadd.s32 1, %s2442_s27   ;;  %s190_s8 = sadd.s32 1, %s2438_s26 }
   0x5   : > { %s187_s9 = ssub.s32 %s2442_s27, %s2516_s30  ;;  %p200_p0 = scmp.ne.s32.totalorder %s2438_s26, %s2434_s25 }
   0x6   : > { %p188_p1 = scmp.eq.s32.totalorder %s187_s9, 0  ;;  %p201_p2 = scmp.eq.s32.totalorder %s2512_s28, 1 }
   0x7   : > { %p206_p3 = scmp.ne.s32.totalorder %s2434_s25, %s2430_s24  ;;  %p207_p4 = scmp.eq.s32.totalorder %s1865_s29, 1 }
   0x8   : > { %s2527_s10 = scalar_select %p188_p1, %s2438_s26, %s190_s8  }
   0x9   : > { %p2529_p5 = por %p201_p2, %p200_p0  ;;  %p2533_p6 = por %p207_p4, %p206_p3 }
   0xa   : > { %p1868_p7 = scmp.ge.s32.totalorder %s2442_s27, 1  ;;  %p253_p8 = scmp.lt.s32.totalorder %s2442_s27, 3 }
   0xc   : > { %p254_p9 = pnand %p1868_p7, %p253_p8 }
   0xd   : > { %v2260_v0 = vld [vmem:[%s3230_s2 + $0x4] ss:$12 sps:$4 sm:$0xff] (!%p254_p9)   ;;  %v2262_v1 = vld [vmem:[%s3230_s2] ss:$12 sps:$4 sm:$0xff] (!%p254_p9)   ;;  %v2444_v2 = vmov (!%p254_p9), 0   ;;  %p295_p10 = scmp.lt.s32.totalorder (!%p254_p9), %s2512_s28, 1  ;;  %v360_v41 = vlaneseq (!%p254_p9) }
   0xe   : > { %257 = sbr.rel (%p254_p9) target bundleno = 1587 (0x633), region = 44  ;;  %535 = vmatprep.mubr.bf16.mxu0 (!%p254_p9), %v2444_v2  ;;  %503 = vmatprep.subr.bf16.mxu0 (!%p254_p9), %v2260_v0  ;;  %v2263_v3 = vld [vmem:[%s3230_s2 + $0x1c] ss:$12 sps:$4 sm:$0xff] (!%p254_p9)   ;;  %v2265_v4 = vld [vmem:[%s3230_s2 + $0x18] ss:$12 sps:$4 sm:$0xff] (!%p254_p9)   ;;  %v2445_v32 = vmov (!%p254_p9), 0.0  }
   0xf   : > { %504 = vmatpush1.bf16.msra.mxu0 (!%p254_p9), %v2262_v1  ;;  %v2266_v5 = vld [vmem:[%s3230_s2 + $0x34] ss:$12 sps:$4 sm:$0xff] (!%p254_p9)   ;;  %v2268_v6 = vld [vmem:[%s3230_s2 + $0x30] ss:$12 sps:$4 sm:$0xff] (!%p254_p9)   ;;  %v2269_v7 = vld [vmem:[%s3230_s2 + $0x4c] ss:$12 sps:$4 sm:$0xff] (!%p254_p9)   ;;  %2004 = vmatprep.subr.bf16.mxu1 (!%p254_p9), %v2445_v32 }
  0x10   : > { %505 = vmatprep.subr.bf16.mxu0 (!%p254_p9), %v2263_v3  ;;  %v2271_v8 = vld [vmem:[%s3230_s2 + $0x48] ss:$12 sps:$4 sm:$0xff] (!%p254_p9)   ;;  %v2272_v9 = vld [vmem:[%s3230_s2 + $0x64] ss:$12 sps:$4 sm:$0xff] (!%p254_p9)   ;;  %v2274_v10 = vld [vmem:[%s3230_s2 + $0x60] ss:$12 sps:$4 sm:$0xff] (!%p254_p9)  }
  0x11   : > { %v2275_v11 = vld [vmem:[%s3230_s2 + $0x7c] ss:$12 sps:$4 sm:$0xff] (!%p254_p9)   ;;  %v2277_v12 = vld [vmem:[%s3230_s2 + $0x78] ss:$12 sps:$4 sm:$0xff] (!%p254_p9)   ;;  %v2278_v13 = vld [vmem:[%s3230_s2 + $0x94] ss:$12 sps:$4 sm:$0xff] (!%p254_p9)  }
  0x12   : > { %v2280_v14 = vld [vmem:[%s3230_s2 + $0x90] ss:$12 sps:$4 sm:$0xff] (!%p254_p9)   ;;  %v2281_v15 = vld [vmem:[%s3230_s2 + $0xac] ss:$12 sps:$4 sm:$0xff] (!%p254_p9)   ;;  %v2283_v16 = vld [vmem:[%s3230_s2 + $0xa8] ss:$12 sps:$4 sm:$0xff] (!%p254_p9)  }
  0x13   : > { %506 = vmatpush1.bf16.msra.mxu0 (!%p254_p9), %v2265_v4  ;;  %v2284_v33 = vld [vmem:[%s3230_s2 + $0x8] ss:$12 sps:$4 sm:$0xff] (!%p254_p9)   ;;  %v2285_v34 = vld [vmem:[%s3230_s2 + $0x20] ss:$12 sps:$4 sm:$0xff] (!%p254_p9)   ;;  %v2286_v35 = vld [vmem:[%s3230_s2 + $0x38] ss:$12 sps:$4 sm:$0xff] (!%p254_p9)  }
  0x14   : > { %507 = vmatprep.subr.bf16.mxu0 (!%p254_p9), %v2266_v5  ;;  %2005 = vmatpush3.bf16.msra.mxu1 (!%p254_p9), %v2284_v33  ;;  %v2287_v36 = vld [vmem:[%s3230_s2 + $0x50] ss:$12 sps:$4 sm:$0xff] (!%p254_p9)   ;;  %vm2446_vm0 = vmmov (!%p254_p9), 0   ;;  %v2288_v37 = vld [vmem:[%s3230_s2 + $0x68] ss:$12 sps:$4 sm:$0xff] (!%p254_p9)   ;;  %v2643_v42 = vshrl.u32 (!%p254_p9), %v360_v41, 7 }
  0x15   : > { %s296_s13 = scalar_select %p295_p10, %s2512_s28, 1  ;;  %2006 = vmatprep.subr.bf16.mxu1 %v2445_v32  ;;  %2020 = vmatprep.mubr.msk.bf16.mxu1 %vm2446_vm0, %v2445_v32  ;;  %v2289_v38 = vld [vmem:[%s3230_s2 + $0x80] ss:$12 sps:$4 sm:$0xff]   ;;  %v2290_v39 = vld [vmem:[%s3230_s2 + $0x98] ss:$12 sps:$4 sm:$0xff]   ;;  %vm729_vm1 = vcmask 523264  }
  0x16   : > { %v2291_v40 = vld [vmem:[%s3230_s2 + $0xb0] ss:$12 sps:$4 sm:$0xff]   ;;  %v362_v43 = vsub.s32 0, %v2643_v42  ;;  %v2649_v44 = vld [vmem:[%s3231_s3] sm:$0x7]  ;;  %v366_v45 = vsub.s32 1, %v2643_v42 }
  0x17   : > { %508 = vmatpush1.bf16.msra.mxu0 %v2268_v6  ;;  %s2571_s20 = smul.u32 80, %s296_s13  ;;  %s2447_s13 = smov 64   ;;  %vm843_vm2 = vcmask 654336   ;;  %vm1534_vm3 = vcmask 1048064  }
  0x18   : > { %509 = vmatprep.subr.bf16.mxu0 %v2269_v7  ;;  %2007 = vmatpush3.bf16.msra.mxu1 %v2285_v34  ;;  %v2653_v46 = vrot.slane %v2649_v44, %v362_v43  ;;  %v2656_v48 = vrot.slane %v2649_v44, %v366_v45  ;;  %s292_s15 = sand.u32 1, %s2434_s25  }
  0x19   : > { %s299_s19 = scalar_lea.vmem %s3228_s0, %s2571_s20  ;;  %2008 = vmatprep.subr.bf16.mxu1 %v2445_v32  ;;  %s2212_s16 = smul.u32 160, %s292_s15 }
  0x1a   : > { %v311_v17 = vld [vmem:[%s299_s19] sm:$0xff]  ;;  %v312_v18 = vld [vmem:[%s299_s19 + $0x8] sm:$0xff]  ;;  %v313_v20 = vld [vmem:[%s299_s19 + $0x10] sm:$0xff]  ;;  %s3152_s18 = scalar_lea.sflag [#allocation5], %s292_s15 }
  0x1b   : > { %510 = vmatpush1.bf16.msra.mxu0 %v2271_v8  ;;  %v321_v19 = vpack.c.bf16 %v312_v18, %v311_v17  ;;  %v314_v21 = vld [vmem:[%s299_s19 + $0x18] sm:$0xff]  ;;  %v315_v23 = vld [vmem:[%s299_s19 + $0x20] sm:$0xff]  ;;  %v316_v24 = vld [vmem:[%s299_s19 + $0x28] sm:$0xff]  ;;  %s2966_s17 = scalar_lea.vmem [#allocation4], %s2212_s16 }
  0x1c   : > { %511 = vmatprep.subr.bf16.mxu0 %v2272_v9  ;;  %v322_v22 = vpack.c.bf16 %v314_v21, %v313_v20  ;;  %v323_v25 = vpack.c.bf16 %v316_v24, %v315_v23  ;;  %v317_v26 = vld [vmem:[%s299_s19 + $0x30] sm:$0xff]  ;;  %v318_v27 = vld [vmem:[%s299_s19 + $0x38] sm:$0xff]  ;;  %v319_v29 = vld [vmem:[%s299_s19 + $0x40] sm:$0xff]  ;;  %2009 = vmatpush3.bf16.msra.mxu1 %v2286_v35  ;;  %s1766_s8 = sshll.u32 %s2966_s17, 4  ;;  %s3148_s8 = int_to_ptr.vmem [resolvable:$true] %s1766_s8 }
  0x1d   : > { %v324_v28 = vpack.c.bf16 %v318_v27, %v317_v26  ;;  %v320_v30 = vld [vmem:[%s299_s19 + $0x48] sm:$0xff]  ;;  %2010 = vmatprep.subr.bf16.mxu1 %v2445_v32  ;;  %s2380_s19 = scalar_lea.vmem %s3148_s8, 2560 }
  0x1e   : > { %v325_v31 = vpack.c.bf16 %v320_v30, %v319_v29  ;;  %p2381_p11 = scmp.ne.s32.totalorder %s3148_s8, %s2380_s19 }
  0x1f   : > { %512 = vmatpush1.bf16.msra.mxu0 %v2274_v10 }
  0x20   : > { %513 = vmatprep.subr.bf16.mxu0 %v2275_v11  ;;  %2011 = vmatpush3.bf16.msra.mxu1 %v2287_v36  ;;  %p2382_p12 = pnand %p2381_p11, %p2529_p5 }
  0x21   : > { %2012 = vmatprep.subr.bf16.mxu1 %v2445_v32 }
  0x22   : > { %p2383_p13 = pneg %p2382_p12 }
  0x23   : > { %514 = vmatpush1.bf16.msra.mxu0 %v2277_v12 }
  0x24   : > { %515 = vmatprep.subr.bf16.mxu0 %v2278_v13  ;;  %2013 = vmatpush3.bf16.msra.mxu1 %v2288_v37 }
  0x25   : > { %2014 = vmatprep.subr.bf16.mxu1 %v2445_v32 }
  0x27   : > { %516 = vmatpush1.bf16.msra.mxu0 %v2280_v14 }
  0x28   : > { %517 = vmatprep.subr.bf16.mxu0 %v2281_v15  ;;  %2015 = vmatpush3.bf16.msra.mxu1 %v2289_v38 }
  0x29   : > { %2016 = vmatprep.subr.bf16.mxu1 %v2445_v32 }
  0x2b   : > { %518 = vmatpush1.bf16.msra.mxu0 %v2283_v16 }
  0x2c   : > { %2040 = vmatprep.subr.bf16.mxu0 %v2445_v32  ;;  %2017 = vmatpush3.bf16.msra.mxu1 %v2290_v39 }
  0x2d   : > { %2018 = vmatprep.subr.bf16.mxu1 %v2445_v32 }
  0x2e   : > { %536 = vmatmul.mubr.bf16.vlgmr.msra.gmra.mrb[0].mxu0 %v321_v19 }
  0x2f   : > { %545 = vmatprep.mubr.bf16.mxu0 %v2444_v2 }
  0x30   : > { %2019 = vmatpush3.bf16.msra.mxu1 %v2291_v40 }
  0x31   : > { %2070 = vmatprep.subr.bf16.mxu1 %v2445_v32 }
  0x33   : > { %2021 = vmatmul.mubr.bf16.vlgmr.msra.gmra.mrb[0].mxu1 %v321_v19 }
  0x34   : > { %2024 = vmatprep.mubr.msk.bf16.mxu1 %vm2446_vm0, %v2445_v32 }
  0x36   : > { %546 = vmatmul.mubr.bf16.gmra.mrb[4].mxu0 %v322_v22 }
  0x37   : > { %555 = vmatprep.mubr.bf16.mxu0 %v2444_v2 }
  0x3b   : > { %2025 = vmatmul.mubr.bf16.gmra.mrb[4].mxu1 %v322_v22 }
  0x3c   : > { %2028 = vmatprep.mubr.msk.bf16.mxu1 %vm2446_vm0, %v2445_v32 }
  0x3e   : > { %556 = vmatmul.mubr.bf16.gmra.mrb[8].mxu0 %v323_v25 }
  0x3f   : > { %565 = vmatprep.mubr.bf16.mxu0 %v2444_v2 }
  0x43   : > { %2029 = vmatmul.mubr.bf16.gmra.mrb[8].mxu1 %v323_v25 }
  0x44   : > { %2032 = vmatprep.mubr.msk.bf16.mxu1 %vm2446_vm0, %v2445_v32 }
  0x46   : > { %566 = vmatmul.mubr.bf16.gmra.mrb[12].mxu0 %v324_v28 }
  0x47   : > { %575 = vmatprep.mubr.bf16.mxu0 %v2444_v2 }
  0x4b   : > { %2033 = vmatmul.mubr.bf16.gmra.mrb[12].mxu1 %v324_v28 }
  0x4c   : > { %2036 = vmatprep.mubr.msk.bf16.mxu1 %vm2446_vm0, %v2445_v32 }
  0x4e   : > { %576 = vmatmul.mubr.bf16.gmra.mrb[16].mxu0 %v325_v31 }
  0x4f   : > { %2050 = vmatprep.mubr.msk.bf16.mxu0 %vm2446_vm0, %v2445_v32 }
  0x53   : > { %2037 = vmatmul.mubr.bf16.gmra.mrb[16].mxu1 %v325_v31 }
  0x54   : > { %2080 = vmatprep.mubr.msk.bf16.mxu1 %vm2446_vm0, %v2445_v32 }
 0x101   : > { %v537_v47 = vpop.f32.mrb[0].mxu0 }
 0x102   : > { %v539_v49 = vpop.f32.mrb[1].mxu0  ;;  %v538_v51 = vadd.f32 %v537_v47, %v2653_v46 }
 0x103   : > { %v541_v50 = vpop.f32.mrb[2].mxu0  ;;  %v540_v54 = vadd.f32 %v539_v49, %v2656_v48 }
 0x104   : > { %v542_v52 = vadd.f32 %v541_v50, %v2653_v46  ;;  %v543_v53 = vpop.f32.mrb[3].mxu0 }
 0x105   : > { %v544_v55 = vadd.f32 %v543_v53, %v2656_v48 }
 0x106   : > { %v2662_v56 = vpack.c.bf16 %v542_v52, %v538_v51  ;;  %v620_v52 = vpop.f32.mrb[0].mxu1 }
 0x107   : > { %v724_v57 = vpack.c.bf16 %v544_v55, %v540_v54  ;;  %v2022_v54 = vpop.f32.mrb[1].mxu1 }
 0x108   : > { %v623_v55 = vpop.f32.mrb[2].mxu1 }
 0x109   : > { %v547_v58 = vpop.f32.mrb[4].mxu0  ;;  %1132 = vrot.lane.b32.xlu0 %v724_v57, %s2447_s13  ;;  %v746_v59 = vsel %vm729_vm1, %v724_v57, 0  ;;  %v2023_v57 = vpop.f32.mrb[3].mxu1 }
 0x10a   : > { %v549_v60 = vpop.f32.mrb[5].mxu0  ;;  %2041 = vmatpush3.bf16.xpose.msra.mxu0 %v746_v59  ;;  %v548_v62 = vadd.f32 %v547_v58, %v2653_v46 }
 0x10b   : > { %v551_v61 = vpop.f32.mrb[6].mxu0  ;;  %2042 = vmatprep.subr.bf16.mxu0 %v2445_v32  ;;  %v550_v1 = vadd.f32 %v549_v60, %v2656_v48 }
 0x10c   : > { %v552_v63 = vadd.f32 %v551_v61, %v2653_v46  ;;  %v553_v0 = vpop.f32.mrb[7].mxu0 }
 0x10d   : > { %v554_v2 = vadd.f32 %v553_v0, %v2656_v48 }
 0x10e   : > { %v720_v3 = vpack.c.bf16 %v552_v63, %v548_v62 }
 0x10f   : > { %v725_v4 = vpack.c.bf16 %v554_v2, %v550_v1 }
 0x111   : > { %v557_v5 = vpop.f32.mrb[8].mxu0  ;;  %1134 = vrot.lane.b32.xlu0 %v725_v4, %s2447_s13  ;;  %v749_v6 = vsel %vm729_vm1, %v725_v4, 0 }
 0x112   : > { %v559_v7 = vpop.f32.mrb[9].mxu0  ;;  %2043 = vmatpush3.bf16.xpose.msra.mxu0 %v749_v6  ;;  %v558_v9 = vadd.f32 %v557_v5, %v2653_v46 }
 0x113   : > { %v561_v8 = vpop.f32.mrb[10].mxu0  ;;  %2044 = vmatprep.subr.bf16.mxu0 %v2445_v32  ;;  %v560_v12 = vadd.f32 %v559_v7, %v2656_v48 }
 0x114   : > { %v562_v10 = vadd.f32 %v561_v8, %v2653_v46  ;;  %v563_v11 = vpop.f32.mrb[11].mxu0 }
 0x115   : > { %v564_v13 = vadd.f32 %v563_v11, %v2656_v48 }
 0x116   : > { %v721_v14 = vpack.c.bf16 %v562_v10, %v558_v9 }
 0x117   : > { %v726_v15 = vpack.c.bf16 %v564_v13, %v560_v12 }
 0x119   : > { %v567_v16 = vpop.f32.mrb[12].mxu0  ;;  %1136 = vrot.lane.b32.xlu1 %v726_v15, %s2447_s13  ;;  %v752_v17 = vsel %vm729_vm1, %v726_v15, 0 }
 0x11a   : > { %v569_v18 = vpop.f32.mrb[13].mxu0  ;;  %2045 = vmatpush3.bf16.xpose.msra.mxu0 %v752_v17  ;;  %v568_v20 = vadd.f32 %v567_v16, %v2653_v46 }
 0x11b   : > { %v571_v19 = vpop.f32.mrb[14].mxu0  ;;  %2046 = vmatprep.subr.bf16.mxu0 %v2445_v32  ;;  %v570_v23 = vadd.f32 %v569_v18, %v2656_v48 }
 0x11c   : > { %v572_v21 = vadd.f32 %v571_v19, %v2653_v46  ;;  %v573_v22 = vpop.f32.mrb[15].mxu0 }
 0x11d   : > { %v574_v24 = vadd.f32 %v573_v22, %v2656_v48  ;;  %v628_v22 = vpop.f32.mrb[4].mxu1 }
 0x11e   : > { %v722_v25 = vpack.c.bf16 %v572_v21, %v568_v20 }
 0x11f   : > { %v727_v26 = vpack.c.bf16 %v574_v24, %v570_v23  ;;  %v2026_v23 = vpop.f32.mrb[5].mxu1 }
 0x120   : > { %v631_v24 = vpop.f32.mrb[6].mxu1 }
 0x121   : > { %v577_v27 = vpop.f32.mrb[16].mxu0  ;;  %1138 = vrot.lane.b32.xlu1 %v727_v26, %s2447_s13  ;;  %v755_v28 = vsel %vm729_vm1, %v727_v26, 0 }
 0x122   : > { %v579_v29 = vpop.f32.mrb[17].mxu0  ;;  %2047 = vmatpush3.bf16.xpose.msra.mxu0 %v755_v28  ;;  %v578_v31 = vadd.f32 %v577_v27, %v2653_v46  ;;  %v2027_v28 = vpop.f32.mrb[7].mxu1 }
 0x123   : > { %v581_v30 = vpop.f32.mrb[18].mxu0  ;;  %2048 = vmatprep.subr.bf16.mxu0 %v2445_v32  ;;  %v580_v35 = vadd.f32 %v579_v29, %v2656_v48 }
 0x124   : > { %v582_v33 = vadd.f32 %v581_v30, %v2653_v46  ;;  %v583_v34 = vpop.f32.mrb[19].mxu0 }
 0x125   : > { %v584_v36 = vadd.f32 %v583_v34, %v2656_v48  ;;  %1117 = vrot.lane.b32.xlu1 %v2662_v56, %s2447_s13  ;;  %v370_v48 = vsub.s32 2, %v2643_v42 }
 0x126   : > { %v723_v37 = vpack.c.bf16 %v582_v33, %v578_v31 }
 0x127   : > { %v728_v38 = vpack.c.bf16 %v584_v36, %v580_v35  ;;  %v2725_v49 = vrot.slane %v2649_v44, %v370_v48 }
 0x129   : > { %1140 = vrot.lane.b32.xlu0 %v728_v38, %s2447_s13  ;;  %1121 = vrot.lane.b32.xlu1 %v721_v14, %s2447_s13  ;;  %v758_v39 = vsel %vm729_vm1, %v728_v38, 0  ;;  %v621_v53 = vadd.f32 %v620_v52, %v2725_v49  ;;  %v629_v26 = vadd.f32 %v628_v22, %v2725_v49  ;;  %v632_v27 = vadd.f32 %v631_v24, %v2725_v49  ;;  %v636_v38 = vpop.f32.mrb[8].mxu1 }
 0x12a   : > { %2049 = vmatpush3.bf16.xpose.msra.mxu0 %v758_v39 }
 0x12b   : > { %2100 = vmatprep.subr.bf16.mxu0 %v2445_v32  ;;  %v2772_v31 = vpack.c.bf16 %v632_v27, %v629_v26 }
 0x12d   : > { %1119 = vrot.lane.b32.xlu0 %v720_v3, %s2447_s13  ;;  %1125 = vrot.lane.b32.xlu1 %v723_v37, %s2447_s13 }
 0x131   : > { %1123 = vrot.lane.b32.xlu0 %v722_v25, %s2447_s13  ;;  %2051 = vmatmul.mubr.msk.bf16.vlgmr.msra.gmra.mrb[20].mxu0 %vm729_vm1, %v2662_v56  ;;  %v624_v56 = vadd.f32 %v623_v55, %v2725_v49 }
 0x132   : > { %2054 = vmatprep.mubr.msk.bf16.mxu0 %vm2446_vm0, %v2445_v32 }
 0x133   : > { %v969_v58 = vpack.c.bf16 %v624_v56, %v621_v53 }
 0x135   : > { %2071 = vmatpush3.bf16.msra.mxu1 %v969_v58 }
 0x136   : > { %2072 = vmatprep.subr.bf16.mxu1 %v2445_v32 }
 0x139   : > { %2055 = vmatmul.mubr.msk.bf16.gmra.mrb[24].mxu0 %vm729_vm1, %v720_v3  ;;  %2073 = vmatpush3.bf16.msra.mxu1 %v2772_v31 }
 0x13a   : > { %2058 = vmatprep.mubr.msk.bf16.mxu0 %vm2446_vm0, %v2445_v32  ;;  %2074 = vmatprep.subr.bf16.mxu1 %v2445_v32 }
 0x141   : > { %2059 = vmatmul.mubr.msk.bf16.gmra.mrb[28].mxu0 %vm729_vm1, %v721_v14 }
 0x142   : > { %2062 = vmatprep.mubr.msk.bf16.mxu0 %vm2446_vm0, %v2445_v32 }
 0x149   : > { %2063 = vmatmul.mubr.msk.bf16.gmra.mrb[32].mxu0 %vm729_vm1, %v722_v25 }
 0x14a   : > { %2066 = vmatprep.mubr.msk.bf16.mxu0 %vm2446_vm0, %v2445_v32 }
 0x151   : > { %2067 = vmatmul.mubr.msk.bf16.gmra.mrb[36].mxu0 %vm729_vm1, %v723_v37 }
 0x152   : > { %2110 = vmatprep.mubr.msk.bf16.mxu0 %vm2446_vm0, %v2445_v32 }
 0x17b   : > { %v1133_v40 = vpop.permute.xlu0 %1132 }
 0x17c   : > { %v1158_v41 = vsel %vm729_vm1, %v1133_v40, 0  ;;  %v637_v40 = vadd.f32 %v636_v38, %v2725_v49 }
 0x17d   : > { %2101 = vmatpush3.bf16.xpose.msra.mxu0 %v1158_v41  ;;  %v2030_v41 = vpop.f32.mrb[9].mxu1 }
 0x17e   : > { %2102 = vmatprep.subr.bf16.mxu0 %v2445_v32 }
 0x183   : > { %v1135_v43 = vpop.permute.xlu0 %1134 }
 0x184   : > { %v1161_v45 = vsel %vm729_vm1, %v1135_v43, 0 }
 0x185   : > { %2103 = vmatpush3.bf16.xpose.msra.mxu0 %v1161_v45 }
 0x186   : > { %2104 = vmatprep.subr.bf16.mxu0 %v2445_v32 }
 0x18b   : > { %v1137_v46 = vpop.permute.xlu1 %1136 }
 0x18c   : > { %v1164_v47 = vsel %vm729_vm1, %v1137_v46, 0  ;;  %v639_v46 = vpop.f32.mrb[10].mxu1 }
 0x18d   : > { %2105 = vmatpush3.bf16.xpose.msra.mxu0 %v1164_v47  ;;  %v640_v47 = vadd.f32 %v639_v46, %v2725_v49  ;;  %v2031_v48 = vpop.f32.mrb[11].mxu1 }
 0x18e   : > { %2106 = vmatprep.subr.bf16.mxu0 %v2445_v32 }
 0x193   : > { %v1139_v50 = vpop.permute.xlu1 %1138 }
 0x194   : > { %v1167_v51 = vsel %vm729_vm1, %v1139_v50, 0 }
 0x195   : > { %2107 = vmatpush3.bf16.xpose.msra.mxu0 %v1167_v51  ;;  %v971_v51 = vpack.c.bf16 %v640_v47, %v637_v40 }
 0x196   : > { %2108 = vmatprep.subr.bf16.mxu0 %v2445_v32 }
 0x197   : > { %v1118_v44 = vpop.permute.xlu1 %1117  ;;  %2075 = vmatpush3.bf16.msra.mxu1 %v971_v51 }
 0x198   : > { %2076 = vmatprep.subr.bf16.mxu1 %v2445_v32 }
 0x19b   : > { %v1141_v59 = vpop.permute.xlu0 %1140  ;;  %v1122_v61 = vpop.permute.xlu1 %1121 }
 0x19c   : > { %v1170_v42 = vsel %vm729_vm1, %v1141_v59, 0 }
 0x19d   : > { %2109 = vmatpush3.bf16.xpose.msra.mxu0 %v1170_v42 }
 0x19e   : > { %2160 = vmatprep.subr.bf16.mxu0 %v2445_v32 }
 0x19f   : > { %v1120_v60 = vpop.permute.xlu0 %1119  ;;  %v1126_v63 = vpop.permute.xlu1 %1125 }
 0x1a3   : > { %v1124_v62 = vpop.permute.xlu0 %1123 }
 0x1a4   : > { %2111 = vmatmul.mubr.msk.bf16.vlgmr.msra.gmra.mrb[40].mxu0 %vm729_vm1, %v1118_v44 }
 0x1a5   : > { %2114 = vmatprep.mubr.msk.bf16.mxu0 %vm2446_vm0, %v2445_v32 }
 0x1ac   : > { %2115 = vmatmul.mubr.msk.bf16.gmra.mrb[44].mxu0 %vm729_vm1, %v1120_v60 }
 0x1ad   : > { %2118 = vmatprep.mubr.msk.bf16.mxu0 %vm2446_vm0, %v2445_v32 }
 0x1b4   : > { %2119 = vmatmul.mubr.msk.bf16.gmra.mrb[48].mxu0 %vm729_vm1, %v1122_v61 }
 0x1b5   : > { %2122 = vmatprep.mubr.msk.bf16.mxu0 %vm2446_vm0, %v2445_v32 }
 0x1bc   : > { %2123 = vmatmul.mubr.msk.bf16.gmra.mrb[52].mxu0 %vm729_vm1, %v1124_v62 }
 0x1bd   : > { %2126 = vmatprep.mubr.msk.bf16.mxu0 %vm2446_vm0, %v2445_v32 }
 0x1c4   : > { %2127 = vmatmul.mubr.msk.bf16.gmra.mrb[56].mxu0 %vm729_vm1, %v1126_v63 }
 0x1c5   : > { %2176 = vmatprep.mubr.msk.bf16.mxu0 %vm2446_vm0, %v2445_v32 }
 0x204   : > { %v794_v0 = vpop.f32.mrb[20].mxu0 }
 0x205   : > { %v2749_v1 = vmul.f32 0.125, %v794_v0  ;;  %v2052_v2 = vpop.f32.mrb[21].mxu0 }
 0x206   : > { %v797_v3 = vpop.f32.mrb[22].mxu0 }
 0x207   : > { %v2751_v4 = vmul.f32 0.125, %v797_v3  ;;  %v2053_v5 = vpop.f32.mrb[23].mxu0  ;;  %v844_v6 = vsel %vm843_vm2, %v2749_v1, -inf }
 0x208   : > { %845 = vmax.xlane.f32.xlu0 %v844_v6 }
 0x209   : > { %v847_v7 = vsel %vm843_vm2, %v2751_v4, -inf }
 0x20a   : > { %848 = vmax.xlane.f32.xlu1 %v847_v7 }
 0x20c   : > { %v802_v8 = vpop.f32.mrb[24].mxu0 }
 0x20d   : > { %v2757_v9 = vmul.f32 0.125, %v802_v8  ;;  %v2056_v10 = vpop.f32.mrb[25].mxu0 }
 0x20e   : > { %v805_v11 = vpop.f32.mrb[26].mxu0 }
 0x20f   : > { %v2759_v12 = vmul.f32 0.125, %v805_v11  ;;  %v2057_v13 = vpop.f32.mrb[27].mxu0  ;;  %v850_v14 = vsel %vm843_vm2, %v2757_v9, -inf }
 0x210   : > { %851 = vmax.xlane.f32.xlu0 %v850_v14 }
 0x211   : > { %v853_v15 = vsel %vm843_vm2, %v2759_v12, -inf }
 0x214   : > { %854 = vmax.xlane.f32.xlu0 %v853_v15  ;;  %v810_v16 = vpop.f32.mrb[28].mxu0 }
 0x215   : > { %v2060_v17 = vpop.f32.mrb[29].mxu0  ;;  %v2787_v52 = vmul.f32 0.125, %v810_v16 }
 0x216   : > { %v813_v18 = vpop.f32.mrb[30].mxu0 }
 0x217   : > { %v2765_v19 = vmul.f32 0.125, %v813_v18  ;;  %v2061_v20 = vpop.f32.mrb[31].mxu0  ;;  %v856_v54 = vsel %vm843_vm2, %v2787_v52, -inf }
 0x219   : > { %v859_v21 = vsel %vm843_vm2, %v2765_v19, -inf }
 0x21a   : > { %860 = vmax.xlane.f32.xlu0 %v859_v21 }
 0x21b   : > { %1391 = vrot.lane.b32.xlu1 %v969_v58, %s2447_s13 }
 0x21c   : > { %v818_v25 = vpop.f32.mrb[32].mxu0 }
 0x21d   : > { %v2064_v29 = vpop.f32.mrb[33].mxu0  ;;  %v2789_v53 = vmul.f32 0.125, %v818_v25 }
 0x21e   : > { %v821_v30 = vpop.f32.mrb[34].mxu0 }
 0x21f   : > { %v2774_v33 = vmul.f32 0.125, %v821_v30  ;;  %v2065_v34 = vpop.f32.mrb[35].mxu0  ;;  %v862_v56 = vsel %vm843_vm2, %v2789_v53, -inf }
 0x221   : > { %v865_v35 = vsel %vm843_vm2, %v2774_v33, -inf }
 0x222   : > { %866 = vmax.xlane.f32.xlu0 %v865_v35 }
 0x224   : > { %v826_v36 = vpop.f32.mrb[36].mxu0 }
 0x225   : > { %v2068_v37 = vpop.f32.mrb[37].mxu0  ;;  %v2793_v55 = vmul.f32 0.125, %v826_v36 }
 0x226   : > { %v829_v39 = vpop.f32.mrb[38].mxu0 }
 0x227   : > { %v2781_v43 = vmul.f32 0.125, %v829_v39  ;;  %v2069_v45 = vpop.f32.mrb[39].mxu0  ;;  %v868_v57 = vsel %vm843_vm2, %v2793_v55, -inf  ;;  %v644_v39 = vpop.f32.mrb[12].mxu1 }
 0x228   : > { %v645_v40 = vadd.f32 %v644_v39, %v2725_v49  ;;  %v2034_v41 = vpop.f32.mrb[13].mxu1 }
 0x229   : > { %v871_v50 = vsel %vm843_vm2, %v2781_v43, -inf  ;;  %v647_v45 = vpop.f32.mrb[14].mxu1 }
 0x22a   : > { %872 = vmax.xlane.f32.xlu0 %v871_v50  ;;  %v648_v47 = vadd.f32 %v647_v45, %v2725_v49  ;;  %v2035_v48 = vpop.f32.mrb[15].mxu1 }
 0x23f   : > { %857 = vmax.xlane.f32.xlu1 %v856_v54  ;;  %v2837_v54 = vpack.c.bf16 %v648_v47, %v645_v40 }
 0x241   : > { %2077 = vmatpush3.bf16.msra.mxu1 %v2837_v54 }
 0x242   : > { %2078 = vmatprep.subr.bf16.mxu1 %v2445_v32 }
 0x243   : > { %863 = vmax.xlane.f32.xlu1 %v862_v56 }
 0x247   : > { %869 = vmax.xlane.f32.xlu1 %v868_v57 }
 0x277   : > { %v1206_v58 = vpop.f32.mrb[40].mxu0 }
 0x278   : > { %v2799_v59 = vmul.f32 0.125, %v1206_v58  ;;  %v2112_v42 = vpop.f32.mrb[41].mxu0 }
 0x279   : > { %v1209_v44 = vpop.f32.mrb[42].mxu0 }
 0x27a   : > { %v2801_v60 = vmul.f32 0.125, %v1209_v44  ;;  %v2113_v61 = vpop.f32.mrb[43].mxu0  ;;  %v1255_v62 = vsel %vm843_vm2, %v2799_v59, -inf }
 0x27b   : > { %1256 = vmax.xlane.f32.xlu1 %v1255_v62 }
 0x27c   : > { %v1258_v63 = vsel %vm843_vm2, %v2801_v60, -inf }
 0x27d   : > { %1259 = vmax.xlane.f32.xlu0 %v1258_v63 }
 0x27f   : > { %v1214_v0 = vpop.f32.mrb[44].mxu0 }
 0x280   : > { %v2807_v2 = vmul.f32 0.125, %v1214_v0  ;;  %v2116_v3 = vpop.f32.mrb[45].mxu0 }
 0x281   : > { %v1217_v5 = vpop.f32.mrb[46].mxu0 }
 0x282   : > { %v2809_v6 = vmul.f32 0.125, %v1217_v5  ;;  %v2117_v7 = vpop.f32.mrb[47].mxu0  ;;  %v1261_v8 = vsel %vm843_vm2, %v2807_v2, -inf  ;;  %v652_v5 = vpop.f32.mrb[16].mxu1 }
 0x283   : > { %1262 = vmax.xlane.f32.xlu1 %v1261_v8  ;;  %v2038_v8 = vpop.f32.mrb[17].mxu1 }
 0x284   : > { %v1264_v10 = vsel %vm843_vm2, %v2809_v6, -inf }
 0x285   : > { %1265 = vmax.xlane.f32.xlu0 %v1264_v10  ;;  %v655_v10 = vpop.f32.mrb[18].mxu1 }
 0x287   : > { %v1222_v11 = vpop.f32.mrb[48].mxu0 }
 0x288   : > { %v2815_v13 = vmul.f32 0.125, %v1222_v11  ;;  %v2120_v14 = vpop.f32.mrb[49].mxu0 }
 0x289   : > { %v1225_v15 = vpop.f32.mrb[50].mxu0  ;;  %v2039_v14 = vpop.f32.mrb[19].mxu1 }
 0x28a   : > { %v2817_v16 = vmul.f32 0.125, %v1225_v15  ;;  %v2121_v17 = vpop.f32.mrb[51].mxu0  ;;  %v1267_v18 = vsel %vm843_vm2, %v2815_v13, -inf }
 0x28b   : > { %1268 = vmax.xlane.f32.xlu1 %v1267_v18 }
 0x28c   : > { %v1270_v20 = vsel %vm843_vm2, %v2817_v16, -inf }
 0x28d   : > { %1271 = vmax.xlane.f32.xlu0 %v1270_v20 }
 0x28f   : > { %v1230_v21 = vpop.f32.mrb[52].mxu0 }
 0x290   : > { %v2823_v22 = vmul.f32 0.125, %v1230_v21  ;;  %v2124_v23 = vpop.f32.mrb[53].mxu0 }
 0x291   : > { %v1233_v24 = vpop.f32.mrb[54].mxu0 }
 0x292   : > { %v2125_v25 = vpop.f32.mrb[55].mxu0  ;;  %v1273_v26 = vsel %vm843_vm2, %v2823_v22, -inf  ;;  %v2844_v42 = vmul.f32 0.125, %v1233_v24 }
 0x293   : > { %1274 = vmax.xlane.f32.xlu1 %v1273_v26 }
 0x295   : > { %v846_v36 = vpop.xlane.xlu0 %845 }
 0x296   : > { %v874_v57 = vsub.f32 %v2749_v1, %v846_v36  ;;  %v1276_v1 = vsel %vm843_vm2, %v2844_v42, -inf }
 0x297   : > { %v1238_v27 = vpop.f32.mrb[56].mxu0  ;;  %v849_v38 = vpop.xlane.xlu1 %848 }
 0x298   : > { %v2827_v28 = vmul.f32 0.125, %v1238_v27  ;;  %v2128_v29 = vpop.f32.mrb[57].mxu0  ;;  %v875_v46 = vsub.f32 %v2751_v4, %v849_v38  ;;  %v884_v61 = vmul.f32 1.442695, %v874_v57 }
 0x299   : > { %v1241_v30 = vpop.f32.mrb[58].mxu0 }
 0x29a   : > { %v2129_v34 = vpop.f32.mrb[59].mxu0  ;;  %v1279_v35 = vsel %vm843_vm2, %v2827_v28, -inf  ;;  %v886_v56 = vmul.f32 1.442695, %v875_v46  ;;  %v2848_v0 = vmul.f32 0.125, %v1241_v30 }
 0x29b   : > { %1280 = vmax.xlane.f32.xlu1 %v1279_v35  ;;  %v2859_v18 = vpop.permute.xlu1 %1391 }
 0x29c   : > { %2300 = vpow2.f32 %v886_v56  ;;  %v1282_v15 = vsel %vm843_vm2, %v2848_v0, -inf }
 0x29d   : > { %v852_v37 = vpop.xlane.xlu0 %851 }
 0x29e   : > { %v876_v62 = vsub.f32 %v2757_v9, %v852_v37 }
 0x2a0   : > { %v888_v7 = vmul.f32 1.442695, %v876_v62 }
 0x2a1   : > { %v855_v50 = vpop.xlane.xlu0 %854 }
 0x2a3   : > { %1393 = vrot.lane.b32.xlu0 %v2772_v31, %s2447_s13  ;;  %v877_v31 = vsub.f32 %v2759_v12, %v855_v50 }
 0x2a5   : > { %v890_v58 = vmul.f32 1.442695, %v877_v31 }
 0x2a6   : > { %v2857_v17 = vpop.eup %2300 }
 0x2a7   : > { %2302 = vpow2.f32 %v890_v58 }
 0x2a8   : > { %2304 = vpow2.f32 %v884_v61 }
 0x2ac   : > { %1395 = vrot.lane.b32.xlu1 %v971_v51, %s2447_s13  ;;  %v861_v51 = vpop.xlane.xlu0 %860 }
 0x2ad   : > { %v879_v4 = vsub.f32 %v2765_v19, %v861_v51  ;;  %v653_v19 = vadd.f32 %v652_v5, %v2725_v49 }
 0x2af   : > { %v894_v63 = vmul.f32 1.442695, %v879_v4 }
 0x2b0   : > { %v867_v44 = vpop.xlane.xlu0 %866 }
 0x2b1   : > { %v881_v12 = vsub.f32 %v2774_v33, %v867_v44  ;;  %2306 = vpow2.f32 %v894_v63  ;;  %v656_v33 = vadd.f32 %v655_v10, %v2725_v49  ;;  %v2867_v49 = vpop.eup %2302 }
 0x2b2   : > { %2308 = vpow2.f32 %v888_v7  ;;  %v2869_v23 = vpop.eup %2304  ;;  %v913_v26 = vsel %vm843_vm2, %v2867_v49, 0.0 }
 0x2b3   : > { %v898_v9 = vmul.f32 1.442695, %v881_v12  ;;  %v2861_v20 = vpack.c.bf16 %v656_v33, %v653_v19  ;;  %v904_v30 = vsel %vm843_vm2, %v2869_v23, 0.0 }
 0x2b5   : > { %2310 = vpow2.f32 %v898_v9  ;;  %2079 = vmatpush3.bf16.msra.mxu1 %v2861_v20 }
 0x2b6   : > { %2130 = vmatprep.subr.bf16.mxu1 %v2445_v32 }
 0x2b7   : > { %v873_v3 = vpop.xlane.xlu0 %872 }
 0x2b8   : > { %v883_v11 = vsub.f32 %v2781_v43, %v873_v3  ;;  %v907_v43 = vsel %vm843_vm2, %v2857_v17, 0.0 }
 0x2ba   : > { %v902_v21 = vmul.f32 1.442695, %v883_v11 }
 0x2bb   : > { %v2874_v27 = vpop.eup %2306 }
 0x2bc   : > { %2312 = vpow2.f32 %v902_v21  ;;  %v2878_v34 = vpop.eup %2308 }
 0x2bd   : > { %v910_v39 = vsel %vm843_vm2, %v2878_v34, 0.0 }
 0x2bf   : > { %v2883_v37 = vpop.eup %2310 }
 0x2c0   : > { %v925_v45 = vsel %vm843_vm2, %v2883_v37, 0.0 }
 0x2c2   : > { %1277 = vmax.xlane.f32.xlu0 %v1276_v1 }
 0x2c6   : > { %1283 = vmax.xlane.f32.xlu0 %v1282_v15  ;;  %v2890_v46 = vpop.eup %2312 }
 0x2c7   : > { %v931_v47 = vsel %vm843_vm2, %v2890_v46, 0.0 }
 0x2ca   : > { %908 = vadd.xlane.f32.xlu0 %v907_v43 }
 0x2cc   : > { %v858_v24 = vpop.xlane.xlu1 %857 }
 0x2cd   : > { %v878_v25 = vsub.f32 %v2787_v52, %v858_v24  ;;  %v919_v52 = vsel %vm843_vm2, %v2874_v27, 0.0 }
 0x2ce   : > { %914 = vadd.xlane.f32.xlu0 %v913_v26 }
 0x2cf   : > { %v892_v29 = vmul.f32 1.442695, %v878_v25 }
 0x2d0   : > { %v864_v35 = vpop.xlane.xlu1 %863  ;;  %905 = vadd.xlane.f32.xlu1 %v904_v30 }
 0x2d1   : > { %2314 = vpow2.f32 %v892_v29  ;;  %v880_v36 = vsub.f32 %v2789_v53, %v864_v35 }
 0x2d2   : > { %920 = vadd.xlane.f32.xlu0 %v919_v52 }
 0x2d3   : > { %v896_v38 = vmul.f32 1.442695, %v880_v36 }
 0x2d4   : > { %v870_v40 = vpop.xlane.xlu1 %869  ;;  %911 = vadd.xlane.f32.xlu1 %v910_v39 }
 0x2d5   : > { %2316 = vpow2.f32 %v896_v38  ;;  %v882_v41 = vsub.f32 %v2793_v55, %v870_v40 }
 0x2d6   : > { %926 = vadd.xlane.f32.xlu0 %v925_v45 }
 0x2d7   : > { %v900_v53 = vmul.f32 1.442695, %v882_v41 }
 0x2d9   : > { %2318 = vpow2.f32 %v900_v53 }
 0x2da   : > { %932 = vadd.xlane.f32.xlu0 %v931_v47 }
 0x2db   : > { %v2894_v48 = vpop.eup %2314 }
 0x2dc   : > { %v916_v50 = vsel %vm843_vm2, %v2894_v48, 0.0 }
 0x2dd   : > { %917 = vadd.xlane.f32.xlu1 %v916_v50 }
 0x2df   : > { %v2898_v56 = vpop.eup %2316 }
 0x2e0   : > { %v922_v55 = vsel %vm843_vm2, %v2898_v56, 0.0 }
 0x2e1   : > { %923 = vadd.xlane.f32.xlu1 %v922_v55 }
 0x2e3   : > { %v2902_v31 = vpop.eup %2318 }
 0x2e4   : > { %v928_v51 = vsel %vm843_vm2, %v2902_v31, 0.0 }
 0x2e5   : > { %929 = vadd.xlane.f32.xlu1 %v928_v51 }
 0x308   : > { %v1257_v57 = vpop.xlane.xlu1 %1256 }
 0x309   : > { %v1285_v58 = vsub.f32 %v2799_v59, %v1257_v57 }
 0x30a   : > { %v1260_v4 = vpop.xlane.xlu0 %1259 }
 0x30b   : > { %v1295_v44 = vmul.f32 1.442695, %v1285_v58  ;;  %v1286_v61 = vsub.f32 %v2801_v60, %v1260_v4 }
 0x30d   : > { %2320 = vpow2.f32 %v1295_v44  ;;  %v1297_v62 = vmul.f32 1.442695, %v1286_v61 }
 0x30f   : > { %2322 = vpow2.f32 %v1297_v62 }
 0x310   : > { %v1263_v63 = vpop.xlane.xlu1 %1262 }
 0x311   : > { %v1287_v12 = vsub.f32 %v2807_v2, %v1263_v63 }
 0x312   : > { %v1266_v3 = vpop.xlane.xlu0 %1265 }
 0x313   : > { %v1299_v1 = vmul.f32 1.442695, %v1287_v12  ;;  %v1288_v5 = vsub.f32 %v2809_v6, %v1266_v3 }
 0x315   : > { %2324 = vpow2.f32 %v1299_v1  ;;  %v1301_v7 = vmul.f32 1.442695, %v1288_v5 }
 0x317   : > { %v2910_v19 = vpop.eup %2320  ;;  %2326 = vpow2.f32 %v1301_v7 }
 0x318   : > { %v1269_v59 = vpop.xlane.xlu1 %1268  ;;  %v1315_v8 = vsel %vm843_vm2, %v2910_v19, 0.0 }
 0x319   : > { %v2914_v60 = vpop.eup %2322  ;;  %v1289_v10 = vsub.f32 %v2815_v13, %v1269_v59  ;;  %1316 = vadd.xlane.f32.xlu1 %v1315_v8 }
 0x31a   : > { %v1272_v9 = vpop.xlane.xlu0 %1271  ;;  %v1318_v2 = vsel %vm843_vm2, %v2914_v60, 0.0 }
 0x31b   : > { %v1303_v11 = vmul.f32 1.442695, %v1289_v10  ;;  %v1290_v6 = vsub.f32 %v2817_v16, %v1272_v9  ;;  %1319 = vadd.xlane.f32.xlu0 %v1318_v2 }
 0x31d   : > { %2328 = vpow2.f32 %v1303_v11  ;;  %v1305_v33 = vmul.f32 1.442695, %v1290_v6 }
 0x31e   : > { %v2945_v36 = vpop.permute.xlu0 %1393 }
 0x31f   : > { %v2920_v14 = vpop.eup %2324  ;;  %2330 = vpow2.f32 %v1305_v33 }
 0x320   : > { %v1275_v15 = vpop.xlane.xlu1 %1274  ;;  %v1321_v21 = vsel %vm843_vm2, %v2920_v14, 0.0 }
 0x321   : > { %v2924_v43 = vpop.eup %2326  ;;  %v1291_v13 = vsub.f32 %v2823_v22, %v1275_v15  ;;  %1322 = vadd.xlane.f32.xlu1 %v1321_v21 }
 0x322   : > { %v1324_v24 = vsel %vm843_vm2, %v2924_v43, 0.0 }
 0x323   : > { %v1307_v25 = vmul.f32 1.442695, %v1291_v13  ;;  %1325 = vadd.xlane.f32.xlu0 %v1324_v24 }
 0x325   : > { %2332 = vpow2.f32 %v1307_v25 }
 0x327   : > { %v2929_v16 = vpop.eup %2328 }
 0x328   : > { %v1327_v26 = vsel %vm843_vm2, %v2929_v16, 0.0  ;;  %v1281_v52 = vpop.xlane.xlu1 %1280 }
 0x329   : > { %v2933_v29 = vpop.eup %2330  ;;  %1328 = vadd.xlane.f32.xlu1 %v1327_v26  ;;  %v1293_v38 = vsub.f32 %v2827_v28, %v1281_v52 }
 0x32a   : > { %v1330_v30 = vsel %vm843_vm2, %v2933_v29, 0.0 }
 0x32b   : > { %1331 = vadd.xlane.f32.xlu0 %v1330_v30  ;;  %v1311_v41 = vmul.f32 1.442695, %v1293_v38 }
 0x32f   : > { %v2937_v22 = vpop.eup %2332 }
 0x330   : > { %v1333_v35 = vsel %vm843_vm2, %v2937_v22, 0.0 }
 0x331   : > { %1334 = vadd.xlane.f32.xlu1 %v1333_v35 }
 0x341   : > { %1397 = vrot.lane.b32.xlu0 %v2837_v54, %s2447_s13 }
 0x342   : > { %1399 = vrot.lane.b32.xlu1 %v2861_v20, %s2447_s13  ;;  %v2950_v20 = vpop.permute.xlu1 %1395 }
 0x34f   : > { %v1278_v39 = vpop.xlane.xlu0 %1277 }
 0x350   : > { %v1292_v40 = vsub.f32 %v2844_v42, %v1278_v39 }
 0x352   : > { %v1309_v45 = vmul.f32 1.442695, %v1292_v40 }
 0x353   : > { %v1284_v53 = vpop.xlane.xlu0 %1283 }
 0x354   : > { %2334 = vpow2.f32 %v1309_v45  ;;  %v1294_v47 = vsub.f32 %v2848_v0, %v1284_v53 }
 0x355   : > { %2336 = vpow2.f32 %v1311_v41 }
 0x356   : > { %v1313_v54 = vmul.f32 1.442695, %v1294_v47 }
 0x357   : > { %v909_v50 = vpop.xlane.xlu0 %908 }
 0x358   : > { %2338 = vrcp.f32 %v909_v50 }
 0x359   : > { %2340 = vpow2.f32 %v1313_v54 }
 0x35b   : > { %v915_v55 = vpop.xlane.xlu0 %914 }
 0x35c   : > { %2342 = vrcp.f32 %v915_v55 }
 0x35d   : > { %v906_v28 = vpop.xlane.xlu1 %905 }
 0x35e   : > { %v2953_v51 = vpop.eup %2334  ;;  %2344 = vrcp.f32 %v906_v28 }
 0x35f   : > { %v921_v42 = vpop.xlane.xlu0 %920  ;;  %v1336_v0 = vsel %vm843_vm2, %v2953_v51, 0.0  ;;  %v2959_v57 = vpop.eup %2336 }
 0x360   : > { %2346 = vrcp.f32 %v921_v42  ;;  %1337 = vadd.xlane.f32.xlu0 %v1336_v0  ;;  %v1339_v61 = vsel %vm843_vm2, %v2959_v57, 0.0 }
 0x361   : > { %v912_v58 = vpop.xlane.xlu1 %911 }
 0x362   : > { %2348 = vrcp.f32 %v912_v58  ;;  %v2339_v4 = vpop.eup %2338 }
 0x363   : > { %v927_v44 = vpop.xlane.xlu0 %926  ;;  %v2963_v62 = vpop.eup %2340  ;;  %v937_v63 = vmul.f32 %v2339_v4, %v2857_v17 }
 0x364   : > { %2350 = vrcp.f32 %v927_v44  ;;  %1340 = vadd.xlane.f32.xlu0 %v1339_v61  ;;  %v1342_v1 = vsel %vm843_vm2, %v2963_v62, 0.0 }
 0x365   : > { %955 = vst.msk [vmem:[%s2966_s17 + $0x8] sm:$0xff] %vm843_vm2, %v937_v63 }
 0x366   : > { %v2343_v12 = vpop.eup %2342 }
 0x367   : > { %v933_v3 = vpop.xlane.xlu0 %932  ;;  %v941_v5 = vmul.f32 %v2343_v12, %v2867_v49 }
 0x368   : > { %v2345_v7 = vpop.eup %2344  ;;  %2352 = vrcp.f32 %v933_v3  ;;  %1343 = vadd.xlane.f32.xlu0 %v1342_v1 }
 0x369   : > { %v935_v17 = vmul.f32 %v2345_v7, %v2869_v23  ;;  %957 = vst.msk [vmem:[%s2966_s17 + $0x18] sm:$0xff] %vm843_vm2, %v941_v5 }
 0x36a   : > { %v2347_v59 = vpop.eup %2346  ;;  %v918_v8 = vpop.xlane.xlu1 %917 }
 0x36b   : > { %954 = vst.msk [vmem:[%s2966_s17] sm:$0xff] %vm843_vm2, %v935_v17  ;;  %v964_v10 = vpack.c.bf16 %v937_v63, %v935_v17  ;;  %2354 = vrcp.f32 %v918_v8  ;;  %v945_v9 = vmul.f32 %v2347_v59, %v2874_v27 }
 0x36c   : > { %v2349_v2 = vpop.eup %2348 }
 0x36d   : > { %2081 = vmatmul.mubr.msk.bf16.vlgmr.msra.gmra.mrb[20].mxu1 %vm843_vm2, %v964_v10  ;;  %v939_v49 = vmul.f32 %v2349_v2, %v2878_v34  ;;  %959 = vst.msk [vmem:[%s2966_s17 + $0x28] sm:$0xff] %vm843_vm2, %v945_v9 }
 0x36e   : > { %v2351_v23 = vpop.eup %2350  ;;  %2131 = vmatpush3.bf16.msra.mxu1 %v2859_v18  ;;  %v924_v11 = vpop.xlane.xlu1 %923  ;;  %2084 = vmatprep.mubr.msk.bf16.mxu1 %vm2446_vm0, %v2445_v32 }
 0x36f   : > { %2356 = vrcp.f32 %v924_v11  ;;  %2132 = vmatprep.subr.bf16.mxu1 %v2445_v32  ;;  %956 = vst.msk [vmem:[%s2966_s17 + $0x10] sm:$0xff] %vm843_vm2, %v939_v49  ;;  %v949_v27 = vmul.f32 %v2351_v23, %v2883_v37  ;;  %v965_v18 = vpack.c.bf16 %v941_v5, %v939_v49 }
 0x371   : > { %961 = vst.msk [vmem:[%s2966_s17 + $0x38] sm:$0xff] %vm843_vm2, %v949_v27 }
 0x372   : > { %v2353_v34 = vpop.eup %2352  ;;  %2133 = vmatpush3.bf16.msra.mxu1 %v2945_v36  ;;  %v930_v6 = vpop.xlane.xlu1 %929 }
 0x373   : > { %2358 = vrcp.f32 %v930_v6  ;;  %2134 = vmatprep.subr.bf16.mxu1 %v2445_v32  ;;  %v953_v33 = vmul.f32 %v2353_v34, %v2890_v46 }
 0x375   : > { %v2355_v15 = vpop.eup %2354  ;;  %2085 = vmatmul.mubr.msk.bf16.gmra.mrb[24].mxu1 %vm843_vm2, %v965_v18  ;;  %963 = vst.msk [vmem:[%s2966_s17 + $0x48] sm:$0xff] %vm843_vm2, %v953_v33 }
 0x376   : > { %2135 = vmatpush3.bf16.msra.mxu1 %v2950_v20  ;;  %2088 = vmatprep.mubr.msk.bf16.mxu1 %vm2446_vm0, %v2445_v32  ;;  %v943_v37 = vmul.f32 %v2355_v15, %v2894_v48  ;;  %v2293_v15 = vld [vmem:[%s3232_s4 + $0x8] sm:$0xff]  }
 0x377   : > { %2136 = vmatprep.subr.bf16.mxu1 %v2445_v32 }
 0x378   : > { %958 = vst.msk [vmem:[%s2966_s17 + $0x20] sm:$0xff] %vm843_vm2, %v943_v37  ;;  %v966_v13 = vpack.c.bf16 %v945_v9, %v943_v37 }
 0x379   : > { %v2357_v21 = vpop.eup %2356 }
 0x37a   : > { %v947_v46 = vmul.f32 %v2357_v21, %v2898_v56 }
 0x37c   : > { %960 = vst.msk [vmem:[%s2966_s17 + $0x30] sm:$0xff] %vm843_vm2, %v947_v46  ;;  %v967_v48 = vpack.c.bf16 %v949_v27, %v947_v46  ;;  %v2294_v46 = vld [vmem:[%s3232_s4 + $0x10] sm:$0xff]  }
 0x37d   : > { %v2359_v24 = vpop.eup %2358  ;;  %2089 = vmatmul.mubr.msk.bf16.gmra.mrb[28].mxu1 %vm843_vm2, %v966_v13 }
 0x37e   : > { %2092 = vmatprep.mubr.msk.bf16.mxu1 %vm2446_vm0, %v2445_v32  ;;  %v951_v25 = vmul.f32 %v2359_v24, %v2902_v31 }
 0x380   : > { %962 = vst.msk [vmem:[%s2966_s17 + $0x40] sm:$0xff] %vm843_vm2, %v951_v25  ;;  %v968_v56 = vpack.c.bf16 %v953_v33, %v951_v25  ;;  %v2292_v33 = vld [vmem:[%s3232_s4] sm:$0xff]   ;;  %v2295_v25 = vld [vmem:[%s3232_s4 + $0x18] sm:$0xff]  }
 0x381   : > { %2161 = vmatpush3.bf16.msra.mxu0 %v2292_v33 }
 0x382   : > { %2162 = vmatprep.subr.bf16.mxu0 %v2445_v32 }
 0x385   : > { %2093 = vmatmul.mubr.msk.bf16.gmra.mrb[32].mxu1 %vm843_vm2, %v967_v48  ;;  %2163 = vmatpush3.bf16.msra.mxu0 %v2293_v15  ;;  %v2296_v48 = vld [vmem:[%s3232_s4 + $0x20] sm:$0xff]  }
 0x386   : > { %2096 = vmatprep.mubr.msk.bf16.mxu1 %vm2446_vm0, %v2445_v32  ;;  %2164 = vmatprep.subr.bf16.mxu0 %v2445_v32 }
 0x389   : > { %2165 = vmatpush3.bf16.msra.mxu0 %v2294_v46 }
 0x38a   : > { %2166 = vmatprep.subr.bf16.mxu0 %v2445_v32 }
 0x38d   : > { %2097 = vmatmul.mubr.msk.bf16.gmra.mrb[36].mxu1 %vm843_vm2, %v968_v56  ;;  %2167 = vmatpush3.bf16.msra.mxu0 %v2295_v25  ;;  %v2297_v56 = vld [vmem:[%s3232_s4 + $0x28] sm:$0xff]  }
 0x38e   : > { %2140 = vmatprep.mubr.msk.bf16.mxu1 %vm2446_vm0, %v2445_v32  ;;  %2168 = vmatprep.subr.bf16.mxu0 %v2445_v32 }
 0x391   : > { %2169 = vmatpush3.bf16.msra.mxu0 %v2296_v48 }
 0x392   : > { %2170 = vmatprep.subr.bf16.mxu0 %v2445_v32 }
 0x395   : > { %2171 = vmatpush3.bf16.msra.mxu0 %v2297_v56 }
 0x396   : > { %2172 = vmatprep.subr.bf16.mxu0 %v2445_v32 }
 0x3a6   : > { %v1317_v26 = vpop.xlane.xlu1 %1316 }
 0x3a7   : > { %2360 = vrcp.f32 %v1317_v26  ;;  %v2298_v26 = vld [vmem:[%s3232_s4 + $0x30] sm:$0xff]  }
 0x3a8   : > { %v1320_v30 = vpop.xlane.xlu0 %1319  ;;  %2173 = vmatpush3.bf16.msra.mxu0 %v2298_v26 }
 0x3a9   : > { %2362 = vrcp.f32 %v1320_v30  ;;  %2174 = vmatprep.subr.bf16.mxu0 %v2445_v32  ;;  %v2299_v30 = vld [vmem:[%s3232_s4 + $0x38] sm:$0xff]  }
 0x3ac   : > { %2175 = vmatpush3.bf16.msra.mxu0 %v2299_v30 }
 0x3ae   : > { %v1323_v31 = vpop.xlane.xlu1 %1322 }
 0x3af   : > { %2364 = vrcp.f32 %v1323_v31 }
 0x3b0   : > { %v1326_v35 = vpop.xlane.xlu0 %1325 }
 0x3b1   : > { %v2361_v36 = vpop.eup %2360  ;;  %2366 = vrcp.f32 %v1326_v35 }
 0x3b2   : > { %v1346_v52 = vmul.f32 %v2361_v36, %v2910_v19 }
 0x3b3   : > { %v2363_v38 = vpop.eup %2362 }
 0x3b4   : > { %1911 = vst.msk [vmem:[%s2966_s17 + $0x50] sm:$0xff] %vm843_vm2, %v1346_v52  ;;  %v1348_v39 = vmul.f32 %v2363_v38, %v2914_v60 }
 0x3b6   : > { %1912 = vst.msk [vmem:[%s2966_s17 + $0x58] sm:$0xff] %vm843_vm2, %v1348_v39  ;;  %v1329_v40 = vpop.xlane.xlu1 %1328  ;;  %v1376_v28 = vpack.c.bf16 %v1348_v39, %v1346_v52 }
 0x3b7   : > { %2368 = vrcp.f32 %v1329_v40 }
 0x3b8   : > { %v1332_v41 = vpop.xlane.xlu0 %1331 }
 0x3b9   : > { %v2365_v45 = vpop.eup %2364  ;;  %2370 = vrcp.f32 %v1332_v41 }
 0x3ba   : > { %v1350_v53 = vmul.f32 %v2365_v45, %v2920_v14 }
 0x3bb   : > { %v2367_v47 = vpop.eup %2366 }
 0x3bc   : > { %v1398_v54 = vpop.permute.xlu0 %1397  ;;  %v1352_v19 = vmul.f32 %v2367_v47, %v2924_v43  ;;  %1913 = vst.msk [vmem:[%s2966_s17 + $0x60] sm:$0xff] %vm843_vm2, %v1350_v53 }
 0x3bd   : > { %2137 = vmatpush3.bf16.msra.mxu1 %v1398_v54 }
 0x3be   : > { %v1335_v50 = vpop.xlane.xlu1 %1334  ;;  %2138 = vmatprep.subr.bf16.mxu1 %v2445_v32  ;;  %1914 = vst.msk [vmem:[%s2966_s17 + $0x68] sm:$0xff] %vm843_vm2, %v1352_v19 }
 0x3bf   : > { %2372 = vrcp.f32 %v1335_v50 }
 0x3c1   : > { %v2369_v60 = vpop.eup %2368 }
 0x3c2   : > { %v1400_v20 = vpop.permute.xlu1 %1399  ;;  %v1354_v14 = vmul.f32 %v2369_v60, %v2929_v16  ;;  %v1377_v16 = vpack.c.bf16 %v1352_v19, %v1350_v53 }
 0x3c3   : > { %v2371_v55 = vpop.eup %2370  ;;  %2139 = vmatpush3.bf16.msra.mxu1 %v1400_v20 }
 0x3c4   : > { %v1356_v43 = vmul.f32 %v2371_v55, %v2933_v29  ;;  %1915 = vst.msk [vmem:[%s2966_s17 + $0x70] sm:$0xff] %vm843_vm2, %v1354_v14  ;;  %2196 = vmatprep.subr.bf16.mxu1 %v2445_v32 }
 0x3c6   : > { %2141 = vmatmul.mubr.msk.bf16.vlgmr.msra.gmra.mrb[40].mxu1 %vm843_vm2, %v1376_v28  ;;  %1916 = vst.msk [vmem:[%s2966_s17 + $0x78] sm:$0xff] %vm843_vm2, %v1356_v43  ;;  %v1378_v29 = vpack.c.bf16 %v1356_v43, %v1354_v14 }
 0x3c7   : > { %2144 = vmatprep.mubr.msk.bf16.mxu1 %vm2446_vm0, %v2445_v32  ;;  %2204 = vmatpush3.bf16.msra.mxu1 %v2292_v33 }
 0x3c8   : > { %2197 = vmatprep.subr.bf16.mxu1 %v2445_v32 }
 0x3c9   : > { %v2373_v42 = vpop.eup %2372 }
 0x3ca   : > { %v1358_v0 = vmul.f32 %v2373_v42, %v2937_v22 }
 0x3cb   : > { %2205 = vmatpush3.bf16.msra.mxu1 %v2293_v15 }
 0x3cc   : > { %1917 = vst.msk [vmem:[%s2966_s17 + $0x80] sm:$0xff] %vm843_vm2, %v1358_v0  ;;  %2198 = vmatprep.subr.bf16.mxu1 %v2445_v32 }
 0x3ce   : > { %2145 = vmatmul.mubr.msk.bf16.gmra.mrb[44].mxu1 %vm843_vm2, %v1377_v16 }
 0x3cf   : > { %2148 = vmatprep.mubr.msk.bf16.mxu1 %vm2446_vm0, %v2445_v32  ;;  %2206 = vmatpush3.bf16.msra.mxu1 %v2294_v46 }
 0x3d0   : > { %2199 = vmatprep.subr.bf16.mxu1 %v2445_v32 }
 0x3d3   : > { %2207 = vmatpush3.bf16.msra.mxu1 %v2295_v25 }
 0x3d4   : > { %2200 = vmatprep.subr.bf16.mxu1 %v2445_v32 }
 0x3d6   : > { %2149 = vmatmul.mubr.msk.bf16.gmra.mrb[48].mxu1 %vm843_vm2, %v1378_v29 }
 0x3d7   : > { %2152 = vmatprep.mubr.msk.bf16.mxu1 %vm2446_vm0, %v2445_v32  ;;  %2208 = vmatpush3.bf16.msra.mxu1 %v2296_v48 }
 0x3d8   : > { %2201 = vmatprep.subr.bf16.mxu1 %v2445_v32 }
 0x3db   : > { %2209 = vmatpush3.bf16.msra.mxu1 %v2297_v56 }
 0x3dc   : > { %2202 = vmatprep.subr.bf16.mxu1 %v2445_v32 }
 0x3df   : > { %2210 = vmatpush3.bf16.msra.mxu1 %v2298_v26 }
 0x3e0   : > { %2203 = vmatprep.subr.bf16.mxu1 %v2445_v32 }
 0x3e3   : > { %2211 = vmatpush3.bf16.msra.mxu1 %v2299_v30 }
 0x3ed   : > { %v1338_v58 = vpop.xlane.xlu0 %1337 }
 0x3ee   : > { %2374 = vrcp.f32 %v1338_v58 }
 0x3f1   : > { %v1341_v22 = vpop.xlane.xlu0 %1340 }
 0x3f2   : > { %2376 = vrcp.f32 %v1341_v22 }
 0x3f5   : > { %v1344_v4 = vpop.xlane.xlu0 %1343 }
 0x3f6   : > { %2378 = vrcp.f32 %v1344_v4 }
 0x3f8   : > { %v2375_v44 = vpop.eup %2374 }
 0x3f9   : > { %v1360_v61 = vmul.f32 %v2375_v44, %v2953_v51 }
 0x3fb   : > { %1918 = vst.msk [vmem:[%s2966_s17 + $0x88] sm:$0xff] %vm843_vm2, %v1360_v61  ;;  %v1379_v63 = vpack.c.bf16 %v1360_v61, %v1358_v0 }
 0x3fc   : > { %v2377_v12 = vpop.eup %2376 }
 0x3fd   : > { %2153 = vmatmul.mubr.msk.bf16.gmra.mrb[52].mxu1 %vm843_vm2, %v1379_v63  ;;  %v1362_v3 = vmul.f32 %v2377_v12, %v2959_v57 }
 0x3fe   : > { %2156 = vmatprep.mubr.msk.bf16.mxu1 %vm2446_vm0, %v2445_v32 }
 0x3ff   : > { %1919 = vst.msk [vmem:[%s2966_s17 + $0x90] sm:$0xff] %vm843_vm2, %v1362_v3 }
 0x400   : > { %v2379_v1 = vpop.eup %2378 }
 0x401   : > { %v1364_v5 = vmul.f32 %v2379_v1, %v2963_v62 }
 0x403   : > { %1920 = vst.msk [vmem:[%s2966_s17 + $0x98] sm:$0xff] %vm843_vm2, %v1364_v5  ;;  %v1380_v7 = vpack.c.bf16 %v1364_v5, %v1362_v3 }
 0x405   : > { %2157 = vmatmul.mubr.msk.bf16.gmra.mrb[56].mxu1 %vm843_vm2, %v1380_v7 }
 0x406   : > { %2188 = vmatprep.mubr.msk.bf16.mxu1 %vm2446_vm0, %v2445_v32 }
 0x440   : > { %v1023_v51 = vpop.f32.mrb[20].mxu1 }
 0x441   : > { %1062 = vst.msk [vmem:[#allocation3] sm:$0xff] %vm729_vm1, %v1023_v51  ;;  %v2082_v57 = vpop.f32.mrb[21].mxu1 }
 0x442   : > { %v1026_v17 = vpop.f32.mrb[22].mxu1 }
 0x443   : > { %1063 = vst.msk [vmem:[#allocation3 + $0x8] sm:$0xff] %vm729_vm1, %v1026_v17  ;;  %v2083_v59 = vpop.f32.mrb[23].mxu1 }
 0x448   : > { %v1031_v8 = vpop.f32.mrb[24].mxu1 }
 0x449   : > { %1064 = vst.msk [vmem:[#allocation3 + $0x10] sm:$0xff] %vm729_vm1, %v1031_v8  ;;  %v2086_v62 = vpop.f32.mrb[25].mxu1 }
 0x44a   : > { %v1034_v10 = vpop.f32.mrb[26].mxu1 }
 0x44b   : > { %1065 = vst.msk [vmem:[#allocation3 + $0x18] sm:$0xff] %vm729_vm1, %v1034_v10  ;;  %v2087_v9 = vpop.f32.mrb[27].mxu1 }
 0x450   : > { %v1039_v2 = vpop.f32.mrb[28].mxu1 }
 0x451   : > { %1066 = vst.msk [vmem:[#allocation3 + $0x20] sm:$0xff] %vm729_vm1, %v1039_v2  ;;  %v2090_v49 = vpop.f32.mrb[29].mxu1 }
 0x452   : > { %v1042_v23 = vpop.f32.mrb[30].mxu1 }
 0x453   : > { %1067 = vst.msk [vmem:[#allocation3 + $0x28] sm:$0xff] %vm729_vm1, %v1042_v23  ;;  %v2091_v11 = vpop.f32.mrb[31].mxu1 }
 0x458   : > { %v1047_v27 = vpop.f32.mrb[32].mxu1 }
 0x459   : > { %1068 = vst.msk [vmem:[#allocation3 + $0x30] sm:$0xff] %vm729_vm1, %v1047_v27  ;;  %v2094_v34 = vpop.f32.mrb[33].mxu1 }
 0x45a   : > { %v1050_v6 = vpop.f32.mrb[34].mxu1 }
 0x45b   : > { %1069 = vst.msk [vmem:[#allocation3 + $0x38] sm:$0xff] %vm729_vm1, %v1050_v6  ;;  %v2095_v18 = vpop.f32.mrb[35].mxu1 }
 0x460   : > { %v1055_v37 = vpop.f32.mrb[36].mxu1 }
 0x461   : > { %1070 = vst.msk [vmem:[#allocation3 + $0x40] sm:$0xff] %vm729_vm1, %v1055_v37  ;;  %v2098_v21 = vpop.f32.mrb[37].mxu1 }
 0x462   : > { %v1058_v13 = vpop.f32.mrb[38].mxu1 }
 0x463   : > { %1071 = vst.msk [vmem:[#allocation3 + $0x48] sm:$0xff] %vm729_vm1, %v1058_v13  ;;  %v2099_v24 = vpop.f32.mrb[39].mxu1 }
 0x499   : > { %v1455_v31 = vpop.f32.mrb[40].mxu1 }
 0x49a   : > { %1504 = vrot.lane.b32.xlu0 %v1455_v31, %s2447_s13  ;;  %v2142_v35 = vpop.f32.mrb[41].mxu1 }
 0x49b   : > { %v1458_v36 = vpop.f32.mrb[42].mxu1 }
 0x49c   : > { %1506 = vrot.lane.b32.xlu1 %v1458_v36, %s2447_s13  ;;  %v2143_v52 = vpop.f32.mrb[43].mxu1 }
 0x4a1   : > { %v1463_v38 = vpop.f32.mrb[44].mxu1 }
 0x4a2   : > { %1508 = vrot.lane.b32.xlu1 %v1463_v38, %s2447_s13  ;;  %v2146_v39 = vpop.f32.mrb[45].mxu1 }
 0x4a3   : > { %v1466_v40 = vpop.f32.mrb[46].mxu1 }
 0x4a4   : > { %v2147_v41 = vpop.f32.mrb[47].mxu1 }
 0x4a6   : > { %1510 = vrot.lane.b32.xlu1 %v1466_v40, %s2447_s13 }
 0x4a9   : > { %v1471_v45 = vpop.f32.mrb[48].mxu1 }
 0x4aa   : > { %v2150_v53 = vpop.f32.mrb[49].mxu1 }
 0x4ab   : > { %v1474_v47 = vpop.f32.mrb[50].mxu1 }
 0x4ac   : > { %v2151_v54 = vpop.f32.mrb[51].mxu1 }
 0x4d0   : > { %v1479_v19 = vpop.f32.mrb[52].mxu1 }
 0x4d1   : > { %1516 = vrot.lane.b32.xlu1 %v1479_v19, %s2447_s13  ;;  %v2154_v50 = vpop.f32.mrb[53].mxu1 }
 0x4d2   : > { %v1482_v60 = vpop.f32.mrb[54].mxu1 }
 0x4d3   : > { %1518 = vrot.lane.b32.xlu0 %v1482_v60, %s2447_s13  ;;  %v2155_v20 = vpop.f32.mrb[55].mxu1 }
 0x4d5   : > { %1512 = vrot.lane.b32.xlu1 %v1471_v45, %s2447_s13 }
 0x4d7   : > { %1514 = vrot.lane.b32.xlu0 %v1474_v47, %s2447_s13 }
 0x4d8   : > { %v1487_v14 = vpop.f32.mrb[56].mxu1 }
 0x4d9   : > { %1520 = vrot.lane.b32.xlu1 %v1487_v14, %s2447_s13  ;;  %v2158_v55 = vpop.f32.mrb[57].mxu1 }
 0x4da   : > { %v1490_v28 = vpop.f32.mrb[58].mxu1 }
 0x4db   : > { %1522 = vrot.lane.b32.xlu0 %v1490_v28, %s2447_s13  ;;  %v2159_v43 = vpop.f32.mrb[59].mxu1  ;;  %s2214_s13 = smul.u32 2560, %s2512_s28  ;;  %s2448_s28 = smov [#allocation4]  }
 0x4dc   : > { %s2384_s17 = sshll.u32 %s2448_s28, 4  ;;  %s2385_s17 = int_to_ptr.vmem [resolvable:$false] %s2384_s17 }
 0x4dd   : > { %s3146_s16 = scalar_lea.hbm %s3235_s7, %s2214_s13  ;;  %s2386_s21 = scalar_lea.vmem %s2385_s17, 5120 }
 0x4de   : > { %p2387_p0 = scmp.lt.s32.totalorder %s3148_s8, %s2385_s17  ;;  %p2388_p1 = scmp.lt.s32.totalorder %s2386_s21, %s2380_s19 }
 0x4e0   : > { %p2389_p2 = por %p2388_p1, %p2387_p0 }
 0x4e2   : > { %p2390_p3 = pnand %p2389_p2, %p2383_p13 }
 0x50c   : > { %v1505_v42 = vpop.permute.xlu0 %1504 }
 0x50d   : > { %1535 = vst.msk [vmem:[#allocation3] sm:$0xff] %vm1534_vm3, %v1505_v42 }
 0x50e   : > { %v1507_v0 = vpop.permute.xlu1 %1506 }
 0x50f   : > { %1536 = vst.msk [vmem:[#allocation3 + $0x8] sm:$0xff] %vm1534_vm3, %v1507_v0 }
 0x514   : > { %v1509_v16 = vpop.permute.xlu1 %1508  ;;  %v1555_v29 = vld [vmem:[#allocation3] sm:$0xff] }
 0x515   : > { %1537 = vst.msk [vmem:[#allocation3 + $0x10] sm:$0xff] %vm1534_vm3, %v1509_v16 }
 0x516   : > { %v1556_v58 = vld [vmem:[#allocation3 + $0x8] sm:$0xff] }
 0x517   : > { %v1565_v22 = vpack.c.bf16 %v1556_v58, %v1555_v29 }
 0x518   : > { %v1511_v4 = vpop.permute.xlu1 %1510 }
 0x519   : > { %1538 = vst.msk [vmem:[#allocation3 + $0x18] sm:$0xff] %vm1534_vm3, %v1511_v4  ;;  %2177 = vmatmul.mubr.bf16.vlgmr.msra.gmra.mrb[60].mxu0 %v1565_v22 }
 0x51a   : > { %2180 = vmatprep.mubr.msk.bf16.mxu0 %vm2446_vm0, %v2445_v32 }
 0x51c   : > { %v1557_v44 = vld [vmem:[#allocation3 + $0x10] sm:$0xff] }
 0x520   : > { %v1558_v61 = vld [vmem:[#allocation3 + $0x18] sm:$0xff] }
 0x521   : > { %v1566_v63 = vpack.c.bf16 %v1558_v61, %v1557_v44 }
 0x523   : > { %2181 = vmatmul.mubr.bf16.gmra.mrb[64].mxu0 %v1566_v63 }
 0x524   : > { %2184 = vmatprep.mubr.msk.bf16.mxu0 %vm2446_vm0, %v2445_v32 }
 0x543   : > { %v1517_v12 = vpop.permute.xlu1 %1516 }
 0x544   : > { %1541 = vst.msk [vmem:[#allocation3 + $0x30] sm:$0xff] %vm1534_vm3, %v1517_v12 }
 0x545   : > { %v1519_v3 = vpop.permute.xlu0 %1518 }
 0x546   : > { %1542 = vst.msk [vmem:[#allocation3 + $0x38] sm:$0xff] %vm1534_vm3, %v1519_v3 }
 0x547   : > { %v1513_v1 = vpop.permute.xlu1 %1512 }
 0x548   : > { %1539 = vst.msk [vmem:[#allocation3 + $0x20] sm:$0xff] %vm1534_vm3, %v1513_v1 }
 0x549   : > { %v1515_v5 = vpop.permute.xlu0 %1514 }
 0x54a   : > { %1540 = vst.msk [vmem:[#allocation3 + $0x28] sm:$0xff] %vm1534_vm3, %v1515_v5 }
 0x54b   : > { %v1521_v7 = vpop.permute.xlu1 %1520  ;;  %v1561_v57 = vld [vmem:[#allocation3 + $0x30] sm:$0xff] }
 0x54c   : > { %1543 = vst.msk [vmem:[#allocation3 + $0x40] sm:$0xff] %vm1534_vm3, %v1521_v7 }
 0x54d   : > { %v1523_v51 = vpop.permute.xlu0 %1522  ;;  %v1562_v17 = vld [vmem:[#allocation3 + $0x38] sm:$0xff] }
 0x54e   : > { %1544 = vst.msk [vmem:[#allocation3 + $0x48] sm:$0xff] %vm1534_vm3, %v1523_v51  ;;  %v1568_v59 = vpack.c.bf16 %v1562_v17, %v1561_v57 }
 0x54f   : > { %v1559_v8 = vld [vmem:[#allocation3 + $0x20] sm:$0xff] }
 0x550   : > { %2189 = vmatmul.mubr.bf16.vlgmr.msra.gmra.mrb[60].mxu1 %v1568_v59 }
 0x551   : > { %v1560_v62 = vld [vmem:[#allocation3 + $0x28] sm:$0xff]  ;;  %2192 = vmatprep.mubr.msk.bf16.mxu1 %vm2446_vm0, %v2445_v32 }
 0x552   : > { %v1567_v10 = vpack.c.bf16 %v1560_v62, %v1559_v8 }
 0x553   : > { %v1563_v9 = vld [vmem:[#allocation3 + $0x40] sm:$0xff] }
 0x554   : > { %2185 = vmatmul.mubr.bf16.gmra.mrb[68].mxu0 %v1567_v10 }
 0x555   : > { %v1564_v2 = vld [vmem:[#allocation3 + $0x48] sm:$0xff] }
 0x556   : > { %v1569_v49 = vpack.c.bf16 %v1564_v2, %v1563_v9 }
 0x558   : > { %2193 = vmatmul.mubr.bf16.gmra.mrb[64].mxu1 %v1569_v49 }
 0x559   : > { %2393 = shalt.err (!%p2390_p3)
}
 0x55a   : > { %s2394_s15 = scalar_lea.hbm %s3146_s16, 2560  ;;  %s2398_s29 = scalar_lea.hbm %s3235_s7, 5120 }
 0x55b   : > { %p2395_p4 = scmp.ne.s32.totalorder %s3146_s16, %s2394_s15  ;;  %p2399_p9 = scmp.lt.u32.totalorder %s3146_s16, %s3235_s7 }
 0x55c   : > { %p2400_p10 = scmp.lt.u32.totalorder %s2398_s29, %s2394_s15  ;;  %p2402_p12 = scmp.lt.u32.totalorder %s2394_s15, %s3146_s16 }
 0x55d   : > { %p2396_p7 = pnand %p2395_p4, %p2529_p5 }
 0x55e   : > { %p2401_p11 = por %p2400_p10, %p2399_p9 }
 0x55f   : > { %p2397_p8 = pneg %p2396_p7 }
 0x560   : > { %p2403_p13 = por %p2402_p12, %p2401_p11 }
 0x562   : > { %p2404_p0 = pnand %p2403_p13, %p2397_p8 }
 0x564   : > { %2407 = shalt.err (!%p2404_p0)
}
 0x565   : > { %s2449_s14 = smov 128   ;;  %s2450_s19 = smov 8   ;;  %v1934_v11 = vld [vmem:[%s3233_s5] ss:$0 sm:$0xff] }
 0x566   : > { %2215 = dma.vmem_to_hbm [thread:$0]  (%p2529_p5), %s3148_s8, 2560, %s3146_s16, %s3152_s18, %s2449_s14, %s2449_s14, %s2450_s19  }
 0x567   : > { %s3180_s21 = scalar_lea.vmem %s3229_s1, %s2571_s20  ;;  %s3191_s16 = scalar_lea.vmem %s3234_s6, %s2571_s20 }
 0x568   : > { %v1545_v32 = vld [vmem:[%s3180_s21] sm:$0xff]  ;;  %v1546_v27 = vld [vmem:[%s3180_s21 + $0x8] sm:$0xff]  ;;  %v1547_v46 = vld [vmem:[%s3180_s21 + $0x10] sm:$0xff] }
 0x569   : > { %v1548_v24 = vld [vmem:[%s3180_s21 + $0x18] sm:$0xff]  ;;  %v1551_v36 = vld [vmem:[%s3180_s21 + $0x30] sm:$0xff]  ;;  %v1549_v45 = vld [vmem:[%s3180_s21 + $0x20] sm:$0xff] }
 0x56a   : > { %v1552_v38 = vld [vmem:[%s3180_s21 + $0x38] sm:$0xff]  ;;  %v1550_v50 = vld [vmem:[%s3180_s21 + $0x28] sm:$0xff]  ;;  %v1553_v28 = vld [vmem:[%s3180_s21 + $0x40] sm:$0xff] }
 0x56b   : > { %v1554_v29 = vld [vmem:[%s3180_s21 + $0x48] sm:$0xff] }
 0x5ec   : > { %v1668_v23 = vpop.f32.mrb[60].mxu0 }
 0x5ed   : > { %v1707_v34 = vadd.f32 %v1668_v23, %v1545_v32  ;;  %v2178_v6 = vpop.f32.mrb[61].mxu0 }
 0x5ee   : > { %v1671_v18 = vpop.f32.mrb[62].mxu0 }
 0x5ef   : > { %v1724_v33 = vadd.f32 %v1934_v11, %v1707_v34  ;;  %v1708_v15 = vadd.f32 %v1671_v18, %v1546_v27  ;;  %v2179_v37 = vpop.f32.mrb[63].mxu0 }
 0x5f1   : > { %1734 = vst [vmem:[%s3191_s16] sm:$0xff] %v1724_v33  ;;  %v1725_v21 = vadd.f32 %v1934_v11, %v1708_v15 }
 0x5f3   : > { %1735 = vst [vmem:[%s3191_s16 + $0x8] sm:$0xff] %v1725_v21 }
 0x5f6   : > { %v1676_v13 = vpop.f32.mrb[64].mxu0 }
 0x5f7   : > { %v1709_v25 = vadd.f32 %v1676_v13, %v1547_v46  ;;  %v2182_v48 = vpop.f32.mrb[65].mxu0 }
 0x5f8   : > { %v1679_v56 = vpop.f32.mrb[66].mxu0 }
 0x5f9   : > { %v1726_v26 = vadd.f32 %v1934_v11, %v1709_v25  ;;  %v1710_v30 = vadd.f32 %v1679_v56, %v1548_v24  ;;  %v2183_v31 = vpop.f32.mrb[67].mxu0 }
 0x5fb   : > { %1736 = vst [vmem:[%s3191_s16 + $0x10] sm:$0xff] %v1726_v26  ;;  %v1727_v35 = vadd.f32 %v1934_v11, %v1710_v30 }
 0x5fd   : > { %1737 = vst [vmem:[%s3191_s16 + $0x18] sm:$0xff] %v1727_v35 }
 0x623   : > { %v1692_v52 = vpop.f32.mrb[60].mxu1 }
 0x624   : > { %v1713_v39 = vadd.f32 %v1692_v52, %v1551_v36  ;;  %v2190_v40 = vpop.f32.mrb[61].mxu1 }
 0x625   : > { %v1695_v41 = vpop.f32.mrb[62].mxu1 }
 0x626   : > { %v1730_v53 = vadd.f32 %v1934_v11, %v1713_v39  ;;  %v1714_v47 = vadd.f32 %v1695_v41, %v1552_v38  ;;  %v2191_v54 = vpop.f32.mrb[63].mxu1 }
 0x627   : > { %v1684_v19 = vpop.f32.mrb[68].mxu0 }
 0x628   : > { %1740 = vst [vmem:[%s3191_s16 + $0x30] sm:$0xff] %v1730_v53  ;;  %v1731_v60 = vadd.f32 %v1934_v11, %v1714_v47  ;;  %v1711_v20 = vadd.f32 %v1684_v19, %v1549_v45  ;;  %v2186_v14 = vpop.f32.mrb[69].mxu0 }
 0x629   : > { %v1687_v55 = vpop.f32.mrb[70].mxu0 }
 0x62a   : > { %1741 = vst [vmem:[%s3191_s16 + $0x38] sm:$0xff] %v1731_v60  ;;  %v1728_v43 = vadd.f32 %v1934_v11, %v1711_v20  ;;  %v1712_v42 = vadd.f32 %v1687_v55, %v1550_v50  ;;  %v2187_v0 = vpop.f32.mrb[71].mxu0 }
 0x62b   : > { %v1700_v16 = vpop.f32.mrb[64].mxu1 }
 0x62c   : > { %1738 = vst [vmem:[%s3191_s16 + $0x20] sm:$0xff] %v1728_v43  ;;  %v1729_v58 = vadd.f32 %v1934_v11, %v1712_v42  ;;  %v1715_v22 = vadd.f32 %v1700_v16, %v1553_v28  ;;  %v2194_v4 = vpop.f32.mrb[65].mxu1 }
 0x62d   : > { %v1703_v44 = vpop.f32.mrb[66].mxu1 }
 0x62e   : > { %1739 = vst [vmem:[%s3191_s16 + $0x28] sm:$0xff] %v1729_v58  ;;  %v1732_v61 = vadd.f32 %v1934_v11, %v1715_v22  ;;  %v1716_v63 = vadd.f32 %v1703_v44, %v1554_v29  ;;  %v2195_v12 = vpop.f32.mrb[67].mxu1 }
 0x630   : > { %1742 = vst [vmem:[%s3191_s16 + $0x40] sm:$0xff] %v1732_v61  ;;  %v1733_v3 = vadd.f32 %v1934_v11, %v1716_v63 }
 0x632   : > { %1743 = vst [vmem:[%s3191_s16 + $0x48] sm:$0xff] %v1733_v3 }
 0x633 PF: > { %p2221_p5 = scmp.ge.s32.totalorder %s2442_s27, 2  ;;  %s1789_s20 = sand.u32 1, %s2430_s24  }
 0x634   : > { %s1790_s18 = scalar_lea.sflag [#allocation5], %s1789_s20 }
 0x635   : > { %p2218_p1 = pnand %p2221_p5, %p2533_p6 }
 0x637   : > { %2425 = dma.done.wait (!%p2218_p1), %s1790_s18, 2560  }
 0x638   : > { %2427 = vsyncadd (!%p2218_p1), %s1790_s18, 4294964736  ;;  %p18_p2 = scmp.ge.s32.totalorder %s2516_s30, 4   ;;  %s3238_s24 = smov %s2434_s25 }
 0x639   : > { %s3239_s25 = smov %s2438_s26  ;;  %s3240_s26 = smov %s2527_s10 }
 0x63a   : > { %s3241_s27 = smov %s2516_s30  ;;  %20 = sbr.rel (!%p18_p2) target bundleno = 3 (0x3), region = 95 }
 0x641   :  { %1795 = vsyncpa [#allocation5], 1 }
 0x642   :  { %1797 = vsyncpa [#allocation5 + $0x1], 1 }

// kernel: ce_block_forward.4
= control target key start
LH: loop header
LB: loop body
LE: loop exit
PB: predicated region body
PF: predicated region fallthrough
CT: control target
= control target key end

     0   :  { %s6356_s0 = inlined_call_operand.vmem [shape: f32[2,16,128], index: 0, kind: input, shape index: {}]   ;;  %s6357_s1 = inlined_call_operand.vmem [shape: f32[1,128], index: 1, kind: input, shape index: {}]   ;;  %s6358_s2 = inlined_call_operand.vmem [shape: f32[1,128], index: 2, kind: input, shape index: {}]   ;;  %s6359_s3 = inlined_call_operand.vmem [shape: bf16[128,192], index: 3, kind: input, shape index: {}]   ;;  %s6360_s4 = inlined_call_operand.vmem [shape: f32[1,192], index: 4, kind: input, shape index: {}]   ;;  %s6361_s5 = inlined_call_operand.vmem [shape: f32[25,16,16], index: 5, kind: input, shape index: {}]   ;;  %s6362_s6 = inlined_call_operand.vmem [shape: f32[25,64], index: 6, kind: input, shape index: {}]   ;;  %s6363_s7 = inlined_call_operand.vmem [shape: f32[1,64], index: 7, kind: input, shape index: {}]   ;;  %s6364_s8 = inlined_call_operand.vmem [shape: f32[12,16], index: 8, kind: input, shape index: {}]   ;;  %s6365_s9 = inlined_call_operand.vmem [shape: f32[12,16], index: 9, kind: input, shape index: {}]   ;;  %s6366_s10 = inlined_call_operand.vmem [shape: f32[9,12,12], index: 10, kind: input, shape index: {}]   ;;  %s6367_s11 = inlined_call_operand.vmem [shape: f32[9,64], index: 11, kind: input, shape index: {}]   ;;  %s6368_s12 = inlined_call_operand.vmem [shape: f32[1,64], index: 12, kind: input, shape index: {}]   ;;  %s6369_s13 = inlined_call_operand.vmem [shape: bf16[64,64], index: 13, kind: input, shape index: {}]   ;;  %s6370_s14 = inlined_call_operand.vmem [shape: f32[1,64], index: 14, kind: input, shape index: {}]   ;;  %s6371_s15 = inlined_call_operand.vmem [shape: f32[16,12], index: 15, kind: input, shape index: {}]   ;;  %s6372_s16 = inlined_call_operand.vmem [shape: f32[16,12], index: 16, kind: input, shape index: {}]   ;;  %s6373_s17 = inlined_call_operand.vmem [shape: bf16[128,128], index: 17, kind: input, shape index: {}]   ;;  %s6374_s18 = inlined_call_operand.vmem [shape: f32[1,128], index: 18, kind: input, shape index: {}]   ;;  %s6375_s19 = inlined_call_operand.vmem [shape: f32[2,16,128], index: 19, kind: output, shape index: {}]  }
   0x1   :  { %6377 = sst [smem:[#allocation4_spill]] %s6356_s0  ;;  %s5646_s0 = smov 0  }
   0x2   :  { %6378 = sst [smem:[#allocation5_spill]] %s6357_s1 }
   0x3   :  { %6379 = sst [smem:[#allocation6_spill]] %s6358_s2 }
   0x4   :  { %6380 = sst [smem:[#allocation7_spill]] %s6359_s3 }
   0x5 LB: > { %s4625_s30 = sadd.s32 4294967295, %s5539_s0   ;;  %p4629_p0 = scmp.ge.s32.totalorder %s5539_s0, 1  ;;  %s5539_s0 = sphi %s5646_s0, %s29_s0  }
   0x6   : > { %p537_p1 = scmp.lt.s32.totalorder %s5539_s0, 3 }
   0x8   : > { %p538_p2 = pnand %p4629_p0, %p537_p1 }
   0x9   : > { %p593_p3 = scmp.lt.s32.totalorder (!%p538_p2), %s4625_s30, 1  ;;  %s6381_s22 = sld [smem:[#allocation4_spill]] (!%p538_p2)  ;;  %v5541_v21 = vmov (!%p538_p2), 0   ;;  %v812_v44 = vld [vmem:[%s6361_s5] sm:$0xff] (!%p538_p2)  ;;  %vm814_vm0 = vcmask (!%p538_p2), 130048   ;;  %v4710_v45 = vld [vmem:[%s6361_s5 + $0xf0] sm:$0xff] (!%p538_p2)  ;;  %v666_v46 = vlaneseq (!%p538_p2) }
   0xa   : > { %541 = sbr.rel (%p538_p2) target bundleno = 1938 (0x792), region = 96  ;;  %s6382_s25 = sld [smem:[#allocation7_spill]] (!%p538_p2)  ;;  %788 = vmatprep.mubr.bf16.mxu0 (!%p538_p2), %v5541_v21  ;;  %4998 = vmatprep.mubr.msk.f32.mxu1 (!%p538_p2), %vm814_vm0, %v812_v44  ;;  %v664_v49 = vld [vmem:[%s6360_s4] sm:$0x3] (!%p538_p2)  ;;  %vm800_vm1 = vcmask (!%p538_p2), 523264   ;;  %v813_v62 = vld [vmem:[%s6361_s5 + $0x8] sm:$0xff] (!%p538_p2) }
   0xb   : > { %s6383_s24 = sld [smem:[#allocation5_spill]] (!%p538_p2)  ;;  %s6384_s27 = sld [smem:[#allocation6_spill]] (!%p538_p2)  ;;  %v5730_v47 = vshrl.u32 (!%p538_p2), %v666_v46, 7  ;;  %v4711_v63 = vld [vmem:[%s6361_s5 + $0xf8] sm:$0xff] (!%p538_p2)  ;;  %v4715_v44 = vld [vmem:[%s6361_s5 + $0x108] sm:$0xff] (!%p538_p2)  ;;  %vm3325_vm2 = vcmask (!%p538_p2), 97280  }
   0xc   : > { %s5542_s23 = smov (!%p538_p2), 64   ;;  %v4671_v21 = vld [vmem:[%s6361_s5 + $0x58] sm:$0xff] (!%p538_p2)  ;;  %v4723_v46 = vld [vmem:[%s6361_s5 + $0x128] sm:$0xff] (!%p538_p2)  ;;  %vm3332_vm3 = vcmask (!%p538_p2), 1043456   ;;  %vm5543_vm8 = vmmov (!%p538_p2), 1   ;;  %vm5545_vm10 = vmmov (!%p538_p2), 0  }
   0xd   : > { %v5733_v48 = vsub.s32 (!%p538_p2), 0, %v5730_v47  ;;  %v5739_v50 = vsub.s32 (!%p538_p2), 1, %v5730_v47  ;;  %vm6136_vm9 = vmpackc.low (!%p538_p2), %vm3332_vm3, %vm5543_vm8  ;;  %vm4448_vm11 = vcmask (!%p538_p2), 1048064  }
   0xf   : > { %v669_v51 = vrot.slane (!%p538_p2), %v664_v49, %v5733_v48  ;;  %v673_v52 = vrot.slane (!%p538_p2), %v664_v49, %v5739_v50  ;;  %v4730_v49 = vld [vmem:[%s6361_s5 + $0x140] sm:$0xff] (!%p538_p2) }
  0x10   : > { %v5481_v2 = vld [vmem:[%s6382_s25 + $0x4] ss:$8 sps:$4 sm:$0xff] (!%p538_p2)   ;;  %v5483_v3 = vld [vmem:[%s6382_s25] ss:$8 sps:$4 sm:$0xff] (!%p538_p2)   ;;  %v5484_v4 = vld [vmem:[%s6382_s25 + $0x14] ss:$8 sps:$4 sm:$0xff] (!%p538_p2)  }
  0x11   : > { %s6388_s30 = smov (!%p593_p3, %s4625_s30), 1  ;;  %756 = vmatprep.subr.bf16.mxu0 %v5481_v2  ;;  %v5486_v13 = vld [vmem:[%s6382_s25 + $0x10] ss:$8 sps:$4 sm:$0xff]   ;;  %v5487_v14 = vld [vmem:[%s6382_s25 + $0x24] ss:$8 sps:$4 sm:$0xff]  }
  0x12   : > { %s4826_s20 = sshll.u32 %s6388_s30, 4  ;;  %757 = vmatpush1.bf16.msra.mxu0 %v5483_v3  ;;  %v5489_v15 = vld [vmem:[%s6382_s25 + $0x20] ss:$8 sps:$4 sm:$0xff]   ;;  %v5490_v16 = vld [vmem:[%s6382_s25 + $0x34] ss:$8 sps:$4 sm:$0xff]  }
  0x13   : > { %s597_s2 = scalar_lea.vmem %s6381_s22, %s4826_s20  ;;  %758 = vmatprep.subr.bf16.mxu0 %v5484_v4  ;;  %v5492_v17 = vld [vmem:[%s6382_s25 + $0x30] ss:$8 sps:$4 sm:$0xff]   ;;  %v5493_v18 = vld [vmem:[%s6382_s25 + $0x44] ss:$8 sps:$4 sm:$0xff]   ;;  %v5495_v19 = vld [vmem:[%s6382_s25 + $0x40] ss:$8 sps:$4 sm:$0xff]  }
  0x14   : > { %v604_v0 = vld [vmem:[%s597_s2] sm:$0xff]  ;;  %v605_v1 = vld [vmem:[%s597_s2 + $0x8] sm:$0xff]  ;;  %v5496_v20 = vld [vmem:[%s6382_s25 + $0x54] ss:$8 sps:$4 sm:$0xff]  }
  0x15   : > { %606 = vadd.xlane.f32.xlu0 %v604_v0  ;;  %v5498_v22 = vld [vmem:[%s6382_s25 + $0x50] ss:$8 sps:$4 sm:$0xff]   ;;  %v5499_v23 = vld [vmem:[%s6382_s25 + $0x64] ss:$8 sps:$4 sm:$0xff]   ;;  %v5501_v24 = vld [vmem:[%s6382_s25 + $0x60] ss:$8 sps:$4 sm:$0xff]  }
  0x16   : > { %759 = vmatpush1.bf16.msra.mxu0 %v5486_v13  ;;  %v5502_v25 = vld [vmem:[%s6382_s25 + $0x74] ss:$8 sps:$4 sm:$0xff]   ;;  %v5504_v26 = vld [vmem:[%s6382_s25 + $0x70] ss:$8 sps:$4 sm:$0xff]   ;;  %v4634_v35 = vld [vmem:[%s6383_s24] ss:$0 sm:$0xff] }
  0x17   : > { %760 = vmatprep.subr.bf16.mxu0 %v5487_v14  ;;  %v4635_v39 = vld [vmem:[%s6384_s27] ss:$0 sm:$0xff]  ;;  %v4655_v2 = vld [vmem:[%s6361_s5 + $0x18] sm:$0xff] }
  0x18   : > { %v4719_v3 = vld [vmem:[%s6361_s5 + $0x118] sm:$0xff]  ;;  %v4658_v4 = vld [vmem:[%s6361_s5 + $0x20] sm:$0xff] }
  0x19   : > { %608 = vadd.xlane.f32.xlu0 %v605_v1 }
  0x1a   : > { %761 = vmatpush1.bf16.msra.mxu0 %v5489_v15  ;;  %v4666_v15 = vld [vmem:[%s6361_s5 + $0x40] sm:$0xff] }
  0x1b   : > { %762 = vmatprep.subr.bf16.mxu0 %v5490_v16  ;;  %v4742_v16 = vld [vmem:[%s6361_s5 + $0x170] sm:$0xff] }
  0x1e   : > { %763 = vmatpush1.bf16.msra.mxu0 %v5492_v17  ;;  %v4667_v17 = vld [vmem:[%s6361_s5 + $0x48] sm:$0xff] }
  0x1f   : > { %764 = vmatprep.subr.bf16.mxu0 %v5493_v18  ;;  %v4743_v18 = vld [vmem:[%s6361_s5 + $0x178] sm:$0xff] }
  0x22   : > { %765 = vmatpush1.bf16.msra.mxu0 %v5495_v19  ;;  %v4670_v19 = vld [vmem:[%s6361_s5 + $0x50] sm:$0xff] }
  0x23   : > { %766 = vmatprep.subr.bf16.mxu0 %v5496_v20  ;;  %v3135_v20 = vld [vmem:[%s6364_s8] sm:$0xff] }
  0x26   : > { %767 = vmatpush1.bf16.msra.mxu0 %v5498_v22  ;;  %v3136_v22 = vld [vmem:[%s6364_s8 + $0x8] sm:$0xf] }
  0x27   : > { %768 = vmatprep.subr.bf16.mxu0 %v5499_v23  ;;  %v4674_v23 = vld [vmem:[%s6361_s5 + $0x60] sm:$0xff] }
  0x2a   : > { %769 = vmatpush1.bf16.msra.mxu0 %v5501_v24  ;;  %v4675_v24 = vld [vmem:[%s6361_s5 + $0x68] sm:$0xff] }
  0x2b   : > { %770 = vmatprep.subr.bf16.mxu0 %v5502_v25  ;;  %v4678_v25 = vld [vmem:[%s6361_s5 + $0x70] sm:$0xff] }
  0x2e   : > { %771 = vmatpush1.bf16.msra.mxu0 %v5504_v26  ;;  %v4679_v26 = vld [vmem:[%s6361_s5 + $0x78] sm:$0xff] }
  0xa2   : > { %v607_v5 = vpop.xlane.xlu0 %606 }
  0xa3   : > { %v611_v6 = vmul.f32 0.0078125, %v607_v5  ;;  %v4726_v5 = vld [vmem:[%s6361_s5 + $0x130] sm:$0xff] }
  0xa5   : > { %v613_v7 = vsub.f32 %v604_v0, %v611_v6  ;;  %v4654_v0 = vld [vmem:[%s6361_s5 + $0x10] sm:$0xff]  ;;  %v4659_v6 = vld [vmem:[%s6361_s5 + $0x28] sm:$0xff] }
  0xa6   : > { %v609_v8 = vpop.xlane.xlu0 %608 }
  0xa7   : > { %v612_v9 = vmul.f32 0.0078125, %v609_v8  ;;  %v615_v10 = vmul.f32 %v613_v7, %v613_v7  ;;  %v4662_v8 = vld [vmem:[%s6361_s5 + $0x30] sm:$0xff] }
  0xa9   : > { %v614_v11 = vsub.f32 %v605_v1, %v612_v9  ;;  %617 = vadd.xlane.f32.xlu1 %v615_v10  ;;  %v4718_v1 = vld [vmem:[%s6361_s5 + $0x110] sm:$0xff]  ;;  %v4663_v10 = vld [vmem:[%s6361_s5 + $0x38] sm:$0xff] }
  0xaa   : > { %v4734_v9 = vld [vmem:[%s6361_s5 + $0x150] sm:$0xff] }
  0xab   : > { %v616_v12 = vmul.f32 %v614_v11, %v614_v11 }
  0xad   : > { %619 = vadd.xlane.f32.xlu1 %v616_v12 }
 0x136   : > { %v618_v27 = vpop.xlane.xlu1 %617 }
 0x137   : > { %v621_v28 = vmul.f32 0.0078125, %v618_v27  ;;  %v4682_v27 = vld [vmem:[%s6361_s5 + $0x80] sm:$0xff] }
 0x139   : > { %v623_v29 = vadd.f32 1e-05, %v621_v28  ;;  %v4683_v28 = vld [vmem:[%s6361_s5 + $0x88] sm:$0xff] }
 0x13a   : > { %v620_v30 = vpop.xlane.xlu1 %619 }
 0x13b   : > { %5517 = vrsqrt.f32 %v623_v29  ;;  %v622_v31 = vmul.f32 0.0078125, %v620_v30  ;;  %v4686_v29 = vld [vmem:[%s6361_s5 + $0x90] sm:$0xff]  ;;  %v4687_v30 = vld [vmem:[%s6361_s5 + $0x98] sm:$0xff] }
 0x13d   : > { %v624_v32 = vadd.f32 1e-05, %v622_v31  ;;  %v4690_v31 = vld [vmem:[%s6361_s5 + $0xa0] sm:$0xff] }
 0x13f   : > { %5519 = vrsqrt.f32 %v624_v32  ;;  %v4691_v32 = vld [vmem:[%s6361_s5 + $0xa8] sm:$0xff] }
 0x145   : > { %v5518_v33 = vpop.eup %5517 }
 0x146   : > { %v627_v34 = vmul.f32 %v5518_v33, %v613_v7  ;;  %v4727_v7 = vld [vmem:[%s6361_s5 + $0x138] sm:$0xff]  ;;  %v4694_v33 = vld [vmem:[%s6361_s5 + $0xb0] sm:$0xff] }
 0x148   : > { %v636_v38 = vmul.f32 %v4634_v35, %v627_v34  ;;  %v4695_v34 = vld [vmem:[%s6361_s5 + $0xb8] sm:$0xff] }
 0x149   : > { %v5520_v36 = vpop.eup %5519 }
 0x14a   : > { %v628_v37 = vmul.f32 %v5520_v36, %v614_v11  ;;  %v5716_v41 = vadd.f32 %v4635_v39, %v636_v38  ;;  %v4735_v11 = vld [vmem:[%s6361_s5 + $0x158] sm:$0xff]  ;;  %v4699_v36 = vld [vmem:[%s6361_s5 + $0xc8] sm:$0xff] }
 0x14b   : > { %v4703_v38 = vld [vmem:[%s6361_s5 + $0xd8] sm:$0xff] }
 0x14c   : > { %v637_v40 = vmul.f32 %v4634_v35, %v628_v37  ;;  %v4698_v35 = vld [vmem:[%s6361_s5 + $0xc0] sm:$0xff]  ;;  %v4702_v37 = vld [vmem:[%s6361_s5 + $0xd0] sm:$0xff] }
 0x14e   : > { %v5718_v42 = vadd.f32 %v4635_v39, %v637_v40  ;;  %v4706_v39 = vld [vmem:[%s6361_s5 + $0xe0] sm:$0xff]  ;;  %v4707_v40 = vld [vmem:[%s6361_s5 + $0xe8] sm:$0xff] }
 0x150   : > { %v647_v43 = vpack.c.bf16 %v5718_v42, %v5716_v41 }
 0x152   : > { %789 = vmatmul.mubr.bf16.vlgmr.msra.gmra.mrb[0].mxu0 %v647_v43  ;;  %v4714_v43 = vld [vmem:[%s6361_s5 + $0x100] sm:$0xff] }
 0x153   : > { %5103 = vmatprep.mubr.msk.f32.mxu0 %vm814_vm0, %v4710_v45  ;;  %v4722_v45 = vld [vmem:[%s6361_s5 + $0x120] sm:$0xff] }
 0x225   : > { %v790_v53 = vpop.f32.mrb[0].mxu0 }
 0x226   : > { %v791_v54 = vadd.f32 %v790_v53, %v669_v51  ;;  %v792_v55 = vpop.f32.mrb[1].mxu0  ;;  %v4739_v53 = vld [vmem:[%s6361_s5 + $0x168] sm:$0xff] }
 0x227   : > { %v793_v56 = vadd.f32 %v792_v55, %v673_v52  ;;  %v794_v57 = vpop.f32.mrb[2].mxu0  ;;  %v4747_v55 = vld [vmem:[%s6361_s5 + $0x188] sm:$0xff] }
 0x228   : > { %v795_v58 = vadd.f32 %v794_v57, %v669_v51  ;;  %v796_v59 = vpop.f32.mrb[3].mxu0  ;;  %3123 = vrot.lane.b32.xlu0 %v791_v54, %s5542_s23  ;;  %v4731_v51 = vld [vmem:[%s6361_s5 + $0x148] sm:$0xff] }
 0x229   : > { %801 = vst.msk [vmem:[#allocation2 + $0x8] sm:$0xff] %vm800_vm1, %v793_v56  ;;  %v797_v60 = vadd.f32 %v796_v59, %v673_v52  ;;  %v4738_v52 = vld [vmem:[%s6361_s5 + $0x160] sm:$0xff]  ;;  %v3219_v57 = vld [vmem:[%s6365_s9 + $0x8] sm:$0xf]  ;;  %v4759_v59 = vld [vmem:[%s6366_s10 + $0x10] sm:$0xff] }
 0x22a   : > { %3125 = vrot.lane.b32.xlu1 %v795_v58, %s5542_s23  ;;  %v5746_v61 = vpack.c.bf16 %v795_v58, %v791_v54  ;;  %v4746_v54 = vld [vmem:[%s6361_s5 + $0x180] sm:$0xff] }
 0x22b   : > { %803 = vst.msk [vmem:[#allocation2 + $0x18] sm:$0xff] %vm800_vm1, %v797_v60  ;;  %v3218_v56 = vld [vmem:[%s6365_s9] sm:$0xff] }
 0x22c   : > { %5293 = vmatprep.subr.bf16.mxu1 %v5746_v61  ;;  %5353 = vmatprep.subr.bf16.mxu0 %v5746_v61  ;;  %v3323_v58 = vld [vmem:[%s6366_s10] sm:$0xff] }
 0x22d   : > { %5295 = vmatpush3.bf16.msra.mxu1 %v5746_v61  ;;  %5355 = vmatpush3.bf16.msra.mxu0 %v5746_v61  ;;  %v6024_v60 = vld [vmem:[%s6362_s6] sm:$0xff] }
 0x22e   : > { %5297 = vmatprep.subr.bf16.mxu1 %v5746_v61  ;;  %5361 = vmatprep.subr.bf16.mxu0 %v5746_v61 }
 0x230   : > { %4999 = vmatmul.mubr.msk.f32.vlgmr.msra.gmra.mrb[0].mxu1 %vm814_vm0, %v813_v62  ;;  %5104 = vmatmul.mubr.msk.f32.vlgmr.msra.gmra.mrb[4].mxu0 %vm814_vm0, %v4711_v63  ;;  %v806_v13 = vld [vmem:[#allocation2 + $0x8] sm:$0xff]  ;;  %v899_v63 = vrot.slane %v6024_v60, %v5733_v48 }
 0x231   : > { %5299 = vmatpush3.bf16.msra.mxu1 %v5746_v61  ;;  %5363 = vmatpush3.bf16.msra.mxu0 %v5746_v61 }
 0x232   : > { %5301 = vmatprep.subr.bf16.mxu1 %v5746_v61  ;;  %5369 = vmatprep.subr.bf16.mxu0 %v5746_v61  ;;  %v807_v12 = vld [vmem:[#allocation2 + $0x18] sm:$0xff] }
 0x233   : > { %5005 = vmatprep.mubr.msk.f32.mxu1 %vm814_vm0, %v4654_v0  ;;  %5117 = vmatprep.mubr.msk.f32.mxu0 %vm814_vm0, %v4718_v1  ;;  %v5823_v14 = vpack.c.bf16 %v807_v12, %v806_v13  ;;  %v991_v1 = vrot.slane %v6024_v60, %v5739_v50 }
 0x234   : > { %5006 = vmatmul.mubr.msk.f32.vlgmr.msra.gmra.mrb[2].mxu1 %vm814_vm0, %v4655_v2  ;;  %5118 = vmatmul.mubr.msk.f32.vlgmr.msra.gmra.mrb[6].mxu0 %vm814_vm0, %v4719_v3  ;;  %v6033_v2 = vsub.s32 2, %v5730_v47 }
 0x235   : > { %5303 = vmatpush3.bf16.msra.mxu1 %v5746_v61  ;;  %5371 = vmatpush3.bf16.msra.mxu0 %v5746_v61 }
 0x236   : > { %5305 = vmatprep.subr.bf16.mxu1 %v5746_v61  ;;  %5377 = vmatprep.subr.bf16.mxu0 %v5746_v61 }
 0x237   : > { %5012 = vmatprep.mubr.msk.f32.mxu1 %vm814_vm0, %v4658_v4  ;;  %5131 = vmatprep.mubr.msk.f32.mxu0 %vm814_vm0, %v4726_v5 }
 0x238   : > { %5013 = vmatmul.mubr.msk.f32.vlgmr.msra.gmra.mrb[4].mxu1 %vm814_vm0, %v4659_v6  ;;  %5132 = vmatmul.mubr.msk.f32.vlgmr.msra.gmra.mrb[8].mxu0 %vm814_vm0, %v4727_v7 }
 0x239   : > { %5307 = vmatpush3.bf16.msra.mxu1 %v5746_v61  ;;  %5379 = vmatpush3.bf16.msra.mxu0 %v5746_v61 }
 0x23a   : > { %5309 = vmatprep.subr.bf16.mxu1 %v5746_v61  ;;  %5385 = vmatprep.subr.bf16.mxu0 %v5746_v61 }
 0x23b   : > { %5019 = vmatprep.mubr.msk.f32.mxu1 %vm814_vm0, %v4662_v8  ;;  %5145 = vmatprep.mubr.msk.f32.mxu0 %vm814_vm0, %v4734_v9  ;;  %v1083_v9 = vrot.slane %v6024_v60, %v6033_v2 }
 0x23c   : > { %5020 = vmatmul.mubr.msk.f32.vlgmr.msra.gmra.mrb[6].mxu1 %vm814_vm0, %v4663_v10  ;;  %5146 = vmatmul.mubr.msk.f32.vlgmr.msra.gmra.mrb[10].mxu0 %vm814_vm0, %v4735_v11  ;;  %v6042_v10 = vsub.s32 3, %v5730_v47 }
 0x23d   : > { %5311 = vmatpush3.bf16.msra.mxu1 %v5746_v61  ;;  %5387 = vmatpush3.bf16.msra.mxu0 %v5746_v61 }
 0x23e   : > { %5313 = vmatprep.subr.bf16.mxu1 %v5746_v61  ;;  %5393 = vmatprep.subr.bf16.mxu0 %v5823_v14 }
 0x23f   : > { %5026 = vmatprep.mubr.msk.f32.mxu1 %vm814_vm0, %v4666_v15  ;;  %5159 = vmatprep.mubr.msk.f32.mxu0 %vm814_vm0, %v4742_v16 }
 0x240   : > { %5027 = vmatmul.mubr.msk.f32.vlgmr.msra.gmra.mrb[8].mxu1 %vm814_vm0, %v4667_v17  ;;  %5160 = vmatmul.mubr.msk.f32.vlgmr.msra.gmra.mrb[12].mxu0 %vm814_vm0, %v4743_v18 }
 0x241   : > { %5315 = vmatpush3.bf16.msra.mxu1 %v5746_v61  ;;  %5395 = vmatpush3.bf16.msra.mxu0 %v5823_v14 }
 0x242   : > { %5317 = vmatprep.subr.bf16.mxu1 %v5746_v61  ;;  %5033 = vmatprep.mubr.msk.f32.mxu1 %vm814_vm0, %v4670_v19 }
 0x243   : > { %5173 = vmatprep.mubr.msk.f32.mxu0 %vm814_vm0, %v3135_v20  ;;  %v1175_v20 = vrot.slane %v6024_v60, %v6042_v10 }
 0x244   : > { %5034 = vmatmul.mubr.msk.f32.vlgmr.msra.gmra.mrb[10].mxu1 %vm814_vm0, %v4671_v21  ;;  %5174 = vmatmul.mubr.msk.f32.vlgmr.msra.gmra.mrb[14].mxu0 %vm814_vm0, %v3136_v22  ;;  %v6051_v21 = vsub.s32 4, %v5730_v47 }
 0x245   : > { %5319 = vmatpush3.bf16.msra.mxu1 %v5746_v61  ;;  %5040 = vmatprep.mubr.msk.f32.mxu1 %vm814_vm0, %v4674_v23 }
 0x246   : > { %5321 = vmatprep.subr.bf16.mxu1 %v5746_v61  ;;  %5187 = vmatprep.mubr.msk.f32.mxu0 %vm3325_vm2, %v3323_v58 }
 0x248   : > { %5041 = vmatmul.mubr.msk.f32.vlgmr.msra.gmra.mrb[12].mxu1 %vm814_vm0, %v4675_v24 }
 0x249   : > { %5323 = vmatpush3.bf16.msra.mxu1 %v5746_v61  ;;  %5047 = vmatprep.mubr.msk.f32.mxu1 %vm814_vm0, %v4678_v25 }
 0x24a   : > { %5325 = vmatprep.subr.bf16.mxu1 %v5746_v61 }
 0x24c   : > { %5048 = vmatmul.mubr.msk.f32.vlgmr.msra.gmra.mrb[14].mxu1 %vm814_vm0, %v4679_v26 }
 0x24d   : > { %5327 = vmatpush3.bf16.msra.mxu1 %v5746_v61  ;;  %5054 = vmatprep.mubr.msk.f32.mxu1 %vm814_vm0, %v4682_v27 }
 0x24e   : > { %5329 = vmatprep.subr.bf16.mxu1 %v5746_v61 }
 0x250   : > { %5055 = vmatmul.mubr.msk.f32.vlgmr.msra.gmra.mrb[16].mxu1 %vm814_vm0, %v4683_v28 }
 0x251   : > { %5331 = vmatpush3.bf16.msra.mxu1 %v5746_v61  ;;  %5061 = vmatprep.mubr.msk.f32.mxu1 %vm814_vm0, %v4686_v29 }
 0x252   : > { %5333 = vmatprep.subr.bf16.mxu1 %v5746_v61 }
 0x254   : > { %5062 = vmatmul.mubr.msk.f32.vlgmr.msra.gmra.mrb[18].mxu1 %vm814_vm0, %v4687_v30  ;;  %v1267_v30 = vrot.slane %v6024_v60, %v6051_v21 }
 0x255   : > { %5335 = vmatpush3.bf16.msra.mxu1 %v5746_v61  ;;  %5068 = vmatprep.mubr.msk.f32.mxu1 %vm814_vm0, %v4690_v31  ;;  %v6060_v31 = vsub.s32 5, %v5730_v47 }
 0x256   : > { %5337 = vmatprep.subr.bf16.mxu1 %v5746_v61 }
 0x258   : > { %5069 = vmatmul.mubr.msk.f32.vlgmr.msra.gmra.mrb[20].mxu1 %vm814_vm0, %v4691_v32 }
 0x259   : > { %5339 = vmatpush3.bf16.msra.mxu1 %v5746_v61  ;;  %5075 = vmatprep.mubr.msk.f32.mxu1 %vm814_vm0, %v4694_v33 }
 0x25a   : > { %5341 = vmatprep.subr.bf16.mxu1 %v5746_v61 }
 0x25c   : > { %5076 = vmatmul.mubr.msk.f32.vlgmr.msra.gmra.mrb[22].mxu1 %vm814_vm0, %v4695_v34 }
 0x25d   : > { %5343 = vmatpush3.bf16.msra.mxu1 %v5746_v61  ;;  %5082 = vmatprep.mubr.msk.f32.mxu1 %vm814_vm0, %v4698_v35 }
 0x25e   : > { %5345 = vmatprep.subr.bf16.mxu1 %v5746_v61 }
 0x260   : > { %5083 = vmatmul.mubr.msk.f32.vlgmr.msra.gmra.mrb[24].mxu1 %vm814_vm0, %v4699_v36 }
 0x261   : > { %5347 = vmatpush3.bf16.msra.mxu1 %v5746_v61  ;;  %5089 = vmatprep.mubr.msk.f32.mxu1 %vm814_vm0, %v4702_v37 }
 0x262   : > { %5349 = vmatprep.subr.bf16.mxu1 %v5746_v61 }
 0x264   : > { %5090 = vmatmul.mubr.msk.f32.vlgmr.msra.gmra.mrb[26].mxu1 %vm814_vm0, %v4703_v38 }
 0x265   : > { %5351 = vmatpush3.bf16.msra.mxu1 %v5746_v61  ;;  %5096 = vmatprep.mubr.msk.f32.mxu1 %vm814_vm0, %v4706_v39 }
 0x266   : > { %5357 = vmatprep.subr.bf16.mxu1 %v5746_v61 }
 0x268   : > { %5097 = vmatmul.mubr.msk.f32.vlgmr.msra.gmra.mrb[28].mxu1 %vm814_vm0, %v4707_v40  ;;  %v1359_v40 = vrot.slane %v6024_v60, %v6060_v31 }
 0x269   : > { %5359 = vmatpush3.bf16.msra.mxu1 %v5746_v61  ;;  %5110 = vmatprep.mubr.msk.f32.mxu1 %vm814_vm0, %v4714_v43  ;;  %v6069_v43 = vsub.s32 6, %v5730_v47 }
 0x26a   : > { %5365 = vmatprep.subr.bf16.mxu1 %v5746_v61 }
 0x26c   : > { %5111 = vmatmul.mubr.msk.f32.vlgmr.msra.gmra.mrb[30].mxu1 %vm814_vm0, %v4715_v44 }
 0x26d   : > { %5367 = vmatpush3.bf16.msra.mxu1 %v5746_v61  ;;  %5124 = vmatprep.mubr.msk.f32.mxu1 %vm814_vm0, %v4722_v45 }
 0x26e   : > { %5373 = vmatprep.subr.bf16.mxu1 %v5746_v61 }
 0x270   : > { %5125 = vmatmul.mubr.msk.f32.vlgmr.msra.gmra.mrb[32].mxu1 %vm814_vm0, %v4723_v46 }
 0x271   : > { %5375 = vmatpush3.bf16.msra.mxu1 %v5746_v61  ;;  %5138 = vmatprep.mubr.msk.f32.mxu1 %vm814_vm0, %v4730_v49 }
 0x272   : > { %5381 = vmatprep.subr.bf16.mxu1 %v5746_v61 }
 0x274   : > { %5139 = vmatmul.mubr.msk.f32.vlgmr.msra.gmra.mrb[34].mxu1 %vm814_vm0, %v4731_v51 }
 0x275   : > { %5383 = vmatpush3.bf16.msra.mxu1 %v5746_v61  ;;  %5152 = vmatprep.mubr.msk.f32.mxu1 %vm814_vm0, %v4738_v52 }
 0x276   : > { %5389 = vmatprep.subr.bf16.mxu1 %v5746_v61 }
 0x278   : > { %5153 = vmatmul.mubr.msk.f32.vlgmr.msra.gmra.mrb[36].mxu1 %vm814_vm0, %v4739_v53 }
 0x279   : > { %5391 = vmatpush3.bf16.msra.mxu1 %v5746_v61  ;;  %5166 = vmatprep.mubr.msk.f32.mxu1 %vm814_vm0, %v4746_v54 }
 0x27a   : > { %5397 = vmatprep.subr.bf16.mxu1 %v5823_v14 }
 0x27c   : > { %5167 = vmatmul.mubr.msk.f32.vlgmr.msra.gmra.mrb[38].mxu1 %vm814_vm0, %v4747_v55  ;;  %v1451_v55 = vrot.slane %v6024_v60, %v6069_v43 }
 0x27d   : > { %5399 = vmatpush3.bf16.msra.mxu1 %v5823_v14  ;;  %5180 = vmatprep.mubr.msk.f32.mxu1 %vm814_vm0, %v3218_v56  ;;  %v6078_v56 = vsub.s32 7, %v5730_v47 }
 0x280   : > { %5181 = vmatmul.mubr.msk.f32.vlgmr.msra.gmra.mrb[40].mxu1 %vm814_vm0, %v3219_v57 }
 0x281   : > { %5194 = vmatprep.mubr.msk.f32.mxu1 %vm3325_vm2, %v4759_v59 }
 0x303   : > { %v5000_v61 = vpop.f32.mrb[0].mxu1  ;;  %v6026_v62 = vpop.f32.mrb[4].mxu0 }
 0x304   : > { %v887_v0 = vpop.f32.mrb[1].mxu1  ;;  %v6035_v3 = vpop.f32.mrb[5].mxu0  ;;  %v901_v6 = vmul.f32 %v5000_v61, %v899_v63 }
 0x305   : > { %v900_v12 = vmul.f32 %v899_v63, %v887_v0 }
 0x307   : > { %v5007_v4 = vpop.f32.mrb[2].mxu1  ;;  %v6037_v5 = vpop.f32.mrb[6].mxu0 }
 0x308   : > { %v993_v7 = vmul.f32 %v5007_v4, %v991_v1  ;;  %v979_v8 = vpop.f32.mrb[3].mxu1  ;;  %v6044_v11 = vpop.f32.mrb[7].mxu0  ;;  %v1543_v4 = vrot.slane %v6024_v60, %v6078_v56 }
 0x309   : > { %v992_v13 = vmul.f32 %v991_v1, %v979_v8 }
 0x30a   : > { %v995_v14 = vadd.f32 %v993_v7, %v901_v6  ;;  %v809_v7 = vld [vmem:[%s6362_s6 + $0x8] sm:$0xff] }
 0x30b   : > { %v994_v15 = vadd.f32 %v992_v13, %v900_v12  ;;  %v5014_v16 = vpop.f32.mrb[4].mxu1  ;;  %v6046_v17 = vpop.f32.mrb[8].mxu0  ;;  %v1727_v60 = vrot.slane %v809_v7, %v5739_v50 }
 0x30c   : > { %v1085_v18 = vmul.f32 %v5014_v16, %v1083_v9  ;;  %v1071_v19 = vpop.f32.mrb[5].mxu1  ;;  %v6053_v22 = vpop.f32.mrb[9].mxu0 }
 0x30d   : > { %v1084_v23 = vmul.f32 %v1083_v9, %v1071_v19 }
 0x30e   : > { %v1087_v24 = vadd.f32 %v1085_v18, %v995_v14  ;;  %v1635_v14 = vrot.slane %v809_v7, %v5733_v48 }
 0x30f   : > { %v1086_v25 = vadd.f32 %v1084_v23, %v994_v15  ;;  %v5021_v26 = vpop.f32.mrb[6].mxu1  ;;  %v6055_v27 = vpop.f32.mrb[10].mxu0 }
 0x310   : > { %v1177_v28 = vmul.f32 %v5021_v26, %v1175_v20  ;;  %v1163_v29 = vpop.f32.mrb[7].mxu1  ;;  %v6062_v32 = vpop.f32.mrb[11].mxu0 }
 0x311   : > { %v1176_v33 = vmul.f32 %v1175_v20, %v1163_v29 }
 0x312   : > { %v1179_v34 = vadd.f32 %v1177_v28, %v1087_v24 }
 0x313   : > { %v1178_v35 = vadd.f32 %v1176_v33, %v1086_v25  ;;  %v5028_v36 = vpop.f32.mrb[8].mxu1  ;;  %v6064_v37 = vpop.f32.mrb[12].mxu0  ;;  %v1819_v33 = vrot.slane %v809_v7, %v6033_v2 }
 0x314   : > { %v1269_v38 = vmul.f32 %v5028_v36, %v1267_v30  ;;  %v1255_v39 = vpop.f32.mrb[9].mxu1  ;;  %v6071_v44 = vpop.f32.mrb[13].mxu0 }
 0x315   : > { %v1268_v45 = vmul.f32 %v1267_v30, %v1255_v39 }
 0x316   : > { %v1271_v46 = vadd.f32 %v1269_v38, %v1179_v34 }
 0x317   : > { %v1270_v49 = vadd.f32 %v1268_v45, %v1178_v35  ;;  %v5035_v51 = vpop.f32.mrb[10].mxu1  ;;  %v6073_v52 = vpop.f32.mrb[14].mxu0  ;;  %v1911_v45 = vrot.slane %v809_v7, %v6042_v10 }
 0x318   : > { %v1361_v53 = vmul.f32 %v5035_v51, %v1359_v40  ;;  %v1347_v54 = vpop.f32.mrb[11].mxu1  ;;  %v6080_v57 = vpop.f32.mrb[15].mxu0 }
 0x319   : > { %v1360_v58 = vmul.f32 %v1359_v40, %v1347_v54 }
 0x31a   : > { %v1363_v59 = vadd.f32 %v1361_v53, %v1271_v46 }
 0x31b   : > { %v1362_v61 = vadd.f32 %v1360_v58, %v1270_v49  ;;  %v5042_v63 = vpop.f32.mrb[12].mxu1  ;;  %v2003_v58 = vrot.slane %v809_v7, %v6051_v21 }
 0x31c   : > { %v1453_v0 = vmul.f32 %v5042_v63, %v1451_v55  ;;  %v1439_v1 = vpop.f32.mrb[13].mxu1 }
 0x31d   : > { %v1452_v6 = vmul.f32 %v1451_v55, %v1439_v1 }
 0x31e   : > { %v1455_v8 = vadd.f32 %v1453_v0, %v1363_v59 }
 0x31f   : > { %v1454_v9 = vadd.f32 %v1452_v6, %v1362_v61  ;;  %v5049_v47 = vpop.f32.mrb[14].mxu1  ;;  %v2095_v6 = vrot.slane %v809_v7, %v6060_v31 }
 0x320   : > { %v1545_v12 = vmul.f32 %v5049_v47, %v1543_v4  ;;  %v1531_v13 = vpop.f32.mrb[15].mxu1 }
 0x321   : > { %v1544_v15 = vmul.f32 %v1543_v4, %v1531_v13 }
 0x322   : > { %v1547_v16 = vadd.f32 %v1545_v12, %v1455_v8 }
 0x323   : > { %v1546_v18 = vadd.f32 %v1544_v15, %v1454_v9  ;;  %v5056_v19 = vpop.f32.mrb[16].mxu1  ;;  %v2187_v15 = vrot.slane %v809_v7, %v6069_v43 }
 0x324   : > { %v1637_v20 = vmul.f32 %v5056_v19, %v1635_v14  ;;  %v1623_v23 = vpop.f32.mrb[17].mxu1  ;;  %v810_v19 = vld [vmem:[%s6362_s6 + $0x10] sm:$0xff] }
 0x325   : > { %v1636_v24 = vmul.f32 %v1635_v14, %v1623_v23 }
 0x326   : > { %v1639_v25 = vadd.f32 %v1637_v20, %v1547_v16  ;;  %v2279_v16 = vrot.slane %v809_v7, %v6078_v56 }
 0x327   : > { %v1638_v26 = vadd.f32 %v1636_v24, %v1546_v18  ;;  %v5063_v28 = vpop.f32.mrb[18].mxu1 }
 0x328   : > { %v1729_v29 = vmul.f32 %v5063_v28, %v1727_v60  ;;  %v1715_v30 = vpop.f32.mrb[19].mxu1  ;;  %v2371_v28 = vrot.slane %v810_v19, %v5733_v48 }
 0x329   : > { %v1728_v34 = vmul.f32 %v1727_v60, %v1715_v30 }
 0x32a   : > { %v1731_v35 = vadd.f32 %v1729_v29, %v1639_v25  ;;  %v2463_v29 = vrot.slane %v810_v19, %v5739_v50 }
 0x32b   : > { %v1730_v36 = vadd.f32 %v1728_v34, %v1638_v26  ;;  %v5070_v38 = vpop.f32.mrb[20].mxu1  ;;  %v2281_v26 = vmul.f32 %v6026_v62, %v2279_v16 }
 0x32c   : > { %v1821_v39 = vmul.f32 %v5070_v38, %v1819_v33  ;;  %v1807_v40 = vpop.f32.mrb[21].mxu1 }
 0x32d   : > { %v1820_v46 = vmul.f32 %v1819_v33, %v1807_v40  ;;  %v2280_v33 = vmul.f32 %v2279_v16, %v6035_v3  ;;  %v2739_v3 = vrot.slane %v810_v19, %v6051_v21 }
 0x32e   : > { %v1823_v49 = vadd.f32 %v1821_v39, %v1731_v35 }
 0x32f   : > { %v1822_v51 = vadd.f32 %v1820_v46, %v1730_v36  ;;  %v5077_v53 = vpop.f32.mrb[22].mxu1  ;;  %v2555_v36 = vrot.slane %v810_v19, %v6033_v2  ;;  %v2647_v46 = vrot.slane %v810_v19, %v6042_v10 }
 0x330   : > { %v1913_v54 = vmul.f32 %v5077_v53, %v1911_v45  ;;  %v1899_v55 = vpop.f32.mrb[23].mxu1 }
 0x331   : > { %v1912_v59 = vmul.f32 %v1911_v45, %v1899_v55  ;;  %v2465_v45 = vmul.f32 %v6037_v5, %v2463_v29 }
 0x332   : > { %v1915_v61 = vadd.f32 %v1913_v54, %v1823_v49 }
 0x333   : > { %v1914_v63 = vadd.f32 %v1912_v59, %v1822_v51  ;;  %v5084_v0 = vpop.f32.mrb[24].mxu1  ;;  %v2464_v51 = vmul.f32 %v2463_v29, %v6044_v11  ;;  %v2923_v11 = vrot.slane %v810_v19, %v6069_v43 }
 0x334   : > { %v2005_v1 = vmul.f32 %v5084_v0, %v2003_v58  ;;  %v1991_v4 = vpop.f32.mrb[25].mxu1  ;;  %v2831_v0 = vrot.slane %v810_v19, %v6060_v31 }
 0x335   : > { %v2004_v8 = vmul.f32 %v2003_v58, %v1991_v4  ;;  %v2648_v4 = vmul.f32 %v2647_v46, %v6053_v22 }
 0x336   : > { %v2007_v9 = vadd.f32 %v2005_v1, %v1915_v61 }
 0x337   : > { %v2006_v47 = vadd.f32 %v2004_v8, %v1914_v63  ;;  %v5091_v12 = vpop.f32.mrb[26].mxu1  ;;  %v2649_v63 = vmul.f32 %v6046_v17, %v2647_v46 }
 0x338   : > { %v2097_v13 = vmul.f32 %v5091_v12, %v2095_v6  ;;  %v2083_v14 = vpop.f32.mrb[27].mxu1 }
 0x339   : > { %v2096_v18 = vmul.f32 %v2095_v6, %v2083_v14  ;;  %v2833_v14 = vmul.f32 %v6055_v27, %v2831_v0  ;;  %v4750_v27 = vld [vmem:[%s6362_s6 + $0x18] ss:$0 sm:$0xff] }
 0x33a   : > { %v2099_v20 = vadd.f32 %v2097_v13, %v2007_v9 }
 0x33b   : > { %v2098_v23 = vadd.f32 %v2096_v18, %v2006_v47  ;;  %v5098_v60 = vpop.f32.mrb[28].mxu1  ;;  %v2832_v18 = vmul.f32 %v2831_v0, %v6062_v32 }
 0x33c   : > { %v2189_v24 = vmul.f32 %v5098_v60, %v2187_v15  ;;  %v2175_v25 = vpop.f32.mrb[29].mxu1 }
 0x33d   : > { %v2188_v30 = vmul.f32 %v2187_v15, %v2175_v25  ;;  %v3015_v15 = vrot.slane %v810_v19, %v6078_v56 }
 0x33e   : > { %v2191_v7 = vadd.f32 %v2189_v24, %v2099_v20 }
 0x33f   : > { %v2190_v34 = vadd.f32 %v2188_v30, %v2098_v23  ;;  %v5112_v35 = vpop.f32.mrb[30].mxu1  ;;  %v3016_v30 = vmul.f32 %v3015_v15, %v6071_v44  ;;  %v3302_v44 = vmul.f32 %v6073_v52, %v6073_v52 }
 0x340   : > { %v2283_v38 = vadd.f32 %v2281_v26, %v2191_v7  ;;  %v2373_v39 = vmul.f32 %v5112_v35, %v2371_v28  ;;  %v2359_v40 = vpop.f32.mrb[31].mxu1  ;;  %v3017_v26 = vmul.f32 %v6064_v37, %v3015_v15  ;;  %v5511_v15 = vld [vmem:[%s6373_s17 + $0x10] sm:$0xff]  }
 0x341   : > { %v2282_v62 = vadd.f32 %v2280_v33, %v2190_v34  ;;  %v2372_v49 = vmul.f32 %v2371_v28, %v2359_v40 }
 0x342   : > { %v2375_v53 = vadd.f32 %v2373_v39, %v2283_v38  ;;  %v4751_v38 = vld [vmem:[%s6363_s7] ss:$0 sm:$0xff] }
 0x343   : > { %v2374_v54 = vadd.f32 %v2372_v49, %v2282_v62  ;;  %v5126_v55 = vpop.f32.mrb[32].mxu1 }
 0x344   : > { %v2467_v58 = vadd.f32 %v2465_v45, %v2375_v53  ;;  %v2557_v59 = vmul.f32 %v5126_v55, %v2555_v36  ;;  %v2543_v61 = vpop.f32.mrb[33].mxu1  ;;  %v3301_v45 = vmul.f32 %v6080_v57, %v6080_v57  ;;  %v3126_v53 = vpop.permute.xlu1 %3125 }
 0x345   : > { %v2466_v1 = vadd.f32 %v2464_v51, %v2374_v54  ;;  %v2556_v5 = vmul.f32 %v2555_v36, %v2543_v61 }
 0x346   : > { %v2559_v6 = vadd.f32 %v2557_v59, %v2467_v58 }
 0x347   : > { %v2558_v8 = vadd.f32 %v2556_v5, %v2466_v1  ;;  %v5140_v9 = vpop.f32.mrb[34].mxu1 }
 0x348   : > { %v2651_v47 = vadd.f32 %v2649_v63, %v2559_v6  ;;  %v2741_v12 = vmul.f32 %v5140_v9, %v2739_v3  ;;  %v2727_v13 = vpop.f32.mrb[35].mxu1 }
 0x349   : > { %v2650_v16 = vadd.f32 %v2648_v4, %v2558_v8  ;;  %v2740_v17 = vmul.f32 %v2739_v3, %v2727_v13  ;;  %v3124_v3 = vpop.permute.xlu0 %3123 }
 0x34a   : > { %v2743_v20 = vadd.f32 %v2741_v12, %v2651_v47 }
 0x34b   : > { %v2742_v23 = vadd.f32 %v2740_v17, %v2650_v16  ;;  %v5154_v60 = vpop.f32.mrb[36].mxu1  ;;  %v3324_v17 = vld [vmem:[%s6366_s10 + $0x8] sm:$0xf] }
 0x34c   : > { %v2835_v22 = vadd.f32 %v2833_v14, %v2743_v20  ;;  %v2925_v24 = vmul.f32 %v5154_v60, %v2923_v11  ;;  %v2911_v25 = vpop.f32.mrb[37].mxu1  ;;  %v4764_v20 = vld [vmem:[%s6366_s10 + $0x20] sm:$0xff]  ;;  %v4765_v60 = vld [vmem:[%s6366_s10 + $0x28] sm:$0xf] }
 0x34d   : > { %v2834_v28 = vadd.f32 %v2832_v18, %v2742_v23  ;;  %v2924_v29 = vmul.f32 %v2923_v11, %v2911_v25  ;;  %v4760_v18 = vld [vmem:[%s6366_s10 + $0x18] sm:$0xf]  ;;  %v4769_v23 = vld [vmem:[%s6366_s10 + $0x30] sm:$0xff] }
 0x34e   : > { %v2927_v19 = vadd.f32 %v2925_v24, %v2835_v22  ;;  %v4770_v22 = vld [vmem:[%s6366_s10 + $0x38] sm:$0xf]  ;;  %v4774_v24 = vld [vmem:[%s6366_s10 + $0x40] sm:$0xff]  ;;  %v4779_v25 = vld [vmem:[%s6366_s10 + $0x50] sm:$0xff] }
 0x34f   : > { %v2926_v33 = vadd.f32 %v2924_v29, %v2834_v28  ;;  %v5168_v7 = vpop.f32.mrb[38].mxu1  ;;  %v4780_v28 = vld [vmem:[%s6366_s10 + $0x58] sm:$0xf]  ;;  %v4784_v29 = vld [vmem:[%s6366_s10 + $0x60] sm:$0xff] }
 0x350   : > { %v3019_v32 = vadd.f32 %v3017_v26, %v2927_v19  ;;  %v3109_v34 = vmul.f32 %v5168_v7, %v4750_v27  ;;  %v3095_v35 = vpop.f32.mrb[39].mxu1  ;;  %v4775_v26 = vld [vmem:[%s6366_s10 + $0x48] sm:$0xf]  ;;  %v4790_v19 = vld [vmem:[%s6366_s10 + $0x78] sm:$0xf] }
 0x351   : > { %v3018_v36 = vadd.f32 %v3016_v30, %v2926_v33  ;;  %v3108_v37 = vmul.f32 %v4750_v27, %v3095_v35  ;;  %v4789_v30 = vld [vmem:[%s6366_s10 + $0x70] sm:$0xff]  ;;  %v4785_v27 = vld [vmem:[%s6366_s10 + $0x68] sm:$0xf]  ;;  %v4794_v33 = vld [vmem:[%s6366_s10 + $0x80] sm:$0xff] }
 0x352   : > { %v3111_v39 = vadd.f32 %v3109_v34, %v3019_v32  ;;  %v4795_v7 = vld [vmem:[%s6366_s10 + $0x88] sm:$0xf]  ;;  %v5505_v32 = vld [vmem:[%s6369_s13] sm:$0xff]   ;;  %v5544_v34 = vmov 0.0  }
 0x353   : > { %v3110_v40 = vadd.f32 %v3108_v37, %v3018_v36  ;;  %v6126_v46 = vpop.f32.mrb[40].mxu1  ;;  %v5506_v35 = vld [vmem:[%s6369_s13 + $0x8] sm:$0xff]   ;;  %v5507_v36 = vld [vmem:[%s6369_s13 + $0x10] sm:$0xff]   ;;  %v3321_v37 = vld [vmem:[%s6367_s11] sm:$0xff] }
 0x354   : > { %v3120_v62 = vadd.f32 %v4751_v38, %v3111_v39  ;;  %v3304_v49 = vmul.f32 %v6126_v46, %v6126_v46  ;;  %v6130_v51 = vpop.f32.mrb[41].mxu1  ;;  %v3414_v39 = vrot.slane %v3321_v37, %v5733_v48 }
 0x355   : > { %v3119_v54 = vadd.f32 %v4751_v38, %v3110_v40  ;;  %v3303_v55 = vmul.f32 %v6130_v51, %v6130_v51  ;;  %v5508_v38 = vld [vmem:[%s6369_s13 + $0x18] sm:$0xff]  }
 0x356   : > { %v3306_v58 = vadd.f32 %v3304_v49, %v3302_v44  ;;  %v3130_v59 = vmul.f32 %v3126_v53, %v3120_v62  ;;  %v3506_v44 = vrot.slane %v3321_v37, %v5739_v50 }
 0x357   : > { %v3305_v61 = vadd.f32 %v3303_v55, %v3301_v45  ;;  %v3129_v63 = vmul.f32 %v3124_v3, %v3119_v54  ;;  %v3598_v55 = vrot.slane %v3321_v37, %v6033_v2  ;;  %v3690_v3 = vrot.slane %v3321_v37, %v6042_v10 }
 0x358   : > { %5521 = vrsqrt.f32 %v3306_v58  ;;  %v3132_v1 = vmax.f32 %v3130_v59, 0.0  ;;  %vm3316_vm4 = vcmp.eq.f32.partialorder %v3306_v58, inf  ;;  %v3319_v8 = vand.u32 2147483648, %v3306_v58 }
 0x359   : > { %5523 = vrsqrt.f32 %v3305_v61  ;;  %v3131_v0 = vmax.f32 %v3129_v63, 0.0  ;;  %vm3318_vm5 = vcmp.eq.f32.partialorder %v3306_v58, 0.0  ;;  %vm3309_vm6 = vcmp.eq.f32.partialorder %v3305_v61, inf }
 0x35a   : > { %3134 = vst.msk [vmem:[#allocation3 + $0x8] sm:$0xff] %vm800_vm1, %v3132_v1  ;;  %v3312_v47 = vand.u32 2147483648, %v3305_v61  ;;  %vm3311_vm7 = vcmp.eq.f32.partialorder %v3305_v61, 0.0 }
 0x35b   : > { %3133 = vst.msk [vmem:[#allocation3] sm:$0xff] %vm800_vm1, %v3131_v0 }
 0x362   : > { %v5522_v5 = vpop.eup %5521 }
 0x363   : > { %v5524_v4 = vpop.eup %5523  ;;  %v3315_v6 = vmul.f32 %v5522_v5, %v3306_v58 }
 0x364   : > { %v3308_v9 = vmul.f32 %v5524_v4, %v3305_v61 }
 0x365   : > { %v3317_v11 = vsel %vm3316_vm4, %v3306_v58, %v3315_v6  ;;  %v3782_v6 = vrot.slane %v3321_v37, %v6051_v21 }
 0x366   : > { %v3320_v12 = vsel %vm3318_vm5, %v3319_v8, %v3317_v11  ;;  %v3310_v13 = vsel %vm3309_vm6, %v3305_v61, %v3308_v9  ;;  %v3874_v8 = vrot.slane %v3321_v37, %v6060_v31 }
 0x367   : > { %v3313_v14 = vsel %vm3311_vm7, %v3312_v47, %v3310_v13  ;;  %v3966_v13 = vrot.slane %v3321_v37, %v6069_v43 }
 0x368   : > { %v5400_v16 = vpack.c.bf16 %v3320_v12, %v3313_v14 }
 0x36a   : > { %5402 = vmatprep.subr.msk.bf16.mxu0 %vm6136_vm9, %v5400_v16  ;;  %5408 = vmatprep.subr.msk.bf16.mxu1 %vm6136_vm9, %v5400_v16 }
 0x36b   : > { %5405 = vmatpush3.bf16.msk.msra.mxu0 %vm6136_vm9, %v5400_v16  ;;  %5411 = vmatpush3.bf16.msk.msra.mxu1 %vm6136_vm9, %v5400_v16 }
 0x36c   : > { %5414 = vmatprep.subr.msk.bf16.mxu0 %vm6136_vm9, %v5400_v16  ;;  %5420 = vmatprep.subr.msk.bf16.mxu1 %vm6136_vm9, %v5400_v16 }
 0x36e   : > { %5188 = vmatmul.mubr.msk.f32.vlgmr.msra.gmra.mrb[16].mxu0 %vm3325_vm2, %v3324_v17  ;;  %5195 = vmatmul.mubr.msk.f32.vlgmr.msra.gmra.mrb[42].mxu1 %vm3325_vm2, %v4760_v18 }
 0x36f   : > { %5417 = vmatpush3.bf16.msk.msra.mxu0 %vm6136_vm9, %v5400_v16  ;;  %5423 = vmatpush3.bf16.msk.msra.mxu1 %vm6136_vm9, %v5400_v16 }
 0x370   : > { %5426 = vmatprep.subr.msk.bf16.mxu0 %vm6136_vm9, %v5400_v16  ;;  %5432 = vmatprep.subr.msk.bf16.mxu1 %vm6136_vm9, %v5400_v16 }
 0x371   : > { %5201 = vmatprep.mubr.msk.f32.mxu0 %vm3325_vm2, %v4764_v20  ;;  %5208 = vmatprep.mubr.msk.f32.mxu1 %vm3325_vm2, %v4769_v23  ;;  %v4058_v23 = vrot.slane %v3321_v37, %v6078_v56 }
 0x372   : > { %5202 = vmatmul.mubr.msk.f32.vlgmr.msra.gmra.mrb[18].mxu0 %vm3325_vm2, %v4765_v60  ;;  %5209 = vmatmul.mubr.msk.f32.vlgmr.msra.gmra.mrb[44].mxu1 %vm3325_vm2, %v4770_v22 }
 0x373   : > { %5429 = vmatpush3.bf16.msk.msra.mxu0 %vm6136_vm9, %v5400_v16  ;;  %5435 = vmatpush3.bf16.msk.msra.mxu1 %vm6136_vm9, %v5400_v16 }
 0x374   : > { %5438 = vmatprep.subr.msk.bf16.mxu0 %vm6136_vm9, %v5400_v16  ;;  %5444 = vmatprep.subr.msk.bf16.mxu1 %vm6136_vm9, %v5400_v16 }
 0x375   : > { %5215 = vmatprep.mubr.msk.f32.mxu0 %vm3325_vm2, %v4774_v24  ;;  %5222 = vmatprep.mubr.msk.f32.mxu1 %vm3325_vm2, %v4779_v25 }
 0x376   : > { %5216 = vmatmul.mubr.msk.f32.vlgmr.msra.gmra.mrb[20].mxu0 %vm3325_vm2, %v4775_v26  ;;  %5223 = vmatmul.mubr.msk.f32.vlgmr.msra.gmra.mrb[46].mxu1 %vm3325_vm2, %v4780_v28 }
 0x377   : > { %5441 = vmatpush3.bf16.msk.msra.mxu0 %vm6136_vm9, %v5400_v16  ;;  %5447 = vmatpush3.bf16.msk.msra.mxu1 %vm6136_vm9, %v5400_v16 }
 0x378   : > { %5450 = vmatprep.subr.msk.bf16.mxu0 %vm6136_vm9, %v5400_v16  ;;  %5229 = vmatprep.mubr.msk.f32.mxu0 %vm3325_vm2, %v4784_v29 }
 0x379   : > { %5236 = vmatprep.mubr.msk.f32.mxu1 %vm3325_vm2, %v4789_v30  ;;  %5246 = vmatprep.subr.bf16.mxu1 %v5544_v34 }
 0x37a   : > { %5230 = vmatmul.mubr.msk.f32.vlgmr.msra.gmra.mrb[22].mxu0 %vm3325_vm2, %v4785_v27  ;;  %5237 = vmatmul.mubr.msk.f32.vlgmr.msra.gmra.mrb[48].mxu1 %vm3325_vm2, %v4790_v19 }
 0x37b   : > { %5453 = vmatpush3.bf16.msk.msra.mxu0 %vm6136_vm9, %v5400_v16  ;;  %5243 = vmatprep.mubr.msk.f32.mxu0 %vm3325_vm2, %v4794_v33 }
 0x37c   : > { %5247 = vmatpush3.bf16.msra.mxu1 %v5505_v32  ;;  %5254 = vmatprep.mubr.msk.bf16.mxu1 %vm5545_vm10, %v5544_v34  ;;  %v4799_v32 = vld [vmem:[%s6367_s11 + $0x8] ss:$0 sm:$0xff] }
 0x37d   : > { %5248 = vmatprep.subr.bf16.mxu1 %v5544_v34 }
 0x37e   : > { %5244 = vmatmul.mubr.msk.f32.vlgmr.msra.gmra.mrb[24].mxu0 %vm3325_vm2, %v4795_v7 }
 0x380   : > { %5249 = vmatpush3.bf16.msra.mxu1 %v5506_v35 }
 0x381   : > { %5250 = vmatprep.subr.bf16.mxu1 %v5544_v34 }
 0x384   : > { %5251 = vmatpush3.bf16.msra.mxu1 %v5507_v36 }
 0x385   : > { %5252 = vmatprep.subr.bf16.mxu1 %v5544_v34 }
 0x388   : > { %5253 = vmatpush3.bf16.msra.mxu1 %v5508_v38 }
 0x441   : > { %v5189_v40 = vpop.f32.mrb[16].mxu0  ;;  %v5196_v45 = vpop.f32.mrb[42].mxu1 }
 0x442   : > { %v3416_v62 = vmul.f32 %v5189_v40, %v3414_v39  ;;  %v3508_v49 = vmul.f32 %v5196_v45, %v3506_v44  ;;  %v3402_v53 = vpop.f32.mrb[17].mxu0  ;;  %v3494_v54 = vpop.f32.mrb[43].mxu1  ;;  %v4800_v40 = vld [vmem:[%s6368_s12] ss:$0 sm:$0xff] }
 0x443   : > { %v3415_v58 = vmul.f32 %v3414_v39, %v3402_v53  ;;  %v3507_v59 = vmul.f32 %v3506_v44, %v3494_v54 }
 0x444   : > { %v3510_v61 = vadd.f32 %v3508_v49, %v3416_v62 }
 0x445   : > { %v3509_v63 = vadd.f32 %v3507_v59, %v3415_v58  ;;  %v5203_v0 = vpop.f32.mrb[18].mxu0  ;;  %v5210_v1 = vpop.f32.mrb[44].mxu1  ;;  %v4266_v59 = vld [vmem:[%s6372_s16] sm:$0xff] }
 0x446   : > { %v3600_v5 = vmul.f32 %v5203_v0, %v3598_v55  ;;  %v3586_v48 = vpop.f32.mrb[19].mxu0  ;;  %v3692_v4 = vmul.f32 %v5210_v1, %v3690_v3  ;;  %v3678_v50 = vpop.f32.mrb[45].mxu1  ;;  %5262 = vmatprep.mubr.msk.f32.mxu0 %vm3325_vm2, %v4266_v59 }
 0x447   : > { %v3599_v9 = vmul.f32 %v3598_v55, %v3586_v48  ;;  %v3691_v11 = vmul.f32 %v3690_v3, %v3678_v50 }
 0x448   : > { %v3602_v47 = vadd.f32 %v3600_v5, %v3510_v61  ;;  %v4801_v61 = vld [vmem:[%s6370_s14] ss:$0 sm:$0xff] }
 0x449   : > { %v3601_v2 = vadd.f32 %v3599_v9, %v3509_v63  ;;  %v5217_v12 = vpop.f32.mrb[20].mxu0  ;;  %v5224_v10 = vpop.f32.mrb[46].mxu1 }
 0x44a   : > { %v3694_v14 = vadd.f32 %v3692_v4, %v3602_v47  ;;  %v3784_v16 = vmul.f32 %v5217_v12, %v3782_v6  ;;  %v3770_v17 = vpop.f32.mrb[21].mxu0  ;;  %v3876_v18 = vmul.f32 %v5224_v10, %v3874_v8  ;;  %v3862_v20 = vpop.f32.mrb[47].mxu1 }
 0x44b   : > { %v3693_v60 = vadd.f32 %v3691_v11, %v3601_v2  ;;  %v3783_v22 = vmul.f32 %v3782_v6, %v3770_v17  ;;  %v3875_v21 = vmul.f32 %v3874_v8, %v3862_v20  ;;  %v4267_v20 = vld [vmem:[%s6372_s16 + $0x8] sm:$0xff] }
 0x44c   : > { %v3786_v24 = vadd.f32 %v3784_v16, %v3694_v14 }
 0x44d   : > { %v3785_v31 = vadd.f32 %v3783_v22, %v3693_v60  ;;  %v5231_v25 = vpop.f32.mrb[22].mxu0  ;;  %v5238_v26 = vpop.f32.mrb[48].mxu1  ;;  %v5513_v60 = vld [vmem:[%s6373_s17 + $0x20] sm:$0xff]   ;;  %v5514_v22 = vld [vmem:[%s6373_s17 + $0x28] sm:$0xff]  }
 0x44e   : > { %v3878_v28 = vadd.f32 %v3876_v18, %v3786_v24  ;;  %v3968_v29 = vmul.f32 %v5231_v25, %v3966_v13  ;;  %v3954_v30 = vpop.f32.mrb[23].mxu0  ;;  %v4060_v27 = vmul.f32 %v5238_v26, %v4058_v23  ;;  %v4046_v19 = vpop.f32.mrb[49].mxu1  ;;  %v5516_v24 = vld [vmem:[%s6373_s17 + $0x38] sm:$0xff]  }
 0x44f   : > { %v3877_v43 = vadd.f32 %v3875_v21, %v3785_v31  ;;  %v3967_v33 = vmul.f32 %v3966_v13, %v3954_v30  ;;  %v4059_v7 = vmul.f32 %v4058_v23, %v4046_v19  ;;  %v5512_v23 = vld [vmem:[%s6373_s17 + $0x18] sm:$0xff]   ;;  %v5515_v21 = vld [vmem:[%s6373_s17 + $0x30] sm:$0xff]  }
 0x450   : > { %v3970_v56 = vadd.f32 %v3968_v29, %v3878_v28 }
 0x451   : > { %v3969_v35 = vadd.f32 %v3967_v33, %v3877_v43  ;;  %v5245_v36 = vpop.f32.mrb[24].mxu0 }
 0x452   : > { %v4062_v38 = vadd.f32 %v4060_v27, %v3970_v56  ;;  %v4152_v37 = vmul.f32 %v5245_v36, %v4799_v32  ;;  %v4138_v39 = vpop.f32.mrb[25].mxu0 }
 0x453   : > { %v4061_v44 = vadd.f32 %v4059_v7, %v3969_v35  ;;  %v4151_v45 = vmul.f32 %v4799_v32, %v4138_v39 }
 0x454   : > { %v4154_v62 = vadd.f32 %v4152_v37, %v4062_v38 }
 0x455   : > { %v4153_v49 = vadd.f32 %v4151_v45, %v4061_v44 }
 0x456   : > { %v4163_v53 = vadd.f32 %v4800_v40, %v4154_v62 }
 0x457   : > { %v4162_v54 = vadd.f32 %v4800_v40, %v4153_v49 }
 0x458   : > { %v4165_v55 = vmax.f32 %v4163_v53, 0.0 }
 0x459   : > { %v4164_v3 = vmax.f32 %v4162_v54, 0.0 }
 0x45b   : > { %v4166_v58 = vpack.c.bf16 %v4165_v55, %v4164_v3 }
 0x45d   : > { %5255 = vmatmul.mubr.msk.bf16.vlgmr.msra.gmra.mrb[52].mxu1 %vm800_vm1, %v4166_v58 }
 0x530   : > { %v4243_v63 = vpop.f32.mrb[52].mxu1 }
 0x531   : > { %v4244_v0 = vadd.f32 %v4801_v61, %v4243_v63  ;;  %v5256_v1 = vpop.f32.mrb[53].mxu1 }
 0x532   : > { %v4246_v5 = vpop.f32.mrb[54].mxu1 }
 0x533   : > { %v4807_v48 = vmul.f32 -1.442695, %v4244_v0  ;;  %v4247_v4 = vadd.f32 %v4801_v61, %v4246_v5  ;;  %v5257_v50 = vpop.f32.mrb[55].mxu1 }
 0x535   : > { %5525 = vpow2.f32 %v4807_v48  ;;  %v4808_v6 = vmul.f32 -1.442695, %v4247_v4 }
 0x537   : > { %5527 = vpow2.f32 %v4808_v6 }
 0x53f   : > { %v5526_v8 = vpop.eup %5525 }
 0x540   : > { %v4256_v9 = vadd.f32 1.0, %v5526_v8 }
 0x541   : > { %v5528_v11 = vpop.eup %5527 }
 0x542   : > { %5529 = vrcp.f32 %v4256_v9  ;;  %v4257_v47 = vadd.f32 1.0, %v5528_v11 }
 0x544   : > { %5531 = vrcp.f32 %v4257_v47 }
 0x54c   : > { %v5530_v2 = vpop.eup %5529 }
 0x54d   : > { %v4268_v12 = vmul.f32 %v5530_v2, %v6130_v51  ;;  %v4264_v10 = vmul.f32 %v5530_v2, %v6080_v57  ;;  %v4262_v57 = vld [vmem:[%s6371_s15] sm:$0xff]  ;;  %v5510_v51 = vld [vmem:[%s6373_s17 + $0x8] sm:$0xff]  }
 0x54e   : > { %v5532_v13 = vpop.eup %5531 }
 0x54f   : > { %v4269_v14 = vmul.f32 %v5532_v13, %v6126_v46  ;;  %v4265_v16 = vmul.f32 %v5532_v13, %v6073_v52  ;;  %v4263_v52 = vld [vmem:[%s6371_s15 + $0x8] sm:$0xff]  ;;  %v5509_v46 = vld [vmem:[%s6373_s17] sm:$0xff]  }
 0x551   : > { %v5454_v17 = vpack.c.bf16 %v4269_v14, %v4268_v12  ;;  %v5460_v18 = vpack.c.bf16 %v4265_v16, %v4264_v10 }
 0x553   : > { %5456 = vmatprep.subr.msk.bf16.mxu0 %vm6136_vm9, %v5454_v17 }
 0x554   : > { %5459 = vmatpush3.bf16.msk.msra.mxu0 %vm6136_vm9, %v5454_v17 }
 0x555   : > { %5462 = vmatprep.subr.msk.bf16.mxu0 %vm6136_vm9, %v5460_v18 }
 0x557   : > { %5263 = vmatmul.mubr.msk.f32.vlgmr.msra.gmra.mrb[26].mxu0 %vm3325_vm2, %v4267_v20 }
 0x558   : > { %5465 = vmatpush3.bf16.msk.msra.mxu0 %vm6136_vm9, %v5460_v18  ;;  %5269 = vmatprep.mubr.msk.f32.mxu0 %vm3325_vm2, %v4262_v57 }
 0x559   : > { %5272 = vmatprep.subr.bf16.mxu0 %v5544_v34 }
 0x55f   : > { %5270 = vmatmul.mubr.msk.f32.vlgmr.msra.gmra.mrb[26].mxu0 %vm3325_vm2, %v4263_v52 }
 0x560   : > { %5288 = vmatprep.mubr.msk.bf16.mxu0 %vm5545_vm10, %v5544_v34  ;;  %5273 = vmatpush3.bf16.msra.mxu0 %v5509_v46 }
 0x561   : > { %5274 = vmatprep.subr.bf16.mxu0 %v5544_v34 }
 0x564   : > { %5275 = vmatpush3.bf16.msra.mxu0 %v5510_v51 }
 0x565   : > { %5276 = vmatprep.subr.bf16.mxu0 %v5544_v34 }
 0x568   : > { %5277 = vmatpush3.bf16.msra.mxu0 %v5511_v15 }
 0x569   : > { %5278 = vmatprep.subr.bf16.mxu0 %v5544_v34 }
 0x56c   : > { %5279 = vmatpush3.bf16.msra.mxu0 %v5512_v23 }
 0x56d   : > { %5280 = vmatprep.subr.bf16.mxu0 %v5544_v34 }
 0x570   : > { %5281 = vmatpush3.bf16.msra.mxu0 %v5513_v60 }
 0x571   : > { %5282 = vmatprep.subr.bf16.mxu0 %v5544_v34 }
 0x574   : > { %5283 = vmatpush3.bf16.msra.mxu0 %v5514_v22 }
 0x575   : > { %5284 = vmatprep.subr.bf16.mxu0 %v5544_v34 }
 0x578   : > { %5285 = vmatpush3.bf16.msra.mxu0 %v5515_v21 }
 0x579   : > { %5286 = vmatprep.subr.bf16.mxu0 %v5544_v34  ;;  %v4815_v34 = vld [vmem:[%s6374_s18] ss:$0 sm:$0xff] }
 0x57c   : > { %5287 = vmatpush3.bf16.msra.mxu0 %v5516_v24 }
 0x632   : > { %v5271_v31 = vpop.f32.mrb[26].mxu0 }
 0x633   : > { %v4429_v25 = vpop.f32.mrb[27].mxu0  ;;  %v4439_v28 = vmax.f32 %v5271_v31, 0.0 }
 0x634   : > { %v4438_v26 = vmax.f32 %v4429_v25, 0.0 }
 0x636   : > { %4442 = vrot.lane.b32.xlu1 %v4438_v26, %s5542_s23 }
 0x63a   : > { %4444 = vrot.lane.b32.xlu1 %v4439_v28, %s5542_s23  ;;  %s602_s23 = scalar_lea.vmem %s6375_s19, %s4826_s20 }
 0x6a8   : > { %v4443_v29 = vpop.permute.xlu1 %4442 }
 0x6a9   : > { %4449 = vst.msk [vmem:[#allocation3] sm:$0xff] %vm4448_vm11, %v4443_v29 }
 0x6ac   : > { %v4445_v30 = vpop.permute.xlu1 %4444 }
 0x6ad   : > { %4450 = vst.msk [vmem:[#allocation3 + $0x8] sm:$0xff] %vm4448_vm11, %v4445_v30 }
 0x6b0   : > { %v4451_v27 = vld [vmem:[#allocation3] sm:$0xff] }
 0x6b4   : > { %v4452_v19 = vld [vmem:[#allocation3 + $0x8] sm:$0xff] }
 0x6b5   : > { %v4453_v43 = vpack.c.bf16 %v4452_v19, %v4451_v27 }
 0x6b7   : > { %5289 = vmatmul.mubr.bf16.vlgmr.msra.gmra.mrb[28].mxu0 %v4453_v43 }
 0x78a   : > { %v4559_v33 = vpop.f32.mrb[28].mxu0 }
 0x78b   : > { %v4560_v7 = vadd.f32 %v4815_v34, %v4559_v33  ;;  %v5290_v32 = vpop.f32.mrb[29].mxu0 }
 0x78c   : > { %v4562_v56 = vpop.f32.mrb[30].mxu0 }
 0x78d   : > { %v4566_v35 = vadd.f32 %v4560_v7, %v5716_v41  ;;  %v4563_v36 = vadd.f32 %v4815_v34, %v4562_v56  ;;  %v5291_v38 = vpop.f32.mrb[31].mxu0 }
 0x78f   : > { %4568 = vst [vmem:[%s602_s23] sm:$0xff] %v4566_v35  ;;  %v4567_v37 = vadd.f32 %v4563_v36, %v5718_v42 }
 0x791   : > { %4569 = vst [vmem:[%s602_s23 + $0x8] sm:$0xff] %v4567_v37 }
 0x792 PF: > { %s29_s0 = sadd.s32 1, %s5539_s0  }
 0x793   : > { %p26_p4 = scmp.ge.s32.totalorder %s29_s0, 4  }
 0x795   :  { %28 = sbr.rel (!%p26_p4) target bundleno = 5 (0x5), region = 158 }

// kernel: ce_block_forward.5
= control target key start
LH: loop header
LB: loop body
LE: loop exit
PB: predicated region body
PF: predicated region fallthrough
CT: control target
= control target key end

     0   :  { %s12862_s0 = inlined_call_operand.vmem [shape: f32[2,64,128], index: 0, kind: input, shape index: {}]   ;;  %s12863_s1 = inlined_call_operand.vmem [shape: f32[1,128], index: 1, kind: input, shape index: {}]   ;;  %s12864_s2 = inlined_call_operand.vmem [shape: f32[1,128], index: 2, kind: input, shape index: {}]   ;;  %s12865_s3 = inlined_call_operand.vmem [shape: bf16[128,192], index: 3, kind: input, shape index: {}]   ;;  %s12866_s4 = inlined_call_operand.vmem [shape: f32[1,192], index: 4, kind: input, shape index: {}]   ;;  %s12867_s5 = inlined_call_operand.vmem [shape: f32[25,64,64], index: 5, kind: input, shape index: {}]   ;;  %s12868_s6 = inlined_call_operand.vmem [shape: f32[25,64], index: 6, kind: input, shape index: {}]   ;;  %s12869_s7 = inlined_call_operand.hbm [shape: f32[1,64], index: 7, kind: input, shape index: {}]   ;;  %s12870_s8 = inlined_call_operand.vmem [shape: f32[40,64], index: 8, kind: input, shape index: {}]   ;;  %s12871_s9 = inlined_call_operand.hbm [shape: f32[40,64], index: 9, kind: input, shape index: {}]   ;;  %s12872_s10 = inlined_call_operand.vmem [shape: f32[9,40,40], index: 10, kind: input, shape index: {}]   ;;  %s12873_s11 = inlined_call_operand.vmem [shape: f32[9,64], index: 11, kind: input, shape index: {}]   ;;  %s12874_s12 = inlined_call_operand.hbm [shape: f32[1,64], index: 12, kind: input, shape index: {}]   ;;  %s12875_s13 = inlined_call_operand.vmem [shape: bf16[64,64], index: 13, kind: input, shape index: {}]   ;;  %s12876_s14 = inlined_call_operand.hbm [shape: f32[1,64], index: 14, kind: input, shape index: {}]   ;;  %s12877_s15 = inlined_call_operand.hbm [shape: f32[64,40], index: 15, kind: input, shape index: {}]   ;;  %s12878_s16 = inlined_call_operand.hbm [shape: f32[64,40], index: 16, kind: input, shape index: {}]   ;;  %s12879_s17 = inlined_call_operand.vmem [shape: bf16[128,128], index: 17, kind: input, shape index: {}]   ;;  %s12880_s18 = inlined_call_operand.vmem [shape: f32[1,128], index: 18, kind: input, shape index: {}]   ;;  %s12881_s19 = inlined_call_operand.hbm [shape: f32[2,64,128], index: 19, kind: output, shape index: {}]  }
   0x1   :  { %12906 = sst [smem:[#allocation31_spill]] %s12862_s0 }
   0x2   :  { %12907 = sst [smem:[#allocation32_spill]] %s12863_s1 }
   0x3   :  { %12908 = sst [smem:[#allocation33_spill]] %s12864_s2 }
   0x4   :  { %12909 = sst [smem:[#allocation34_spill]] %s12865_s3 }
   0x5   :  { %12910 = sst [smem:[#allocation35_spill]] %s12879_s17 }
   0x6   :  { %12911 = sst [smem:[#allocation36_spill]] %s12880_s18 }
   0x7   :  { %12912 = sst [smem:[#allocation37_spill]] %s12881_s19 }
   0x8   :  { %24 = vsyncpa [#allocation5], 0 }
   0x9   :  { %25 = vsyncpa [#allocation8], 0 }
   0xa   :  { %26 = vsyncpa [#allocation11], 0 }
   0xb   :  { %27 = vsyncpa [#allocation14], 0 }
   0xc   :  { %28 = vsyncpa [#allocation6], 0 }
   0xd   :  { %30 = vsyncpa [#allocation6 + $0x1], 0  ;;  %s10503_s0 = smov 0   ;;  %s10505_s30 = smov 0  }
   0xe   :  { %s10507_s20 = smov 0   ;;  %s10509_s21 = smov 0  }
   0xf LB: > { %12913 = sst [smem:[#allocation21_spill]] %s10373_s0  ;;  %s10524_s1 = sadd.s32 4294967295, %s10385_s21   ;;  %s10385_s21 = sphi %s10509_s21, %s12958_s21   ;;  %s10381_s20 = sphi %s10507_s20, %s12961_s20   ;;  %s10377_s30 = sphi %s10505_s30, %s12960_s30   ;;  %s10373_s0 = sphi %s10503_s0, %s12959_s0  }
  0x10   : > { %12914 = sst [smem:[#allocation22_spill]] %s10377_s30  ;;  %s7237_s22 = sadd.s32 4294967294, %s10385_s21  }
  0x11   : > { %12915 = sst [smem:[#allocation23_spill]] %s10381_s20  ;;  %s10528_s2 = sadd.s32 1, %s10385_s21  }
  0x12   : > { %12916 = sst [smem:[#allocation24_spill]] %s10385_s21  ;;  %s447_s23 = sadd.s32 1, %s10381_s20 }
  0x13   : > { %12917 = sst [smem:[#allocation25_spill]] %s10528_s2  ;;  %s444_s24 = ssub.s32 %s10385_s21, %s10528_s2 }
  0x14   : > { %p457_p0 = scmp.ne.s32.totalorder %s10381_s20, %s10377_s30  ;;  %p445_p1 = scmp.eq.s32.totalorder %s444_s24, 0 }
  0x15   : > { %p458_p2 = scmp.eq.s32.totalorder %s10524_s1, 1  ;;  %p463_p3 = scmp.ne.s32.totalorder %s10377_s30, %s10373_s0 }
  0x16   : > { %p464_p4 = scmp.eq.s32.totalorder %s7237_s22, 1  ;;  %p7238_p7 = scmp.ge.s32.totalorder %s10385_s21, 1 }
  0x17   : > { %s10539_s25 = scalar_select %p445_p1, %s10381_s20, %s447_s23  }
  0x18   : > { %p10541_p5 = por %p458_p2, %p457_p0  ;;  %p10545_p6 = por %p464_p4, %p463_p3 }
  0x19   : > { %12918 = sst [smem:[#allocation26_spill]] %s10539_s25  ;;  %p471_p8 = scmp.lt.s32.totalorder %s10385_s21, 3 }
  0x1a   : > { %s12919_s3 = scalar_select %p10541_p5, 1, 0 }
  0x1b   : > { %s12921_s26 = scalar_select %p10545_p6, 1, 0 }
  0x1c   : > { %12920 = sst [smem:[#allocation27_spill]] %s12919_s3  ;;  %p12890_p9 = scmp.eq.s32.totalorder %s10524_s1, 0 }
  0x1d   : > { %12922 = sst [smem:[#allocation28_spill]] %s12921_s26  ;;  %p10552_p10 = pnand %p7238_p7, %p471_p8 }
  0x1e   : > { %s10387_s28 = smov [#allocation7]   ;;  %s10388_s23 = smov [#allocation10]  }
  0x1f   : > { %s12923_s27 = scalar_select %p10552_p10, 1, 0 }
  0x20   : > { %s515_s29 = sshll.u32 %s10387_s28, 4  ;;  %p9974_p11 = pneg %p10552_p10  ;;  %s10558_s29 = int_to_ptr.vmem [resolvable:$true] %s515_s29 }
  0x21   : > { %s549_s24 = sshll.u32 %s10388_s23, 4  ;;  %s10389_s25 = smov [#allocation4]   ;;  %s10566_s24 = int_to_ptr.vmem [resolvable:$true] %s549_s24 }
  0x22   : > { %p10562_p12 = pnand %p12890_p9, %p9974_p11  ;;  %s10568_s20 = sshll.u32 %s10389_s25, 4  ;;  %s503_s20 = int_to_ptr.vmem [resolvable:$true] %s10568_s20 }
  0x23   : > { %s10139_s28 = scalar_lea.hbm %s12871_s9, 640 }
  0x24   : > { %p10140_p13 = scmp.ne.s32.totalorder %s12871_s9, %s10139_s28  ;;  %p10578_p0 = pneg %p10562_p12 }
  0x25   : > { %p10146_p3 = scmp.lt.u32.totalorder %s10139_s28, %s12871_s9 }
  0x26   : > { %p10142_p1 = pnand %p10578_p0, %p10140_p13 }
  0x28   : > { %p10143_p2 = pneg %p10142_p1 }
  0x2a   : > { %p10148_p4 = pnand %p10146_p3, %p10143_p2 }
  0x2c   : > { %10151 = shalt.err (!%p10148_p4)
}
  0x2d   : > { %s10152_s0 = scalar_lea.vmem %s10558_s29, 640  ;;  %p10160_p9 = scmp.lt.s32.totalorder %s10558_s29, %s10558_s29 }
  0x2e   : > { %p10153_p7 = scmp.ne.s32.totalorder %s10558_s29, %s10152_s0  ;;  %p10161_p6 = scmp.lt.s32.totalorder %s10152_s0, %s10152_s0 }
  0x30   : > { %p10155_p8 = pnand %p10153_p7, %p10578_p0  ;;  %p10162_p13 = por %p10161_p6, %p10160_p9 }
  0x32   : > { %p10156_p11 = pneg %p10155_p8 }
  0x34   : > { %p10163_p1 = pnand %p10162_p13, %p10156_p11 }
  0x36   : > { %10166 = shalt.err (!%p10163_p1)
}
  0x37   : > { %s12898_s21 = smov 128   ;;  %s10391_s2 = smov 8  }
  0x38   : > { %9980 = dma.hbm_to_vmem [thread:$0]  (!%p10562_p12), %s12871_s9, 640, %s10558_s29, [#allocation8], %s12898_s21, %s12898_s21, %s10391_s2  }
  0x39   : > { %s10167_s0 = scalar_lea.hbm %s12876_s14, 16 }
  0x3a   : > { %p10168_p6 = scmp.ne.s32.totalorder %s12876_s14, %s10167_s0  ;;  %p10174_p3 = scmp.lt.u32.totalorder %s10167_s0, %s12876_s14 }
  0x3c   : > { %p10170_p9 = pnand %p10168_p6, %p10578_p0 }
  0x3e   : > { %p10171_p2 = pneg %p10170_p9 }
  0x40   : > { %p10176_p4 = pnand %p10174_p3, %p10171_p2 }
  0x42   : > { %10179 = shalt.err (!%p10176_p4)
}
  0x43   : > { %s10180_s29 = scalar_lea.vmem %s10566_s24, 16  ;;  %s10187_s18 = scalar_lea.vmem %s10566_s24, 32 }
  0x44   : > { %p10181_p7 = scmp.ne.s32.totalorder %s10566_s24, %s10180_s29  ;;  %p10188_p13 = scmp.lt.s32.totalorder %s10566_s24, %s10566_s24 }
  0x45   : > { %p10189_p1 = scmp.lt.s32.totalorder %s10187_s18, %s10180_s29 }
  0x46   : > { %p10183_p8 = pnand %p10181_p7, %p10578_p0 }
  0x47   : > { %p10190_p6 = por %p10189_p1, %p10188_p13 }
  0x48   : > { %p10184_p11 = pneg %p10183_p8 }
  0x4a   : > { %p10191_p9 = pnand %p10190_p6, %p10184_p11 }
  0x4c   : > { %10194 = shalt.err (!%p10191_p9)
}
  0x4d   : > { %9986 = dma.hbm_to_vmem [thread:$0]  (!%p10562_p12), %s12876_s14, 16, %s10566_s24, [#allocation11]  }
  0x4e   : > { %s10195_s28 = scalar_lea.hbm %s12869_s7, 16 }
  0x4f   : > { %p10196_p2 = scmp.ne.s32.totalorder %s12869_s7, %s10195_s28  ;;  %p10202_p7 = scmp.lt.u32.totalorder %s10195_s28, %s12869_s7 }
  0x51   : > { %p10198_p3 = pnand %p10196_p2, %p10578_p0 }
  0x53   : > { %p10199_p4 = pneg %p10198_p3 }
  0x55   : > { %p10204_p8 = pnand %p10202_p7, %p10199_p4 }
  0x57   : > { %10207 = shalt.err (!%p10204_p8)
}
  0x58   : > { %s10208_s18 = scalar_lea.vmem %s503_s20, 16  ;;  %s10215_s24 = scalar_lea.vmem %s503_s20, 32 }
  0x59   : > { %p10209_p11 = scmp.ne.s32.totalorder %s503_s20, %s10208_s18  ;;  %p10216_p6 = scmp.lt.s32.totalorder %s503_s20, %s503_s20 }
  0x5a   : > { %p10217_p9 = scmp.lt.s32.totalorder %s10215_s24, %s10208_s18 }
  0x5b   : > { %p10211_p13 = pnand %p10209_p11, %p10578_p0 }
  0x5c   : > { %p10218_p5 = por %p10217_p9, %p10216_p6 }
  0x5d   : > { %p10212_p1 = pneg %p10211_p13 }
  0x5f   : > { %p10219_p10 = pnand %p10218_p5, %p10212_p1 }
  0x61   : > { %10222 = shalt.err (!%p10219_p10)
}
  0x62   : > { %9977 = dma.hbm_to_vmem [thread:$0]  (!%p10562_p12), %s12869_s7, 16, %s503_s20, [#allocation5]  }
  0x63   : > { %s10392_s3 = smov [#allocation9]   ;;  %s10393_s28 = smov [#allocation12]  }
  0x64   : > { %s535_s26 = sshll.u32 %s10392_s3, 4  ;;  %s559_s23 = sshll.u32 %s10393_s28, 4  ;;  %s536_s26 = int_to_ptr.vmem [resolvable:$true] %s535_s26  ;;  %s560_s23 = int_to_ptr.vmem [resolvable:$true] %s559_s23 }
  0x65   : > { %s10223_s29 = scalar_lea.hbm %s12874_s12, 16 }
  0x66   : > { %p10224_p5 = scmp.ne.s32.totalorder %s12874_s12, %s10223_s29  ;;  %p10230_p3 = scmp.lt.u32.totalorder %s10223_s29, %s12874_s12 }
  0x68   : > { %p10226_p10 = pnand %p10224_p5, %p10578_p0 }
  0x6a   : > { %p10227_p2 = pneg %p10226_p10 }
  0x6c   : > { %p10232_p4 = pnand %p10230_p3, %p10227_p2 }
  0x6e   : > { %10235 = shalt.err (!%p10232_p4)
}
  0x6f   : > { %s10236_s20 = scalar_lea.vmem %s536_s26, 16  ;;  %s10243_s30 = scalar_lea.vmem %s536_s26, 32 }
  0x70   : > { %p10237_p7 = scmp.ne.s32.totalorder %s536_s26, %s10236_s20  ;;  %p10244_p13 = scmp.lt.s32.totalorder %s536_s26, %s536_s26 }
  0x71   : > { %p10245_p1 = scmp.lt.s32.totalorder %s10243_s30, %s10236_s20 }
  0x72   : > { %p10239_p8 = pnand %p10237_p7, %p10578_p0 }
  0x73   : > { %p10246_p6 = por %p10245_p1, %p10244_p13 }
  0x74   : > { %p10240_p11 = pneg %p10239_p8 }
  0x76   : > { %p10247_p9 = pnand %p10246_p6, %p10240_p11 }
  0x78   : > { %10250 = shalt.err (!%p10247_p9)
}
  0x79   : > { %9983 = dma.hbm_to_vmem [thread:$0]  (!%p10562_p12), %s12874_s12, 16, %s536_s26, [#allocation8]  }
  0x7a   : > { %s10251_s0 = scalar_lea.hbm %s12877_s15, 1024 }
  0x7b   : > { %p10252_p5 = scmp.ne.s32.totalorder %s12877_s15, %s10251_s0  ;;  %p10258_p3 = scmp.lt.u32.totalorder %s10251_s0, %s12877_s15 }
  0x7d   : > { %p10254_p10 = pnand %p10252_p5, %p10578_p0 }
  0x7f   : > { %p10255_p2 = pneg %p10254_p10 }
  0x81   : > { %p10260_p4 = pnand %p10258_p3, %p10255_p2 }
  0x83   : > { %10263 = shalt.err (!%p10260_p4)
}
  0x84   : > { %s10264_s20 = scalar_lea.vmem %s560_s23, 1024  ;;  %p10272_p13 = scmp.lt.s32.totalorder %s560_s23, %s560_s23 }
  0x85   : > { %p10265_p7 = scmp.ne.s32.totalorder %s560_s23, %s10264_s20  ;;  %p10273_p1 = scmp.lt.s32.totalorder %s10264_s20, %s10264_s20 }
  0x87   : > { %p10267_p8 = pnand %p10265_p7, %p10578_p0  ;;  %p10274_p6 = por %p10273_p1, %p10272_p13 }
  0x89   : > { %p10268_p11 = pneg %p10267_p8 }
  0x8b   : > { %p10275_p9 = pnand %p10274_p6, %p10268_p11 }
  0x8d   : > { %10278 = shalt.err (!%p10275_p9)
}
  0x8e   : > { %s12926_s26 = smov 128   ;;  %s10394_s28 = smov [#allocation13]  }
  0x8f   : > { %9989 = dma.hbm_to_vmem [thread:$0]  (!%p10562_p12), %s12877_s15, 1024, %s560_s23, [#allocation11], %s12926_s26, %s12926_s26, %s10391_s2  }
  0x90   : > { %s572_s21 = sshll.u32 %s10394_s28, 4  ;;  %s10279_s29 = scalar_lea.hbm %s12878_s16, 1024  ;;  %s573_s21 = int_to_ptr.vmem [resolvable:$true] %s572_s21 }
  0x91   : > { %p10280_p5 = scmp.ne.s32.totalorder %s12878_s16, %s10279_s29  ;;  %p10286_p3 = scmp.lt.u32.totalorder %s10279_s29, %s12878_s16 }
  0x93   : > { %p10282_p10 = pnand %p10280_p5, %p10578_p0 }
  0x95   : > { %p10283_p2 = pneg %p10282_p10 }
  0x97   : > { %p10288_p4 = pnand %p10286_p3, %p10283_p2 }
  0x99   : > { %10291 = shalt.err (!%p10288_p4)
}
  0x9a   : > { %s10292_s23 = scalar_lea.vmem %s573_s21, 1024  ;;  %p10300_p13 = scmp.lt.s32.totalorder %s573_s21, %s573_s21 }
  0x9b   : > { %p10293_p7 = scmp.ne.s32.totalorder %s573_s21, %s10292_s23  ;;  %p10301_p1 = scmp.lt.s32.totalorder %s10292_s23, %s10292_s23 }
  0x9d   : > { %p10295_p8 = pnand %p10293_p7, %p10578_p0  ;;  %p10302_p6 = por %p10301_p1, %p10300_p13 }
  0x9f   : > { %p10296_p11 = pneg %p10295_p8 }
  0xa1   : > { %p10303_p9 = pnand %p10302_p6, %p10296_p11 }
  0xa3   : > { %10306 = shalt.err (!%p10303_p9)
}
  0xa4   : > { %9992 = dma.hbm_to_vmem [thread:$0]  (!%p10562_p12), %s12878_s16, 1024, %s573_s21, [#allocation14], %s12926_s26, %s12926_s26, %s10391_s2  }
  0xa5   : > { %p12927_p5 = scmp.ne.s32.totalorder %s12923_s27, 0 }
  0xa7   : > { %602 = sbr.rel (%p12927_p5) target bundleno = 2399 (0x95f), region = 96 }
  0xae   : > { %p12928_p0 = scmp.eq.s32.totalorder %s10524_s1, 0 }
  0xb0   : > { %10352 = dma.done.wait (%p12928_p0), [#allocation5], 16   ;;  %p12929_p10 = pmov %p12928_p0 }
  0xb1   : > { %p12930_p2 = pmov %p12928_p0 }
  0xb2   : > { %10354 = vsyncadd (%p12929_p10), [#allocation5], 4294967280 }
  0xb3   : > { %10356 = dma.done.wait (%p12930_p2), [#allocation8], 656   ;;  %p12931_p3 = pmov %p12928_p0 }
  0xb4   : > { %p12932_p4 = pmov %p12928_p0 }
  0xb5   : > { %10358 = vsyncadd (%p12931_p3), [#allocation8], 4294966640 }
  0xb6   : > { %10360 = dma.done.wait (%p12932_p4), [#allocation11], 1040   ;;  %p12933_p12 = pmov %p12928_p0 }
  0xb7   : > { %p12934_p7 = pmov %p12928_p0 }
  0xb8   : > { %10362 = vsyncadd (%p12933_p12), [#allocation11], 4294966256 }
  0xb9   : > { %10364 = dma.done.wait (%p12934_p7), [#allocation14], 1024   ;;  %p12935_p8 = pmov %p12928_p0 }
  0xba   : > { %p678_p11 = scmp.lt.s32.totalorder %s10524_s1, 1  ;;  %s12936_s26 = sld [smem:[#allocation31_spill]]  ;;  %v10395_v56 = vmov 0   ;;  %vm997_vm0 = vcmask 523264   ;;  %vm10398_vm1 = vmmov 0   ;;  %vm5330_vm12 = vcmask 326656  }
  0xbb   : > { %10366 = vsyncadd (%p12935_p8), [#allocation14], 4294966272  ;;  %s12937_s0 = sld [smem:[#allocation34_spill]]  ;;  %955 = vmatprep.mubr.bf16.mxu0 %v10395_v56  ;;  %s12939_s18 = sld [smem:[#allocation32_spill]]  ;;  %vm6928_vm13 = vcmask 1048064  }
  0xbc   : > { %s679_s19 = scalar_select %p678_p11, %s10524_s1, 1 }
  0xbd   : > { %s12940_s20 = sld [smem:[#allocation33_spill]]  ;;  %s10396_s2 = smov 64  }
  0xbe   : > { %s7808_s27 = sshll.u32 %s679_s19, 6  ;;  %s12949_s21 = sld [smem:[#allocation27_spill]] }
  0xbf   : > { %s7809_s25 = sshll.u32 %s10524_s1, 10  ;;  %s12952_s24 = sld [smem:[#allocation37_spill]] }
  0xc0   : > { %s682_s28 = scalar_lea.vmem %s12936_s26, %s7808_s27  ;;  %s12948_s27 = sld [smem:[#allocation36_spill]] }
  0xc1   : > { %v684_v0 = vld [vmem:[%s682_s28] sm:$0xff]  ;;  %v686_v1 = vld [vmem:[%s682_s28 + $0x10] sm:$0xff]  ;;  %v685_v2 = vld [vmem:[%s682_s28 + $0x8] sm:$0xff]  ;;  %s12938_s29 = smov %s12937_s0  ;;  %s10400_s3 = smov [#allocation15]  }
  0xc2   : > { %692 = vadd.xlane.f32.xlu0 %v684_v0  ;;  %696 = vadd.xlane.f32.xlu1 %v686_v1  ;;  %v687_v3 = vld [vmem:[%s682_s28 + $0x18] sm:$0xff]  ;;  %v688_v4 = vld [vmem:[%s682_s28 + $0x20] sm:$0xff]  ;;  %v689_v5 = vld [vmem:[%s682_s28 + $0x28] sm:$0xff]  ;;  %s10311_s19 = sshll.u32 %s10400_s3, 4  ;;  %s10312_s19 = int_to_ptr.vmem [resolvable:$false] %s10311_s19 }
  0xc3   : > { %v690_v6 = vld [vmem:[%s682_s28 + $0x30] sm:$0xff]  ;;  %v691_v7 = vld [vmem:[%s682_s28 + $0x38] sm:$0xff]  ;;  %v10057_v8 = vld [vmem:[%s12937_s0 + $0x4] ss:$8 sps:$4 sm:$0xff]  }
  0xc4   : > { %v10059_v9 = vld [vmem:[%s12938_s29] ss:$8 sps:$4 sm:$0xff]   ;;  %v10060_v10 = vld [vmem:[%s12938_s29 + $0x14] ss:$8 sps:$4 sm:$0xff]   ;;  %923 = vmatprep.subr.bf16.mxu0 %v10057_v8  ;;  %v10062_v43 = vld [vmem:[%s12938_s29 + $0x10] ss:$8 sps:$4 sm:$0xff]  }
  0xc5   : > { %924 = vmatpush1.bf16.msra.mxu0 %v10059_v9  ;;  %v10063_v44 = vld [vmem:[%s12938_s29 + $0x24] ss:$8 sps:$4 sm:$0xff]   ;;  %v10065_v45 = vld [vmem:[%s12938_s29 + $0x20] ss:$8 sps:$4 sm:$0xff]   ;;  %v10066_v46 = vld [vmem:[%s12938_s29 + $0x34] ss:$8 sps:$4 sm:$0xff]   ;;  %s12817_s17 = scalar_lea.hbm %s12952_s24, %s7809_s25 }
  0xc6   : > { %694 = vadd.xlane.f32.xlu0 %v685_v2  ;;  %698 = vadd.xlane.f32.xlu1 %v687_v3  ;;  %v10068_v47 = vld [vmem:[%s12938_s29 + $0x30] ss:$8 sps:$4 sm:$0xff]   ;;  %v10069_v48 = vld [vmem:[%s12938_s29 + $0x44] ss:$8 sps:$4 sm:$0xff]   ;;  %v10071_v49 = vld [vmem:[%s12938_s29 + $0x40] ss:$8 sps:$4 sm:$0xff]  }
  0xc7   : > { %925 = vmatprep.subr.bf16.mxu0 %v10060_v10  ;;  %v10072_v50 = vld [vmem:[%s12938_s29 + $0x54] ss:$8 sps:$4 sm:$0xff]   ;;  %v10074_v51 = vld [vmem:[%s12938_s29 + $0x50] ss:$8 sps:$4 sm:$0xff]   ;;  %v10075_v52 = vld [vmem:[%s12938_s29 + $0x64] ss:$8 sps:$4 sm:$0xff]  }
  0xc8   : > { %v10077_v53 = vld [vmem:[%s12938_s29 + $0x60] ss:$8 sps:$4 sm:$0xff]   ;;  %v10078_v54 = vld [vmem:[%s12938_s29 + $0x74] ss:$8 sps:$4 sm:$0xff]   ;;  %v10080_v55 = vld [vmem:[%s12938_s29 + $0x70] ss:$8 sps:$4 sm:$0xff]  }
  0xc9   : > { %926 = vmatpush1.bf16.msra.mxu0 %v10062_v43  ;;  %p12953_p1 = scmp.ne.s32.totalorder %s12949_s21, 0 }
  0xca   : > { %700 = vadd.xlane.f32.xlu0 %v688_v4  ;;  %702 = vadd.xlane.f32.xlu1 %v689_v5 }
  0xcb   : > { %927 = vmatprep.subr.bf16.mxu0 %v10063_v44 }
  0xcd   : > { %928 = vmatpush1.bf16.msra.mxu0 %v10065_v45 }
  0xce   : > { %704 = vadd.xlane.f32.xlu0 %v690_v6  ;;  %706 = vadd.xlane.f32.xlu1 %v691_v7 }
  0xcf   : > { %929 = vmatprep.subr.bf16.mxu0 %v10066_v46 }
  0xd1   : > { %930 = vmatpush1.bf16.msra.mxu0 %v10068_v47 }
  0xd2   : > { %931 = vmatprep.subr.bf16.mxu0 %v10069_v48 }
  0xd5   : > { %932 = vmatpush1.bf16.msra.mxu0 %v10071_v49 }
  0xd6   : > { %933 = vmatprep.subr.bf16.mxu0 %v10072_v50 }
  0xd9   : > { %934 = vmatpush1.bf16.msra.mxu0 %v10074_v51 }
  0xda   : > { %935 = vmatprep.subr.bf16.mxu0 %v10075_v52 }
  0xdd   : > { %936 = vmatpush1.bf16.msra.mxu0 %v10077_v53 }
  0xde   : > { %937 = vmatprep.subr.bf16.mxu0 %v10078_v54 }
  0xe1   : > { %938 = vmatpush1.bf16.msra.mxu0 %v10080_v55 }
 0x14f   : > { %v693_v11 = vpop.xlane.xlu0 %692  ;;  %v697_v12 = vpop.xlane.xlu1 %696 }
 0x150   : > { %v709_v13 = vmul.f32 0.0078125, %v693_v11  ;;  %v711_v14 = vmul.f32 0.0078125, %v697_v12 }
 0x152   : > { %v10737_v15 = vsub.f32 %v684_v0, %v709_v13  ;;  %v10739_v16 = vsub.f32 %v686_v1, %v711_v14 }
 0x153   : > { %v695_v17 = vpop.xlane.xlu0 %694  ;;  %v699_v18 = vpop.xlane.xlu1 %698 }
 0x154   : > { %v710_v19 = vmul.f32 0.0078125, %v695_v17  ;;  %v725_v20 = vmul.f32 %v10737_v15, %v10737_v15  ;;  %v712_v21 = vmul.f32 0.0078125, %v699_v18  ;;  %v727_v24 = vmul.f32 %v10739_v16, %v10739_v16  ;;  %v7256_v18 = vld [vmem:[%s12939_s18] ss:$0 sm:$0xff] }
 0x156   : > { %v10743_v22 = vsub.f32 %v685_v2, %v710_v19  ;;  %733 = vadd.xlane.f32.xlu0 %v725_v20  ;;  %v10745_v23 = vsub.f32 %v687_v3, %v712_v21 }
 0x157   : > { %v701_v25 = vpop.xlane.xlu0 %700  ;;  %v703_v26 = vpop.xlane.xlu1 %702 }
 0x158   : > { %v713_v27 = vmul.f32 0.0078125, %v701_v25  ;;  %v726_v28 = vmul.f32 %v10743_v22, %v10743_v22  ;;  %v714_v29 = vmul.f32 0.0078125, %v703_v26  ;;  %v728_v32 = vmul.f32 %v10745_v23, %v10745_v23 }
 0x15a   : > { %v10751_v30 = vsub.f32 %v688_v4, %v713_v27  ;;  %737 = vadd.xlane.f32.xlu0 %v727_v24  ;;  %735 = vadd.xlane.f32.xlu1 %v726_v28  ;;  %v10753_v31 = vsub.f32 %v689_v5, %v714_v29  ;;  %v7257_v27 = vld [vmem:[%s12940_s20] ss:$0 sm:$0xff]  ;;  %s12945_s20 = sld [smem:[#allocation35_spill]] }
 0x15b   : > { %v705_v33 = vpop.xlane.xlu0 %704  ;;  %v707_v34 = vpop.xlane.xlu1 %706 }
 0x15c   : > { %v715_v35 = vmul.f32 0.0078125, %v705_v33  ;;  %v729_v36 = vmul.f32 %v10751_v30, %v10751_v30  ;;  %v716_v37 = vmul.f32 0.0078125, %v707_v34  ;;  %v730_v40 = vmul.f32 %v10753_v31, %v10753_v31 }
 0x15e   : > { %v10759_v38 = vsub.f32 %v690_v6, %v715_v35  ;;  %739 = vadd.xlane.f32.xlu1 %v728_v32  ;;  %741 = vadd.xlane.f32.xlu0 %v729_v36  ;;  %v10761_v39 = vsub.f32 %v691_v7, %v716_v37 }
 0x160   : > { %v731_v41 = vmul.f32 %v10759_v38, %v10759_v38  ;;  %v732_v42 = vmul.f32 %v10761_v39, %v10761_v39  ;;  %s12946_s23 = smov %s12945_s20 }
 0x162   : > { %743 = vadd.xlane.f32.xlu1 %v730_v40  ;;  %745 = vadd.xlane.f32.xlu0 %v731_v41 }
 0x166   : > { %747 = vadd.xlane.f32.xlu1 %v732_v42 }
 0x1e3   : > { %v734_v57 = vpop.xlane.xlu0 %733 }
 0x1e4   : > { %v749_v58 = vmul.f32 0.0078125, %v734_v57 }
 0x1e6   : > { %v757_v59 = vadd.f32 1e-05, %v749_v58 }
 0x1e7   : > { %v736_v60 = vpop.xlane.xlu1 %735  ;;  %v738_v61 = vpop.xlane.xlu0 %737 }
 0x1e8   : > { %10093 = vrsqrt.f32 %v757_v59  ;;  %v750_v62 = vmul.f32 0.0078125, %v736_v60  ;;  %v751_v63 = vmul.f32 0.0078125, %v738_v61  ;;  %v831_v60 = vld [vmem:[%s12866_s4] sm:$0x3] }
 0x1ea   : > { %v758_v0 = vadd.f32 1e-05, %v750_v62  ;;  %v759_v1 = vadd.f32 1e-05, %v751_v63 }
 0x1eb   : > { %v740_v2 = vpop.xlane.xlu1 %739  ;;  %v742_v3 = vpop.xlane.xlu0 %741 }
 0x1ec   : > { %10095 = vrsqrt.f32 %v758_v0  ;;  %v752_v4 = vmul.f32 0.0078125, %v740_v2  ;;  %v753_v6 = vmul.f32 0.0078125, %v742_v3 }
 0x1ed   : > { %10097 = vrsqrt.f32 %v759_v1 }
 0x1ee   : > { %v760_v5 = vadd.f32 1e-05, %v752_v4  ;;  %v761_v10 = vadd.f32 1e-05, %v753_v6 }
 0x1ef   : > { %v744_v7 = vpop.xlane.xlu1 %743  ;;  %v746_v12 = vpop.xlane.xlu0 %745 }
 0x1f0   : > { %10099 = vrsqrt.f32 %v760_v5  ;;  %v754_v8 = vmul.f32 0.0078125, %v744_v7  ;;  %v755_v20 = vmul.f32 0.0078125, %v746_v12 }
 0x1f2   : > { %v10094_v9 = vpop.eup %10093  ;;  %v762_v11 = vadd.f32 1e-05, %v754_v8  ;;  %v763_v29 = vadd.f32 1e-05, %v755_v20 }
 0x1f3   : > { %v748_v13 = vpop.xlane.xlu1 %747  ;;  %v773_v14 = vmul.f32 %v10094_v9, %v10737_v15 }
 0x1f4   : > { %10101 = vrsqrt.f32 %v762_v11  ;;  %v756_v17 = vmul.f32 0.0078125, %v748_v13 }
 0x1f5   : > { %10103 = vrsqrt.f32 %v761_v10  ;;  %v788_v24 = vmul.f32 %v7256_v18, %v773_v14 }
 0x1f6   : > { %v10096_v19 = vpop.eup %10095  ;;  %v764_v26 = vadd.f32 1e-05, %v756_v17 }
 0x1f7   : > { %v774_v21 = vmul.f32 %v10096_v19, %v10743_v22  ;;  %v10098_v25 = vpop.eup %10097  ;;  %v10817_v32 = vadd.f32 %v7257_v27, %v788_v24 }
 0x1f8   : > { %v775_v34 = vmul.f32 %v10098_v25, %v10739_v16  ;;  %10105 = vrsqrt.f32 %v764_v26 }
 0x1f9   : > { %v789_v28 = vmul.f32 %v7256_v18, %v774_v21  ;;  %10107 = vrsqrt.f32 %v763_v29 }
 0x1fa   : > { %v10100_v15 = vpop.eup %10099  ;;  %v790_v40 = vmul.f32 %v7256_v18, %v775_v34 }
 0x1fb   : > { %v10819_v33 = vadd.f32 %v7257_v27, %v789_v28  ;;  %v776_v35 = vmul.f32 %v10100_v15, %v10745_v23 }
 0x1fc   : > { %v10829_v44 = vadd.f32 %v7257_v27, %v790_v40 }
 0x1fd   : > { %v811_v22 = vpack.c.bf16 %v10819_v33, %v10817_v32  ;;  %v791_v36 = vmul.f32 %v7256_v18, %v776_v35 }
 0x1fe   : > { %v10102_v37 = vpop.eup %10101 }
 0x1ff   : > { %956 = vmatmul.mubr.bf16.vlgmr.msra.gmra.mrb[0].mxu0 %v811_v22  ;;  %v10104_v41 = vpop.eup %10103  ;;  %v10826_v42 = vadd.f32 %v7257_v27, %v791_v36  ;;  %v778_v43 = vmul.f32 %v10102_v37, %v10753_v31 }
 0x200   : > { %965 = vmatprep.mubr.bf16.mxu0 %v10395_v56  ;;  %v777_v16 = vmul.f32 %v10104_v41, %v10751_v30 }
 0x201   : > { %v812_v23 = vpack.c.bf16 %v10826_v42, %v10829_v44  ;;  %v793_v45 = vmul.f32 %v7256_v18, %v778_v43 }
 0x202   : > { %v10106_v46 = vpop.eup %10105  ;;  %v792_v47 = vmul.f32 %v7256_v18, %v777_v16 }
 0x203   : > { %v10108_v48 = vpop.eup %10107  ;;  %v10835_v49 = vadd.f32 %v7257_v27, %v793_v45  ;;  %v780_v50 = vmul.f32 %v10106_v46, %v10761_v39  ;;  %v7314_v39 = vld [vmem:[%s12867_s5 + $0xc0] sm:$0xff]  ;;  %v7315_v45 = vld [vmem:[%s12867_s5 + $0xc8] sm:$0xff]  ;;  %v1035_v46 = vld [vmem:[%s12867_s5 + $0x10] sm:$0xff] }
 0x204   : > { %v10838_v51 = vadd.f32 %v7257_v27, %v792_v47  ;;  %v779_v31 = vmul.f32 %v10108_v48, %v10759_v38  ;;  %v1033_v38 = vld [vmem:[%s12867_s5] sm:$0xff]  ;;  %v7316_v47 = vld [vmem:[%s12867_s5 + $0xd0] sm:$0xff]  ;;  %v1036_v48 = vld [vmem:[%s12867_s5 + $0x18] sm:$0xff] }
 0x205   : > { %12941 = vst [vmem:[#allocation29_spill] sm:$0xff] %v10835_v49  ;;  %v795_v52 = vmul.f32 %v7256_v18, %v780_v50  ;;  %8387 = vmatprep.mubr.msk.f32.mxu1 %vm997_vm0, %v1033_v38  ;;  %v7317_v50 = vld [vmem:[%s12867_s5 + $0xd8] sm:$0xff]  ;;  %v7320_v38 = vld [vmem:[%s12867_s5 + $0xf0] sm:$0xff] }
 0x206   : > { %v813_v30 = vpack.c.bf16 %v10835_v49, %v10838_v51  ;;  %v794_v53 = vmul.f32 %v7256_v18, %v779_v31  ;;  %v1037_v31 = vld [vmem:[%s12867_s5 + $0x20] sm:$0xff] }
 0x207   : > { %966 = vmatmul.mubr.bf16.gmra.mrb[4].mxu0 %v812_v23  ;;  %v10844_v54 = vadd.f32 %v7257_v27, %v795_v52  ;;  %v1034_v23 = vld [vmem:[%s12867_s5 + $0x8] sm:$0xff] }
 0x208   : > { %975 = vmatprep.mubr.bf16.mxu0 %v10395_v56  ;;  %v10846_v55 = vadd.f32 %v7257_v27, %v794_v53  ;;  %v1038_v52 = vld [vmem:[%s12867_s5 + $0x28] sm:$0xff] }
 0x209   : > { %12942 = vst [vmem:[#allocation30_spill] sm:$0xff] %v10844_v54  ;;  %v7319_v53 = vld [vmem:[%s12867_s5 + $0xe8] sm:$0xff] }
 0x20a   : > { %v814_v57 = vpack.c.bf16 %v10844_v54, %v10846_v55 }
 0x20f   : > { %976 = vmatmul.mubr.bf16.gmra.mrb[8].mxu0 %v813_v30  ;;  %v7318_v30 = vld [vmem:[%s12867_s5 + $0xe0] sm:$0xff] }
 0x210   : > { %985 = vmatprep.mubr.bf16.mxu0 %v10395_v56  ;;  %v833_v56 = vlaneseq }
 0x212   : > { %v10858_v58 = vshrl.u32 %v833_v56, 7  ;;  %v7321_v56 = vld [vmem:[%s12867_s5 + $0xf8] sm:$0xff] }
 0x214   : > { %v10861_v59 = vsub.s32 0, %v10858_v58  ;;  %v10867_v61 = vsub.s32 1, %v10858_v58 }
 0x216   : > { %v836_v62 = vrot.slane %v831_v60, %v10861_v59  ;;  %v840_v63 = vrot.slane %v831_v60, %v10867_v61  ;;  %v7282_v60 = vld [vmem:[%s12867_s5 + $0x40] sm:$0xff] }
 0x217   : > { %986 = vmatmul.mubr.bf16.gmra.mrb[12].mxu0 %v814_v57  ;;  %v1039_v57 = vld [vmem:[%s12867_s5 + $0x30] sm:$0xff] }
 0x218   : > { %8471 = vmatprep.mubr.msk.f32.mxu0 %vm997_vm0, %v7314_v39  ;;  %v1040_v39 = vld [vmem:[%s12867_s5 + $0x38] sm:$0xff] }
 0x2d2   : > { %v957_v0 = vpop.f32.mrb[0].mxu0 }
 0x2d3   : > { %v958_v1 = vadd.f32 %v957_v0, %v836_v62  ;;  %v959_v2 = vpop.f32.mrb[1].mxu0  ;;  %v7347_v0 = vld [vmem:[%s12867_s5 + $0x148] sm:$0xff] }
 0x2d4   : > { %v960_v3 = vadd.f32 %v959_v2, %v840_v63  ;;  %v961_v4 = vpop.f32.mrb[2].mxu0  ;;  %v7348_v2 = vld [vmem:[%s12867_s5 + $0x150] sm:$0xff] }
 0x2d5   : > { %v962_v5 = vadd.f32 %v961_v4, %v836_v62  ;;  %v963_v6 = vpop.f32.mrb[3].mxu0  ;;  %5005 = vrot.lane.b32.xlu0 %v958_v1, %s10396_s2  ;;  %v7349_v4 = vld [vmem:[%s12867_s5 + $0x158] sm:$0xff] }
 0x2d6   : > { %998 = vst.msk [vmem:[#allocation2 + $0x8] sm:$0xff] %vm997_vm0, %v960_v3  ;;  %v964_v7 = vadd.f32 %v963_v6, %v840_v63  ;;  %v7285_v3 = vld [vmem:[%s12867_s5 + $0x58] sm:$0xff]  ;;  %v7350_v6 = vld [vmem:[%s12867_s5 + $0x160] sm:$0xff] }
 0x2d7   : > { %5007 = vrot.lane.b32.xlu1 %v962_v5, %s10396_s2  ;;  %v10874_v8 = vpack.c.bf16 %v962_v5, %v958_v1  ;;  %v7284_v1 = vld [vmem:[%s12867_s5 + $0x50] sm:$0xff]  ;;  %v7286_v5 = vld [vmem:[%s12867_s5 + $0x60] sm:$0xff] }
 0x2d8   : > { %1000 = vst.msk [vmem:[#allocation2 + $0x18] sm:$0xff] %vm997_vm0, %v964_v7  ;;  %v7287_v7 = vld [vmem:[%s12867_s5 + $0x68] sm:$0xff] }
 0x2d9   : > { %9447 = vmatprep.subr.bf16.mxu1 %v10874_v8  ;;  %9495 = vmatprep.subr.bf16.mxu0 %v10874_v8 }
 0x2da   : > { %v967_v9 = vpop.f32.mrb[4].mxu0  ;;  %9449 = vmatpush3.bf16.msra.mxu1 %v10874_v8  ;;  %9497 = vmatpush3.bf16.msra.mxu0 %v10874_v8 }
 0x2db   : > { %v968_v10 = vadd.f32 %v967_v9, %v836_v62  ;;  %v969_v11 = vpop.f32.mrb[5].mxu0  ;;  %v7351_v9 = vld [vmem:[%s12867_s5 + $0x168] sm:$0xff] }
 0x2dc   : > { %v970_v12 = vadd.f32 %v969_v11, %v840_v63  ;;  %v971_v13 = vpop.f32.mrb[6].mxu0  ;;  %v7352_v11 = vld [vmem:[%s12867_s5 + $0x170] sm:$0xff] }
 0x2dd   : > { %v972_v14 = vadd.f32 %v971_v13, %v836_v62  ;;  %v973_v17 = vpop.f32.mrb[7].mxu0  ;;  %5009 = vrot.lane.b32.xlu1 %v968_v10, %s10396_s2  ;;  %v7353_v13 = vld [vmem:[%s12867_s5 + $0x178] sm:$0xff] }
 0x2de   : > { %1002 = vst.msk [vmem:[#allocation2 + $0x28] sm:$0xff] %vm997_vm0, %v970_v12  ;;  %v974_v18 = vadd.f32 %v973_v17, %v840_v63  ;;  %v7289_v12 = vld [vmem:[%s12867_s5 + $0x78] sm:$0xff]  ;;  %v7378_v17 = vld [vmem:[%s12867_s5 + $0x1c0] sm:$0xff] }
 0x2df   : > { %v10883_v19 = vpack.c.bf16 %v972_v14, %v968_v10  ;;  %v7288_v10 = vld [vmem:[%s12867_s5 + $0x70] sm:$0xff] }
 0x2e0   : > { %1004 = vst.msk [vmem:[#allocation2 + $0x38] sm:$0xff] %vm997_vm0, %v974_v18  ;;  %v7299_v18 = vld [vmem:[%s12867_s5 + $0x88] sm:$0xff] }
 0x2e1   : > { %5011 = vrot.lane.b32.xlu1 %v972_v14, %s10396_s2  ;;  %9451 = vmatprep.subr.bf16.mxu1 %v10883_v19  ;;  %v7298_v14 = vld [vmem:[%s12867_s5 + $0x80] sm:$0xff] }
 0x2e2   : > { %v977_v20 = vpop.f32.mrb[8].mxu0  ;;  %9499 = vmatprep.subr.bf16.mxu0 %v10883_v19  ;;  %9453 = vmatpush3.bf16.msra.mxu1 %v10883_v19 }
 0x2e3   : > { %v978_v21 = vadd.f32 %v977_v20, %v836_v62  ;;  %v979_v24 = vpop.f32.mrb[9].mxu0  ;;  %9501 = vmatpush3.bf16.msra.mxu0 %v10883_v19  ;;  %v7379_v20 = vld [vmem:[%s12867_s5 + $0x1c8] sm:$0xff] }
 0x2e4   : > { %v980_v25 = vadd.f32 %v979_v24, %v840_v63  ;;  %v981_v26 = vpop.f32.mrb[10].mxu0  ;;  %v7380_v24 = vld [vmem:[%s12867_s5 + $0x1d0] sm:$0xff] }
 0x2e5   : > { %v982_v27 = vadd.f32 %v981_v26, %v836_v62  ;;  %v983_v28 = vpop.f32.mrb[11].mxu0  ;;  %5013 = vrot.lane.b32.xlu0 %v978_v21, %s10396_s2  ;;  %v7381_v26 = vld [vmem:[%s12867_s5 + $0x1d8] sm:$0xff] }
 0x2e6   : > { %1006 = vst.msk [vmem:[#allocation2 + $0x48] sm:$0xff] %vm997_vm0, %v980_v25  ;;  %v984_v15 = vadd.f32 %v983_v28, %v840_v63  ;;  %v7301_v25 = vld [vmem:[%s12867_s5 + $0x98] sm:$0xff]  ;;  %v7382_v28 = vld [vmem:[%s12867_s5 + $0x1e0] sm:$0xff] }
 0x2e7   : > { %5015 = vrot.lane.b32.xlu1 %v982_v27, %s10396_s2  ;;  %v10894_v29 = vpack.c.bf16 %v982_v27, %v978_v21  ;;  %v7300_v21 = vld [vmem:[%s12867_s5 + $0x90] sm:$0xff]  ;;  %v7302_v27 = vld [vmem:[%s12867_s5 + $0xa0] sm:$0xff] }
 0x2e8   : > { %1008 = vst.msk [vmem:[#allocation2 + $0x58] sm:$0xff] %vm997_vm0, %v984_v15  ;;  %v7303_v15 = vld [vmem:[%s12867_s5 + $0xa8] sm:$0xff] }
 0x2e9   : > { %9455 = vmatprep.subr.bf16.mxu1 %v10894_v29  ;;  %9503 = vmatprep.subr.bf16.mxu0 %v10894_v29 }
 0x2ea   : > { %v987_v34 = vpop.f32.mrb[12].mxu0  ;;  %9457 = vmatpush3.bf16.msra.mxu1 %v10894_v29  ;;  %9505 = vmatpush3.bf16.msra.mxu0 %v10894_v29 }
 0x2eb   : > { %v988_v35 = vadd.f32 %v987_v34, %v836_v62  ;;  %v989_v22 = vpop.f32.mrb[13].mxu0  ;;  %v7383_v34 = vld [vmem:[%s12867_s5 + $0x1e8] sm:$0xff] }
 0x2ec   : > { %v990_v36 = vadd.f32 %v989_v22, %v840_v63  ;;  %v991_v37 = vpop.f32.mrb[14].mxu0  ;;  %v7384_v22 = vld [vmem:[%s12867_s5 + $0x1f0] sm:$0xff] }
 0x2ed   : > { %v992_v40 = vadd.f32 %v991_v37, %v836_v62  ;;  %v993_v41 = vpop.f32.mrb[15].mxu0  ;;  %5017 = vrot.lane.b32.xlu0 %v988_v35, %s10396_s2  ;;  %v7346_v62 = vld [vmem:[%s12867_s5 + $0x140] sm:$0xff]  ;;  %v7385_v37 = vld [vmem:[%s12867_s5 + $0x1f8] sm:$0xff] }
 0x2ee   : > { %1010 = vst.msk [vmem:[#allocation2 + $0x68] sm:$0xff] %vm997_vm0, %v990_v36  ;;  %v994_v43 = vadd.f32 %v993_v41, %v840_v63  ;;  %v7283_v63 = vld [vmem:[%s12867_s5 + $0x48] sm:$0xff]  ;;  %v7305_v36 = vld [vmem:[%s12867_s5 + $0xb8] sm:$0xff]  ;;  %v7410_v41 = vld [vmem:[%s12867_s5 + $0x240] sm:$0xff] }
 0x2ef   : > { %5019 = vrot.lane.b32.xlu1 %v992_v40, %s10396_s2  ;;  %v10904_v16 = vpack.c.bf16 %v992_v40, %v988_v35  ;;  %v7304_v35 = vld [vmem:[%s12867_s5 + $0xb0] sm:$0xff]  ;;  %v7330_v40 = vld [vmem:[%s12867_s5 + $0x100] sm:$0xff] }
 0x2f0   : > { %1012 = vst.msk [vmem:[#allocation2 + $0x78] sm:$0xff] %vm997_vm0, %v994_v43  ;;  %v7331_v43 = vld [vmem:[%s12867_s5 + $0x108] sm:$0xff] }
 0x2f1   : > { %9459 = vmatprep.subr.bf16.mxu1 %v10904_v16  ;;  %9507 = vmatprep.subr.bf16.mxu0 %v10904_v16 }
 0x2f2   : > { %9461 = vmatpush3.bf16.msra.mxu1 %v10904_v16  ;;  %9509 = vmatpush3.bf16.msra.mxu0 %v10904_v16 }
 0x2f3   : > { %9463 = vmatprep.subr.bf16.mxu1 %v10874_v8  ;;  %9527 = vmatprep.subr.bf16.mxu0 %v10874_v8 }
 0x2f5   : > { %8388 = vmatmul.mubr.msk.f32.vlgmr.msra.gmra.mrb[0].mxu1 %vm997_vm0, %v1034_v23  ;;  %8472 = vmatmul.mubr.msk.f32.vlgmr.msra.gmra.mrb[16].mxu0 %vm997_vm0, %v7315_v45  ;;  %v7411_v23 = vld [vmem:[%s12867_s5 + $0x248] sm:$0xff]  ;;  %v7332_v45 = vld [vmem:[%s12867_s5 + $0x110] sm:$0xff] }
 0x2f6   : > { %9465 = vmatpush3.bf16.msra.mxu1 %v10874_v8  ;;  %9529 = vmatpush3.bf16.msra.mxu0 %v10874_v8 }
 0x2f7   : > { %9467 = vmatprep.subr.bf16.mxu1 %v10883_v19  ;;  %9531 = vmatprep.subr.bf16.mxu0 %v10883_v19 }
 0x2f8   : > { %8390 = vmatprep.mubr.msk.f32.mxu1 %vm997_vm0, %v1035_v46  ;;  %8474 = vmatprep.mubr.msk.f32.mxu0 %vm997_vm0, %v7316_v47  ;;  %v7412_v46 = vld [vmem:[%s12867_s5 + $0x250] sm:$0xff]  ;;  %v7333_v47 = vld [vmem:[%s12867_s5 + $0x118] sm:$0xff] }
 0x2f9   : > { %8391 = vmatmul.mubr.msk.f32.gmra.mrb[2].mxu1 %vm997_vm0, %v1036_v48  ;;  %8475 = vmatmul.mubr.msk.f32.gmra.mrb[18].mxu0 %vm997_vm0, %v7317_v50  ;;  %v7413_v48 = vld [vmem:[%s12867_s5 + $0x258] sm:$0xff]  ;;  %v7334_v50 = vld [vmem:[%s12867_s5 + $0x120] sm:$0xff] }
 0x2fa   : > { %9469 = vmatpush3.bf16.msra.mxu1 %v10883_v19  ;;  %9533 = vmatpush3.bf16.msra.mxu0 %v10883_v19 }
 0x2fb   : > { %9471 = vmatprep.subr.bf16.mxu1 %v10894_v29  ;;  %9535 = vmatprep.subr.bf16.mxu0 %v10894_v29 }
 0x2fc   : > { %8393 = vmatprep.mubr.msk.f32.mxu1 %vm997_vm0, %v1037_v31  ;;  %8477 = vmatprep.mubr.msk.f32.mxu0 %vm997_vm0, %v7318_v30  ;;  %v7414_v31 = vld [vmem:[%s12867_s5 + $0x260] sm:$0xff]  ;;  %v7335_v30 = vld [vmem:[%s12867_s5 + $0x128] sm:$0xff] }
 0x2fd   : > { %8394 = vmatmul.mubr.msk.f32.gmra.mrb[4].mxu1 %vm997_vm0, %v1038_v52  ;;  %8478 = vmatmul.mubr.msk.f32.gmra.mrb[20].mxu0 %vm997_vm0, %v7319_v53  ;;  %v7415_v52 = vld [vmem:[%s12867_s5 + $0x268] sm:$0xff]  ;;  %v7336_v53 = vld [vmem:[%s12867_s5 + $0x130] sm:$0xff] }
 0x2fe   : > { %9473 = vmatpush3.bf16.msra.mxu1 %v10894_v29  ;;  %9537 = vmatpush3.bf16.msra.mxu0 %v10894_v29 }
 0x2ff   : > { %9475 = vmatprep.subr.bf16.mxu1 %v10904_v16  ;;  %9539 = vmatprep.subr.bf16.mxu0 %v10904_v16 }
 0x300   : > { %8396 = vmatprep.mubr.msk.f32.mxu1 %vm997_vm0, %v1039_v57  ;;  %8480 = vmatprep.mubr.msk.f32.mxu0 %vm997_vm0, %v7320_v38  ;;  %v7416_v57 = vld [vmem:[%s12867_s5 + $0x270] sm:$0xff]  ;;  %v7337_v38 = vld [vmem:[%s12867_s5 + $0x138] sm:$0xff] }
 0x301   : > { %8397 = vmatmul.mubr.msk.f32.gmra.mrb[6].mxu1 %vm997_vm0, %v1040_v39  ;;  %8481 = vmatmul.mubr.msk.f32.gmra.mrb[22].mxu0 %vm997_vm0, %v7321_v56  ;;  %v7417_v39 = vld [vmem:[%s12867_s5 + $0x278] sm:$0xff]  ;;  %v7362_v56 = vld [vmem:[%s12867_s5 + $0x180] sm:$0xff] }
 0x302   : > { %9477 = vmatpush3.bf16.msra.mxu1 %v10904_v16  ;;  %9541 = vmatpush3.bf16.msra.mxu0 %v10904_v16 }
 0x303   : > { %9479 = vmatprep.subr.bf16.mxu1 %v10874_v8  ;;  %9559 = vmatprep.subr.bf16.mxu0 %v10874_v8 }
 0x304   : > { %8415 = vmatprep.mubr.msk.f32.mxu1 %vm997_vm0, %v7282_v60  ;;  %8527 = vmatprep.mubr.msk.f32.mxu0 %vm997_vm0, %v7346_v62  ;;  %v7442_v60 = vld [vmem:[%s12867_s5 + $0x2c0] sm:$0xff]  ;;  %v7363_v62 = vld [vmem:[%s12867_s5 + $0x188] sm:$0xff] }
 0x305   : > { %8416 = vmatmul.mubr.msk.f32.vlgmr.msra.gmra.mrb[8].mxu1 %vm997_vm0, %v7283_v63  ;;  %8528 = vmatmul.mubr.msk.f32.vlgmr.msra.gmra.mrb[24].mxu0 %vm997_vm0, %v7347_v0  ;;  %v7443_v63 = vld [vmem:[%s12867_s5 + $0x2c8] sm:$0xff]  ;;  %v7364_v0 = vld [vmem:[%s12867_s5 + $0x190] sm:$0xff] }
 0x306   : > { %9481 = vmatpush3.bf16.msra.mxu1 %v10874_v8  ;;  %9561 = vmatpush3.bf16.msra.mxu0 %v10874_v8 }
 0x307   : > { %9483 = vmatprep.subr.bf16.mxu1 %v10883_v19  ;;  %9563 = vmatprep.subr.bf16.mxu0 %v10883_v19 }
 0x308   : > { %8418 = vmatprep.mubr.msk.f32.mxu1 %vm997_vm0, %v7284_v1  ;;  %8530 = vmatprep.mubr.msk.f32.mxu0 %vm997_vm0, %v7348_v2  ;;  %v7444_v1 = vld [vmem:[%s12867_s5 + $0x2d0] sm:$0xff]  ;;  %v7365_v2 = vld [vmem:[%s12867_s5 + $0x198] sm:$0xff] }
 0x309   : > { %8419 = vmatmul.mubr.msk.f32.gmra.mrb[10].mxu1 %vm997_vm0, %v7285_v3  ;;  %8531 = vmatmul.mubr.msk.f32.gmra.mrb[26].mxu0 %vm997_vm0, %v7349_v4  ;;  %v7445_v3 = vld [vmem:[%s12867_s5 + $0x2d8] sm:$0xff]  ;;  %v7366_v4 = vld [vmem:[%s12867_s5 + $0x1a0] sm:$0xff] }
 0x30a   : > { %9485 = vmatpush3.bf16.msra.mxu1 %v10883_v19  ;;  %9565 = vmatpush3.bf16.msra.mxu0 %v10883_v19 }
 0x30b   : > { %9487 = vmatprep.subr.bf16.mxu1 %v10894_v29  ;;  %9567 = vmatprep.subr.bf16.mxu0 %v10894_v29 }
 0x30c   : > { %8421 = vmatprep.mubr.msk.f32.mxu1 %vm997_vm0, %v7286_v5  ;;  %8533 = vmatprep.mubr.msk.f32.mxu0 %vm997_vm0, %v7350_v6  ;;  %v7446_v5 = vld [vmem:[%s12867_s5 + $0x2e0] sm:$0xff]  ;;  %v7367_v6 = vld [vmem:[%s12867_s5 + $0x1a8] sm:$0xff] }
 0x30d   : > { %8422 = vmatmul.mubr.msk.f32.gmra.mrb[12].mxu1 %vm997_vm0, %v7287_v7  ;;  %8534 = vmatmul.mubr.msk.f32.gmra.mrb[28].mxu0 %vm997_vm0, %v7351_v9  ;;  %v7447_v7 = vld [vmem:[%s12867_s5 + $0x2e8] sm:$0xff]  ;;  %v7368_v9 = vld [vmem:[%s12867_s5 + $0x1b0] sm:$0xff] }
 0x30e   : > { %9489 = vmatpush3.bf16.msra.mxu1 %v10894_v29  ;;  %9569 = vmatpush3.bf16.msra.mxu0 %v10894_v29 }
 0x30f   : > { %9491 = vmatprep.subr.bf16.mxu1 %v10904_v16  ;;  %9571 = vmatprep.subr.bf16.mxu0 %v10904_v16 }
 0x310   : > { %8424 = vmatprep.mubr.msk.f32.mxu1 %vm997_vm0, %v7288_v10  ;;  %8536 = vmatprep.mubr.msk.f32.mxu0 %vm997_vm0, %v7352_v11  ;;  %v7448_v10 = vld [vmem:[%s12867_s5 + $0x2f0] sm:$0xff]  ;;  %v7369_v11 = vld [vmem:[%s12867_s5 + $0x1b8] sm:$0xff] }
 0x311   : > { %8425 = vmatmul.mubr.msk.f32.gmra.mrb[14].mxu1 %vm997_vm0, %v7289_v12  ;;  %8537 = vmatmul.mubr.msk.f32.gmra.mrb[30].mxu0 %vm997_vm0, %v7353_v13  ;;  %v7449_v12 = vld [vmem:[%s12867_s5 + $0x2f8] sm:$0xff]  ;;  %v7394_v13 = vld [vmem:[%s12867_s5 + $0x200] sm:$0xff] }
 0x312   : > { %9493 = vmatpush3.bf16.msra.mxu1 %v10904_v16  ;;  %9573 = vmatpush3.bf16.msra.mxu0 %v10904_v16 }
 0x313   : > { %9511 = vmatprep.subr.bf16.mxu1 %v10874_v8  ;;  %9591 = vmatprep.subr.bf16.mxu0 %v10874_v8 }
 0x314   : > { %8443 = vmatprep.mubr.msk.f32.mxu1 %vm997_vm0, %v7298_v14  ;;  %8583 = vmatprep.mubr.msk.f32.mxu0 %vm997_vm0, %v7378_v17  ;;  %v7474_v14 = vld [vmem:[%s12867_s5 + $0x340] sm:$0xff]  ;;  %v7395_v17 = vld [vmem:[%s12867_s5 + $0x208] sm:$0xff] }
 0x315   : > { %8444 = vmatmul.mubr.msk.f32.vlgmr.msra.gmra.mrb[16].mxu1 %vm997_vm0, %v7299_v18  ;;  %8584 = vmatmul.mubr.msk.f32.vlgmr.msra.gmra.mrb[32].mxu0 %vm997_vm0, %v7379_v20  ;;  %v7475_v18 = vld [vmem:[%s12867_s5 + $0x348] sm:$0xff]  ;;  %v7396_v20 = vld [vmem:[%s12867_s5 + $0x210] sm:$0xff] }
 0x316   : > { %9513 = vmatpush3.bf16.msra.mxu1 %v10874_v8  ;;  %9593 = vmatpush3.bf16.msra.mxu0 %v10874_v8 }
 0x317   : > { %9515 = vmatprep.subr.bf16.mxu1 %v10883_v19  ;;  %9595 = vmatprep.subr.bf16.mxu0 %v10883_v19 }
 0x318   : > { %8446 = vmatprep.mubr.msk.f32.mxu1 %vm997_vm0, %v7300_v21  ;;  %8586 = vmatprep.mubr.msk.f32.mxu0 %vm997_vm0, %v7380_v24  ;;  %v7476_v21 = vld [vmem:[%s12867_s5 + $0x350] sm:$0xff]  ;;  %v7397_v24 = vld [vmem:[%s12867_s5 + $0x218] sm:$0xff] }
 0x319   : > { %8447 = vmatmul.mubr.msk.f32.gmra.mrb[18].mxu1 %vm997_vm0, %v7301_v25  ;;  %8587 = vmatmul.mubr.msk.f32.gmra.mrb[34].mxu0 %vm997_vm0, %v7381_v26  ;;  %v7477_v25 = vld [vmem:[%s12867_s5 + $0x358] sm:$0xff]  ;;  %v7398_v26 = vld [vmem:[%s12867_s5 + $0x220] sm:$0xff] }
 0x31a   : > { %9517 = vmatpush3.bf16.msra.mxu1 %v10883_v19  ;;  %9597 = vmatpush3.bf16.msra.mxu0 %v10883_v19 }
 0x31b   : > { %9519 = vmatprep.subr.bf16.mxu1 %v10894_v29  ;;  %9599 = vmatprep.subr.bf16.mxu0 %v10894_v29 }
 0x31c   : > { %8449 = vmatprep.mubr.msk.f32.mxu1 %vm997_vm0, %v7302_v27  ;;  %8589 = vmatprep.mubr.msk.f32.mxu0 %vm997_vm0, %v7382_v28  ;;  %v7478_v27 = vld [vmem:[%s12867_s5 + $0x360] sm:$0xff]  ;;  %v7399_v28 = vld [vmem:[%s12867_s5 + $0x228] sm:$0xff] }
 0x31d   : > { %8450 = vmatmul.mubr.msk.f32.gmra.mrb[20].mxu1 %vm997_vm0, %v7303_v15  ;;  %8590 = vmatmul.mubr.msk.f32.gmra.mrb[36].mxu0 %vm997_vm0, %v7383_v34  ;;  %v7479_v15 = vld [vmem:[%s12867_s5 + $0x368] sm:$0xff]  ;;  %v7400_v34 = vld [vmem:[%s12867_s5 + $0x230] sm:$0xff] }
 0x31e   : > { %9521 = vmatpush3.bf16.msra.mxu1 %v10894_v29  ;;  %9601 = vmatpush3.bf16.msra.mxu0 %v10894_v29 }
 0x31f   : > { %9523 = vmatprep.subr.bf16.mxu1 %v10904_v16  ;;  %9603 = vmatprep.subr.bf16.mxu0 %v10904_v16 }
 0x320   : > { %8452 = vmatprep.mubr.msk.f32.mxu1 %vm997_vm0, %v7304_v35  ;;  %8592 = vmatprep.mubr.msk.f32.mxu0 %vm997_vm0, %v7384_v22  ;;  %v7480_v35 = vld [vmem:[%s12867_s5 + $0x370] sm:$0xff]  ;;  %v7401_v22 = vld [vmem:[%s12867_s5 + $0x238] sm:$0xff] }
 0x321   : > { %8453 = vmatmul.mubr.msk.f32.gmra.mrb[22].mxu1 %vm997_vm0, %v7305_v36  ;;  %8593 = vmatmul.mubr.msk.f32.gmra.mrb[38].mxu0 %vm997_vm0, %v7385_v37  ;;  %v7481_v36 = vld [vmem:[%s12867_s5 + $0x378] sm:$0xff]  ;;  %v7426_v37 = vld [vmem:[%s12867_s5 + $0x280] sm:$0xff] }
 0x322   : > { %9525 = vmatpush3.bf16.msra.mxu1 %v10904_v16  ;;  %9605 = vmatpush3.bf16.msra.mxu0 %v10904_v16 }
 0x323   : > { %9543 = vmatprep.subr.bf16.mxu1 %v10874_v8  ;;  %9623 = vmatprep.subr.bf16.mxu0 %v10874_v8 }
 0x324   : > { %8499 = vmatprep.mubr.msk.f32.mxu1 %vm997_vm0, %v7330_v40  ;;  %8639 = vmatprep.mubr.msk.f32.mxu0 %vm997_vm0, %v7410_v41  ;;  %v7506_v40 = vld [vmem:[%s12867_s5 + $0x3c0] sm:$0xff]  ;;  %v7427_v41 = vld [vmem:[%s12867_s5 + $0x288] sm:$0xff] }
 0x325   : > { %8500 = vmatmul.mubr.msk.f32.vlgmr.msra.gmra.mrb[24].mxu1 %vm997_vm0, %v7331_v43  ;;  %8640 = vmatmul.mubr.msk.f32.vlgmr.msra.gmra.mrb[40].mxu0 %vm997_vm0, %v7411_v23  ;;  %v7507_v43 = vld [vmem:[%s12867_s5 + $0x3c8] sm:$0xff]  ;;  %v7428_v23 = vld [vmem:[%s12867_s5 + $0x290] sm:$0xff] }
 0x326   : > { %9545 = vmatpush3.bf16.msra.mxu1 %v10874_v8  ;;  %9625 = vmatpush3.bf16.msra.mxu0 %v10874_v8 }
 0x327   : > { %9547 = vmatprep.subr.bf16.mxu1 %v10883_v19  ;;  %9627 = vmatprep.subr.bf16.mxu0 %v10883_v19 }
 0x328   : > { %8502 = vmatprep.mubr.msk.f32.mxu1 %vm997_vm0, %v7332_v45  ;;  %8642 = vmatprep.mubr.msk.f32.mxu0 %vm997_vm0, %v7412_v46  ;;  %v7508_v45 = vld [vmem:[%s12867_s5 + $0x3d0] sm:$0xff]  ;;  %v7429_v46 = vld [vmem:[%s12867_s5 + $0x298] sm:$0xff] }
 0x329   : > { %8503 = vmatmul.mubr.msk.f32.gmra.mrb[26].mxu1 %vm997_vm0, %v7333_v47  ;;  %8643 = vmatmul.mubr.msk.f32.gmra.mrb[42].mxu0 %vm997_vm0, %v7413_v48  ;;  %v7509_v47 = vld [vmem:[%s12867_s5 + $0x3d8] sm:$0xff]  ;;  %v7430_v48 = vld [vmem:[%s12867_s5 + $0x2a0] sm:$0xff] }
 0x32a   : > { %9549 = vmatpush3.bf16.msra.mxu1 %v10883_v19  ;;  %9629 = vmatpush3.bf16.msra.mxu0 %v10883_v19 }
 0x32b   : > { %9551 = vmatprep.subr.bf16.mxu1 %v10894_v29  ;;  %9631 = vmatprep.subr.bf16.mxu0 %v10894_v29 }
 0x32c   : > { %8505 = vmatprep.mubr.msk.f32.mxu1 %vm997_vm0, %v7334_v50  ;;  %8645 = vmatprep.mubr.msk.f32.mxu0 %vm997_vm0, %v7414_v31  ;;  %v7510_v50 = vld [vmem:[%s12867_s5 + $0x3e0] sm:$0xff]  ;;  %v7431_v31 = vld [vmem:[%s12867_s5 + $0x2a8] sm:$0xff] }
 0x32d   : > { %8506 = vmatmul.mubr.msk.f32.gmra.mrb[28].mxu1 %vm997_vm0, %v7335_v30  ;;  %8646 = vmatmul.mubr.msk.f32.gmra.mrb[44].mxu0 %vm997_vm0, %v7415_v52  ;;  %v7511_v30 = vld [vmem:[%s12867_s5 + $0x3e8] sm:$0xff]  ;;  %v7432_v52 = vld [vmem:[%s12867_s5 + $0x2b0] sm:$0xff] }
 0x32e   : > { %9553 = vmatpush3.bf16.msra.mxu1 %v10894_v29  ;;  %9633 = vmatpush3.bf16.msra.mxu0 %v10894_v29 }
 0x32f   : > { %9555 = vmatprep.subr.bf16.mxu1 %v10904_v16  ;;  %9635 = vmatprep.subr.bf16.mxu0 %v10904_v16 }
 0x330   : > { %8508 = vmatprep.mubr.msk.f32.mxu1 %vm997_vm0, %v7336_v53  ;;  %8648 = vmatprep.mubr.msk.f32.mxu0 %vm997_vm0, %v7416_v57  ;;  %v7512_v53 = vld [vmem:[%s12867_s5 + $0x3f0] sm:$0xff]  ;;  %v7433_v57 = vld [vmem:[%s12867_s5 + $0x2b8] sm:$0xff] }
 0x331   : > { %8509 = vmatmul.mubr.msk.f32.gmra.mrb[30].mxu1 %vm997_vm0, %v7337_v38  ;;  %8649 = vmatmul.mubr.msk.f32.gmra.mrb[46].mxu0 %vm997_vm0, %v7417_v39  ;;  %v7513_v38 = vld [vmem:[%s12867_s5 + $0x3f8] sm:$0xff]  ;;  %v7458_v39 = vld [vmem:[%s12867_s5 + $0x300] sm:$0xff] }
 0x332   : > { %9557 = vmatpush3.bf16.msra.mxu1 %v10904_v16  ;;  %9637 = vmatpush3.bf16.msra.mxu0 %v10904_v16 }
 0x333   : > { %9575 = vmatprep.subr.bf16.mxu1 %v10874_v8  ;;  %9655 = vmatprep.subr.bf16.mxu0 %v10874_v8 }
 0x334   : > { %8555 = vmatprep.mubr.msk.f32.mxu1 %vm997_vm0, %v7362_v56  ;;  %8695 = vmatprep.mubr.msk.f32.mxu0 %vm997_vm0, %v7442_v60  ;;  %v7538_v56 = vld [vmem:[%s12867_s5 + $0x440] sm:$0xff]  ;;  %v7459_v60 = vld [vmem:[%s12867_s5 + $0x308] sm:$0xff] }
 0x335   : > { %8556 = vmatmul.mubr.msk.f32.vlgmr.msra.gmra.mrb[32].mxu1 %vm997_vm0, %v7363_v62  ;;  %8696 = vmatmul.mubr.msk.f32.vlgmr.msra.gmra.mrb[48].mxu0 %vm997_vm0, %v7443_v63  ;;  %v7539_v62 = vld [vmem:[%s12867_s5 + $0x448] sm:$0xff]  ;;  %v7460_v63 = vld [vmem:[%s12867_s5 + $0x310] sm:$0xff] }
 0x336   : > { %9577 = vmatpush3.bf16.msra.mxu1 %v10874_v8  ;;  %9657 = vmatpush3.bf16.msra.mxu0 %v10874_v8 }
 0x337   : > { %9579 = vmatprep.subr.bf16.mxu1 %v10883_v19  ;;  %9659 = vmatprep.subr.bf16.mxu0 %v10883_v19 }
 0x338   : > { %8558 = vmatprep.mubr.msk.f32.mxu1 %vm997_vm0, %v7364_v0  ;;  %8698 = vmatprep.mubr.msk.f32.mxu0 %vm997_vm0, %v7444_v1  ;;  %v7540_v0 = vld [vmem:[%s12867_s5 + $0x450] sm:$0xff]  ;;  %v7461_v1 = vld [vmem:[%s12867_s5 + $0x318] sm:$0xff] }
 0x339   : > { %8559 = vmatmul.mubr.msk.f32.gmra.mrb[34].mxu1 %vm997_vm0, %v7365_v2  ;;  %8699 = vmatmul.mubr.msk.f32.gmra.mrb[50].mxu0 %vm997_vm0, %v7445_v3  ;;  %v7541_v2 = vld [vmem:[%s12867_s5 + $0x458] sm:$0xff]  ;;  %v7462_v3 = vld [vmem:[%s12867_s5 + $0x320] sm:$0xff] }
 0x33a   : > { %9581 = vmatpush3.bf16.msra.mxu1 %v10883_v19  ;;  %9661 = vmatpush3.bf16.msra.mxu0 %v10883_v19 }
 0x33b   : > { %9583 = vmatprep.subr.bf16.mxu1 %v10894_v29  ;;  %9663 = vmatprep.subr.bf16.mxu0 %v10894_v29 }
 0x33c   : > { %8561 = vmatprep.mubr.msk.f32.mxu1 %vm997_vm0, %v7366_v4  ;;  %8701 = vmatprep.mubr.msk.f32.mxu0 %vm997_vm0, %v7446_v5  ;;  %v7542_v4 = vld [vmem:[%s12867_s5 + $0x460] sm:$0xff]  ;;  %v7463_v5 = vld [vmem:[%s12867_s5 + $0x328] sm:$0xff] }
 0x33d   : > { %8562 = vmatmul.mubr.msk.f32.gmra.mrb[36].mxu1 %vm997_vm0, %v7367_v6  ;;  %8702 = vmatmul.mubr.msk.f32.gmra.mrb[52].mxu0 %vm997_vm0, %v7447_v7  ;;  %v7543_v6 = vld [vmem:[%s12867_s5 + $0x468] sm:$0xff]  ;;  %v7464_v7 = vld [vmem:[%s12867_s5 + $0x330] sm:$0xff] }
 0x33e   : > { %9585 = vmatpush3.bf16.msra.mxu1 %v10894_v29  ;;  %9665 = vmatpush3.bf16.msra.mxu0 %v10894_v29 }
 0x33f   : > { %9587 = vmatprep.subr.bf16.mxu1 %v10904_v16  ;;  %9667 = vmatprep.subr.bf16.mxu0 %v10904_v16 }
 0x340   : > { %8564 = vmatprep.mubr.msk.f32.mxu1 %vm997_vm0, %v7368_v9  ;;  %8704 = vmatprep.mubr.msk.f32.mxu0 %vm997_vm0, %v7448_v10  ;;  %v7544_v9 = vld [vmem:[%s12867_s5 + $0x470] sm:$0xff]  ;;  %v7465_v10 = vld [vmem:[%s12867_s5 + $0x338] sm:$0xff] }
 0x341   : > { %8565 = vmatmul.mubr.msk.f32.gmra.mrb[38].mxu1 %vm997_vm0, %v7369_v11  ;;  %8705 = vmatmul.mubr.msk.f32.gmra.mrb[54].mxu0 %vm997_vm0, %v7449_v12  ;;  %v7545_v11 = vld [vmem:[%s12867_s5 + $0x478] sm:$0xff]  ;;  %v7490_v12 = vld [vmem:[%s12867_s5 + $0x380] sm:$0xff] }
 0x342   : > { %9589 = vmatpush3.bf16.msra.mxu1 %v10904_v16  ;;  %9669 = vmatpush3.bf16.msra.mxu0 %v10904_v16 }
 0x343   : > { %9607 = vmatprep.subr.bf16.mxu1 %v10874_v8  ;;  %9687 = vmatprep.subr.bf16.mxu0 %v10874_v8 }
 0x344   : > { %8611 = vmatprep.mubr.msk.f32.mxu1 %vm997_vm0, %v7394_v13  ;;  %8751 = vmatprep.mubr.msk.f32.mxu0 %vm997_vm0, %v7474_v14  ;;  %v7570_v13 = vld [vmem:[%s12867_s5 + $0x4c0] sm:$0xff]  ;;  %v7491_v14 = vld [vmem:[%s12867_s5 + $0x388] sm:$0xff] }
 0x345   : > { %8612 = vmatmul.mubr.msk.f32.vlgmr.msra.gmra.mrb[40].mxu1 %vm997_vm0, %v7395_v17  ;;  %8752 = vmatmul.mubr.msk.f32.vlgmr.msra.gmra.mrb[56].mxu0 %vm997_vm0, %v7475_v18  ;;  %v7571_v17 = vld [vmem:[%s12867_s5 + $0x4c8] sm:$0xff]  ;;  %v7492_v18 = vld [vmem:[%s12867_s5 + $0x390] sm:$0xff] }
 0x346   : > { %9609 = vmatpush3.bf16.msra.mxu1 %v10874_v8  ;;  %9689 = vmatpush3.bf16.msra.mxu0 %v10874_v8 }
 0x347   : > { %9611 = vmatprep.subr.bf16.mxu1 %v10883_v19  ;;  %9691 = vmatprep.subr.bf16.mxu0 %v10883_v19 }
 0x348   : > { %8614 = vmatprep.mubr.msk.f32.mxu1 %vm997_vm0, %v7396_v20  ;;  %8754 = vmatprep.mubr.msk.f32.mxu0 %vm997_vm0, %v7476_v21  ;;  %v7572_v20 = vld [vmem:[%s12867_s5 + $0x4d0] sm:$0xff]  ;;  %v7493_v21 = vld [vmem:[%s12867_s5 + $0x398] sm:$0xff] }
 0x349   : > { %8615 = vmatmul.mubr.msk.f32.gmra.mrb[42].mxu1 %vm997_vm0, %v7397_v24  ;;  %8755 = vmatmul.mubr.msk.f32.gmra.mrb[58].mxu0 %vm997_vm0, %v7477_v25  ;;  %v7573_v24 = vld [vmem:[%s12867_s5 + $0x4d8] sm:$0xff]  ;;  %v7494_v25 = vld [vmem:[%s12867_s5 + $0x3a0] sm:$0xff] }
 0x34a   : > { %9613 = vmatpush3.bf16.msra.mxu1 %v10883_v19  ;;  %9693 = vmatpush3.bf16.msra.mxu0 %v10883_v19 }
 0x34b   : > { %9615 = vmatprep.subr.bf16.mxu1 %v10894_v29  ;;  %9695 = vmatprep.subr.bf16.mxu0 %v10894_v29 }
 0x34c   : > { %8617 = vmatprep.mubr.msk.f32.mxu1 %vm997_vm0, %v7398_v26  ;;  %8757 = vmatprep.mubr.msk.f32.mxu0 %vm997_vm0, %v7478_v27  ;;  %v7574_v26 = vld [vmem:[%s12867_s5 + $0x4e0] sm:$0xff]  ;;  %v7495_v27 = vld [vmem:[%s12867_s5 + $0x3a8] sm:$0xff] }
 0x34d   : > { %8618 = vmatmul.mubr.msk.f32.gmra.mrb[44].mxu1 %vm997_vm0, %v7399_v28  ;;  %8758 = vmatmul.mubr.msk.f32.gmra.mrb[60].mxu0 %vm997_vm0, %v7479_v15  ;;  %v7575_v28 = vld [vmem:[%s12867_s5 + $0x4e8] sm:$0xff]  ;;  %v7496_v15 = vld [vmem:[%s12867_s5 + $0x3b0] sm:$0xff] }
 0x34e   : > { %9617 = vmatpush3.bf16.msra.mxu1 %v10894_v29  ;;  %9697 = vmatpush3.bf16.msra.mxu0 %v10894_v29 }
 0x34f   : > { %9619 = vmatprep.subr.bf16.mxu1 %v10904_v16  ;;  %9699 = vmatprep.subr.bf16.mxu0 %v10904_v16 }
 0x350   : > { %8620 = vmatprep.mubr.msk.f32.mxu1 %vm997_vm0, %v7400_v34  ;;  %8760 = vmatprep.mubr.msk.f32.mxu0 %vm997_vm0, %v7480_v35  ;;  %v7576_v34 = vld [vmem:[%s12867_s5 + $0x4f0] sm:$0xff]  ;;  %v7497_v35 = vld [vmem:[%s12867_s5 + $0x3b8] sm:$0xff] }
 0x351   : > { %8621 = vmatmul.mubr.msk.f32.gmra.mrb[46].mxu1 %vm997_vm0, %v7401_v22  ;;  %8761 = vmatmul.mubr.msk.f32.gmra.mrb[62].mxu0 %vm997_vm0, %v7481_v36  ;;  %v7577_v22 = vld [vmem:[%s12867_s5 + $0x4f8] sm:$0xff]  ;;  %v7522_v36 = vld [vmem:[%s12867_s5 + $0x400] sm:$0xff] }
 0x352   : > { %9621 = vmatpush3.bf16.msra.mxu1 %v10904_v16  ;;  %9701 = vmatpush3.bf16.msra.mxu0 %v10904_v16 }
 0x353   : > { %9639 = vmatprep.subr.bf16.mxu1 %v10874_v8  ;;  %9719 = vmatprep.subr.bf16.mxu0 %v10874_v8 }
 0x354   : > { %8667 = vmatprep.mubr.msk.f32.mxu1 %vm997_vm0, %v7426_v37  ;;  %8807 = vmatprep.mubr.msk.f32.mxu0 %vm997_vm0, %v7506_v40  ;;  %v7602_v37 = vld [vmem:[%s12867_s5 + $0x540] sm:$0xff]  ;;  %v7523_v40 = vld [vmem:[%s12867_s5 + $0x408] sm:$0xff] }
 0x355   : > { %8668 = vmatmul.mubr.msk.f32.vlgmr.msra.gmra.mrb[48].mxu1 %vm997_vm0, %v7427_v41  ;;  %8808 = vmatmul.mubr.msk.f32.vlgmr.msra.gmra.mrb[64].mxu0 %vm997_vm0, %v7507_v43  ;;  %v7603_v41 = vld [vmem:[%s12867_s5 + $0x548] sm:$0xff]  ;;  %v7524_v43 = vld [vmem:[%s12867_s5 + $0x410] sm:$0xff] }
 0x356   : > { %9641 = vmatpush3.bf16.msra.mxu1 %v10874_v8  ;;  %9721 = vmatpush3.bf16.msra.mxu0 %v10874_v8 }
 0x357   : > { %9643 = vmatprep.subr.bf16.mxu1 %v10883_v19  ;;  %9723 = vmatprep.subr.bf16.mxu0 %v10883_v19 }
 0x358   : > { %8670 = vmatprep.mubr.msk.f32.mxu1 %vm997_vm0, %v7428_v23  ;;  %8810 = vmatprep.mubr.msk.f32.mxu0 %vm997_vm0, %v7508_v45  ;;  %v7604_v23 = vld [vmem:[%s12867_s5 + $0x550] sm:$0xff]  ;;  %v7525_v45 = vld [vmem:[%s12867_s5 + $0x418] sm:$0xff] }
 0x359   : > { %8671 = vmatmul.mubr.msk.f32.gmra.mrb[50].mxu1 %vm997_vm0, %v7429_v46  ;;  %8811 = vmatmul.mubr.msk.f32.gmra.mrb[66].mxu0 %vm997_vm0, %v7509_v47  ;;  %v7605_v46 = vld [vmem:[%s12867_s5 + $0x558] sm:$0xff]  ;;  %v7526_v47 = vld [vmem:[%s12867_s5 + $0x420] sm:$0xff] }
 0x35a   : > { %9645 = vmatpush3.bf16.msra.mxu1 %v10883_v19  ;;  %9725 = vmatpush3.bf16.msra.mxu0 %v10883_v19 }
 0x35b   : > { %9647 = vmatprep.subr.bf16.mxu1 %v10894_v29  ;;  %9727 = vmatprep.subr.bf16.mxu0 %v10894_v29 }
 0x35c   : > { %8673 = vmatprep.mubr.msk.f32.mxu1 %vm997_vm0, %v7430_v48  ;;  %8813 = vmatprep.mubr.msk.f32.mxu0 %vm997_vm0, %v7510_v50  ;;  %v7606_v48 = vld [vmem:[%s12867_s5 + $0x560] sm:$0xff]  ;;  %v7527_v50 = vld [vmem:[%s12867_s5 + $0x428] sm:$0xff] }
 0x35d   : > { %8674 = vmatmul.mubr.msk.f32.gmra.mrb[52].mxu1 %vm997_vm0, %v7431_v31  ;;  %8814 = vmatmul.mubr.msk.f32.gmra.mrb[68].mxu0 %vm997_vm0, %v7511_v30  ;;  %v7607_v31 = vld [vmem:[%s12867_s5 + $0x568] sm:$0xff]  ;;  %v7528_v30 = vld [vmem:[%s12867_s5 + $0x430] sm:$0xff] }
 0x35e   : > { %9649 = vmatpush3.bf16.msra.mxu1 %v10894_v29  ;;  %9729 = vmatpush3.bf16.msra.mxu0 %v10894_v29 }
 0x35f   : > { %9651 = vmatprep.subr.bf16.mxu1 %v10904_v16  ;;  %9731 = vmatprep.subr.bf16.mxu0 %v10904_v16 }
 0x360   : > { %8676 = vmatprep.mubr.msk.f32.mxu1 %vm997_vm0, %v7432_v52  ;;  %8816 = vmatprep.mubr.msk.f32.mxu0 %vm997_vm0, %v7512_v53  ;;  %v7608_v52 = vld [vmem:[%s12867_s5 + $0x570] sm:$0xff]  ;;  %v7529_v53 = vld [vmem:[%s12867_s5 + $0x438] sm:$0xff] }
 0x361   : > { %8677 = vmatmul.mubr.msk.f32.gmra.mrb[54].mxu1 %vm997_vm0, %v7433_v57  ;;  %8817 = vmatmul.mubr.msk.f32.gmra.mrb[70].mxu0 %vm997_vm0, %v7513_v38  ;;  %v7609_v57 = vld [vmem:[%s12867_s5 + $0x578] sm:$0xff]  ;;  %v7554_v38 = vld [vmem:[%s12867_s5 + $0x480] sm:$0xff] }
 0x362   : > { %9653 = vmatpush3.bf16.msra.mxu1 %v10904_v16  ;;  %9733 = vmatpush3.bf16.msra.mxu0 %v10904_v16 }
 0x363   : > { %9671 = vmatprep.subr.bf16.mxu1 %v10874_v8  ;;  %9751 = vmatprep.subr.bf16.mxu0 %v10874_v8 }
 0x364   : > { %8723 = vmatprep.mubr.msk.f32.mxu1 %vm997_vm0, %v7458_v39  ;;  %8863 = vmatprep.mubr.msk.f32.mxu0 %vm997_vm0, %v7538_v56  ;;  %v7634_v39 = vld [vmem:[%s12867_s5 + $0x5c0] sm:$0xff]  ;;  %v1022_v56 = vld [vmem:[#allocation2 + $0x18] sm:$0xff] }
 0x365   : > { %8724 = vmatmul.mubr.msk.f32.vlgmr.msra.gmra.mrb[56].mxu1 %vm997_vm0, %v7459_v60  ;;  %8864 = vmatmul.mubr.msk.f32.vlgmr.msra.gmra.mrb[72].mxu0 %vm997_vm0, %v7539_v62  ;;  %v7555_v60 = vld [vmem:[%s12867_s5 + $0x488] sm:$0xff] }
 0x366   : > { %9673 = vmatpush3.bf16.msra.mxu1 %v10874_v8  ;;  %9753 = vmatpush3.bf16.msra.mxu0 %v10874_v8  ;;  %v7635_v62 = vld [vmem:[%s12867_s5 + $0x5c8] sm:$0xff] }
 0x367   : > { %9675 = vmatprep.subr.bf16.mxu1 %v10883_v19  ;;  %9755 = vmatprep.subr.bf16.mxu0 %v10883_v19 }
 0x368   : > { %8726 = vmatprep.mubr.msk.f32.mxu1 %vm997_vm0, %v7460_v63  ;;  %8866 = vmatprep.mubr.msk.f32.mxu0 %vm997_vm0, %v7540_v0  ;;  %v1021_v63 = vld [vmem:[#allocation2 + $0x8] sm:$0xff]  ;;  %v12902_v0 = vmov 0.0|0.0  }
 0x369   : > { %8727 = vmatmul.mubr.msk.f32.gmra.mrb[58].mxu1 %vm997_vm0, %v7461_v1  ;;  %8867 = vmatmul.mubr.msk.f32.gmra.mrb[74].mxu0 %vm997_vm0, %v7541_v2  ;;  %v11719_v1 = vpack.c.bf16 %v1022_v56, %v1021_v63  ;;  %v7556_v2 = vld [vmem:[%s12867_s5 + $0x490] sm:$0xff]  ;;  %v7654_v56 = vld [vmem:[%s12867_s5 + $0x620] sm:$0xff] }
 0x36a   : > { %9677 = vmatpush3.bf16.msra.mxu1 %v10883_v19  ;;  %9757 = vmatpush3.bf16.msra.mxu0 %v10883_v19 }
 0x36b   : > { %9679 = vmatprep.subr.bf16.mxu1 %v10894_v29  ;;  %9759 = vmatprep.subr.bf16.mxu0 %v10894_v29 }
 0x36c   : > { %8729 = vmatprep.mubr.msk.f32.mxu1 %vm997_vm0, %v7462_v3  ;;  %8869 = vmatprep.mubr.msk.f32.mxu0 %vm997_vm0, %v7542_v4  ;;  %v1024_v3 = vld [vmem:[#allocation2 + $0x38] sm:$0xff]  ;;  %v7636_v4 = vld [vmem:[%s12867_s5 + $0x5d0] sm:$0xff] }
 0x36d   : > { %8730 = vmatmul.mubr.msk.f32.gmra.mrb[60].mxu1 %vm997_vm0, %v7463_v5  ;;  %8870 = vmatmul.mubr.msk.f32.gmra.mrb[76].mxu0 %vm997_vm0, %v7543_v6  ;;  %v7557_v5 = vld [vmem:[%s12867_s5 + $0x498] sm:$0xff] }
 0x36e   : > { %9681 = vmatpush3.bf16.msra.mxu1 %v10894_v29  ;;  %9761 = vmatpush3.bf16.msra.mxu0 %v10894_v29  ;;  %v7637_v6 = vld [vmem:[%s12867_s5 + $0x5d8] sm:$0xff] }
 0x36f   : > { %9683 = vmatprep.subr.bf16.mxu1 %v10904_v16  ;;  %9763 = vmatprep.subr.bf16.mxu0 %v10904_v16 }
 0x370   : > { %8732 = vmatprep.mubr.msk.f32.mxu1 %vm997_vm0, %v7464_v7  ;;  %8872 = vmatprep.mubr.msk.f32.mxu0 %vm997_vm0, %v7544_v9  ;;  %v1023_v7 = vld [vmem:[#allocation2 + $0x28] sm:$0xff] }
 0x371   : > { %8733 = vmatmul.mubr.msk.f32.gmra.mrb[62].mxu1 %vm997_vm0, %v7465_v10  ;;  %8873 = vmatmul.mubr.msk.f32.gmra.mrb[78].mxu0 %vm997_vm0, %v7545_v11  ;;  %v11740_v9 = vpack.c.bf16 %v1024_v3, %v1023_v7  ;;  %v7558_v10 = vld [vmem:[%s12867_s5 + $0x4a0] sm:$0xff]  ;;  %v1026_v11 = vld [vmem:[#allocation2 + $0x58] sm:$0xff]  ;;  %v7656_v3 = vld [vmem:[%s12867_s5 + $0x630] sm:$0xff] }
 0x372   : > { %9685 = vmatpush3.bf16.msra.mxu1 %v10904_v16  ;;  %9765 = vmatpush3.bf16.msra.mxu0 %v10904_v16 }
 0x373   : > { %9703 = vmatprep.subr.bf16.mxu1 %v10874_v8  ;;  %9783 = vmatprep.subr.bf16.mxu0 %v10874_v8 }
 0x374   : > { %8779 = vmatprep.mubr.msk.f32.mxu1 %vm997_vm0, %v7490_v12  ;;  %8919 = vmatprep.mubr.msk.f32.mxu0 %vm997_vm0, %v7570_v13  ;;  %v7638_v12 = vld [vmem:[%s12867_s5 + $0x5e0] sm:$0xff]  ;;  %v7559_v13 = vld [vmem:[%s12867_s5 + $0x4a8] sm:$0xff] }
 0x375   : > { %8780 = vmatmul.mubr.msk.f32.vlgmr.msra.gmra.mrb[64].mxu1 %vm997_vm0, %v7491_v14  ;;  %8920 = vmatmul.mubr.msk.f32.vlgmr.msra.gmra.mrb[80].mxu0 %vm997_vm0, %v7571_v17  ;;  %v7639_v14 = vld [vmem:[%s12867_s5 + $0x5e8] sm:$0xff] }
 0x376   : > { %9705 = vmatpush3.bf16.msra.mxu1 %v10874_v8  ;;  %9785 = vmatpush3.bf16.msra.mxu0 %v10874_v8  ;;  %v1025_v17 = vld [vmem:[#allocation2 + $0x48] sm:$0xff] }
 0x377   : > { %9707 = vmatprep.subr.bf16.mxu1 %v10883_v19  ;;  %9787 = vmatprep.subr.bf16.mxu0 %v10883_v19 }
 0x378   : > { %8782 = vmatprep.mubr.msk.f32.mxu1 %vm997_vm0, %v7492_v18  ;;  %8922 = vmatprep.mubr.msk.f32.mxu0 %vm997_vm0, %v7572_v20  ;;  %v11762_v18 = vpack.c.bf16 %v1026_v11, %v1025_v17  ;;  %v7560_v20 = vld [vmem:[%s12867_s5 + $0x4b0] sm:$0xff]  ;;  %v5163_v17 = vld [vmem:[#allocation7] sm:$0xff] }
 0x379   : > { %8783 = vmatmul.mubr.msk.f32.gmra.mrb[66].mxu1 %vm997_vm0, %v7493_v21  ;;  %8923 = vmatmul.mubr.msk.f32.gmra.mrb[82].mxu0 %vm997_vm0, %v7573_v24  ;;  %v1028_v21 = vld [vmem:[#allocation2 + $0x78] sm:$0xff]  ;;  %v7640_v24 = vld [vmem:[%s12867_s5 + $0x5f0] sm:$0xff] }
 0x37a   : > { %9709 = vmatpush3.bf16.msra.mxu1 %v10883_v19  ;;  %9789 = vmatpush3.bf16.msra.mxu0 %v10883_v19 }
 0x37b   : > { %9711 = vmatprep.subr.bf16.mxu1 %v10894_v29  ;;  %9791 = vmatprep.subr.bf16.mxu0 %v10894_v29 }
 0x37c   : > { %8785 = vmatprep.mubr.msk.f32.mxu1 %vm997_vm0, %v7494_v25  ;;  %8925 = vmatprep.mubr.msk.f32.mxu0 %vm997_vm0, %v7574_v26  ;;  %v7561_v25 = vld [vmem:[%s12867_s5 + $0x4b8] sm:$0xff] }
 0x37d   : > { %8786 = vmatmul.mubr.msk.f32.gmra.mrb[68].mxu1 %vm997_vm0, %v7495_v27  ;;  %8926 = vmatmul.mubr.msk.f32.gmra.mrb[84].mxu0 %vm997_vm0, %v7575_v28  ;;  %v7641_v26 = vld [vmem:[%s12867_s5 + $0x5f8] sm:$0xff]  ;;  %v1027_v27 = vld [vmem:[#allocation2 + $0x68] sm:$0xff] }
 0x37e   : > { %9713 = vmatpush3.bf16.msra.mxu1 %v10894_v29  ;;  %9793 = vmatpush3.bf16.msra.mxu0 %v10894_v29  ;;  %v11784_v28 = vpack.c.bf16 %v1028_v21, %v1027_v27  ;;  %v5164_v27 = vld [vmem:[#allocation7 + $0x8] sm:$0xff] }
 0x37f   : > { %9715 = vmatprep.subr.bf16.mxu1 %v10904_v16  ;;  %9795 = vmatprep.subr.bf16.mxu0 %v10904_v16 }
 0x380   : > { %8788 = vmatprep.mubr.msk.f32.mxu1 %vm997_vm0, %v7496_v15  ;;  %8928 = vmatprep.mubr.msk.f32.mxu0 %vm997_vm0, %v7576_v34  ;;  %v7586_v15 = vld [vmem:[%s12867_s5 + $0x500] sm:$0xff]  ;;  %v7587_v34 = vld [vmem:[%s12867_s5 + $0x508] sm:$0xff] }
 0x381   : > { %8789 = vmatmul.mubr.msk.f32.gmra.mrb[70].mxu1 %vm997_vm0, %v7497_v35  ;;  %8929 = vmatmul.mubr.msk.f32.gmra.mrb[86].mxu0 %vm997_vm0, %v7577_v22  ;;  %v5053_v35 = vld [vmem:[%s12870_s8] sm:$0xff]  ;;  %v7588_v22 = vld [vmem:[%s12867_s5 + $0x510] sm:$0xff] }
 0x382   : > { %9717 = vmatpush3.bf16.msra.mxu1 %v10904_v16  ;;  %9797 = vmatpush3.bf16.msra.mxu0 %v10904_v16 }
 0x383   : > { %9735 = vmatprep.subr.bf16.mxu1 %v10874_v8  ;;  %9815 = vmatprep.subr.bf16.mxu0 %v10874_v8 }
 0x384   : > { %8835 = vmatprep.mubr.msk.f32.mxu1 %vm997_vm0, %v7522_v36  ;;  %8975 = vmatprep.mubr.msk.f32.mxu0 %vm997_vm0, %v7602_v37  ;;  %v12900_v36 = vmov 0.0   ;;  %v7589_v37 = vld [vmem:[%s12867_s5 + $0x518] sm:$0xff] }
 0x385   : > { %8836 = vmatmul.mubr.msk.f32.vlgmr.msra.gmra.mrb[72].mxu1 %vm997_vm0, %v7523_v40  ;;  %8976 = vmatmul.mubr.msk.f32.vlgmr.msra.gmra.mrb[88].mxu0 %vm997_vm0, %v7603_v41  ;;  %v5054_v40 = vld [vmem:[%s12870_s8 + $0x8] sm:$0xff]  ;;  %v7590_v41 = vld [vmem:[%s12867_s5 + $0x520] sm:$0xff] }
 0x386   : > { %9737 = vmatpush3.bf16.msra.mxu1 %v10874_v8  ;;  %9817 = vmatpush3.bf16.msra.mxu0 %v10874_v8 }
 0x387   : > { %9739 = vmatprep.subr.bf16.mxu1 %v10883_v19  ;;  %9819 = vmatprep.subr.bf16.mxu0 %v10883_v19 }
 0x388   : > { %8838 = vmatprep.mubr.msk.f32.mxu1 %vm997_vm0, %v7524_v43  ;;  %8978 = vmatprep.mubr.msk.f32.mxu0 %vm997_vm0, %v7604_v23  ;;  %v7591_v43 = vld [vmem:[%s12867_s5 + $0x528] sm:$0xff]  ;;  %v5055_v23 = vld [vmem:[%s12870_s8 + $0x10] sm:$0xff] }
 0x389   : > { %8839 = vmatmul.mubr.msk.f32.gmra.mrb[74].mxu1 %vm997_vm0, %v7525_v45  ;;  %8979 = vmatmul.mubr.msk.f32.gmra.mrb[90].mxu0 %vm997_vm0, %v7605_v46  ;;  %v7592_v45 = vld [vmem:[%s12867_s5 + $0x530] sm:$0xff]  ;;  %v7593_v46 = vld [vmem:[%s12867_s5 + $0x538] sm:$0xff] }
 0x38a   : > { %9741 = vmatpush3.bf16.msra.mxu1 %v10883_v19  ;;  %9821 = vmatpush3.bf16.msra.mxu0 %v10883_v19 }
 0x38b   : > { %9743 = vmatprep.subr.bf16.mxu1 %v10894_v29  ;;  %9823 = vmatprep.subr.bf16.mxu0 %v10894_v29 }
 0x38c   : > { %8841 = vmatprep.mubr.msk.f32.mxu1 %vm997_vm0, %v7526_v47  ;;  %8981 = vmatprep.mubr.msk.f32.mxu0 %vm997_vm0, %v7606_v48  ;;  %v5056_v47 = vld [vmem:[%s12870_s8 + $0x18] sm:$0xff]  ;;  %v7618_v48 = vld [vmem:[%s12867_s5 + $0x580] sm:$0xff] }
 0x38d   : > { %8842 = vmatmul.mubr.msk.f32.gmra.mrb[76].mxu1 %vm997_vm0, %v7527_v50  ;;  %8982 = vmatmul.mubr.msk.f32.gmra.mrb[92].mxu0 %vm997_vm0, %v7607_v31  ;;  %v7619_v50 = vld [vmem:[%s12867_s5 + $0x588] sm:$0xff]  ;;  %v5057_v31 = vld [vmem:[%s12870_s8 + $0x20] sm:$0xff] }
 0x38e   : > { %9745 = vmatpush3.bf16.msra.mxu1 %v10894_v29  ;;  %9825 = vmatpush3.bf16.msra.mxu0 %v10894_v29 }
 0x38f   : > { %9747 = vmatprep.subr.bf16.mxu1 %v10904_v16  ;;  %9827 = vmatprep.subr.bf16.mxu0 %v10904_v16 }
 0x390   : > { %8844 = vmatprep.mubr.msk.f32.mxu1 %vm997_vm0, %v7528_v30  ;;  %8984 = vmatprep.mubr.msk.f32.mxu0 %vm997_vm0, %v7608_v52  ;;  %v7620_v30 = vld [vmem:[%s12867_s5 + $0x590] sm:$0xff]  ;;  %v7621_v52 = vld [vmem:[%s12867_s5 + $0x598] sm:$0xff] }
 0x391   : > { %8845 = vmatmul.mubr.msk.f32.gmra.mrb[78].mxu1 %vm997_vm0, %v7529_v53  ;;  %8985 = vmatmul.mubr.msk.f32.gmra.mrb[94].mxu0 %vm997_vm0, %v7609_v57  ;;  %v7622_v53 = vld [vmem:[%s12867_s5 + $0x5a0] sm:$0xff]  ;;  %v7624_v57 = vld [vmem:[%s12867_s5 + $0x5b0] sm:$0xff] }
 0x392   : > { %9749 = vmatpush3.bf16.msra.mxu1 %v10904_v16  ;;  %9829 = vmatpush3.bf16.msra.mxu0 %v10904_v16 }
 0x393   : > { %9767 = vmatprep.subr.bf16.mxu1 %v10874_v8  ;;  %8891 = vmatprep.mubr.msk.f32.mxu1 %vm997_vm0, %v7554_v38  ;;  %v7650_v38 = vld [vmem:[%s12867_s5 + $0x600] sm:$0xff] }
 0x394   : > { %9031 = vmatprep.mubr.msk.f32.mxu0 %vm997_vm0, %v7634_v39  ;;  %9846 = vmatprep.subr.bf16.mxu0 %v12902_v0  ;;  %v7652_v39 = vld [vmem:[%s12867_s5 + $0x610] sm:$0xff] }
 0x395   : > { %8892 = vmatmul.mubr.msk.f32.vlgmr.msra.gmra.mrb[80].mxu1 %vm997_vm0, %v7555_v60  ;;  %9032 = vmatmul.mubr.msk.f32.vlgmr.msra.gmra.mrb[96].mxu0 %vm997_vm0, %v7635_v62 }
 0x396   : > { %9769 = vmatpush3.bf16.msra.mxu1 %v10874_v8  ;;  %9848 = vmatpush3.bf16.msra.mxu0 %v11719_v1 }
 0x397   : > { %9771 = vmatprep.subr.bf16.mxu1 %v10883_v19  ;;  %8894 = vmatprep.mubr.msk.f32.mxu1 %vm997_vm0, %v7556_v2 }
 0x398   : > { %9849 = vmatprep.subr.bf16.mxu0 %v12902_v0  ;;  %9034 = vmatprep.mubr.msk.f32.mxu0 %vm997_vm0, %v7636_v4 }
 0x399   : > { %8895 = vmatmul.mubr.msk.f32.gmra.mrb[82].mxu1 %vm997_vm0, %v7557_v5  ;;  %9035 = vmatmul.mubr.msk.f32.gmra.mrb[98].mxu0 %vm997_vm0, %v7637_v6 }
 0x39a   : > { %9773 = vmatpush3.bf16.msra.mxu1 %v10883_v19  ;;  %9851 = vmatpush3.bf16.msra.mxu0 %v11740_v9 }
 0x39b   : > { %9775 = vmatprep.subr.bf16.mxu1 %v10894_v29  ;;  %8897 = vmatprep.mubr.msk.f32.mxu1 %vm997_vm0, %v7558_v10 }
 0x39c   : > { %9852 = vmatprep.subr.bf16.mxu0 %v12902_v0  ;;  %9037 = vmatprep.mubr.msk.f32.mxu0 %vm997_vm0, %v7638_v12 }
 0x39d   : > { %8898 = vmatmul.mubr.msk.f32.gmra.mrb[84].mxu1 %vm997_vm0, %v7559_v13  ;;  %9038 = vmatmul.mubr.msk.f32.gmra.mrb[100].mxu0 %vm997_vm0, %v7639_v14  ;;  %v11958_v14 = vld [vmem:[%s12868_s6] sm:$0xff] }
 0x39e   : > { %9777 = vmatpush3.bf16.msra.mxu1 %v10894_v29  ;;  %9854 = vmatpush3.bf16.msra.mxu0 %v11762_v18  ;;  %v1173_v21 = vrot.slane %v11958_v14, %v10861_v59 }
 0x39f   : > { %9779 = vmatprep.subr.bf16.mxu1 %v10904_v16  ;;  %8900 = vmatprep.mubr.msk.f32.mxu1 %vm997_vm0, %v7560_v20 }
 0x3a0   : > { %9855 = vmatprep.subr.bf16.mxu0 %v12902_v0  ;;  %9040 = vmatprep.mubr.msk.f32.mxu0 %vm997_vm0, %v7640_v24 }
 0x3a1   : > { %8901 = vmatmul.mubr.msk.f32.gmra.mrb[86].mxu1 %vm997_vm0, %v7561_v25  ;;  %9041 = vmatmul.mubr.msk.f32.gmra.mrb[102].mxu0 %vm997_vm0, %v7641_v26  ;;  %v1331_v25 = vrot.slane %v11958_v14, %v10867_v61 }
 0x3a2   : > { %9781 = vmatpush3.bf16.msra.mxu1 %v10904_v16  ;;  %9857 = vmatpush3.bf16.msra.mxu0 %v11784_v28 }
 0x3a3   : > { %9799 = vmatprep.subr.bf16.mxu1 %v10874_v8  ;;  %8947 = vmatprep.mubr.msk.f32.mxu1 %vm997_vm0, %v7586_v15 }
 0x3a4   : > { %9087 = vmatprep.mubr.msk.f32.mxu0 %vm10398_vm1, %v12900_v36  ;;  %9870 = vmatprep.subr.bf16.mxu0 %v12902_v0 }
 0x3a5   : > { %8948 = vmatmul.mubr.msk.f32.vlgmr.msra.gmra.mrb[88].mxu1 %vm997_vm0, %v7587_v34  ;;  %9088 = vmatmul.mubr.msk.f32.vlgmr.msra.gmra.mrb[104].mxu0 %vm997_vm0, %v5053_v35 }
 0x3a6   : > { %9801 = vmatpush3.bf16.msra.mxu1 %v10874_v8  ;;  %8950 = vmatprep.mubr.msk.f32.mxu1 %vm997_vm0, %v7588_v22 }
 0x3a7   : > { %9803 = vmatprep.subr.bf16.mxu1 %v10883_v19  ;;  %9090 = vmatprep.mubr.msk.f32.mxu0 %vm10398_vm1, %v12900_v36 }
 0x3a9   : > { %8951 = vmatmul.mubr.msk.f32.gmra.mrb[90].mxu1 %vm997_vm0, %v7589_v37  ;;  %9091 = vmatmul.mubr.msk.f32.gmra.mrb[106].mxu0 %vm997_vm0, %v5054_v40 }
 0x3aa   : > { %9805 = vmatpush3.bf16.msra.mxu1 %v10883_v19  ;;  %8953 = vmatprep.mubr.msk.f32.mxu1 %vm997_vm0, %v7590_v41 }
 0x3ab   : > { %9807 = vmatprep.subr.bf16.mxu1 %v10894_v29  ;;  %9093 = vmatprep.mubr.msk.f32.mxu0 %vm10398_vm1, %v12900_v36 }
 0x3ad   : > { %8954 = vmatmul.mubr.msk.f32.gmra.mrb[92].mxu1 %vm997_vm0, %v7591_v43  ;;  %9094 = vmatmul.mubr.msk.f32.gmra.mrb[108].mxu0 %vm997_vm0, %v5055_v23  ;;  %v5165_v43 = vld [vmem:[#allocation7 + $0x10] sm:$0xff] }
 0x3ae   : > { %9809 = vmatpush3.bf16.msra.mxu1 %v10894_v29  ;;  %8956 = vmatprep.mubr.msk.f32.mxu1 %vm997_vm0, %v7592_v45 }
 0x3af   : > { %9811 = vmatprep.subr.bf16.mxu1 %v10904_v16  ;;  %9096 = vmatprep.mubr.msk.f32.mxu0 %vm10398_vm1, %v12900_v36 }
 0x3b1   : > { %8957 = vmatmul.mubr.msk.f32.gmra.mrb[94].mxu1 %vm997_vm0, %v7593_v46  ;;  %9097 = vmatmul.mubr.msk.f32.gmra.mrb[110].mxu0 %vm997_vm0, %v5056_v47 }
 0x3b2   : > { %9813 = vmatpush3.bf16.msra.mxu1 %v10904_v16  ;;  %9003 = vmatprep.mubr.msk.f32.mxu1 %vm997_vm0, %v7618_v48 }
 0x3b3   : > { %9831 = vmatprep.subr.bf16.mxu1 %v10874_v8  ;;  %9099 = vmatprep.mubr.msk.f32.mxu0 %vm10398_vm1, %v12900_v36 }
 0x3b5   : > { %9004 = vmatmul.mubr.msk.f32.vlgmr.msra.gmra.mrb[96].mxu1 %vm997_vm0, %v7619_v50  ;;  %9100 = vmatmul.mubr.msk.f32.gmra.mrb[112].mxu0 %vm997_vm0, %v5057_v31 }
 0x3b6   : > { %9833 = vmatpush3.bf16.msra.mxu1 %v10874_v8  ;;  %9006 = vmatprep.mubr.msk.f32.mxu1 %vm997_vm0, %v7620_v30  ;;  %v7623_v8 = vld [vmem:[%s12867_s5 + $0x5a8] sm:$0xff] }
 0x3b7   : > { %9835 = vmatprep.subr.bf16.mxu1 %v10883_v19  ;;  %9143 = vmatprep.mubr.msk.f32.mxu0 %vm10398_vm1, %v12900_v36 }
 0x3b9   : > { %9007 = vmatmul.mubr.msk.f32.gmra.mrb[98].mxu1 %vm997_vm0, %v7621_v52 }
 0x3ba   : > { %9837 = vmatpush3.bf16.msra.mxu1 %v10883_v19  ;;  %9009 = vmatprep.mubr.msk.f32.mxu1 %vm997_vm0, %v7622_v53  ;;  %v7625_v19 = vld [vmem:[%s12867_s5 + $0x5b8] sm:$0xff] }
 0x3bb   : > { %9839 = vmatprep.subr.bf16.mxu1 %v10894_v29 }
 0x3bd   : > { %9010 = vmatmul.mubr.msk.f32.gmra.mrb[100].mxu1 %vm997_vm0, %v7623_v8  ;;  %v5166_v8 = vld [vmem:[#allocation7 + $0x18] sm:$0xff] }
 0x3be   : > { %9841 = vmatpush3.bf16.msra.mxu1 %v10894_v29  ;;  %9012 = vmatprep.mubr.msk.f32.mxu1 %vm997_vm0, %v7624_v57  ;;  %v7651_v29 = vld [vmem:[%s12867_s5 + $0x608] sm:$0xff] }
 0x3bf   : > { %9843 = vmatprep.subr.bf16.mxu1 %v10904_v16 }
 0x3c1   : > { %9013 = vmatmul.mubr.msk.f32.gmra.mrb[102].mxu1 %vm997_vm0, %v7625_v19 }
 0x3c2   : > { %9845 = vmatpush3.bf16.msra.mxu1 %v10904_v16  ;;  %9059 = vmatprep.mubr.msk.f32.mxu1 %vm997_vm0, %v7650_v38  ;;  %v7653_v16 = vld [vmem:[%s12867_s5 + $0x618] sm:$0xff] }
 0x3c3   : > { %9858 = vmatprep.subr.bf16.mxu1 %v12902_v0 }
 0x3c5   : > { %9060 = vmatmul.mubr.msk.f32.vlgmr.msra.gmra.mrb[104].mxu1 %vm997_vm0, %v7651_v29 }
 0x3c6   : > { %9860 = vmatpush3.bf16.msra.mxu1 %v11719_v1  ;;  %9062 = vmatprep.mubr.msk.f32.mxu1 %vm997_vm0, %v7652_v39  ;;  %v7655_v1 = vld [vmem:[%s12867_s5 + $0x628] sm:$0xff] }
 0x3c7   : > { %9861 = vmatprep.subr.bf16.mxu1 %v12902_v0 }
 0x3c8   : > { %v8389_v60 = vpop.f32.mrb[0].mxu1  ;;  %v11925_v62 = vpop.f32.mrb[16].mxu0 }
 0x3c9   : > { %v1131_v63 = vpop.f32.mrb[1].mxu1  ;;  %9063 = vmatmul.mubr.msk.f32.gmra.mrb[106].mxu1 %vm997_vm0, %v7653_v16  ;;  %v11928_v2 = vpop.f32.mrb[17].mxu0  ;;  %v1175_v34 = vmul.f32 %v8389_v60, %v1173_v21  ;;  %v11993_v60 = vsub.s32 2, %v10858_v58 }
 0x3ca   : > { %9863 = vmatpush3.bf16.msra.mxu1 %v11740_v9  ;;  %9065 = vmatprep.mubr.msk.f32.mxu1 %vm997_vm0, %v7654_v56  ;;  %v7657_v9 = vld [vmem:[%s12867_s5 + $0x638] sm:$0xff]  ;;  %v1174_v40 = vmul.f32 %v1173_v21, %v1131_v63  ;;  %v11996_v63 = vsub.s32 3, %v10858_v58 }
 0x3cb   : > { %9864 = vmatprep.subr.bf16.mxu1 %v12902_v0 }
 0x3cc   : > { %v8392_v4 = vpop.f32.mrb[2].mxu1  ;;  %v11939_v5 = vpop.f32.mrb[18].mxu0 }
 0x3cd   : > { %v1141_v6 = vpop.f32.mrb[3].mxu1  ;;  %9066 = vmatmul.mubr.msk.f32.gmra.mrb[108].mxu1 %vm997_vm0, %v7655_v1  ;;  %v11942_v7 = vpop.f32.mrb[19].mxu0  ;;  %v1177_v48 = vmul.f32 %v8392_v4, %v1173_v21 }
 0x3ce   : > { %9866 = vmatpush3.bf16.msra.mxu1 %v11762_v18  ;;  %9068 = vmatprep.mubr.msk.f32.mxu1 %vm997_vm0, %v7656_v3  ;;  %v1176_v52 = vmul.f32 %v1173_v21, %v1141_v6  ;;  %v5167_v6 = vld [vmem:[#allocation7 + $0x20] sm:$0xff] }
 0x3cf   : > { %9867 = vmatprep.subr.bf16.mxu1 %v12902_v0 }
 0x3d0   : > { %v8395_v10 = vpop.f32.mrb[4].mxu1  ;;  %v11950_v11 = vpop.f32.mrb[20].mxu0 }
 0x3d1   : > { %v1151_v12 = vpop.f32.mrb[5].mxu1  ;;  %9069 = vmatmul.mubr.msk.f32.gmra.mrb[110].mxu1 %vm997_vm0, %v7657_v9  ;;  %v11953_v13 = vpop.f32.mrb[21].mxu0  ;;  %v1179_v39 = vmul.f32 %v8395_v10, %v1173_v21 }
 0x3d2   : > { %9869 = vmatpush3.bf16.msra.mxu1 %v11784_v28  ;;  %9118 = vmatprep.mubr.msk.f32.mxu1 %vm10398_vm1, %v12900_v36  ;;  %v1178_v3 = vmul.f32 %v1173_v21, %v1151_v12  ;;  %v1647_v12 = vrot.slane %v11958_v14, %v11996_v63 }
 0x3d3   : > { %9876 = vmatprep.subr.bf16.mxu1 %v12902_v0 }
 0x3d4   : > { %v8398_v18 = vpop.f32.mrb[6].mxu1  ;;  %v11964_v20 = vpop.f32.mrb[22].mxu0 }
 0x3d5   : > { %v1161_v24 = vpop.f32.mrb[7].mxu1  ;;  %9119 = vmatmul.mubr.msk.f32.vlgmr.msra.gmra.mrb[112].mxu1 %vm997_vm0, %v5163_v17  ;;  %v11971_v26 = vpop.f32.mrb[23].mxu0 }
 0x3d6   : > { %9121 = vmatprep.mubr.msk.f32.mxu1 %vm10398_vm1, %v12900_v36 }
 0x3d8   : > { %v8417_v28 = vpop.f32.mrb[8].mxu1  ;;  %v11975_v15 = vpop.f32.mrb[24].mxu0 }
 0x3d9   : > { %v1333_v35 = vmul.f32 %v8417_v28, %v1331_v25  ;;  %v1289_v22 = vpop.f32.mrb[9].mxu1  ;;  %9122 = vmatmul.mubr.msk.f32.gmra.mrb[114].mxu1 %vm997_vm0, %v5164_v27  ;;  %v11978_v37 = vpop.f32.mrb[25].mxu0  ;;  %v1181_v28 = vmul.f32 %v8398_v18, %v1173_v21 }
 0x3da   : > { %v1332_v41 = vmul.f32 %v1331_v25, %v1289_v22  ;;  %9124 = vmatprep.mubr.msk.f32.mxu1 %vm10398_vm1, %v12900_v36  ;;  %v1489_v22 = vrot.slane %v11958_v14, %v11993_v60 }
 0x3db   : > { %v1341_v23 = vadd.f32 %v1333_v35, %v1175_v34 }
 0x3dc   : > { %v1340_v45 = vadd.f32 %v1332_v41, %v1174_v40  ;;  %v8420_v46 = vpop.f32.mrb[10].mxu1  ;;  %v11982_v47 = vpop.f32.mrb[26].mxu0  ;;  %v1180_v41 = vmul.f32 %v1173_v21, %v1161_v24 }
 0x3dd   : > { %v1335_v50 = vmul.f32 %v8420_v46, %v1331_v25  ;;  %v1299_v31 = vpop.f32.mrb[11].mxu1  ;;  %9125 = vmatmul.mubr.msk.f32.gmra.mrb[116].mxu1 %vm997_vm0, %v5165_v43  ;;  %v11985_v30 = vpop.f32.mrb[27].mxu0 }
 0x3de   : > { %v1334_v53 = vmul.f32 %v1331_v25, %v1299_v31  ;;  %9127 = vmatprep.mubr.msk.f32.mxu1 %vm10398_vm1, %v12900_v36 }
 0x3df   : > { %v1343_v57 = vadd.f32 %v1335_v50, %v1177_v48 }
 0x3e0   : > { %v1342_v19 = vadd.f32 %v1334_v53, %v1176_v52  ;;  %v8423_v38 = vpop.f32.mrb[12].mxu1  ;;  %v11989_v29 = vpop.f32.mrb[28].mxu0  ;;  %v1649_v53 = vmul.f32 %v11925_v62, %v1647_v12  ;;  %v1650_v62 = vmul.f32 %v1647_v12, %v11942_v7 }
 0x3e1   : > { %v1337_v16 = vmul.f32 %v8423_v38, %v1331_v25  ;;  %v1309_v56 = vpop.f32.mrb[13].mxu1  ;;  %9128 = vmatmul.mubr.msk.f32.gmra.mrb[118].mxu1 %vm997_vm0, %v5166_v8  ;;  %v11998_v1 = vpop.f32.mrb[29].mxu0 }
 0x3e2   : > { %v1336_v4 = vmul.f32 %v1331_v25, %v1309_v56  ;;  %9130 = vmatprep.mubr.msk.f32.mxu1 %vm10398_vm1, %v12900_v36 }
 0x3e3   : > { %v1345_v9 = vadd.f32 %v1337_v16, %v1179_v39  ;;  %v1648_v39 = vmul.f32 %v1647_v12, %v11928_v2  ;;  %v12026_v2 = vsub.s32 4, %v10858_v58 }
 0x3e4   : > { %v1344_v10 = vadd.f32 %v1336_v4, %v1178_v3  ;;  %v8426_v17 = vpop.f32.mrb[14].mxu1  ;;  %v12002_v27 = vpop.f32.mrb[30].mxu0 }
 0x3e5   : > { %v1339_v34 = vmul.f32 %v8426_v17, %v1331_v25  ;;  %v1319_v35 = vpop.f32.mrb[15].mxu1  ;;  %9131 = vmatmul.mubr.msk.f32.gmra.mrb[120].mxu1 %vm997_vm0, %v5167_v6  ;;  %v12009_v40 = vpop.f32.mrb[31].mxu0  ;;  %v1651_v6 = vmul.f32 %v11939_v5, %v1647_v12  ;;  %v12032_v5 = vsub.s32 5, %v10858_v58 }
 0x3e6   : > { %v1338_v43 = vmul.f32 %v1331_v25, %v1319_v35  ;;  %9168 = vmatprep.mubr.msk.f32.mxu1 %vm10398_vm1, %v12900_v36 }
 0x3e7   : > { %v1347_v46 = vadd.f32 %v1339_v34, %v1181_v28 }
 0x3e8   : > { %v1346_v48 = vadd.f32 %v1338_v43, %v1180_v41  ;;  %v8445_v18 = vpop.f32.mrb[16].mxu1  ;;  %v12013_v50 = vpop.f32.mrb[32].mxu0 }
 0x3e9   : > { %v1491_v31 = vmul.f32 %v8445_v18, %v1489_v22  ;;  %v1447_v52 = vpop.f32.mrb[17].mxu1  ;;  %v12016_v8 = vpop.f32.mrb[33].mxu0 }
 0x3ea   : > { %v1490_v38 = vmul.f32 %v1489_v22, %v1447_v52  ;;  %v1653_v52 = vmul.f32 %v11950_v11, %v1647_v12 }
 0x3eb   : > { %v1499_v16 = vadd.f32 %v1491_v31, %v1341_v23 }
 0x3ec   : > { %v1498_v21 = vadd.f32 %v1490_v38, %v1340_v45  ;;  %v8448_v24 = vpop.f32.mrb[18].mxu1  ;;  %v12019_v25 = vpop.f32.mrb[34].mxu0 }
 0x3ed   : > { %v1657_v56 = vadd.f32 %v1649_v53, %v1499_v16  ;;  %v1493_v3 = vmul.f32 %v8448_v24, %v1489_v22  ;;  %v1457_v4 = vpop.f32.mrb[19].mxu1  ;;  %v12022_v17 = vpop.f32.mrb[35].mxu0 }
 0x3ee   : > { %v1656_v28 = vadd.f32 %v1648_v39, %v1498_v21  ;;  %v1492_v34 = vmul.f32 %v1489_v22, %v1457_v4  ;;  %v1805_v21 = vrot.slane %v11958_v14, %v12026_v2 }
 0x3ef   : > { %v1501_v35 = vadd.f32 %v1493_v3, %v1343_v57  ;;  %v1652_v57 = vmul.f32 %v1647_v12, %v11953_v13 }
 0x3f0   : > { %v1500_v41 = vadd.f32 %v1492_v34, %v1342_v19  ;;  %v8451_v43 = vpop.f32.mrb[20].mxu1  ;;  %v12028_v23 = vpop.f32.mrb[36].mxu0  ;;  %v1963_v34 = vrot.slane %v11958_v14, %v12032_v5 }
 0x3f1   : > { %v1659_v45 = vadd.f32 %v1651_v6, %v1501_v35  ;;  %v1495_v18 = vmul.f32 %v8451_v43, %v1489_v22  ;;  %v1467_v31 = vpop.f32.mrb[21].mxu1  ;;  %v12034_v53 = vpop.f32.mrb[37].mxu0  ;;  %v1655_v6 = vmul.f32 %v11964_v20, %v1647_v12 }
 0x3f2   : > { %v1658_v38 = vadd.f32 %v1650_v62, %v1500_v41  ;;  %v1494_v7 = vmul.f32 %v1489_v22, %v1467_v31  ;;  %v1964_v0 = vmul.f32 %v1963_v34, %v11978_v37  ;;  %v12060_v37 = vsub.s32 6, %v10858_v58 }
 0x3f3   : > { %v1503_v19 = vadd.f32 %v1495_v18, %v1345_v9  ;;  %v1654_v9 = vmul.f32 %v1647_v12, %v11971_v26 }
 0x3f4   : > { %v1502_v39 = vadd.f32 %v1494_v7, %v1344_v10  ;;  %v8454_v16 = vpop.f32.mrb[22].mxu1  ;;  %v12039_v24 = vpop.f32.mrb[38].mxu0 }
 0x3f5   : > { %v1661_v3 = vadd.f32 %v1653_v52, %v1503_v19  ;;  %v1497_v4 = vmul.f32 %v8454_v16, %v1489_v22  ;;  %v1477_v11 = vpop.f32.mrb[23].mxu1  ;;  %v12044_v62 = vpop.f32.mrb[39].mxu0  ;;  %v1965_v19 = vmul.f32 %v11975_v15, %v1963_v34 }
 0x3f6   : > { %v1660_v35 = vadd.f32 %v1652_v57, %v1502_v39  ;;  %v1496_v13 = vmul.f32 %v1489_v22, %v1477_v11 }
 0x3f7   : > { %v1505_v10 = vadd.f32 %v1497_v4, %v1347_v46  ;;  %v1967_v4 = vmul.f32 %v11982_v47, %v1963_v34  ;;  %v12066_v47 = vsub.s32 7, %v10858_v58  ;;  %v1971_v58 = vmul.f32 %v12002_v27, %v1963_v34 }
 0x3f8   : > { %v1504_v41 = vadd.f32 %v1496_v13, %v1346_v48  ;;  %v8501_v43 = vpop.f32.mrb[24].mxu1  ;;  %v12047_v18 = vpop.f32.mrb[40].mxu0  ;;  %v1966_v13 = vmul.f32 %v1963_v34, %v11985_v30 }
 0x3f9   : > { %v1663_v31 = vadd.f32 %v1655_v6, %v1505_v10  ;;  %v1807_v52 = vmul.f32 %v8501_v43, %v1805_v21  ;;  %v1763_v7 = vpop.f32.mrb[25].mxu1  ;;  %v12050_v20 = vpop.f32.mrb[41].mxu0 }
 0x3fa   : > { %v1662_v16 = vadd.f32 %v1654_v9, %v1504_v41  ;;  %v1806_v36 = vmul.f32 %v1805_v21, %v1763_v7 }
 0x3fb   : > { %v1815_v57 = vadd.f32 %v1807_v52, %v1657_v56  ;;  %v1969_v52 = vmul.f32 %v11989_v29, %v1963_v34 }
 0x3fc   : > { %v1814_v22 = vadd.f32 %v1806_v36, %v1656_v28  ;;  %v8504_v39 = vpop.f32.mrb[26].mxu1  ;;  %v12053_v26 = vpop.f32.mrb[42].mxu0 }
 0x3fd   : > { %v1973_v12 = vadd.f32 %v1965_v19, %v1815_v57  ;;  %v1809_v46 = vmul.f32 %v8504_v39, %v1805_v21  ;;  %v1773_v48 = vpop.f32.mrb[27].mxu1  ;;  %v12056_v11 = vpop.f32.mrb[43].mxu0 }
 0x3fe   : > { %v1972_v6 = vadd.f32 %v1964_v0, %v1814_v22  ;;  %v1808_v15 = vmul.f32 %v1805_v21, %v1773_v48  ;;  %v2121_v22 = vrot.slane %v11958_v14, %v12060_v37 }
 0x3ff   : > { %v1817_v9 = vadd.f32 %v1809_v46, %v1659_v45  ;;  %v1968_v45 = vmul.f32 %v1963_v34, %v11998_v1 }
 0x400   : > { %v1816_v10 = vadd.f32 %v1808_v15, %v1658_v38  ;;  %v8507_v41 = vpop.f32.mrb[28].mxu1  ;;  %v12062_v36 = vpop.f32.mrb[44].mxu0 }
 0x401   : > { %v1975_v56 = vadd.f32 %v1967_v4, %v1817_v9  ;;  %v1811_v28 = vmul.f32 %v8507_v41, %v1805_v21  ;;  %v1783_v43 = vpop.f32.mrb[29].mxu1  ;;  %v12068_v0 = vpop.f32.mrb[45].mxu0  ;;  %v2279_v4 = vrot.slane %v11958_v14, %v12066_v47 }
 0x402   : > { %v1974_v7 = vadd.f32 %v1966_v13, %v1816_v10  ;;  %v1810_v30 = vmul.f32 %v1805_v21, %v1783_v43 }
 0x403   : > { %v1819_v38 = vadd.f32 %v1811_v28, %v1661_v3  ;;  %v1970_v3 = vmul.f32 %v1963_v34, %v12009_v40 }
 0x404   : > { %v1818_v19 = vadd.f32 %v1810_v30, %v1660_v35  ;;  %v8510_v57 = vpop.f32.mrb[30].mxu1  ;;  %v12073_v39 = vpop.f32.mrb[46].mxu0  ;;  %v2281_v30 = vmul.f32 %v12013_v50, %v2279_v4 }
 0x405   : > { %v1977_v46 = vadd.f32 %v1969_v52, %v1819_v38  ;;  %v1813_v48 = vmul.f32 %v8510_v57, %v1805_v21  ;;  %v1793_v29 = vpop.f32.mrb[31].mxu1  ;;  %v12078_v15 = vpop.f32.mrb[47].mxu0  ;;  %v2280_v57 = vmul.f32 %v2279_v4, %v12016_v8 }
 0x406   : > { %v1976_v13 = vadd.f32 %v1968_v45, %v1818_v19  ;;  %v1812_v1 = vmul.f32 %v1805_v21, %v1793_v29 }
 0x407   : > { %v1821_v35 = vadd.f32 %v1813_v48, %v1663_v31  ;;  %v2283_v48 = vmul.f32 %v12019_v25, %v2279_v4  ;;  %v12099_v25 = vld [vmem:[%s12868_s6 + $0x8] sm:$0xff] }
 0x408   : > { %v1820_v9 = vadd.f32 %v1812_v1, %v1662_v16  ;;  %v8557_v10 = vpop.f32.mrb[32].mxu1  ;;  %v12081_v41 = vpop.f32.mrb[48].mxu0  ;;  %v2282_v1 = vmul.f32 %v2279_v4, %v12022_v17  ;;  %v2284_v17 = vmul.f32 %v2279_v4, %v12034_v53 }
 0x409   : > { %v1979_v28 = vadd.f32 %v1971_v58, %v1821_v35  ;;  %v2123_v43 = vmul.f32 %v8557_v10, %v2121_v22  ;;  %v2079_v52 = vpop.f32.mrb[33].mxu1  ;;  %v12084_v27 = vpop.f32.mrb[49].mxu0 }
 0x40a   : > { %v1978_v38 = vadd.f32 %v1970_v3, %v1820_v9  ;;  %v2122_v14 = vmul.f32 %v2121_v22, %v2079_v52 }
 0x40b   : > { %v2131_v45 = vadd.f32 %v2123_v43, %v1973_v12  ;;  %v2285_v43 = vmul.f32 %v12028_v23, %v2279_v4 }
 0x40c   : > { %v2130_v21 = vadd.f32 %v2122_v14, %v1972_v6  ;;  %v8560_v19 = vpop.f32.mrb[34].mxu1  ;;  %v12087_v40 = vpop.f32.mrb[50].mxu0 }
 0x40d   : > { %v2289_v34 = vadd.f32 %v2281_v30, %v2131_v45  ;;  %v2125_v31 = vmul.f32 %v8560_v19, %v2121_v22  ;;  %v2089_v16 = vpop.f32.mrb[35].mxu1  ;;  %v12090_v29 = vpop.f32.mrb[51].mxu0  ;;  %v2437_v45 = vrot.slane %v12099_v25, %v10861_v59 }
 0x40e   : > { %v2288_v58 = vadd.f32 %v2280_v57, %v2130_v21  ;;  %v2124_v50 = vmul.f32 %v2121_v22, %v2089_v16  ;;  %v2287_v16 = vmul.f32 %v12039_v24, %v2279_v4 }
 0x40f   : > { %v2133_v3 = vadd.f32 %v2125_v31, %v1975_v56 }
 0x410   : > { %v2132_v35 = vadd.f32 %v2124_v50, %v1974_v7  ;;  %v8563_v9 = vpop.f32.mrb[36].mxu1  ;;  %v12093_v8 = vpop.f32.mrb[52].mxu0 }
 0x411   : > { %v2291_v12 = vadd.f32 %v2283_v48, %v2133_v3  ;;  %v2127_v6 = vmul.f32 %v8563_v9, %v2121_v22  ;;  %v2099_v10 = vpop.f32.mrb[37].mxu1  ;;  %v12101_v52 = vpop.f32.mrb[53].mxu0  ;;  %v2595_v48 = vrot.slane %v12099_v25, %v10867_v61 }
 0x412   : > { %v2290_v30 = vadd.f32 %v2282_v1, %v2132_v35  ;;  %v2126_v14 = vmul.f32 %v2121_v22, %v2099_v10 }
 0x413   : > { %v2135_v56 = vadd.f32 %v2127_v6, %v1977_v46  ;;  %v2286_v46 = vmul.f32 %v2279_v4, %v12044_v62  ;;  %v2596_v49 = vmul.f32 %v2595_v48, %v12050_v20 }
 0x414   : > { %v2134_v7 = vadd.f32 %v2126_v14, %v1976_v13  ;;  %v8566_v57 = vpop.f32.mrb[38].mxu1  ;;  %v12106_v21 = vpop.f32.mrb[54].mxu0  ;;  %v2597_v14 = vmul.f32 %v12047_v18, %v2595_v48 }
 0x415   : > { %v2293_v23 = vadd.f32 %v2285_v43, %v2135_v56  ;;  %v2129_v19 = vmul.f32 %v8566_v57, %v2121_v22  ;;  %v2109_v31 = vpop.f32.mrb[39].mxu1  ;;  %v12111_v50 = vpop.f32.mrb[55].mxu0 }
 0x416   : > { %v2292_v1 = vadd.f32 %v2284_v17, %v2134_v7  ;;  %v2128_v53 = vmul.f32 %v2121_v22, %v2109_v31 }
 0x417   : > { %v2137_v13 = vadd.f32 %v2129_v19, %v1979_v28  ;;  %v2599_v19 = vmul.f32 %v12053_v26, %v2595_v48 }
 0x418   : > { %v2136_v3 = vadd.f32 %v2128_v53, %v1978_v38  ;;  %v8613_v35 = vpop.f32.mrb[40].mxu1  ;;  %v12114_v9 = vpop.f32.mrb[56].mxu0  ;;  %v2598_v53 = vmul.f32 %v2595_v48, %v12056_v11  ;;  %v2753_v11 = vrot.slane %v12099_v25, %v11993_v60 }
 0x419   : > { %v2295_v6 = vadd.f32 %v2287_v16, %v2137_v13  ;;  %v2439_v10 = vmul.f32 %v8613_v35, %v2437_v45  ;;  %v2395_v43 = vpop.f32.mrb[41].mxu1  ;;  %v12117_v24 = vpop.f32.mrb[57].mxu0 }
 0x41a   : > { %v2294_v56 = vadd.f32 %v2286_v46, %v2136_v3  ;;  %v2438_v57 = vmul.f32 %v2437_v45, %v2395_v43 }
 0x41b   : > { %v2447_v17 = vadd.f32 %v2439_v10, %v2289_v34  ;;  %v2601_v10 = vmul.f32 %v12062_v36, %v2595_v48  ;;  %v2911_v36 = vrot.slane %v12099_v25, %v11996_v63 }
 0x41c   : > { %v2446_v22 = vadd.f32 %v2438_v57, %v2288_v58  ;;  %v8616_v7 = vpop.f32.mrb[42].mxu1  ;;  %v12120_v62 = vpop.f32.mrb[58].mxu0  ;;  %v2600_v57 = vmul.f32 %v2595_v48, %v12068_v0 }
 0x41d   : > { %v2605_v4 = vadd.f32 %v2597_v14, %v2447_v17  ;;  %v2441_v28 = vmul.f32 %v8616_v7, %v2437_v45  ;;  %v2405_v38 = vpop.f32.mrb[43].mxu1  ;;  %v12123_v31 = vpop.f32.mrb[59].mxu0 }
 0x41e   : > { %v2604_v16 = vadd.f32 %v2596_v49, %v2446_v22  ;;  %v2440_v18 = vmul.f32 %v2437_v45, %v2405_v38  ;;  %v2603_v38 = vmul.f32 %v12073_v39, %v2595_v48 }
 0x41f   : > { %v2449_v46 = vadd.f32 %v2441_v28, %v2291_v12 }
 0x420   : > { %v2448_v13 = vadd.f32 %v2440_v18, %v2290_v30  ;;  %v8619_v3 = vpop.f32.mrb[44].mxu1  ;;  %v12126_v20 = vpop.f32.mrb[60].mxu0 }
 0x421   : > { %v2607_v34 = vadd.f32 %v2599_v19, %v2449_v46  ;;  %v2443_v58 = vmul.f32 %v8619_v3, %v2437_v45  ;;  %v2415_v35 = vpop.f32.mrb[45].mxu1  ;;  %v12129_v43 = vpop.f32.mrb[61].mxu0 }
 0x422   : > { %v2606_v14 = vadd.f32 %v2598_v53, %v2448_v13  ;;  %v2442_v26 = vmul.f32 %v2437_v45, %v2415_v35 }
 0x423   : > { %v2451_v49 = vadd.f32 %v2443_v58, %v2293_v23  ;;  %v2602_v23 = vmul.f32 %v2595_v48, %v12078_v15 }
 0x424   : > { %v2450_v17 = vadd.f32 %v2442_v26, %v2292_v1  ;;  %v8622_v22 = vpop.f32.mrb[46].mxu1  ;;  %v12134_v12 = vpop.f32.mrb[62].mxu0 }
 0x425   : > { %v2609_v30 = vadd.f32 %v2601_v10, %v2451_v49  ;;  %v2445_v7 = vmul.f32 %v8622_v22, %v2437_v45  ;;  %v2425_v28 = vpop.f32.mrb[47].mxu1  ;;  %v12139_v19 = vpop.f32.mrb[63].mxu0  ;;  %v2913_v10 = vmul.f32 %v12081_v41, %v2911_v36  ;;  %v2912_v22 = vmul.f32 %v2911_v36, %v12084_v27 }
 0x426   : > { %v2608_v18 = vadd.f32 %v2600_v57, %v2450_v17  ;;  %v2444_v0 = vmul.f32 %v2437_v45, %v2425_v28 }
 0x427   : > { %v2453_v1 = vadd.f32 %v2445_v7, %v2295_v6  ;;  %v2915_v7 = vmul.f32 %v12087_v40, %v2911_v36 }
 0x428   : > { %v2452_v53 = vadd.f32 %v2444_v0, %v2294_v56  ;;  %v8669_v46 = vpop.f32.mrb[48].mxu1  ;;  %v12142_v13 = vpop.f32.mrb[64].mxu0  ;;  %v2914_v0 = vmul.f32 %v2911_v36, %v12090_v29  ;;  %v3069_v29 = vrot.slane %v12099_v25, %v12026_v2 }
 0x429   : > { %v2611_v3 = vadd.f32 %v2603_v38, %v2453_v1  ;;  %v2755_v58 = vmul.f32 %v8669_v46, %v2753_v11  ;;  %v2711_v35 = vpop.f32.mrb[49].mxu1  ;;  %v12145_v39 = vpop.f32.mrb[65].mxu0 }
 0x42a   : > { %v2610_v26 = vadd.f32 %v2602_v23, %v2452_v53  ;;  %v2754_v49 = vmul.f32 %v2753_v11, %v2711_v35 }
 0x42b   : > { %v2763_v57 = vadd.f32 %v2755_v58, %v2605_v4  ;;  %v2917_v58 = vmul.f32 %v12093_v8, %v2911_v36  ;;  %v3227_v8 = vrot.slane %v12099_v25, %v12032_v5 }
 0x42c   : > { %v2762_v45 = vadd.f32 %v2754_v49, %v2604_v16  ;;  %v8672_v17 = vpop.f32.mrb[50].mxu1  ;;  %v12148_v15 = vpop.f32.mrb[66].mxu0  ;;  %v2916_v49 = vmul.f32 %v2911_v36, %v12101_v52 }
 0x42d   : > { %v2921_v48 = vadd.f32 %v2913_v10, %v2763_v57  ;;  %v2757_v6 = vmul.f32 %v8672_v17, %v2753_v11  ;;  %v2721_v56 = vpop.f32.mrb[51].mxu1  ;;  %v12151_v28 = vpop.f32.mrb[67].mxu0 }
 0x42e   : > { %v2920_v38 = vadd.f32 %v2912_v22, %v2762_v45  ;;  %v2756_v41 = vmul.f32 %v2753_v11, %v2721_v56  ;;  %v2919_v56 = vmul.f32 %v12106_v21, %v2911_v36 }
 0x42f   : > { %v2765_v23 = vadd.f32 %v2757_v6, %v2607_v34 }
 0x430   : > { %v2764_v1 = vadd.f32 %v2756_v41, %v2606_v14  ;;  %v8675_v53 = vpop.f32.mrb[52].mxu1  ;;  %v12154_v27 = vpop.f32.mrb[68].mxu0 }
 0x431   : > { %v2923_v4 = vadd.f32 %v2915_v7, %v2765_v23  ;;  %v2759_v16 = vmul.f32 %v8675_v53, %v2753_v11  ;;  %v2731_v46 = vpop.f32.mrb[53].mxu1  ;;  %v12157_v35 = vpop.f32.mrb[69].mxu0 }
 0x432   : > { %v2922_v10 = vadd.f32 %v2914_v0, %v2764_v1  ;;  %v2758_v40 = vmul.f32 %v2753_v11, %v2731_v46 }
 0x433   : > { %v2767_v22 = vadd.f32 %v2759_v16, %v2609_v30  ;;  %v2918_v30 = vmul.f32 %v2911_v36, %v12111_v50 }
 0x434   : > { %v2766_v57 = vadd.f32 %v2758_v40, %v2608_v18  ;;  %v8678_v45 = vpop.f32.mrb[54].mxu1  ;;  %v12162_v34 = vpop.f32.mrb[70].mxu0 }
 0x435   : > { %v2925_v14 = vadd.f32 %v2917_v58, %v2767_v22  ;;  %v2761_v17 = vmul.f32 %v8678_v45, %v2753_v11  ;;  %v2741_v6 = vpop.f32.mrb[55].mxu1  ;;  %v12167_v7 = vpop.f32.mrb[71].mxu0  ;;  %v3229_v58 = vmul.f32 %v12114_v9, %v3227_v8  ;;  %v3228_v45 = vmul.f32 %v3227_v8, %v12117_v24 }
 0x436   : > { %v2924_v41 = vadd.f32 %v2916_v49, %v2766_v57  ;;  %v2760_v52 = vmul.f32 %v2753_v11, %v2741_v6 }
 0x437   : > { %v2769_v18 = vadd.f32 %v2761_v17, %v2611_v3  ;;  %v3231_v17 = vmul.f32 %v12120_v62, %v3227_v8 }
 0x438   : > { %v2768_v0 = vadd.f32 %v2760_v52, %v2610_v26  ;;  %v8725_v23 = vpop.f32.mrb[56].mxu1  ;;  %v12170_v1 = vpop.f32.mrb[72].mxu0  ;;  %v3230_v52 = vmul.f32 %v3227_v8, %v12123_v31  ;;  %v3385_v31 = vrot.slane %v12099_v25, %v12060_v37 }
 0x439   : > { %v2927_v53 = vadd.f32 %v2919_v56, %v2769_v18  ;;  %v3071_v16 = vmul.f32 %v8725_v23, %v3069_v29  ;;  %v3027_v46 = vpop.f32.mrb[57].mxu1  ;;  %v12173_v21 = vpop.f32.mrb[73].mxu0 }
 0x43a   : > { %v2926_v40 = vadd.f32 %v2918_v30, %v2768_v0  ;;  %v3070_v22 = vmul.f32 %v3069_v29, %v3027_v46 }
 0x43b   : > { %v3079_v49 = vadd.f32 %v3071_v16, %v2921_v48  ;;  %v3233_v16 = vmul.f32 %v12126_v20, %v3227_v8  ;;  %v3543_v20 = vrot.slane %v12099_v25, %v12066_v47 }
 0x43c   : > { %v3078_v11 = vadd.f32 %v3070_v22, %v2920_v38  ;;  %v8728_v57 = vpop.f32.mrb[58].mxu1  ;;  %v12176_v50 = vpop.f32.mrb[74].mxu0  ;;  %v3232_v22 = vmul.f32 %v3227_v8, %v12129_v43 }
 0x43d   : > { %v3237_v36 = vadd.f32 %v3229_v58, %v3079_v49  ;;  %v3073_v3 = vmul.f32 %v8728_v57, %v3069_v29  ;;  %v3037_v26 = vpop.f32.mrb[59].mxu1  ;;  %v12179_v6 = vpop.f32.mrb[75].mxu0 }
 0x43e   : > { %v3236_v56 = vadd.f32 %v3228_v45, %v3078_v11  ;;  %v3072_v9 = vmul.f32 %v3069_v29, %v3037_v26  ;;  %v3235_v26 = vmul.f32 %v12134_v12, %v3227_v8 }
 0x43f   : > { %v3081_v30 = vadd.f32 %v3073_v3, %v2923_v4 }
 0x440   : > { %v3080_v18 = vadd.f32 %v3072_v9, %v2922_v10  ;;  %v8731_v0 = vpop.f32.mrb[60].mxu1  ;;  %v12182_v24 = vpop.f32.mrb[76].mxu0 }
 0x441   : > { %v3239_v48 = vadd.f32 %v3231_v17, %v3081_v30  ;;  %v3075_v38 = vmul.f32 %v8731_v0, %v3069_v29  ;;  %v3047_v23 = vpop.f32.mrb[61].mxu1  ;;  %v12185_v46 = vpop.f32.mrb[77].mxu0 }
 0x442   : > { %v3238_v58 = vadd.f32 %v3230_v52, %v3080_v18  ;;  %v3074_v62 = vmul.f32 %v3069_v29, %v3047_v23 }
 0x443   : > { %v3083_v45 = vadd.f32 %v3075_v38, %v2925_v14  ;;  %v3234_v14 = vmul.f32 %v3227_v8, %v12139_v19 }
 0x444   : > { %v3082_v49 = vadd.f32 %v3074_v62, %v2924_v41  ;;  %v8734_v11 = vpop.f32.mrb[62].mxu1  ;;  %v12190_v4 = vpop.f32.mrb[78].mxu0 }
 0x445   : > { %v3241_v10 = vadd.f32 %v3233_v16, %v3083_v45  ;;  %v3077_v57 = vmul.f32 %v8734_v11, %v3069_v29  ;;  %v3057_v3 = vpop.f32.mrb[63].mxu1  ;;  %v12195_v17 = vpop.f32.mrb[79].mxu0  ;;  %v3545_v16 = vmul.f32 %v12142_v13, %v3543_v20  ;;  %v3544_v45 = vmul.f32 %v3543_v20, %v12145_v39 }
 0x446   : > { %v3240_v9 = vadd.f32 %v3232_v22, %v3082_v49  ;;  %v3076_v43 = vmul.f32 %v3069_v29, %v3057_v3  ;;  %v3547_v11 = vmul.f32 %v12148_v15, %v3543_v20  ;;  %v12216_v15 = vld [vmem:[%s12868_s6 + $0x10] sm:$0xff] }
 0x447   : > { %v3085_v41 = vadd.f32 %v3077_v57, %v2927_v53 }
 0x448   : > { %v3084_v52 = vadd.f32 %v3076_v43, %v2926_v40  ;;  %v8781_v30 = vpop.f32.mrb[64].mxu1  ;;  %v12198_v18 = vpop.f32.mrb[80].mxu0 }
 0x449   : > { %v3243_v0 = vadd.f32 %v3235_v26, %v3085_v41  ;;  %v3387_v38 = vmul.f32 %v8781_v30, %v3385_v31  ;;  %v3343_v23 = vpop.f32.mrb[65].mxu1  ;;  %v12201_v12 = vpop.f32.mrb[81].mxu0  ;;  %v3546_v26 = vmul.f32 %v3543_v20, %v12151_v28  ;;  %v3549_v30 = vmul.f32 %v12154_v27, %v3543_v20 }
 0x44a   : > { %v3242_v62 = vadd.f32 %v3234_v14, %v3084_v52  ;;  %v3386_v25 = vmul.f32 %v3385_v31, %v3343_v23  ;;  %v3548_v28 = vmul.f32 %v3543_v20, %v12157_v35 }
 0x44b   : > { %v3395_v22 = vadd.f32 %v3387_v38, %v3237_v36 }
 0x44c   : > { %v3394_v29 = vadd.f32 %v3386_v25, %v3236_v56  ;;  %v8784_v49 = vpop.f32.mrb[66].mxu1  ;;  %v12204_v19 = vpop.f32.mrb[82].mxu0 }
 0x44d   : > { %v3553_v8 = vadd.f32 %v3545_v16, %v3395_v22  ;;  %v3389_v53 = vmul.f32 %v8784_v49, %v3385_v31  ;;  %v3353_v40 = vpop.f32.mrb[67].mxu1  ;;  %v12207_v57 = vpop.f32.mrb[83].mxu0 }
 0x44e   : > { %v3552_v3 = vadd.f32 %v3544_v45, %v3394_v29  ;;  %v3388_v13 = vmul.f32 %v3385_v31, %v3353_v40  ;;  %v3701_v45 = vrot.slane %v12216_v15, %v10861_v59  ;;  %v3859_v40 = vrot.slane %v12216_v15, %v10867_v61 }
 0x44f   : > { %v3397_v43 = vadd.f32 %v3389_v53, %v3239_v48  ;;  %v3551_v53 = vmul.f32 %v12162_v34, %v3543_v20 }
 0x450   : > { %v3396_v14 = vadd.f32 %v3388_v13, %v3238_v58  ;;  %v8787_v41 = vpop.f32.mrb[68].mxu1  ;;  %v12210_v39 = vpop.f32.mrb[84].mxu0 }
 0x451   : > { %v3555_v36 = vadd.f32 %v3547_v11, %v3397_v43  ;;  %v3391_v56 = vmul.f32 %v8787_v41, %v3385_v31  ;;  %v3363_v52 = vpop.f32.mrb[69].mxu1  ;;  %v12218_v38 = vpop.f32.mrb[85].mxu0 }
 0x452   : > { %v3554_v23 = vadd.f32 %v3546_v26, %v3396_v14  ;;  %v3390_v16 = vmul.f32 %v3385_v31, %v3363_v52 }
 0x453   : > { %v3399_v48 = vadd.f32 %v3391_v56, %v3241_v10  ;;  %v3550_v10 = vmul.f32 %v3543_v20, %v12167_v7 }
 0x454   : > { %v3398_v58 = vadd.f32 %v3390_v16, %v3240_v9  ;;  %v8790_v25 = vpop.f32.mrb[70].mxu1  ;;  %v12223_v22 = vpop.f32.mrb[86].mxu0 }
 0x455   : > { %v3557_v27 = vadd.f32 %v3549_v30, %v3399_v48  ;;  %v3393_v29 = vmul.f32 %v8790_v25, %v3385_v31  ;;  %v3373_v49 = vpop.f32.mrb[71].mxu1  ;;  %v12228_v11 = vpop.f32.mrb[87].mxu0  ;;  %v3861_v30 = vmul.f32 %v12170_v1, %v3859_v40  ;;  %v3860_v25 = vmul.f32 %v3859_v40, %v12173_v21 }
 0x456   : > { %v3556_v13 = vadd.f32 %v3548_v28, %v3398_v58  ;;  %v3392_v35 = vmul.f32 %v3385_v31, %v3373_v49 }
 0x457   : > { %v3401_v9 = vadd.f32 %v3393_v29, %v3243_v0  ;;  %v3863_v29 = vmul.f32 %v12176_v50, %v3859_v40 }
 0x458   : > { %v3400_v26 = vadd.f32 %v3392_v35, %v3242_v62  ;;  %v8837_v43 = vpop.f32.mrb[72].mxu1  ;;  %v12231_v14 = vpop.f32.mrb[88].mxu0  ;;  %v3862_v35 = vmul.f32 %v3859_v40, %v12179_v6  ;;  %v4017_v6 = vrot.slane %v12216_v15, %v11993_v60 }
 0x459   : > { %v3559_v41 = vadd.f32 %v3551_v53, %v3401_v9  ;;  %v3703_v56 = vmul.f32 %v8837_v43, %v3701_v45  ;;  %v3659_v52 = vpop.f32.mrb[73].mxu1  ;;  %v12234_v34 = vpop.f32.mrb[89].mxu0 }
 0x45a   : > { %v3558_v16 = vadd.f32 %v3550_v10, %v3400_v26  ;;  %v3702_v48 = vmul.f32 %v3701_v45, %v3659_v52 }
 0x45b   : > { %v3711_v28 = vadd.f32 %v3703_v56, %v3553_v8  ;;  %v3865_v56 = vmul.f32 %v12182_v24, %v3859_v40  ;;  %v4175_v24 = vrot.slane %v12216_v15, %v11996_v63 }
 0x45c   : > { %v3710_v31 = vadd.f32 %v3702_v48, %v3552_v3  ;;  %v8840_v58 = vpop.f32.mrb[74].mxu1  ;;  %v12237_v7 = vpop.f32.mrb[90].mxu0  ;;  %v3864_v48 = vmul.f32 %v3859_v40, %v12185_v46 }
 0x45d   : > { %v3869_v20 = vadd.f32 %v3861_v30, %v3711_v28  ;;  %v3705_v0 = vmul.f32 %v8840_v58, %v3701_v45  ;;  %v3669_v62 = vpop.f32.mrb[75].mxu1  ;;  %v12240_v49 = vpop.f32.mrb[91].mxu0 }
 0x45e   : > { %v3868_v53 = vadd.f32 %v3860_v25, %v3710_v31  ;;  %v3704_v1 = vmul.f32 %v3701_v45, %v3669_v62  ;;  %v3867_v62 = vmul.f32 %v12190_v4, %v3859_v40 }
 0x45f   : > { %v3713_v10 = vadd.f32 %v3705_v0, %v3555_v36 }
 0x460   : > { %v3712_v9 = vadd.f32 %v3704_v1, %v3554_v23  ;;  %v8843_v26 = vpop.f32.mrb[76].mxu1  ;;  %v12243_v21 = vpop.f32.mrb[92].mxu0 }
 0x461   : > { %v3871_v8 = vadd.f32 %v3863_v29, %v3713_v10  ;;  %v3707_v3 = vmul.f32 %v8843_v26, %v3701_v45  ;;  %v3679_v43 = vpop.f32.mrb[77].mxu1  ;;  %v12246_v52 = vpop.f32.mrb[93].mxu0 }
 0x462   : > { %v3870_v30 = vadd.f32 %v3862_v35, %v3712_v9  ;;  %v3706_v50 = vmul.f32 %v3701_v45, %v3679_v43 }
 0x463   : > { %v3715_v25 = vadd.f32 %v3707_v3, %v3557_v27  ;;  %v3866_v27 = vmul.f32 %v3859_v40, %v12195_v17 }
 0x464   : > { %v3714_v28 = vadd.f32 %v3706_v50, %v3556_v13  ;;  %v8846_v31 = vpop.f32.mrb[78].mxu1  ;;  %v12251_v36 = vpop.f32.mrb[94].mxu0 }
 0x465   : > { %v3873_v23 = vadd.f32 %v3865_v56, %v3715_v25  ;;  %v3709_v58 = vmul.f32 %v8846_v31, %v3701_v45  ;;  %v3689_v0 = vpop.f32.mrb[79].mxu1  ;;  %v12256_v29 = vpop.f32.mrb[95].mxu0  ;;  %v4177_v56 = vmul.f32 %v12198_v18, %v4175_v24  ;;  %v4176_v31 = vmul.f32 %v4175_v24, %v12201_v12 }
 0x466   : > { %v3872_v1 = vadd.f32 %v3864_v48, %v3714_v28  ;;  %v3708_v46 = vmul.f32 %v3701_v45, %v3689_v0 }
 0x467   : > { %v3717_v13 = vadd.f32 %v3709_v58, %v3559_v41  ;;  %v4179_v58 = vmul.f32 %v12204_v19, %v4175_v24 }
 0x468   : > { %v3716_v35 = vadd.f32 %v3708_v46, %v3558_v16  ;;  %v8893_v10 = vpop.f32.mrb[80].mxu1  ;;  %v12259_v9 = vpop.f32.mrb[96].mxu0  ;;  %v4178_v46 = vmul.f32 %v4175_v24, %v12207_v57  ;;  %v4333_v57 = vrot.slane %v12216_v15, %v12026_v2 }
 0x469   : > { %v3875_v26 = vadd.f32 %v3867_v62, %v3717_v13  ;;  %v4019_v3 = vmul.f32 %v8893_v10, %v4017_v6  ;;  %v3975_v43 = vpop.f32.mrb[81].mxu1  ;;  %v12262_v4 = vpop.f32.mrb[97].mxu0 }
 0x46a   : > { %v3874_v50 = vadd.f32 %v3866_v27, %v3716_v35  ;;  %v4018_v25 = vmul.f32 %v4017_v6, %v3975_v43 }
 0x46b   : > { %v4027_v48 = vadd.f32 %v4019_v3, %v3869_v20  ;;  %v4181_v3 = vmul.f32 %v12210_v39, %v4175_v24  ;;  %v4491_v39 = vrot.slane %v12216_v15, %v12032_v5 }
 0x46c   : > { %v4026_v45 = vadd.f32 %v4018_v25, %v3868_v53  ;;  %v8896_v28 = vpop.f32.mrb[82].mxu1  ;;  %v12265_v17 = vpop.f32.mrb[98].mxu0  ;;  %v4180_v25 = vmul.f32 %v4175_v24, %v12218_v38 }
 0x46d   : > { %v4185_v40 = vadd.f32 %v4177_v56, %v4027_v48  ;;  %v4021_v41 = vmul.f32 %v8896_v28, %v4017_v6  ;;  %v3985_v16 = vpop.f32.mrb[83].mxu1  ;;  %v12268_v0 = vpop.f32.mrb[99].mxu0 }
 0x46e   : > { %v4184_v62 = vadd.f32 %v4176_v31, %v4026_v45  ;;  %v4020_v18 = vmul.f32 %v4017_v6, %v3985_v16  ;;  %v4183_v16 = vmul.f32 %v12223_v22, %v4175_v24 }
 0x46f   : > { %v4029_v27 = vadd.f32 %v4021_v41, %v3871_v8 }
 0x470   : > { %v4028_v13 = vadd.f32 %v4020_v18, %v3870_v30  ;;  %v8899_v35 = vpop.f32.mrb[84].mxu1  ;;  %v12271_v12 = vpop.f32.mrb[100].mxu0 }
 0x471   : > { %v4187_v20 = vadd.f32 %v4179_v58, %v4029_v27  ;;  %v4023_v53 = vmul.f32 %v8899_v35, %v4017_v6  ;;  %v3995_v10 = vpop.f32.mrb[85].mxu1  ;;  %v12274_v43 = vpop.f32.mrb[101].mxu0 }
 0x472   : > { %v4186_v56 = vadd.f32 %v4178_v46, %v4028_v13  ;;  %v4022_v19 = vmul.f32 %v4017_v6, %v3995_v10 }
 0x473   : > { %v4031_v31 = vadd.f32 %v4023_v53, %v3873_v23  ;;  %v4182_v23 = vmul.f32 %v4175_v24, %v12228_v11 }
 0x474   : > { %v4030_v48 = vadd.f32 %v4022_v19, %v3872_v1  ;;  %v8902_v45 = vpop.f32.mrb[86].mxu1  ;;  %v12279_v8 = vpop.f32.mrb[102].mxu0 }
 0x475   : > { %v4189_v30 = vadd.f32 %v4181_v3, %v4031_v31  ;;  %v4025_v28 = vmul.f32 %v8902_v45, %v4017_v6  ;;  %v4005_v41 = vpop.f32.mrb[87].mxu1  ;;  %v12284_v58 = vpop.f32.mrb[103].mxu0  ;;  %v4493_v3 = vmul.f32 %v12231_v14, %v4491_v39  ;;  %v4492_v45 = vmul.f32 %v4491_v39, %v12234_v34 }
 0x476   : > { %v4188_v18 = vadd.f32 %v4180_v25, %v4030_v48  ;;  %v4024_v38 = vmul.f32 %v4017_v6, %v4005_v41  ;;  %v4494_v14 = vmul.f32 %v4491_v39, %v12240_v49  ;;  %v4649_v49 = vrot.slane %v12216_v15, %v12060_v37 }
 0x477   : > { %v4033_v1 = vadd.f32 %v4025_v28, %v3875_v26 }
 0x478   : > { %v4032_v46 = vadd.f32 %v4024_v38, %v3874_v50  ;;  %v8949_v27 = vpop.f32.mrb[88].mxu1  ;;  %v12287_v13 = vpop.f32.mrb[104].mxu0  ;;  %v4495_v50 = vmul.f32 %v12237_v7, %v4491_v39  ;;  %v4496_v7 = vmul.f32 %v4491_v39, %v12246_v52  ;;  %v4498_v52 = vmul.f32 %v4491_v39, %v12256_v29 }
 0x479   : > { %v4191_v35 = vadd.f32 %v4183_v16, %v4033_v1  ;;  %v4335_v53 = vmul.f32 %v8949_v27, %v4333_v57  ;;  %v4291_v10 = vpop.f32.mrb[89].mxu1  ;;  %v9089_v22 = vpop.f32.mrb[105].mxu0  ;;  %v4497_v27 = vmul.f32 %v12243_v21, %v4491_v39  ;;  %v4807_v21 = vrot.slane %v12216_v15, %v12066_v47 }
 0x47a   : > { %v4190_v19 = vadd.f32 %v4182_v23, %v4032_v46  ;;  %v4334_v31 = vmul.f32 %v4333_v57, %v4291_v10 }
 0x47b   : > { %v4343_v54 = vadd.f32 %v4335_v53, %v4185_v40  ;;  %v4808_v15 = vmul.f32 %v4807_v21, %v12262_v4  ;;  %v4813_v4 = vmul.f32 %v12271_v12, %v4807_v21  ;;  %v7666_v12 = vld [vmem:[%s12868_s6 + $0x18] ss:$0 sm:$0xff] }
 0x47c   : > { %v4342_v25 = vadd.f32 %v4334_v31, %v4184_v62  ;;  %v8952_v6 = vpop.f32.mrb[90].mxu1  ;;  %v12291_v48 = vpop.f32.mrb[106].mxu0 }
 0x47d   : > { %v4501_v11 = vadd.f32 %v4493_v3, %v4343_v54  ;;  %v4337_v24 = vmul.f32 %v8952_v6, %v4333_v57  ;;  %v4301_v26 = vpop.f32.mrb[91].mxu1  ;;  %v9092_v28 = vpop.f32.mrb[107].mxu0  ;;  %v4499_v6 = vmul.f32 %v12251_v36, %v4491_v39 }
 0x47e   : > { %v4500_v41 = vadd.f32 %v4492_v45, %v4342_v25  ;;  %v4336_v16 = vmul.f32 %v4333_v57, %v4301_v26 }
 0x47f   : > { %v4345_v38 = vadd.f32 %v4337_v24, %v4187_v20 }
 0x480   : > { %v4344_v23 = vadd.f32 %v4336_v16, %v4186_v56  ;;  %v8955_v1 = vpop.f32.mrb[92].mxu1  ;;  %v12295_v46 = vpop.f32.mrb[108].mxu0 }
 0x481   : > { %v4503_v34 = vadd.f32 %v4495_v50, %v4345_v38  ;;  %v4339_v40 = vmul.f32 %v8955_v1, %v4333_v57  ;;  %v4311_v62 = vpop.f32.mrb[93].mxu1  ;;  %v9095_v54 = vpop.f32.mrb[109].mxu0  ;;  %v4809_v1 = vmul.f32 %v12259_v9, %v4807_v21 }
 0x482   : > { %v4502_v53 = vadd.f32 %v4494_v14, %v4344_v23  ;;  %v4338_v10 = vmul.f32 %v4333_v57, %v4311_v62 }
 0x483   : > { %v4347_v3 = vadd.f32 %v4339_v40, %v4189_v30 }
 0x484   : > { %v4346_v22 = vadd.f32 %v4338_v10, %v4188_v18  ;;  %v8958_v31 = vpop.f32.mrb[94].mxu1  ;;  %v12301_v20 = vpop.f32.mrb[110].mxu0 }
 0x485   : > { %v4505_v56 = vadd.f32 %v4497_v27, %v4347_v3  ;;  %v4341_v45 = vmul.f32 %v8958_v31, %v4333_v57  ;;  %v4321_v25 = vpop.f32.mrb[95].mxu1  ;;  %v9098_v24 = vpop.f32.mrb[111].mxu0  ;;  %v4810_v3 = vmul.f32 %v4807_v21, %v12268_v0  ;;  %v4815_v0 = vmul.f32 %v12279_v8, %v4807_v21 }
 0x486   : > { %v4504_v26 = vadd.f32 %v4496_v7, %v4346_v22  ;;  %v4340_v50 = vmul.f32 %v4333_v57, %v4321_v25  ;;  %v4812_v24 = vmul.f32 %v4807_v21, %v12274_v43 }
 0x487   : > { %v4349_v30 = vadd.f32 %v4341_v45, %v4191_v35  ;;  %v4811_v35 = vmul.f32 %v12265_v17, %v4807_v21 }
 0x488   : > { %v4348_v18 = vadd.f32 %v4340_v50, %v4190_v19  ;;  %v9005_v28 = vpop.f32.mrb[96].mxu1  ;;  %v12307_v16 = vpop.f32.mrb[112].mxu0 }
 0x489   : > { %v4507_v14 = vadd.f32 %v4499_v6, %v4349_v30  ;;  %v4651_v38 = vmul.f32 %v9005_v28, %v4649_v49  ;;  %v4607_v23 = vpop.f32.mrb[97].mxu1  ;;  %v9101_v40 = vpop.f32.mrb[113].mxu0 }
 0x48a   : > { %v4506_v36 = vadd.f32 %v4498_v52, %v4348_v18  ;;  %v4650_v62 = vmul.f32 %v4649_v49, %v4607_v23 }
 0x48b   : > { %v4659_v27 = vadd.f32 %v4651_v38, %v4501_v11  ;;  %v4814_v38 = vmul.f32 %v4807_v21, %v12284_v58 }
 0x48c   : > { %v4658_v54 = vadd.f32 %v4650_v62, %v4500_v41  ;;  %v9008_v57 = vpop.f32.mrb[98].mxu1 }
 0x48d   : > { %v4817_v10 = vadd.f32 %v4809_v1, %v4659_v27  ;;  %v4653_v29 = vmul.f32 %v9008_v57, %v4649_v49  ;;  %v4617_v39 = vpop.f32.mrb[99].mxu1  ;;  %v5008_v1 = vpop.permute.xlu1 %5007  ;;  %v7667_v27 = vld [vmem:[#allocation4] ss:$0 sm:$0xff] }
 0x48e   : > { %v4816_v19 = vadd.f32 %v4808_v15, %v4658_v54  ;;  %v4652_v7 = vmul.f32 %v4649_v49, %v4617_v39 }
 0x48f   : > { %v4661_v22 = vadd.f32 %v4653_v29, %v4503_v34 }
 0x490   : > { %v4660_v31 = vadd.f32 %v4652_v7, %v4502_v53  ;;  %v9011_v9 = vpop.f32.mrb[100].mxu1 }
 0x491   : > { %v4819_v45 = vadd.f32 %v4811_v35, %v4661_v22  ;;  %v4655_v25 = vmul.f32 %v9011_v9, %v4649_v49  ;;  %v4627_v6 = vpop.f32.mrb[101].mxu1  ;;  %v5010_v8 = vpop.permute.xlu1 %5009 }
 0x492   : > { %v4818_v11 = vadd.f32 %v4810_v3, %v4660_v31  ;;  %v4654_v41 = vmul.f32 %v4649_v49, %v4627_v6  ;;  %v5006_v3 = vpop.permute.xlu0 %5005 }
 0x493   : > { %v4663_v50 = vadd.f32 %v4655_v25, %v4505_v56 }
 0x494   : > { %v4662_v52 = vadd.f32 %v4654_v41, %v4504_v26  ;;  %v9014_v30 = vpop.f32.mrb[102].mxu1 }
 0x495   : > { %v4821_v17 = vadd.f32 %v4813_v4, %v4663_v50  ;;  %v4657_v18 = vmul.f32 %v9014_v30, %v4649_v49  ;;  %v4637_v28 = vpop.f32.mrb[103].mxu1 }
 0x496   : > { %v4820_v34 = vadd.f32 %v4812_v24, %v4662_v52  ;;  %v4656_v53 = vmul.f32 %v4649_v49, %v4637_v28  ;;  %v5012_v24 = vpop.permute.xlu1 %5011 }
 0x497   : > { %v4665_v23 = vadd.f32 %v4657_v18, %v4507_v14 }
 0x498   : > { %v4664_v40 = vadd.f32 %v4656_v53, %v4506_v36  ;;  %v9061_v43 = vpop.f32.mrb[104].mxu1 }
 0x499   : > { %v4823_v56 = vadd.f32 %v4815_v0, %v4665_v23  ;;  %v4967_v26 = vmul.f32 %v9061_v43, %v7666_v12  ;;  %v4923_v62 = vpop.f32.mrb[105].mxu1 }
 0x49a   : > { %v4822_v15 = vadd.f32 %v4814_v38, %v4664_v40  ;;  %v4966_v54 = vmul.f32 %v7666_v12, %v4923_v62  ;;  %v5016_v23 = vpop.permute.xlu1 %5015 }
 0x49b   : > { %v4975_v57 = vadd.f32 %v4967_v26, %v4817_v10  ;;  %v5014_v26 = vpop.permute.xlu0 %5013 }
 0x49c   : > { %v4974_v29 = vadd.f32 %v4966_v54, %v4816_v19  ;;  %v9064_v49 = vpop.f32.mrb[106].mxu1 }
 0x49d   : > { %v4990_v39 = vadd.f32 %v7667_v27, %v4975_v57  ;;  %v4969_v58 = vmul.f32 %v9064_v49, %v7666_v12  ;;  %v4933_v21 = vpop.f32.mrb[107].mxu1 }
 0x49e   : > { %v4989_v35 = vadd.f32 %v7667_v27, %v4974_v29  ;;  %v4968_v7 = vmul.f32 %v7666_v12, %v4933_v21 }
 0x49f   : > { %v5030_v14 = vmul.f32 %v5008_v1, %v4990_v39  ;;  %v4977_v22 = vadd.f32 %v4969_v58, %v4819_v45  ;;  %v5020_v58 = vpop.permute.xlu1 %5019 }
 0x4a0   : > { %v5029_v36 = vmul.f32 %v5006_v3, %v4989_v35  ;;  %v4976_v31 = vadd.f32 %v4968_v7, %v4818_v11  ;;  %v9067_v9 = vpop.f32.mrb[108].mxu1  ;;  %v5018_v7 = vpop.permute.xlu0 %5017 }
 0x4a1   : > { %v5038_v25 = vmax.f32 %v5030_v14, 0.0  ;;  %v4992_v6 = vadd.f32 %v7667_v27, %v4977_v22  ;;  %v4971_v4 = vmul.f32 %v9067_v9, %v7666_v12  ;;  %v4943_v41 = vpop.f32.mrb[109].mxu1 }
 0x4a2   : > { %v5037_v10 = vmax.f32 %v5029_v36, 0.0  ;;  %v4991_v50 = vadd.f32 %v7667_v27, %v4976_v31  ;;  %v4970_v19 = vmul.f32 %v7666_v12, %v4943_v41 }
 0x4a3   : > { %5046 = vst.msk [vmem:[#allocation3 + $0x8] sm:$0xff] %vm997_vm0, %v5038_v25  ;;  %v5032_v52 = vmul.f32 %v5012_v24, %v4992_v6  ;;  %v4979_v30 = vadd.f32 %v4971_v4, %v4821_v17  ;;  %v5273_v17 = vmul.f32 %v12287_v13, %v12287_v13  ;;  %v5275_v25 = vmul.f32 %v12295_v46, %v12295_v46 }
 0x4a4   : > { %5045 = vst.msk [vmem:[#allocation3] sm:$0xff] %vm997_vm0, %v5037_v10  ;;  %v5031_v18 = vmul.f32 %v5010_v8, %v4991_v50  ;;  %v4978_v28 = vadd.f32 %v4970_v19, %v4820_v34  ;;  %v9070_v45 = vpop.f32.mrb[110].mxu1  ;;  %v5276_v50 = vmul.f32 %v12301_v20, %v12301_v20 }
 0x4a5   : > { %v5040_v0 = vmax.f32 %v5032_v52, 0.0  ;;  %v4994_v11 = vadd.f32 %v7667_v27, %v4979_v30  ;;  %v4973_v53 = vmul.f32 %v9070_v45, %v7666_v12  ;;  %v4953_v38 = vpop.f32.mrb[111].mxu1 }
 0x4a6   : > { %v5039_v1 = vmax.f32 %v5031_v18, 0.0  ;;  %v4993_v40 = vadd.f32 %v7667_v27, %v4978_v28  ;;  %v4972_v43 = vmul.f32 %v7666_v12, %v4953_v38  ;;  %v5277_v28 = vmul.f32 %v12307_v16, %v12307_v16 }
 0x4a7   : > { %5048 = vst.msk [vmem:[#allocation3 + $0x18] sm:$0xff] %vm997_vm0, %v5040_v0  ;;  %v5034_v62 = vmul.f32 %v5016_v23, %v4994_v11  ;;  %v4981_v54 = vadd.f32 %v4973_v53, %v4823_v56 }
 0x4a8   : > { %5047 = vst.msk [vmem:[#allocation3 + $0x10] sm:$0xff] %vm997_vm0, %v5039_v1  ;;  %v5033_v34 = vmul.f32 %v5014_v26, %v4993_v40  ;;  %v4980_v57 = vadd.f32 %v4972_v43, %v4822_v15  ;;  %v12326_v8 = vpop.f32.mrb[112].mxu1  ;;  %v5274_v15 = vmul.f32 %v12291_v48, %v12291_v48 }
 0x4a9   : > { %v5042_v29 = vmax.f32 %v5034_v62, 0.0  ;;  %v4996_v49 = vadd.f32 %v7667_v27, %v4981_v54  ;;  %v5278_v39 = vmul.f32 %v12326_v8, %v12326_v8  ;;  %v9120_v12 = vpop.f32.mrb[113].mxu1 }
 0x4aa   : > { %v5041_v21 = vmax.f32 %v5033_v34, 0.0  ;;  %v4995_v35 = vadd.f32 %v7667_v27, %v4980_v57  ;;  %v12943_v12 = vmov 0.0|0.0  }
 0x4ab   : > { %5050 = vst.msk [vmem:[#allocation3 + $0x28] sm:$0xff] %vm997_vm0, %v5042_v29  ;;  %v5036_v56 = vmul.f32 %v5020_v58, %v4996_v49  ;;  %v5283_v3 = vadd.f32 %v5278_v39, %v5273_v17 }
 0x4ac   : > { %5049 = vst.msk [vmem:[#allocation3 + $0x20] sm:$0xff] %vm997_vm0, %v5041_v21  ;;  %v5035_v14 = vmul.f32 %v5018_v7, %v4995_v35  ;;  %v12334_v22 = vpop.f32.mrb[114].mxu1 }
 0x4ad   : > { %v5044_v36 = vmax.f32 %v5036_v56, 0.0  ;;  %10109 = vrsqrt.f32 %v5283_v3  ;;  %v9123_v31 = vpop.f32.mrb[115].mxu1  ;;  %v5279_v27 = vmul.f32 %v12334_v22, %v12334_v22  ;;  %vm5290_vm2 = vcmp.eq.f32.partialorder %v5283_v3, inf }
 0x4ae   : > { %v5043_v9 = vmax.f32 %v5035_v14, 0.0  ;;  %v5293_v26 = vand.u32 2147483648, %v5283_v3  ;;  %vm5292_vm4 = vcmp.eq.f32.partialorder %v5283_v3, 0.0 }
 0x4af   : > { %5052 = vst.msk [vmem:[#allocation3 + $0x38] sm:$0xff] %vm997_vm0, %v5044_v36  ;;  %v5284_v6 = vadd.f32 %v5279_v27, %v5274_v15 }
 0x4b0   : > { %5051 = vst.msk [vmem:[#allocation3 + $0x30] sm:$0xff] %vm997_vm0, %v5043_v9  ;;  %v12342_v4 = vpop.f32.mrb[116].mxu1 }
 0x4b1   : > { %v5280_v41 = vmul.f32 %v12342_v4, %v12342_v4  ;;  %v9126_v24 = vpop.f32.mrb[117].mxu1  ;;  %10111 = vrsqrt.f32 %v5284_v6  ;;  %vm5297_vm3 = vcmp.eq.f32.partialorder %v5284_v6, inf  ;;  %v5300_v62 = vand.u32 2147483648, %v5284_v6 }
 0x4b2   : > { %vm5299_vm5 = vcmp.eq.f32.partialorder %v5284_v6, 0.0 }
 0x4b3   : > { %v5285_v10 = vadd.f32 %v5280_v41, %v5275_v25  ;;  %v12944_v25 = vmov 0.0   ;;  %v7683_v41 = vld [vmem:[%s12872_s10 + $0x28] sm:$0xff] }
 0x4b4   : > { %v12348_v19 = vpop.f32.mrb[118].mxu1 }
 0x4b5   : > { %10113 = vrsqrt.f32 %v5285_v10  ;;  %v9129_v52 = vpop.f32.mrb[119].mxu1  ;;  %v5281_v30 = vmul.f32 %v12348_v19, %v12348_v19  ;;  %vm5304_vm6 = vcmp.eq.f32.partialorder %v5285_v10, inf  ;;  %v5307_v35 = vand.u32 2147483648, %v5285_v10 }
 0x4b6   : > { %vm5306_vm8 = vcmp.eq.f32.partialorder %v5285_v10, 0.0  ;;  %v5327_v52 = vld [vmem:[%s12872_s10 + $0x10] sm:$0xff] }
 0x4b7   : > { %v10110_v18 = vpop.eup %10109  ;;  %v5286_v45 = vadd.f32 %v5281_v30, %v5276_v50  ;;  %v7684_v50 = vld [vmem:[%s12872_s10 + $0x30] sm:$0xff]  ;;  %v7685_v30 = vld [vmem:[%s12872_s10 + $0x38] sm:$0xff] }
 0x4b8   : > { %v12354_v0 = vpop.f32.mrb[120].mxu1  ;;  %v5289_v11 = vmul.f32 %v10110_v18, %v5283_v3  ;;  %v5328_v18 = vld [vmem:[%s12872_s10 + $0x18] sm:$0xff] }
 0x4b9   : > { %v5282_v53 = vmul.f32 %v12354_v0, %v12354_v0  ;;  %v9132_v38 = vpop.f32.mrb[121].mxu1  ;;  %10115 = vrsqrt.f32 %v5286_v45  ;;  %vm5311_vm7 = vcmp.eq.f32.partialorder %v5286_v45, inf  ;;  %v5314_v7 = vand.u32 2147483648, %v5286_v45 }
 0x4ba   : > { %v5291_v40 = vsel %vm5290_vm2, %v5283_v3, %v5289_v11  ;;  %vm5313_vm9 = vcmp.eq.f32.partialorder %v5286_v45, 0.0  ;;  %v7687_v11 = vld [vmem:[%s12872_s10 + $0x48] sm:$0xff]  ;;  %v7703_v38 = vld [vmem:[%s12872_s10 + $0x78] sm:$0xff] }
 0x4bb   : > { %v5287_v23 = vadd.f32 %v5282_v53, %v5277_v28  ;;  %v10112_v1 = vpop.eup %10111  ;;  %v5294_v34 = vsel %vm5292_vm4, %v5293_v26, %v5291_v40  ;;  %v7686_v28 = vld [vmem:[%s12872_s10 + $0x40] sm:$0xff]  ;;  %v7693_v53 = vld [vmem:[%s12872_s10 + $0x50] sm:$0xff]  ;;  %v7696_v26 = vld [vmem:[%s12872_s10 + $0x68] sm:$0xff] }
 0x4bc   : > { %v5296_v43 = vmul.f32 %v10112_v1, %v5284_v6  ;;  %v7704_v1 = vld [vmem:[%s12872_s10 + $0x80] sm:$0xff] }
 0x4bd   : > { %10117 = vrsqrt.f32 %v5287_v23  ;;  %vm5318_vm10 = vcmp.eq.f32.partialorder %v5287_v23, inf  ;;  %v5321_v27 = vand.u32 2147483648, %v5287_v23  ;;  %vm5320_vm11 = vcmp.eq.f32.partialorder %v5287_v23, 0.0  ;;  %v7695_v40 = vld [vmem:[%s12872_s10 + $0x60] sm:$0xff] }
 0x4be   : > { %v5298_v17 = vsel %vm5297_vm3, %v5284_v6, %v5296_v43  ;;  %v5325_v6 = vld [vmem:[%s12872_s10] sm:$0xff]  ;;  %v7705_v43 = vld [vmem:[%s12872_s10 + $0x88] sm:$0xff] }
 0x4bf   : > { %v10114_v54 = vpop.eup %10113  ;;  %v5301_v57 = vsel %vm5299_vm5, %v5300_v62, %v5298_v17  ;;  %v7706_v62 = vld [vmem:[%s12872_s10 + $0x90] sm:$0xff]  ;;  %v7707_v17 = vld [vmem:[%s12872_s10 + $0x98] sm:$0xff] }
 0x4c0   : > { %v12358_v29 = vpack.c.bf16 %v5301_v57, %v5294_v34  ;;  %v5303_v49 = vmul.f32 %v10114_v54, %v5285_v10  ;;  %v7697_v54 = vld [vmem:[%s12872_s10 + $0x70] sm:$0xff]  ;;  %v7713_v34 = vld [vmem:[%s12872_s10 + $0xa0] sm:$0xff]  ;;  %v7723_v57 = vld [vmem:[%s12872_s10 + $0xc8] sm:$0xff] }
 0x4c2   : > { %9872 = vmatpush3.bf16.msra.mxu0 %v12358_v29  ;;  %9878 = vmatpush3.bf16.msra.mxu1 %v12358_v29  ;;  %v5305_v58 = vsel %vm5304_vm6, %v5285_v10, %v5303_v49  ;;  %v5326_v10 = vld [vmem:[%s12872_s10 + $0x8] sm:$0xff] }
 0x4c3   : > { %v10116_v39 = vpop.eup %10115  ;;  %9873 = vmatprep.subr.bf16.mxu0 %v12943_v12  ;;  %9879 = vmatprep.subr.bf16.mxu1 %v12943_v12  ;;  %v5308_v14 = vsel %vm5306_vm8, %v5307_v35, %v5305_v58  ;;  %v7714_v49 = vld [vmem:[%s12872_s10 + $0xa8] sm:$0xff]  ;;  %v7715_v58 = vld [vmem:[%s12872_s10 + $0xb0] sm:$0xff]  ;;  %v7716_v35 = vld [vmem:[%s12872_s10 + $0xb8] sm:$0xff] }
 0x4c4   : > { %v5310_v21 = vmul.f32 %v10116_v39, %v5286_v45  ;;  %v7724_v39 = vld [vmem:[%s12872_s10 + $0xd0] sm:$0xff] }
 0x4c6   : > { %v5312_v3 = vsel %vm5311_vm7, %v5286_v45, %v5310_v21  ;;  %v5329_v45 = vld [vmem:[%s12872_s10 + $0x20] sm:$0xff]  ;;  %v7725_v21 = vld [vmem:[%s12872_s10 + $0xd8] sm:$0xff] }
 0x4c7   : > { %v10118_v56 = vpop.eup %10117  ;;  %v5315_v15 = vsel %vm5313_vm9, %v5314_v7, %v5312_v3  ;;  %v7726_v7 = vld [vmem:[%s12872_s10 + $0xe0] sm:$0xff]  ;;  %v7727_v3 = vld [vmem:[%s12872_s10 + $0xe8] sm:$0xff] }
 0x4c8   : > { %v5317_v36 = vmul.f32 %v10118_v56, %v5287_v23  ;;  %v12364_v31 = vpack.c.bf16 %v5315_v15, %v5308_v14  ;;  %v7717_v56 = vld [vmem:[%s12872_s10 + $0xc0] sm:$0xff]  ;;  %v7733_v14 = vld [vmem:[%s12872_s10 + $0xf0] sm:$0xff]  ;;  %v7743_v15 = vld [vmem:[%s12872_s10 + $0x118] sm:$0xff] }
 0x4ca   : > { %v5319_v9 = vsel %vm5318_vm10, %v5287_v23, %v5317_v36  ;;  %9875 = vmatpush3.bf16.msra.mxu0 %v12364_v31  ;;  %9881 = vmatpush3.bf16.msra.mxu1 %v12364_v31  ;;  %v7694_v23 = vld [vmem:[%s12872_s10 + $0x58] sm:$0xff] }
 0x4cb   : > { %9141 = vmatprep.subr.mxu0 %v12944_v25  ;;  %9166 = vmatprep.subr.mxu1 %v12944_v25  ;;  %v12376_v24 = vsel %vm5320_vm11, %v5321_v27, %v5319_v9  ;;  %v7734_v36 = vld [vmem:[%s12872_s10 + $0xf8] sm:$0xff]  ;;  %v7744_v9 = vld [vmem:[%s12872_s10 + $0x120] sm:$0xff]  ;;  %v7746_v27 = vld [vmem:[%s12872_s10 + $0x130] sm:$0xff] }
 0x4ce   : > { %9142 = vmatpush3.msra.mxu0 %v12376_v24  ;;  %9167 = vmatpush3.msra.mxu1 %v12376_v24 }
 0x4cf   : > { %9144 = vmatmul.mubr.msk.f32.vlgmr.msra.gmra.mrb[114].mxu0 %vm5330_vm12, %v5325_v6  ;;  %9169 = vmatmul.mubr.msk.f32.vlgmr.msra.gmra.mrb[122].mxu1 %vm5330_vm12, %v7683_v41  ;;  %v7737_v6 = vld [vmem:[%s12872_s10 + $0x110] sm:$0xff]  ;;  %v7747_v41 = vld [vmem:[%s12872_s10 + $0x138] sm:$0xff] }
 0x4d0   : > { %9882 = vmatprep.subr.bf16.mxu0 %v12943_v12  ;;  %9888 = vmatprep.subr.bf16.mxu1 %v12943_v12 }
 0x4d1   : > { %9884 = vmatpush3.bf16.msra.mxu0 %v12358_v29  ;;  %9890 = vmatpush3.bf16.msra.mxu1 %v12358_v29 }
 0x4d2   : > { %9146 = vmatprep.mubr.msk.f32.mxu0 %vm10398_vm1, %v12944_v25  ;;  %9171 = vmatprep.mubr.msk.f32.mxu1 %vm10398_vm1, %v12944_v25 }
 0x4d3   : > { %9147 = vmatmul.mubr.msk.f32.gmra.mrb[116].mxu0 %vm5330_vm12, %v5326_v10  ;;  %9172 = vmatmul.mubr.msk.f32.gmra.mrb[124].mxu1 %vm5330_vm12, %v7684_v50  ;;  %v7754_v10 = vld [vmem:[%s12872_s10 + $0x148] sm:$0xff]  ;;  %v7755_v50 = vld [vmem:[%s12872_s10 + $0x150] sm:$0xff] }
 0x4d4   : > { %9885 = vmatprep.subr.bf16.mxu0 %v12943_v12  ;;  %9891 = vmatprep.subr.bf16.mxu1 %v12943_v12 }
 0x4d5   : > { %9887 = vmatpush3.bf16.msra.mxu0 %v12364_v31  ;;  %9893 = vmatpush3.bf16.msra.mxu1 %v12364_v31 }
 0x4d6   : > { %9149 = vmatprep.mubr.msk.f32.mxu0 %vm10398_vm1, %v12944_v25  ;;  %9174 = vmatprep.mubr.msk.f32.mxu1 %vm10398_vm1, %v12944_v25 }
 0x4d7   : > { %9150 = vmatmul.mubr.msk.f32.gmra.mrb[118].mxu0 %vm5330_vm12, %v5327_v52  ;;  %9175 = vmatmul.mubr.msk.f32.gmra.mrb[126].mxu1 %vm5330_vm12, %v7685_v30  ;;  %v7756_v52 = vld [vmem:[%s12872_s10 + $0x158] sm:$0xff]  ;;  %v7757_v30 = vld [vmem:[%s12872_s10 + $0x160] sm:$0xff] }
 0x4d8   : > { %9191 = vmatprep.subr.mxu0 %v12944_v25  ;;  %9216 = vmatprep.subr.mxu1 %v12944_v25 }
 0x4d9   : > { %9192 = vmatpush3.msra.mxu0 %v12376_v24  ;;  %9217 = vmatpush3.msra.mxu1 %v12376_v24 }
 0x4da   : > { %9152 = vmatprep.mubr.msk.f32.mxu0 %vm10398_vm1, %v12944_v25  ;;  %9177 = vmatprep.mubr.msk.f32.mxu1 %vm10398_vm1, %v12944_v25 }
 0x4db   : > { %9153 = vmatmul.mubr.msk.f32.gmra.mrb[120].mxu0 %vm5330_vm12, %v5328_v18  ;;  %9178 = vmatmul.mubr.msk.f32.gmra.mrb[128].mxu1 %vm5330_vm12, %v7686_v28  ;;  %v10081_v18 = vld [vmem:[%s12875_s13] sm:$0xff]   ;;  %v10082_v28 = vld [vmem:[%s12875_s13 + $0x8] sm:$0xff]  }
 0x4dc   : > { %9155 = vmatprep.mubr.msk.f32.mxu0 %vm10398_vm1, %v12944_v25  ;;  %9180 = vmatprep.mubr.msk.f32.mxu1 %vm10398_vm1, %v12944_v25 }
 0x4dd   : > { %9894 = vmatprep.subr.bf16.mxu0 %v12943_v12  ;;  %9900 = vmatprep.subr.bf16.mxu1 %v12943_v12 }
 0x4df   : > { %9156 = vmatmul.mubr.msk.f32.gmra.mrb[122].mxu0 %vm5330_vm12, %v5329_v45  ;;  %9181 = vmatmul.mubr.msk.f32.gmra.mrb[130].mxu1 %vm5330_vm12, %v7687_v11  ;;  %v10083_v45 = vld [vmem:[%s12875_s13 + $0x10] sm:$0xff]   ;;  %v10084_v11 = vld [vmem:[%s12875_s13 + $0x18] sm:$0xff]  }
 0x4e0   : > { %9193 = vmatprep.mubr.msk.f32.mxu0 %vm10398_vm1, %v12944_v25  ;;  %9218 = vmatprep.mubr.msk.f32.mxu1 %vm10398_vm1, %v12944_v25 }
 0x4e3   : > { %9194 = vmatmul.mubr.msk.f32.vlgmr.msra.gmra.mrb[124].mxu0 %vm5330_vm12, %v7693_v53  ;;  %9219 = vmatmul.mubr.msk.f32.vlgmr.msra.gmra.mrb[132].mxu1 %vm5330_vm12, %v7703_v38  ;;  %v12703_v53 = vld [vmem:[%s12873_s11] sm:$0xff] }
 0x4e4   : > { %9896 = vmatpush3.bf16.msra.mxu0 %v12358_v29  ;;  %9902 = vmatpush3.bf16.msra.mxu1 %v12358_v29  ;;  %v5439_v38 = vrot.slane %v12703_v53, %v10861_v59 }
 0x4e5   : > { %9196 = vmatprep.mubr.msk.f32.mxu0 %vm10398_vm1, %v12944_v25  ;;  %9221 = vmatprep.mubr.msk.f32.mxu1 %vm10398_vm1, %v12944_v25 }
 0x4e6   : > { %9897 = vmatprep.subr.bf16.mxu0 %v12943_v12  ;;  %9903 = vmatprep.subr.bf16.mxu1 %v12943_v12 }
 0x4e7   : > { %9197 = vmatmul.mubr.msk.f32.gmra.mrb[126].mxu0 %vm5330_vm12, %v7694_v23  ;;  %9222 = vmatmul.mubr.msk.f32.gmra.mrb[134].mxu1 %vm5330_vm12, %v7704_v1  ;;  %v5564_v23 = vrot.slane %v12703_v53, %v10867_v61 }
 0x4e8   : > { %9899 = vmatpush3.bf16.msra.mxu0 %v12364_v31  ;;  %9905 = vmatpush3.bf16.msra.mxu1 %v12364_v31 }
 0x4e9   : > { %9199 = vmatprep.mubr.msk.f32.mxu0 %vm10398_vm1, %v12944_v25  ;;  %9224 = vmatprep.mubr.msk.f32.mxu1 %vm10398_vm1, %v12944_v25 }
 0x4ea   : > { %9241 = vmatprep.subr.mxu0 %v12944_v25  ;;  %9266 = vmatprep.subr.mxu1 %v12944_v25 }
 0x4eb   : > { %9200 = vmatmul.mubr.msk.f32.gmra.mrb[128].mxu0 %vm5330_vm12, %v7695_v40  ;;  %9225 = vmatmul.mubr.msk.f32.gmra.mrb[136].mxu1 %vm5330_vm12, %v7705_v43 }
 0x4ec   : > { %9242 = vmatpush3.msra.mxu0 %v12376_v24  ;;  %9267 = vmatpush3.msra.mxu1 %v12376_v24 }
 0x4ed   : > { %9202 = vmatprep.mubr.msk.f32.mxu0 %vm10398_vm1, %v12944_v25  ;;  %9227 = vmatprep.mubr.msk.f32.mxu1 %vm10398_vm1, %v12944_v25 }
 0x4ee   : > { %9906 = vmatprep.subr.bf16.mxu0 %v12943_v12  ;;  %9912 = vmatprep.subr.bf16.mxu1 %v12943_v12 }
 0x4ef   : > { %9203 = vmatmul.mubr.msk.f32.gmra.mrb[130].mxu0 %vm5330_vm12, %v7696_v26  ;;  %9228 = vmatmul.mubr.msk.f32.gmra.mrb[138].mxu1 %vm5330_vm12, %v7706_v62 }
 0x4f0   : > { %9205 = vmatprep.mubr.msk.f32.mxu0 %vm10398_vm1, %v12944_v25  ;;  %9230 = vmatprep.mubr.msk.f32.mxu1 %vm10398_vm1, %v12944_v25 }
 0x4f3   : > { %9206 = vmatmul.mubr.msk.f32.gmra.mrb[132].mxu0 %vm5330_vm12, %v7697_v54  ;;  %9231 = vmatmul.mubr.msk.f32.gmra.mrb[140].mxu1 %vm5330_vm12, %v7707_v17 }
 0x4f4   : > { %9243 = vmatprep.mubr.msk.f32.mxu0 %vm10398_vm1, %v12944_v25  ;;  %9268 = vmatprep.mubr.msk.f32.mxu1 %vm10398_vm1, %v12944_v25 }
 0x4f7   : > { %9244 = vmatmul.mubr.msk.f32.vlgmr.msra.gmra.mrb[134].mxu0 %vm5330_vm12, %v7713_v34  ;;  %9269 = vmatmul.mubr.msk.f32.vlgmr.msra.gmra.mrb[142].mxu1 %vm5330_vm12, %v7723_v57 }
 0x4f8   : > { %9908 = vmatpush3.bf16.msra.mxu0 %v12358_v29  ;;  %9914 = vmatpush3.bf16.msra.mxu1 %v12358_v29 }
 0x4f9   : > { %9246 = vmatprep.mubr.msk.f32.mxu0 %vm10398_vm1, %v12944_v25  ;;  %9909 = vmatprep.subr.bf16.mxu0 %v12943_v12 }
 0x4fa   : > { %9915 = vmatprep.subr.bf16.mxu1 %v12943_v12  ;;  %9271 = vmatprep.mubr.msk.f32.mxu1 %vm10398_vm1, %v12944_v25 }
 0x4fb   : > { %9247 = vmatmul.mubr.msk.f32.gmra.mrb[136].mxu0 %vm5330_vm12, %v7714_v49  ;;  %9272 = vmatmul.mubr.msk.f32.gmra.mrb[144].mxu1 %vm5330_vm12, %v7724_v39 }
 0x4fc   : > { %9911 = vmatpush3.bf16.msra.mxu0 %v12364_v31  ;;  %9917 = vmatpush3.bf16.msra.mxu1 %v12364_v31 }
 0x4fd   : > { %9249 = vmatprep.mubr.msk.f32.mxu0 %vm10398_vm1, %v12944_v25  ;;  %9291 = vmatprep.subr.mxu0 %v12944_v25 }
 0x4fe   : > { %9316 = vmatprep.subr.mxu1 %v12944_v25  ;;  %9274 = vmatprep.mubr.msk.f32.mxu1 %vm10398_vm1, %v12944_v25 }
 0x4ff   : > { %9250 = vmatmul.mubr.msk.f32.gmra.mrb[138].mxu0 %vm5330_vm12, %v7715_v58  ;;  %9275 = vmatmul.mubr.msk.f32.gmra.mrb[146].mxu1 %vm5330_vm12, %v7725_v21 }
 0x500   : > { %9292 = vmatpush3.msra.mxu0 %v12376_v24  ;;  %9317 = vmatpush3.msra.mxu1 %v12376_v24 }
 0x501   : > { %9252 = vmatprep.mubr.msk.f32.mxu0 %vm10398_vm1, %v12944_v25  ;;  %9277 = vmatprep.mubr.msk.f32.mxu1 %vm10398_vm1, %v12944_v25 }
 0x502   : > { %9918 = vmatprep.subr.bf16.mxu0 %v12943_v12  ;;  %9358 = vmatprep.subr.bf16.mxu1 %v12944_v25 }
 0x503   : > { %9253 = vmatmul.mubr.msk.f32.gmra.mrb[140].mxu0 %vm5330_vm12, %v7716_v35  ;;  %9278 = vmatmul.mubr.msk.f32.gmra.mrb[148].mxu1 %vm5330_vm12, %v7726_v7 }
 0x504   : > { %9255 = vmatprep.mubr.msk.f32.mxu0 %vm10398_vm1, %v12944_v25  ;;  %9280 = vmatprep.mubr.msk.f32.mxu1 %vm10398_vm1, %v12944_v25 }
 0x507   : > { %9256 = vmatmul.mubr.msk.f32.gmra.mrb[142].mxu0 %vm5330_vm12, %v7717_v56  ;;  %9281 = vmatmul.mubr.msk.f32.gmra.mrb[150].mxu1 %vm5330_vm12, %v7727_v3 }
 0x508   : > { %9293 = vmatprep.mubr.msk.f32.mxu0 %vm10398_vm1, %v12944_v25  ;;  %9318 = vmatprep.mubr.msk.f32.mxu1 %vm10398_vm1, %v12944_v25 }
 0x50b   : > { %9294 = vmatmul.mubr.msk.f32.vlgmr.msra.gmra.mrb[144].mxu0 %vm5330_vm12, %v7733_v14  ;;  %9319 = vmatmul.mubr.msk.f32.vlgmr.msra.gmra.mrb[152].mxu1 %vm5330_vm12, %v7743_v15 }
 0x50c   : > { %9920 = vmatpush3.bf16.msra.mxu0 %v12358_v29  ;;  %9296 = vmatprep.mubr.msk.f32.mxu0 %vm10398_vm1, %v12944_v25  ;;  %v7735_v29 = vld [vmem:[%s12872_s10 + $0x100] sm:$0xff] }
 0x50d   : > { %9921 = vmatprep.subr.bf16.mxu0 %v12943_v12  ;;  %9321 = vmatprep.mubr.msk.f32.mxu1 %vm10398_vm1, %v12944_v25  ;;  %v7745_v12 = vld [vmem:[%s12872_s10 + $0x128] sm:$0xff] }
 0x50e   : > { %9359 = vmatpush3.bf16.msra.mxu1 %v10081_v18 }
 0x50f   : > { %9297 = vmatmul.mubr.msk.f32.gmra.mrb[146].mxu0 %vm5330_vm12, %v7734_v36  ;;  %9322 = vmatmul.mubr.msk.f32.gmra.mrb[154].mxu1 %vm5330_vm12, %v7744_v9 }
 0x510   : > { %9923 = vmatpush3.bf16.msra.mxu0 %v12364_v31  ;;  %9299 = vmatprep.mubr.msk.f32.mxu0 %vm10398_vm1, %v12944_v25  ;;  %v7736_v31 = vld [vmem:[%s12872_s10 + $0x108] sm:$0xff] }
 0x511   : > { %9341 = vmatprep.subr.mxu0 %v12944_v25  ;;  %9324 = vmatprep.mubr.msk.f32.mxu1 %vm10398_vm1, %v12944_v25 }
 0x512   : > { %9360 = vmatprep.subr.bf16.mxu1 %v12944_v25 }
 0x513   : > { %9300 = vmatmul.mubr.msk.f32.gmra.mrb[148].mxu0 %vm5330_vm12, %v7735_v29  ;;  %9325 = vmatmul.mubr.msk.f32.gmra.mrb[156].mxu1 %vm5330_vm12, %v7745_v12 }
 0x514   : > { %9342 = vmatpush3.msra.mxu0 %v12376_v24  ;;  %9302 = vmatprep.mubr.msk.f32.mxu0 %vm10398_vm1, %v12944_v25  ;;  %v7753_v24 = vld [vmem:[%s12872_s10 + $0x140] sm:$0xff] }
 0x515   : > { %9327 = vmatprep.mubr.msk.f32.mxu1 %vm10398_vm1, %v12944_v25  ;;  %9361 = vmatpush3.bf16.msra.mxu1 %v10082_v28  ;;  %v5814_v28 = vrot.slane %v12703_v53, %v11996_v63 }
 0x516   : > { %9362 = vmatprep.subr.bf16.mxu1 %v12944_v25 }
 0x517   : > { %9303 = vmatmul.mubr.msk.f32.gmra.mrb[150].mxu0 %vm5330_vm12, %v7736_v31  ;;  %9328 = vmatmul.mubr.msk.f32.gmra.mrb[158].mxu1 %vm5330_vm12, %v7746_v27 }
 0x518   : > { %9305 = vmatprep.mubr.msk.f32.mxu0 %vm10398_vm1, %v12944_v25  ;;  %9330 = vmatprep.mubr.msk.f32.mxu1 %vm10398_vm1, %v12944_v25 }
 0x519   : > { %9363 = vmatpush3.bf16.msra.mxu1 %v10083_v45 }
 0x51a   : > { %9364 = vmatprep.subr.bf16.mxu1 %v12944_v25 }
 0x51b   : > { %9306 = vmatmul.mubr.msk.f32.gmra.mrb[152].mxu0 %vm5330_vm12, %v7737_v6  ;;  %9331 = vmatmul.mubr.msk.f32.gmra.mrb[160].mxu1 %vm5330_vm12, %v7747_v41 }
 0x51c   : > { %9343 = vmatprep.mubr.msk.f32.mxu0 %vm10398_vm1, %v12944_v25  ;;  %9366 = vmatprep.mubr.msk.bf16.mxu1 %vm10398_vm1, %v12944_v25 }
 0x51d   : > { %9365 = vmatpush3.bf16.msra.mxu1 %v10084_v11 }
 0x51f   : > { %9344 = vmatmul.mubr.msk.f32.vlgmr.msra.gmra.mrb[154].mxu0 %vm5330_vm12, %v7753_v24 }
 0x520   : > { %9346 = vmatprep.mubr.msk.f32.mxu0 %vm10398_vm1, %v12944_v25 }
 0x523   : > { %9347 = vmatmul.mubr.msk.f32.gmra.mrb[156].mxu0 %vm5330_vm12, %v7754_v10 }
 0x524   : > { %9349 = vmatprep.mubr.msk.f32.mxu0 %vm10398_vm1, %v12944_v25 }
 0x527   : > { %9350 = vmatmul.mubr.msk.f32.gmra.mrb[158].mxu0 %vm5330_vm12, %v7755_v50 }
 0x528   : > { %9352 = vmatprep.mubr.msk.f32.mxu0 %vm10398_vm1, %v12944_v25 }
 0x52b   : > { %9353 = vmatmul.mubr.msk.f32.gmra.mrb[160].mxu0 %vm5330_vm12, %v7756_v52 }
 0x52c   : > { %9355 = vmatprep.mubr.msk.f32.mxu0 %vm10398_vm1, %v12944_v25 }
 0x52f   : > { %9356 = vmatmul.mubr.msk.f32.gmra.mrb[162].mxu0 %vm5330_vm12, %v7757_v30  ;;  %v5689_v30 = vrot.slane %v12703_v53, %v11993_v60 }
 0x5a2   : > { %v5412_v1 = vpop.f32.mrb[114].mxu0  ;;  %v5537_v40 = vpop.f32.mrb[122].mxu1 }
 0x5a3   : > { %v5440_v43 = vmul.f32 %v5439_v38, %v5412_v1  ;;  %v5565_v26 = vmul.f32 %v5564_v23, %v5537_v40  ;;  %v9145_v62 = vpop.f32.mrb[115].mxu0  ;;  %v9170_v54 = vpop.f32.mrb[123].mxu1 }
 0x5a5   : > { %v5570_v17 = vadd.f32 %v5565_v26, %v5440_v43 }
 0x5a6   : > { %v5417_v34 = vpop.f32.mrb[116].mxu0  ;;  %v5542_v57 = vpop.f32.mrb[124].mxu1 }
 0x5a7   : > { %v5441_v49 = vmul.f32 %v5439_v38, %v5417_v34  ;;  %v5566_v39 = vmul.f32 %v5564_v23, %v5542_v57  ;;  %v9148_v58 = vpop.f32.mrb[117].mxu0  ;;  %v9173_v21 = vpop.f32.mrb[125].mxu1 }
 0x5a9   : > { %v5571_v35 = vadd.f32 %v5566_v39, %v5441_v49 }
 0x5aa   : > { %v5422_v7 = vpop.f32.mrb[118].mxu0  ;;  %v5547_v56 = vpop.f32.mrb[126].mxu1 }
 0x5ab   : > { %v5442_v59 = vmul.f32 %v5439_v38, %v5422_v7  ;;  %v5567_v3 = vmul.f32 %v5564_v23, %v5547_v56  ;;  %v9151_v14 = vpop.f32.mrb[119].mxu0  ;;  %v9176_v61 = vpop.f32.mrb[127].mxu1 }
 0x5ad   : > { %v5572_v15 = vadd.f32 %v5567_v3, %v5442_v59 }
 0x5ae   : > { %v5427_v36 = vpop.f32.mrb[120].mxu0  ;;  %v5552_v9 = vpop.f32.mrb[128].mxu1 }
 0x5af   : > { %v5443_v29 = vmul.f32 %v5439_v38, %v5427_v36  ;;  %v5568_v12 = vmul.f32 %v5564_v23, %v5552_v9  ;;  %v9154_v31 = vpop.f32.mrb[121].mxu0  ;;  %v9179_v27 = vpop.f32.mrb[129].mxu1 }
 0x5b1   : > { %v5573_v6 = vadd.f32 %v5568_v12, %v5443_v29 }
 0x5b2   : > { %v5432_v41 = vpop.f32.mrb[122].mxu0  ;;  %v5557_v24 = vpop.f32.mrb[130].mxu1 }
 0x5b3   : > { %v5444_v10 = vmul.f32 %v5439_v38, %v5432_v41  ;;  %v5569_v50 = vmul.f32 %v5564_v23, %v5557_v24  ;;  %v9157_v52 = vpop.f32.mrb[123].mxu0  ;;  %v9182_v18 = vpop.f32.mrb[131].mxu1 }
 0x5b5   : > { %v5574_v45 = vadd.f32 %v5569_v50, %v5444_v10 }
 0x5b6   : > { %v5662_v11 = vpop.f32.mrb[124].mxu0  ;;  %v5787_v1 = vpop.f32.mrb[132].mxu1 }
 0x5b7   : > { %v5690_v40 = vmul.f32 %v5689_v30, %v5662_v11  ;;  %v9195_v43 = vpop.f32.mrb[125].mxu0  ;;  %v5815_v26 = vmul.f32 %v5814_v28, %v5787_v1  ;;  %v9220_v62 = vpop.f32.mrb[133].mxu1 }
 0x5b9   : > { %v5695_v54 = vadd.f32 %v5690_v40, %v5570_v17 }
 0x5ba   : > { %v5667_v34 = vpop.f32.mrb[126].mxu0  ;;  %v5792_v57 = vpop.f32.mrb[134].mxu1 }
 0x5bb   : > { %v5820_v38 = vadd.f32 %v5815_v26, %v5695_v54  ;;  %v5691_v23 = vmul.f32 %v5689_v30, %v5667_v34  ;;  %v9198_v49 = vpop.f32.mrb[127].mxu0  ;;  %v5816_v39 = vmul.f32 %v5814_v28, %v5792_v57  ;;  %v9223_v58 = vpop.f32.mrb[135].mxu1 }
 0x5bd   : > { %v5696_v60 = vadd.f32 %v5691_v23, %v5571_v35  ;;  %v5939_v35 = vrot.slane %v12703_v53, %v12026_v2 }
 0x5be   : > { %v5672_v21 = vpop.f32.mrb[128].mxu0  ;;  %v5797_v7 = vpop.f32.mrb[136].mxu1 }
 0x5bf   : > { %v5821_v56 = vadd.f32 %v5816_v39, %v5696_v60  ;;  %v5692_v63 = vmul.f32 %v5689_v30, %v5672_v21  ;;  %v9201_v59 = vpop.f32.mrb[129].mxu0  ;;  %v5817_v3 = vmul.f32 %v5814_v28, %v5797_v7  ;;  %v9226_v14 = vpop.f32.mrb[137].mxu1 }
 0x5c1   : > { %v5697_v61 = vadd.f32 %v5692_v63, %v5572_v15  ;;  %v6064_v15 = vrot.slane %v12703_v53, %v12032_v5 }
 0x5c2   : > { %v5677_v36 = vpop.f32.mrb[130].mxu0  ;;  %v5802_v9 = vpop.f32.mrb[138].mxu1 }
 0x5c3   : > { %v5822_v29 = vadd.f32 %v5817_v3, %v5697_v61  ;;  %v5693_v17 = vmul.f32 %v5689_v30, %v5677_v36  ;;  %v9204_v12 = vpop.f32.mrb[131].mxu0  ;;  %v5818_v31 = vmul.f32 %v5814_v28, %v5802_v9  ;;  %v9229_v27 = vpop.f32.mrb[139].mxu1 }
 0x5c5   : > { %v5698_v41 = vadd.f32 %v5693_v17, %v5573_v6 }
 0x5c6   : > { %v5682_v24 = vpop.f32.mrb[132].mxu0  ;;  %v5807_v10 = vpop.f32.mrb[140].mxu1 }
 0x5c7   : > { %v5823_v50 = vadd.f32 %v5818_v31, %v5698_v41  ;;  %v5694_v52 = vmul.f32 %v5689_v30, %v5682_v24  ;;  %v9207_v18 = vpop.f32.mrb[133].mxu0  ;;  %v5819_v11 = vmul.f32 %v5814_v28, %v5807_v10  ;;  %v9232_v1 = vpop.f32.mrb[141].mxu1 }
 0x5c9   : > { %v5699_v40 = vadd.f32 %v5694_v52, %v5574_v45 }
 0x5ca   : > { %v5912_v43 = vpop.f32.mrb[134].mxu0  ;;  %v6037_v26 = vpop.f32.mrb[142].mxu1 }
 0x5cb   : > { %v5824_v62 = vadd.f32 %v5819_v11, %v5699_v40  ;;  %v5940_v54 = vmul.f32 %v5939_v35, %v5912_v43  ;;  %v9245_v34 = vpop.f32.mrb[135].mxu0  ;;  %v6065_v6 = vmul.f32 %v6064_v15, %v6037_v26  ;;  %v9270_v57 = vpop.f32.mrb[143].mxu1 }
 0x5cd   : > { %v5945_v23 = vadd.f32 %v5940_v54, %v5820_v38 }
 0x5ce   : > { %v5917_v49 = vpop.f32.mrb[136].mxu0  ;;  %v6042_v39 = vpop.f32.mrb[144].mxu1 }
 0x5cf   : > { %v6070_v2 = vadd.f32 %v6065_v6, %v5945_v23  ;;  %v5941_v58 = vmul.f32 %v5939_v35, %v5917_v49  ;;  %v9248_v30 = vpop.f32.mrb[137].mxu0  ;;  %v6066_v60 = vmul.f32 %v6064_v15, %v6042_v39  ;;  %v9273_v28 = vpop.f32.mrb[145].mxu1 }
 0x5d1   : > { %v5946_v21 = vadd.f32 %v5941_v58, %v5821_v56  ;;  %v6189_v56 = vrot.slane %v12703_v53, %v12060_v37 }
 0x5d2   : > { %v5922_v7 = vpop.f32.mrb[138].mxu0  ;;  %v6047_v63 = vpop.f32.mrb[146].mxu1 }
 0x5d3   : > { %v6071_v5 = vadd.f32 %v6066_v60, %v5946_v21  ;;  %v5942_v45 = vmul.f32 %v5939_v35, %v5922_v7  ;;  %v9251_v59 = vpop.f32.mrb[139].mxu0  ;;  %v6067_v3 = vmul.f32 %v6064_v15, %v6047_v63  ;;  %v9276_v14 = vpop.f32.mrb[147].mxu1 }
 0x5d5   : > { %v5947_v61 = vadd.f32 %v5942_v45, %v5822_v29  ;;  %v6314_v29 = vrot.slane %v12703_v53, %v12066_v47 }
 0x5d6   : > { %v5927_v36 = vpop.f32.mrb[140].mxu0  ;;  %v6052_v9 = vpop.f32.mrb[148].mxu1 }
 0x5d7   : > { %v6072_v17 = vadd.f32 %v6067_v3, %v5947_v61  ;;  %v5943_v38 = vmul.f32 %v5939_v35, %v5927_v36  ;;  %v9254_v12 = vpop.f32.mrb[141].mxu0  ;;  %v6068_v31 = vmul.f32 %v6064_v15, %v6052_v9  ;;  %v9279_v27 = vpop.f32.mrb[149].mxu1 }
 0x5d9   : > { %v5948_v41 = vadd.f32 %v5943_v38, %v5823_v50 }
 0x5da   : > { %v5932_v24 = vpop.f32.mrb[142].mxu0  ;;  %v6057_v10 = vpop.f32.mrb[150].mxu1 }
 0x5db   : > { %v6073_v52 = vadd.f32 %v6068_v31, %v5948_v41  ;;  %v5944_v18 = vmul.f32 %v5939_v35, %v5932_v24  ;;  %v9257_v11 = vpop.f32.mrb[143].mxu0  ;;  %v6069_v1 = vmul.f32 %v6064_v15, %v6057_v10  ;;  %v9282_v40 = vpop.f32.mrb[151].mxu1 }
 0x5dc   : > { %v7763_v11 = vld [vmem:[%s12873_s11 + $0x8] ss:$0 sm:$0xff] }
 0x5dd   : > { %v5949_v43 = vadd.f32 %v5944_v18, %v5824_v62 }
 0x5de   : > { %v6162_v26 = vpop.f32.mrb[144].mxu0  ;;  %v6287_v54 = vpop.f32.mrb[152].mxu1 }
 0x5df   : > { %v6074_v34 = vadd.f32 %v6069_v1, %v5949_v43  ;;  %v6190_v6 = vmul.f32 %v6189_v56, %v6162_v26  ;;  %v9295_v57 = vpop.f32.mrb[145].mxu0  ;;  %v6315_v50 = vmul.f32 %v6314_v29, %v6287_v54  ;;  %v9320_v23 = vpop.f32.mrb[153].mxu1 }
 0x5e1   : > { %v6195_v49 = vadd.f32 %v6190_v6, %v6070_v2  ;;  %v7764_v6 = vld [vmem:[#allocation9] ss:$0 sm:$0xff] }
 0x5e2   : > { %v6167_v39 = vpop.f32.mrb[146].mxu0  ;;  %v6292_v58 = vpop.f32.mrb[154].mxu1 }
 0x5e3   : > { %v6320_v37 = vadd.f32 %v6315_v50, %v6195_v49  ;;  %v6191_v30 = vmul.f32 %v6189_v56, %v6167_v39  ;;  %v9298_v35 = vpop.f32.mrb[147].mxu0  ;;  %v6316_v60 = vmul.f32 %v6314_v29, %v6292_v58  ;;  %v9323_v15 = vpop.f32.mrb[155].mxu1 }
 0x5e5   : > { %v6196_v28 = vadd.f32 %v6191_v30, %v6071_v5 }
 0x5e6   : > { %v6172_v21 = vpop.f32.mrb[148].mxu0  ;;  %v6297_v7 = vpop.f32.mrb[156].mxu1 }
 0x5e7   : > { %v6321_v47 = vadd.f32 %v6316_v60, %v6196_v28  ;;  %v6192_v53 = vmul.f32 %v6189_v56, %v6172_v21  ;;  %v9301_v62 = vpop.f32.mrb[149].mxu0  ;;  %v6317_v63 = vmul.f32 %v6314_v29, %v6297_v7  ;;  %v9326_v45 = vpop.f32.mrb[157].mxu1 }
 0x5e9   : > { %v6197_v59 = vadd.f32 %v6192_v53, %v6072_v17 }
 0x5ea   : > { %v6177_v3 = vpop.f32.mrb[150].mxu0  ;;  %v6302_v14 = vpop.f32.mrb[158].mxu1 }
 0x5eb   : > { %v6322_v61 = vadd.f32 %v6317_v63, %v6197_v59  ;;  %v6193_v2 = vmul.f32 %v6189_v56, %v6177_v3  ;;  %v9304_v36 = vpop.f32.mrb[151].mxu0  ;;  %v6318_v9 = vmul.f32 %v6314_v29, %v6302_v14  ;;  %v9329_v38 = vpop.f32.mrb[159].mxu1 }
 0x5ec   : > { %v7765_v38 = vld [vmem:[#allocation10] ss:$0 sm:$0xff] }
 0x5ed   : > { %v6198_v12 = vadd.f32 %v6193_v2, %v6073_v52 }
 0x5ee   : > { %v6182_v31 = vpop.f32.mrb[152].mxu0  ;;  %v6307_v27 = vpop.f32.mrb[160].mxu1 }
 0x5ef   : > { %v6323_v41 = vadd.f32 %v6318_v9, %v6198_v12  ;;  %v6194_v5 = vmul.f32 %v6189_v56, %v6182_v31  ;;  %v9307_v24 = vpop.f32.mrb[153].mxu0  ;;  %v6319_v10 = vmul.f32 %v6314_v29, %v6307_v27  ;;  %v9332_v18 = vpop.f32.mrb[161].mxu1  ;;  %v6617_v9 = vld [vmem:[#allocation13] sm:$0xff] }
 0x5f0   : > { %9388 = vmatprep.mubr.msk.f32.mxu0 %vm5330_vm12, %v6617_v9 }
 0x5f1   : > { %v6199_v17 = vadd.f32 %v6194_v5, %v6074_v34 }
 0x5f2   : > { %v6412_v1 = vpop.f32.mrb[154].mxu0 }
 0x5f3   : > { %v6324_v40 = vadd.f32 %v6319_v10, %v6199_v17  ;;  %v6440_v43 = vmul.f32 %v7763_v11, %v6412_v1  ;;  %v9345_v26 = vpop.f32.mrb[155].mxu0 }
 0x5f5   : > { %v6445_v54 = vadd.f32 %v6440_v43, %v6320_v37 }
 0x5f6   : > { %v6417_v57 = vpop.f32.mrb[156].mxu0 }
 0x5f7   : > { %v6441_v52 = vmul.f32 %v7763_v11, %v6417_v57  ;;  %v9348_v50 = vpop.f32.mrb[157].mxu0  ;;  %v6457_v23 = vadd.f32 %v7764_v6, %v6445_v54 }
 0x5f9   : > { %v6446_v49 = vadd.f32 %v6441_v52, %v6321_v47  ;;  %v6462_v30 = vmax.f32 %v6457_v23, 0.0 }
 0x5fa   : > { %v6422_v56 = vpop.f32.mrb[158].mxu0 }
 0x5fb   : > { %v6458_v39 = vadd.f32 %v7764_v6, %v6446_v49  ;;  %v6442_v29 = vmul.f32 %v7763_v11, %v6422_v56  ;;  %v9351_v58 = vpop.f32.mrb[159].mxu0 }
 0x5fd   : > { %v6463_v35 = vmax.f32 %v6458_v39, 0.0  ;;  %v6447_v60 = vadd.f32 %v6442_v29, %v6322_v61 }
 0x5fe   : > { %v6427_v15 = vpop.f32.mrb[160].mxu0 }
 0x5ff   : > { %v6467_v34 = vpack.c.bf16 %v6463_v35, %v6462_v30  ;;  %v6443_v28 = vmul.f32 %v7763_v11, %v6427_v15  ;;  %v9354_v21 = vpop.f32.mrb[161].mxu0  ;;  %v6459_v7 = vadd.f32 %v7764_v6, %v6447_v60 }
 0x601   : > { %v6448_v53 = vadd.f32 %v6443_v28, %v6323_v41  ;;  %9367 = vmatmul.mubr.msk.bf16.vlgmr.msra.gmra.mrb[164].mxu1 %vm997_vm0, %v6467_v34  ;;  %v6464_v45 = vmax.f32 %v6459_v7, 0.0 }
 0x602   : > { %v6432_v37 = vpop.f32.mrb[162].mxu0  ;;  %9370 = vmatprep.mubr.msk.bf16.mxu1 %vm10398_vm1, %v12944_v25 }
 0x603   : > { %v6460_v47 = vadd.f32 %v7764_v6, %v6448_v53  ;;  %v6444_v62 = vmul.f32 %v7763_v11, %v6432_v37  ;;  %v9357_v63 = vpop.f32.mrb[163].mxu0 }
 0x605   : > { %v6465_v59 = vmax.f32 %v6460_v47, 0.0  ;;  %v6449_v3 = vadd.f32 %v6444_v62, %v6324_v40 }
 0x607   : > { %v6468_v14 = vpack.c.bf16 %v6465_v59, %v6464_v45  ;;  %v6461_v61 = vadd.f32 %v7764_v6, %v6449_v3 }
 0x609   : > { %9371 = vmatmul.mubr.msk.bf16.gmra.mrb[168].mxu1 %vm997_vm0, %v6468_v14  ;;  %v6466_v2 = vmax.f32 %v6461_v61, 0.0 }
 0x60a   : > { %9374 = vmatprep.mubr.msk.bf16.mxu1 %vm10398_vm1, %v12944_v25 }
 0x60b   : > { %v6469_v36 = vpack.c.bf16 %v6466_v2, %v6466_v2 }
 0x611   : > { %9375 = vmatmul.mubr.msk.bf16.gmra.mrb[172].mxu1 %vm997_vm0, %v6469_v36 }
 0x6d4   : > { %v6552_v12 = vpop.f32.mrb[164].mxu1 }
 0x6d5   : > { %v6553_v31 = vadd.f32 %v7765_v38, %v6552_v12  ;;  %v9368_v27 = vpop.f32.mrb[165].mxu1  ;;  %v6619_v12 = vld [vmem:[#allocation13 + $0x10] sm:$0xff] }
 0x6d6   : > { %v6555_v41 = vpop.f32.mrb[166].mxu1  ;;  %v6606_v27 = vld [vmem:[#allocation12 + $0x10] sm:$0xff] }
 0x6d7   : > { %v7773_v5 = vmul.f32 -1.442695, %v6553_v31  ;;  %v6556_v24 = vadd.f32 %v7765_v38, %v6555_v41  ;;  %v9369_v10 = vpop.f32.mrb[167].mxu1  ;;  %v6605_v31 = vld [vmem:[#allocation12 + $0x8] sm:$0xff]  ;;  %v6607_v41 = vld [vmem:[#allocation12 + $0x18] sm:$0xff] }
 0x6d8   : > { %v6610_v10 = vld [vmem:[#allocation12 + $0x30] sm:$0xff] }
 0x6d9   : > { %10119 = vpow2.f32 %v7773_v5  ;;  %v7774_v18 = vmul.f32 -1.442695, %v6556_v24  ;;  %v6608_v5 = vld [vmem:[#allocation12 + $0x20] sm:$0xff]  ;;  %v6609_v24 = vld [vmem:[#allocation12 + $0x28] sm:$0xff] }
 0x6db   : > { %10121 = vpow2.f32 %v7774_v18  ;;  %v6611_v18 = vld [vmem:[#allocation12 + $0x38] sm:$0xff] }
 0x6dc   : > { %v6560_v11 = vpop.f32.mrb[168].mxu1 }
 0x6dd   : > { %v6561_v25 = vadd.f32 %v7765_v38, %v6560_v11  ;;  %v9372_v17 = vpop.f32.mrb[169].mxu1  ;;  %v10085_v11 = vld [vmem:[%s12945_s20] sm:$0xff]  }
 0x6de   : > { %v6563_v1 = vpop.f32.mrb[170].mxu1  ;;  %9422 = vmatprep.subr.bf16.mxu1 %v10085_v11  ;;  %v10087_v17 = vld [vmem:[%s12946_s23 + $0x10] sm:$0xff]  }
 0x6df   : > { %v7775_v40 = vmul.f32 -1.442695, %v6561_v25  ;;  %v6564_v43 = vadd.f32 %v7765_v38, %v6563_v1  ;;  %v9373_v26 = vpop.f32.mrb[171].mxu1  ;;  %v10086_v25 = vld [vmem:[%s12946_s23 + $0x8] sm:$0xff]   ;;  %9423 = vmatpush3.bf16.msra.mxu1 %v10085_v11  ;;  %v10088_v1 = vld [vmem:[%s12946_s23 + $0x18] sm:$0xff]  }
 0x6e0   : > { %9424 = vmatprep.subr.bf16.mxu1 %v10086_v25  ;;  %v10091_v26 = vld [vmem:[%s12946_s23 + $0x30] sm:$0xff]  }
 0x6e1   : > { %10123 = vpow2.f32 %v7775_v40  ;;  %v7776_v54 = vmul.f32 -1.442695, %v6564_v43  ;;  %v10089_v40 = vld [vmem:[%s12946_s23 + $0x20] sm:$0xff]   ;;  %v10090_v43 = vld [vmem:[%s12946_s23 + $0x28] sm:$0xff]  }
 0x6e3   : > { %v10120_v6 = vpop.eup %10119  ;;  %10125 = vpow2.f32 %v7776_v54  ;;  %9425 = vmatpush3.bf16.msra.mxu1 %v10086_v25  ;;  %v10092_v54 = vld [vmem:[%s12946_s23 + $0x38] sm:$0xff]  }
 0x6e4   : > { %v6589_v57 = vadd.f32 1.0, %v10120_v6  ;;  %v6568_v52 = vpop.f32.mrb[172].mxu1  ;;  %9426 = vmatprep.subr.bf16.mxu1 %v10087_v17 }
 0x6e5   : > { %v10122_v50 = vpop.eup %10121  ;;  %v6569_v23 = vadd.f32 %v7765_v38, %v6568_v52  ;;  %v9376_v49 = vpop.f32.mrb[173].mxu1  ;;  %v6618_v38 = vld [vmem:[#allocation13 + $0x8] sm:$0xff] }
 0x6e6   : > { %10127 = vrcp.f32 %v6589_v57  ;;  %v6590_v56 = vadd.f32 1.0, %v10122_v50  ;;  %v6571_v39 = vpop.f32.mrb[174].mxu1 }
 0x6e7   : > { %v7777_v29 = vmul.f32 -1.442695, %v6569_v23  ;;  %v9377_v58 = vpop.f32.mrb[175].mxu1  ;;  %9427 = vmatpush3.bf16.msra.mxu1 %v10087_v17 }
 0x6e8   : > { %10129 = vrcp.f32 %v6590_v56  ;;  %9428 = vmatprep.subr.bf16.mxu1 %v10088_v1 }
 0x6e9   : > { %10131 = vpow2.f32 %v7777_v29 }
 0x6eb   : > { %v10124_v30 = vpop.eup %10123  ;;  %9429 = vmatpush3.bf16.msra.mxu1 %v10088_v1 }
 0x6ec   : > { %v6591_v35 = vadd.f32 1.0, %v10124_v30  ;;  %9430 = vmatprep.subr.bf16.mxu1 %v10089_v40 }
 0x6ed   : > { %v10126_v60 = vpop.eup %10125 }
 0x6ee   : > { %10133 = vrcp.f32 %v6591_v35  ;;  %v6592_v15 = vadd.f32 1.0, %v10126_v60 }
 0x6ef   : > { %9431 = vmatpush3.bf16.msra.mxu1 %v10089_v40 }
 0x6f0   : > { %v10128_v34 = vpop.eup %10127  ;;  %10135 = vrcp.f32 %v6592_v15  ;;  %9432 = vmatprep.subr.bf16.mxu1 %v10090_v43 }
 0x6f1   : > { %v6625_v28 = vmul.f32 %v10128_v34, %v12326_v8  ;;  %v6612_v21 = vmul.f32 %v10128_v34, %v12287_v13 }
 0x6f2   : > { %v10130_v7 = vpop.eup %10129 }
 0x6f3   : > { %v10132_v53 = vpop.eup %10131  ;;  %v6626_v37 = vmul.f32 %v10130_v7, %v12334_v22  ;;  %v6613_v47 = vmul.f32 %v10130_v7, %v12291_v48  ;;  %9433 = vmatpush3.bf16.msra.mxu1 %v10090_v43 }
 0x6f4   : > { %v6593_v62 = vadd.f32 1.0, %v10132_v53  ;;  %9434 = vmatprep.subr.bf16.mxu1 %v10091_v26 }
 0x6f5   : > { %v9924_v63 = vpack.c.bf16 %v6626_v37, %v6625_v28  ;;  %v9932_v45 = vpack.c.bf16 %v6613_v47, %v6612_v21 }
 0x6f6   : > { %10137 = vrcp.f32 %v6593_v62 }
 0x6f7   : > { %9925 = vmatprep.subr.bf16.mxu0 %v9924_v63  ;;  %9435 = vmatpush3.bf16.msra.mxu1 %v10091_v26 }
 0x6f8   : > { %v10134_v59 = vpop.eup %10133  ;;  %9927 = vmatpush3.bf16.msra.mxu0 %v9924_v63  ;;  %9436 = vmatprep.subr.bf16.mxu1 %v10092_v54 }
 0x6f9   : > { %v6627_v3 = vmul.f32 %v10134_v59, %v12342_v4  ;;  %v6614_v14 = vmul.f32 %v10134_v59, %v12295_v46  ;;  %v6620_v46 = vld [vmem:[#allocation13 + $0x18] sm:$0xff]  ;;  %v6622_v4 = vld [vmem:[#allocation13 + $0x28] sm:$0xff] }
 0x6fa   : > { %v10136_v8 = vpop.eup %10135 }
 0x6fb   : > { %v6628_v13 = vmul.f32 %v10136_v8, %v12348_v19  ;;  %v6615_v61 = vmul.f32 %v10136_v8, %v12301_v20  ;;  %v6621_v20 = vld [vmem:[#allocation13 + $0x20] sm:$0xff]  ;;  %v6624_v19 = vld [vmem:[#allocation13 + $0x38] sm:$0xff]  ;;  %9437 = vmatpush3.bf16.msra.mxu1 %v10092_v54 }
 0x6fc   : > { %v12951_v54 = vld [vmem:[#allocation29_spill] sm:$0xff] }
 0x6fd   : > { %v9928_v2 = vpack.c.bf16 %v6628_v13, %v6627_v3  ;;  %v9936_v22 = vpack.c.bf16 %v6615_v61, %v6614_v14 }
 0x6ff   : > { %9929 = vmatprep.subr.bf16.mxu0 %v9928_v2 }
 0x700   : > { %v10138_v48 = vpop.eup %10137  ;;  %9931 = vmatpush3.bf16.msra.mxu0 %v9928_v2 }
 0x701   : > { %v6629_v36 = vmul.f32 %v10138_v48, %v12354_v0  ;;  %v6616_v9 = vmul.f32 %v10138_v48, %v12307_v16  ;;  %v6623_v16 = vld [vmem:[#allocation13 + $0x30] sm:$0xff]  ;;  %v6604_v0 = vld [vmem:[#allocation12] sm:$0xff] }
 0x703   : > { %9386 = vmatprep.subr.mxu0 %v6629_v36 }
 0x704   : > { %9387 = vmatpush3.msra.mxu0 %v6629_v36 }
 0x705   : > { %9389 = vmatmul.mubr.msk.f32.vlgmr.msra.gmra.mrb[164].mxu0 %vm5330_vm12, %v6618_v38  ;;  %9933 = vmatprep.subr.bf16.mxu0 %v9932_v45 }
 0x706   : > { %9935 = vmatpush3.bf16.msra.mxu0 %v9932_v45  ;;  %9391 = vmatprep.mubr.msk.f32.mxu0 %vm5330_vm12, %v6619_v12  ;;  %v7794_v12 = vld [vmem:[%s12948_s27] ss:$0 sm:$0xff]  ;;  %s10313_s27 = scalar_lea.vmem %s10312_s19, 2048 }
 0x707   : > { %9937 = vmatprep.subr.bf16.mxu0 %v9936_v22 }
 0x709   : > { %9392 = vmatmul.mubr.msk.f32.gmra.mrb[166].mxu0 %vm5330_vm12, %v6620_v46 }
 0x70a   : > { %9939 = vmatpush3.bf16.msra.mxu0 %v9936_v22  ;;  %9394 = vmatprep.mubr.msk.f32.mxu0 %vm5330_vm12, %v6621_v20 }
 0x70b   : > { %9408 = vmatprep.subr.mxu0 %v6616_v9 }
 0x70d   : > { %9395 = vmatmul.mubr.msk.f32.gmra.mrb[168].mxu0 %vm5330_vm12, %v6622_v4 }
 0x70e   : > { %9409 = vmatpush3.msra.mxu0 %v6616_v9  ;;  %9397 = vmatprep.mubr.msk.f32.mxu0 %vm5330_vm12, %v6623_v16 }
 0x711   : > { %9398 = vmatmul.mubr.msk.f32.gmra.mrb[170].mxu0 %vm5330_vm12, %v6624_v19 }
 0x712   : > { %9410 = vmatprep.mubr.msk.f32.mxu0 %vm5330_vm12, %v6604_v0 }
 0x715   : > { %9411 = vmatmul.mubr.msk.f32.vlgmr.msra.gmra.mrb[164].mxu0 %vm5330_vm12, %v6605_v31 }
 0x716   : > { %9413 = vmatprep.mubr.msk.f32.mxu0 %vm5330_vm12, %v6606_v27 }
 0x719   : > { %9414 = vmatmul.mubr.msk.f32.gmra.mrb[166].mxu0 %vm5330_vm12, %v6607_v41 }
 0x71a   : > { %9416 = vmatprep.mubr.msk.f32.mxu0 %vm5330_vm12, %v6608_v5 }
 0x71d   : > { %9417 = vmatmul.mubr.msk.f32.gmra.mrb[168].mxu0 %vm5330_vm12, %v6609_v24 }
 0x71e   : > { %9419 = vmatprep.mubr.msk.f32.mxu0 %vm5330_vm12, %v6610_v10 }
 0x721   : > { %9420 = vmatmul.mubr.msk.f32.gmra.mrb[170].mxu0 %vm5330_vm12, %v6611_v18 }
 0x7e8   : > { %v9412_v6 = vpop.f32.mrb[164].mxu0 }
 0x7e9   : > { %v6889_v57 = vmax.f32 %v9412_v6, 0.0  ;;  %v6849_v52 = vpop.f32.mrb[165].mxu0 }
 0x7ea   : > { %v6888_v50 = vmax.f32 %v6849_v52, 0.0 }
 0x7eb   : > { %6906 = vrot.lane.b32.xlu1 %v6889_v57, %s10396_s2 }
 0x7ec   : > { %6904 = vrot.lane.b32.xlu0 %v6888_v50, %s10396_s2  ;;  %v9415_v23 = vpop.f32.mrb[166].mxu0 }
 0x7ed   : > { %v6891_v49 = vmax.f32 %v9415_v23, 0.0  ;;  %v6859_v56 = vpop.f32.mrb[167].mxu0 }
 0x7ee   : > { %v6890_v39 = vmax.f32 %v6859_v56, 0.0 }
 0x7ef   : > { %6910 = vrot.lane.b32.xlu1 %v6891_v49, %s10396_s2 }
 0x7f0   : > { %6908 = vrot.lane.b32.xlu0 %v6890_v39, %s10396_s2  ;;  %v9418_v29 = vpop.f32.mrb[168].mxu0 }
 0x7f1   : > { %v6893_v58 = vmax.f32 %v9418_v29, 0.0  ;;  %v6869_v30 = vpop.f32.mrb[169].mxu0 }
 0x7f2   : > { %v6892_v35 = vmax.f32 %v6869_v30, 0.0 }
 0x7f3   : > { %6914 = vrot.lane.b32.xlu1 %v6893_v58, %s10396_s2 }
 0x7f4   : > { %6912 = vrot.lane.b32.xlu0 %v6892_v35, %s10396_s2  ;;  %v9421_v60 = vpop.f32.mrb[170].mxu0 }
 0x7f5   : > { %v6895_v15 = vmax.f32 %v9421_v60, 0.0  ;;  %v6879_v34 = vpop.f32.mrb[171].mxu0 }
 0x7f6   : > { %v6894_v28 = vmax.f32 %v6879_v34, 0.0 }
 0x7f7   : > { %6918 = vrot.lane.b32.xlu1 %v6895_v15, %s10396_s2 }
 0x7f8   : > { %6916 = vrot.lane.b32.xlu0 %v6894_v28, %s10396_s2  ;;  %s12947_s2 = sld [smem:[#allocation22_spill]] }
 0x7fe   : > { %s675_s30 = sand.u32 1, %s12947_s2  }
 0x7ff   : > { %s7253_s22 = sshll.u32 %s675_s30, 6  ;;  %s12821_s1 = scalar_lea.sflag [#allocation6], %s675_s30 }
 0x800   : > { %s677_s26 = scalar_lea.vmem [#allocation15], %s7253_s22 }
 0x801   : > { %s7115_s28 = sshll.u32 %s677_s26, 4  ;;  %s12810_s28 = int_to_ptr.vmem [resolvable:$true] %s7115_s28 }
 0x802   : > { %s10307_s20 = scalar_lea.vmem %s12810_s28, 1024  ;;  %p10314_p5 = scmp.lt.s32.totalorder %s12810_s28, %s10312_s19 }
 0x803   : > { %p10308_p13 = scmp.ne.s32.totalorder %s12810_s28, %s10307_s20  ;;  %p10315_p0 = scmp.lt.s32.totalorder %s10313_s27, %s10307_s20 }
 0x805   : > { %p10309_p6 = pnand %p10308_p13, %p12953_p1  ;;  %p10316_p10 = por %p10315_p0, %p10314_p5 }
 0x807   : > { %p10310_p9 = pneg %p10309_p6 }
 0x809   : > { %p10317_p2 = pnand %p10316_p10, %p10310_p9 }
 0x85d   : > { %v6907_v21 = vpop.permute.xlu1 %6906 }
 0x85e   : > { %6930 = vst.msk [vmem:[#allocation3 + $0x8] sm:$0xff] %vm6928_vm13, %v6907_v21  ;;  %v6905_v7 = vpop.permute.xlu0 %6904 }
 0x85f   : > { %6929 = vst.msk [vmem:[#allocation3] sm:$0xff] %vm6928_vm13, %v6905_v7 }
 0x861   : > { %v6911_v53 = vpop.permute.xlu1 %6910 }
 0x862   : > { %6932 = vst.msk [vmem:[#allocation3 + $0x18] sm:$0xff] %vm6928_vm13, %v6911_v53  ;;  %v6909_v37 = vpop.permute.xlu0 %6908 }
 0x863   : > { %6931 = vst.msk [vmem:[#allocation3 + $0x10] sm:$0xff] %vm6928_vm13, %v6909_v37 }
 0x865   : > { %v6915_v47 = vpop.permute.xlu1 %6914  ;;  %v6938_v62 = vld [vmem:[#allocation3 + $0x8] sm:$0xff] }
 0x866   : > { %6934 = vst.msk [vmem:[#allocation3 + $0x28] sm:$0xff] %vm6928_vm13, %v6915_v47  ;;  %v6913_v63 = vpop.permute.xlu0 %6912  ;;  %v6937_v45 = vld [vmem:[#allocation3] sm:$0xff] }
 0x867   : > { %6933 = vst.msk [vmem:[#allocation3 + $0x20] sm:$0xff] %vm6928_vm13, %v6913_v63  ;;  %v6945_v59 = vpack.c.bf16 %v6938_v62, %v6937_v45 }
 0x869   : > { %v6919_v3 = vpop.permute.xlu1 %6918  ;;  %9438 = vmatprep.mubr.bf16.mxu1 %v6945_v59  ;;  %v6940_v14 = vld [vmem:[#allocation3 + $0x18] sm:$0xff] }
 0x86a   : > { %6936 = vst.msk [vmem:[#allocation3 + $0x38] sm:$0xff] %vm6928_vm13, %v6919_v3  ;;  %v6917_v8 = vpop.permute.xlu0 %6916  ;;  %v6939_v13 = vld [vmem:[#allocation3 + $0x10] sm:$0xff] }
 0x86b   : > { %6935 = vst.msk [vmem:[#allocation3 + $0x30] sm:$0xff] %vm6928_vm13, %v6917_v8  ;;  %v6946_v61 = vpack.c.bf16 %v6940_v14, %v6939_v13 }
 0x86d   : > { %9439 = vmatmul.mubr.bf16.vlgmr.msra.gmra.mrb[176].mxu1 %v6946_v61  ;;  %v6942_v2 = vld [vmem:[#allocation3 + $0x28] sm:$0xff] }
 0x86e   : > { %v6941_v22 = vld [vmem:[#allocation3 + $0x20] sm:$0xff] }
 0x86f   : > { %v6947_v48 = vpack.c.bf16 %v6942_v2, %v6941_v22 }
 0x871   : > { %9442 = vmatprep.mubr.bf16.mxu1 %v6947_v48  ;;  %v6944_v36 = vld [vmem:[#allocation3 + $0x38] sm:$0xff] }
 0x872   : > { %v6943_v9 = vld [vmem:[#allocation3 + $0x30] sm:$0xff] }
 0x873   : > { %v6948_v38 = vpack.c.bf16 %v6944_v36, %v6943_v9 }
 0x875   : > { %9443 = vmatmul.mubr.bf16.gmra.mrb[180].mxu1 %v6948_v38 }
 0x940   : > { %v9440_v46 = vpop.f32.mrb[176].mxu1 }
 0x941   : > { %v7063_v20 = vadd.f32 %v9440_v46, %v7794_v12  ;;  %v7054_v4 = vpop.f32.mrb[177].mxu1 }
 0x942   : > { %v7055_v16 = vadd.f32 %v7794_v12, %v7054_v4  ;;  %v9441_v19 = vpop.f32.mrb[178].mxu1 }
 0x943   : > { %v7087_v0 = vadd.f32 %v7063_v20, %v10829_v44  ;;  %v7066_v31 = vadd.f32 %v9441_v19, %v7794_v12  ;;  %v7057_v27 = vpop.f32.mrb[179].mxu1 }
 0x944   : > { %v7085_v41 = vadd.f32 %v7055_v16, %v10817_v32  ;;  %v7058_v5 = vadd.f32 %v7794_v12, %v7057_v27 }
 0x945   : > { %7095 = vst [vmem:[%s677_s26 + $0x10] sm:$0xff] %v7087_v0  ;;  %v7088_v24 = vadd.f32 %v7066_v31, %v10826_v42 }
 0x946   : > { %7093 = vst [vmem:[%s677_s26] sm:$0xff] %v7085_v41  ;;  %v7086_v10 = vadd.f32 %v7058_v5, %v10819_v33  ;;  %v12950_v33 = vld [vmem:[#allocation30_spill] sm:$0xff] }
 0x947   : > { %7096 = vst [vmem:[%s677_s26 + $0x18] sm:$0xff] %v7088_v24 }
 0x948   : > { %7094 = vst [vmem:[%s677_s26 + $0x8] sm:$0xff] %v7086_v10  ;;  %v9444_v18 = vpop.f32.mrb[180].mxu1 }
 0x949   : > { %v7079_v11 = vadd.f32 %v9444_v18, %v7794_v12  ;;  %v7070_v25 = vpop.f32.mrb[181].mxu1 }
 0x94a   : > { %v7071_v44 = vadd.f32 %v7794_v12, %v7070_v25  ;;  %v9445_v17 = vpop.f32.mrb[182].mxu1 }
 0x94b   : > { %v7091_v32 = vadd.f32 %v7079_v11, %v10846_v55  ;;  %v7082_v1 = vadd.f32 %v9445_v17, %v7794_v12  ;;  %v7073_v40 = vpop.f32.mrb[183].mxu1 }
 0x94c   : > { %v7089_v42 = vadd.f32 %v7071_v44, %v10838_v51  ;;  %v7074_v43 = vadd.f32 %v7794_v12, %v7073_v40 }
 0x94d   : > { %7099 = vst [vmem:[%s677_s26 + $0x30] sm:$0xff] %v7091_v32  ;;  %v7092_v26 = vadd.f32 %v7082_v1, %v12950_v33 }
 0x94e   : > { %7097 = vst [vmem:[%s677_s26 + $0x20] sm:$0xff] %v7089_v42  ;;  %v7090_v6 = vadd.f32 %v7074_v43, %v12951_v54 }
 0x94f   : > { %7100 = vst [vmem:[%s677_s26 + $0x38] sm:$0xff] %v7092_v26 }
 0x950   : > { %7098 = vst [vmem:[%s677_s26 + $0x28] sm:$0xff] %v7090_v6 }
 0x951   : > { %10320 = shalt.err (!%p10317_p2)
}
 0x952   : > { %s10321_s2 = scalar_lea.hbm %s12817_s17, 1024  ;;  %s10325_s26 = scalar_lea.hbm %s12952_s24, 2048 }
 0x953   : > { %p10322_p3 = scmp.ne.s32.totalorder %s12817_s17, %s10321_s2  ;;  %p10326_p7 = scmp.lt.u32.totalorder %s12817_s17, %s12952_s24 }
 0x954   : > { %p10327_p8 = scmp.lt.u32.totalorder %s10325_s26, %s10321_s2  ;;  %p10329_p13 = scmp.lt.u32.totalorder %s10321_s2, %s12817_s17 }
 0x955   : > { %p10323_p4 = pnand %p10322_p3, %p12953_p1 }
 0x956   : > { %p10328_p11 = por %p10327_p8, %p10326_p7 }
 0x957   : > { %p10324_p12 = pneg %p10323_p4 }
 0x958   : > { %p10330_p6 = por %p10329_p13, %p10328_p11 }
 0x95a   : > { %p10331_p9 = pnand %p10330_p6, %p10324_p12 }
 0x95c   : > { %10334 = shalt.err (!%p10331_p9)
}
 0x95d   : > { %s10401_s18 = smov 128   ;;  %s10402_s20 = smov 8  }
 0x95e   : > { %9972 = dma.vmem_to_hbm [thread:$0]  (%p12953_p1), %s12810_s28, 1024, %s12817_s17, %s12821_s1, %s10401_s18, %s10401_s18, %s10402_s20  }
 0x95f PF: > { %s12954_s3 = sld [smem:[#allocation24_spill]]  ;;  %s12955_s19 = sld [smem:[#allocation21_spill]] }
 0x960   : > { %s12956_s27 = sld [smem:[#allocation28_spill]] }
 0x965   : > { %p10009_p5 = scmp.ge.s32.totalorder %s12954_s3, 2  ;;  %s7130_s30 = sand.u32 1, %s12955_s19  }
 0x966   : > { %p12957_p0 = scmp.ne.s32.totalorder %s12956_s27, 0  ;;  %s7131_s2 = scalar_lea.sflag [#allocation6], %s7130_s30 }
 0x968   : > { %p9994_p10 = pnand %p10009_p5, %p12957_p0 }
 0x96a   : > { %10368 = dma.done.wait (!%p9994_p10), %s7131_s2, 1024  }
 0x96b   : > { %10370 = vsyncadd (!%p9994_p10), %s7131_s2, 4294966272  ;;  %s12958_s21 = sld [smem:[#allocation25_spill]]  ;;  %s12959_s0 = sld [smem:[#allocation22_spill]] }
 0x96c   : > { %s12960_s30 = sld [smem:[#allocation23_spill]]  ;;  %s12961_s20 = sld [smem:[#allocation26_spill]] }
 0x971   : > { %p33_p2 = scmp.ge.s32.totalorder %s12958_s21, 4  }
 0x973   :  { %35 = sbr.rel (!%p33_p2) target bundleno = 15 (0xf), region = 188 }
 0x97a   :  { %7136 = vsyncpa [#allocation5], 1 }
 0x97b   :  { %7138 = vsyncpa [#allocation5 + $0x1], 1 }
 0x97c   :  { %7139 = vsyncpa [#allocation8], 1 }
 0x97d   :  { %7140 = vsyncpa [#allocation11], 1 }
 0x97e   :  { %7141 = vsyncpa [#allocation14], 1 }
 0x97f   :  { %7142 = vsyncpa [#allocation6], 1 }
 0x980   :  { %7144 = vsyncpa [#allocation6 + $0x1], 1 }

</bundles_post_ra>
